<compile_context>
chip_gen: v6e
topology: v6e:2x2x1
jax: 0.10.0
libtpu: 0.0.40
codegen_flags: <defaults>
</compile_context>

<pallas_src>
import functools

import jax
import jax.numpy as jnp
from jax.experimental import pallas as pl
from jax.experimental.pallas import tpu as pltpu

INPUT_SIZE = 5
IN_PAD = 8          # input feature dim padded to a clean sublane count
HIDDEN_SIZE = 256
OUTPUT_SIZE = 2
OUT_PAD = 128       # lane-dense slab for the final (B*S, 2) logits
NHEAD = 4
NLAYERS = 2
FFN_SIZE = 2048
LN_EPS = 1e-5
HEAD_DIM = HIDDEN_SIZE // NHEAD


# ----------------------------- fused kernel ---------------------------------

def _layernorm(y, g, b, eps=LN_EPS):
    mean = jnp.mean(y, axis=-1, keepdims=True)
    var = jnp.mean(jnp.square(y - mean), axis=-1, keepdims=True)
    return (y - mean) * jax.lax.rsqrt(var + eps) * g + b


def _fused_forward_kernel(
    # inputs (all resident const blocks except x, which is tiled over batch)
    x_ref, fc0_w_ref, fc0_b_ref, fc1_w_ref, fc1_b_ref,
    in_w_ref, in_b_ref, out_w_ref, out_b_ref,
    l1_w_ref, l1_s_ref, l1_b_ref, l2_w_ref, l2_s_ref, l2_b_ref,
    ln1_g_ref, ln1_b_ref, ln2_g_ref, ln2_b_ref,
    # output
    o_ref,
    *, tb, seq,
):
    D = HIDDEN_SIZE
    Dh = HEAD_DIM
    M = tb * seq
    scale = 1.0 / (Dh ** 0.5)

    # fc0: input was zero-padded to IN_PAD features in the wrapper.
    h = jnp.dot(x_ref[...], fc0_w_ref[...],
                preferred_element_type=jnp.float32) + fc0_b_ref[...]      # (M, D) f32

    # Static unroll over the 2 encoder layers -- all weights already resident in VMEM.
    for layer in range(NLAYERS):
        # ---------------- multi-head self-attention -------------------------
        qkv = jnp.dot(h.astype(jnp.bfloat16), in_w_ref[layer],
                      preferred_element_type=jnp.float32) + in_b_ref[layer]   # (M, 3D)
        q = qkv[:, 0 * D:1 * D]
        k = qkv[:, 1 * D:2 * D]
        v = qkv[:, 2 * D:3 * D]

        out_w = out_w_ref[layer]                                  # (D, D) bf16
        attn = jnp.zeros((M, D), jnp.float32)
        for hd in range(NHEAD):                                   # static unroll; lane slices
            sl = slice(hd * Dh, (hd + 1) * Dh)
            qh = (q[:, sl] * scale).astype(jnp.bfloat16).reshape(tb, seq, Dh)
            kh = k[:, sl].astype(jnp.bfloat16).reshape(tb, seq, Dh)
            vh = v[:, sl].astype(jnp.bfloat16).reshape(tb, seq, Dh)
            s = jnp.einsum('bqd,bkd->bqk', qh, kh,
                           preferred_element_type=jnp.float32)
            s = s - jnp.max(s, axis=-1, keepdims=True)
            p = jnp.exp(s)
            # approx reciprocal -> EUP slot; final output softmax renormalizes exactly.
            p = p * pl.reciprocal(jnp.sum(p, axis=-1, keepdims=True), approx=True)
            oh = jnp.einsum('bqk,bkd->bqd', p.astype(jnp.bfloat16), vh,
                            preferred_element_type=jnp.float32)
            # per-head out-projection accumulate (no concat relayout)
            attn = attn + jnp.dot(oh.reshape(M, Dh).astype(jnp.bfloat16),
                                  out_w[sl, :],
                                  preferred_element_type=jnp.float32)
        attn = attn + out_b_ref[layer]
        h = _layernorm(h + attn, ln1_g_ref[layer], ln1_b_ref[layer])      # norm1(x + attn)

        # ---------------- feed-forward (int8 weights, bf16 MXU, f32 acc) ----
        w1 = l1_w_ref[layer].astype(jnp.bfloat16)                 # int8 -> bf16 dequant (scale below)
        ff = jnp.dot(h.astype(jnp.bfloat16), w1,
                     preferred_element_type=jnp.float32)
        ff = ff * l1_s_ref[layer] + l1_b_ref[layer]               # per-out-channel scale
        ff = jnp.maximum(ff, 0.0)                                 # ReLU
        w2 = l2_w_ref[layer].astype(jnp.bfloat16)
        ff = jnp.dot(ff.astype(jnp.bfloat16), w2,
                     preferred_element_type=jnp.float32)
        ff = ff * l2_s_ref[layer] + l2_b_ref[layer]
        h = _layernorm(h + ff, ln2_g_ref[layer], ln2_b_ref[layer])        # norm2(x + ff)

    # ---------------- fc1 + softmax on lane-dense 128-wide slab -------------
    logits = jnp.dot(h.astype(jnp.bfloat16), fc1_w_ref[...],
                     preferred_element_type=jnp.float32) + fc1_b_ref[...]
    col = jax.lax.broadcasted_iota(jnp.int32, logits.shape, 1)
    logits = jnp.where(col < OUTPUT_SIZE, logits, -1e30)          # mask padded lanes
    m = jnp.max(logits, axis=-1, keepdims=True)
    e = jnp.exp(logits - m)
    o_ref[...] = (e / jnp.sum(e, axis=-1, keepdims=True)).astype(o_ref.dtype)


# ----------------------------- wrapper ---------------------------------------

def _pick_batch_tile(B, S, target_rows=512):
    """Largest TB dividing B with TB*S <= target_rows and sublane-aligned rows."""
    cands = [tb for tb in range(1, B + 1)
             if B % tb == 0 and tb * S <= target_rows and (tb * S) % 8 == 0]
    return max(cands) if cands else B   # fall back to a single full-array tile


def lstm_policy_forward(params, x):
    """x: (B, S, input_size) -> (B, S, output_size), softmax over last dim."""
    B, S, _ = x.shape
    M = B * S
    D, F = HIDDEN_SIZE, FFN_SIZE
    TB = _pick_batch_tile(B, S)
    TM = TB * S

    x2d = x.reshape(M, INPUT_SIZE)
    x2d = jnp.pad(x2d, ((0, 0), (0, IN_PAD - INPUT_SIZE)))

    def const_spec(shape):
        nd = len(shape)
        return pl.BlockSpec(shape, lambda i, _nd=nd: (0,) * _nd)

    out = pl.pallas_call(
        functools.partial(_fused_forward_kernel, tb=TB, seq=S),
        out_shape=jax.ShapeDtypeStruct((M, OUT_PAD), jnp.float32),
        grid=(B // TB,),
        in_specs=[
            pl.BlockSpec((TM, IN_PAD), lambda i: (i, 0)),   # x (tiled over batch)
            const_spec((IN_PAD, D)),                        # fc0_w
            const_spec((1, D)),                             # fc0_b
            const_spec((D, OUT_PAD)),                       # fc1_w (bf16, lane-padded)
            const_spec((1, OUT_PAD)),                       # fc1_b
            const_spec((NLAYERS, D, 3 * D)),                # in_proj_w  (bf16, resident)
            const_spec((NLAYERS, 1, 3 * D)),                # in_proj_b
            const_spec((NLAYERS, D, D)),                    # out_proj_w (bf16, resident)
            const_spec((NLAYERS, 1, D)),                    # out_proj_b
            const_spec((NLAYERS, D, F)),                    # lin1_w     (int8, resident)
            const_spec((NLAYERS, 1, F)),                    # lin1_scale (f32)
            const_spec((NLAYERS, 1, F)),                    # lin1_b
            const_spec((NLAYERS, F, D)),                    # lin2_w     (int8, resident)
            const_spec((NLAYERS, 1, D)),                    # lin2_scale (f32)
            const_spec((NLAYERS, 1, D)),                    # lin2_b
            const_spec((NLAYERS, 1, D)),                    # ln1_g
            const_spec((NLAYERS, 1, D)),                    # ln1_b
            const_spec((NLAYERS, 1, D)),                    # ln2_g
            const_spec((NLAYERS, 1, D)),                    # ln2_b
        ],
        out_specs=pl.BlockSpec((TM, OUT_PAD), lambda i: (i, 0)),
        compiler_params=pltpu.CompilerParams(
            dimension_semantics=("parallel",),              # batch tiles shard across TCs
            vmem_limit_bytes=48 * 1024 * 1024,              # fits v7x (64 MiB) with headroom
        ),
    )(
        x2d,
        params["fc0_w"], params["fc0_b"], params["fc1_w"], params["fc1_b"],
        params["in_proj_w"], params["in_proj_b"],
        params["out_proj_w"], params["out_proj_b"],
        params["lin1_w"], params["lin1_s"], params["lin1_b"],
        params["lin2_w"], params["lin2_s"], params["lin2_b"],
        params["ln1_g"], params["ln1_b"], params["ln2_g"], params["ln2_b"],
    )
    return out[:, :OUTPUT_SIZE].reshape(B, S, OUTPUT_SIZE)


# ----------------------------- parameters ------------------------------------

def _quantize_per_out_channel(w):
    """Symmetric int8 quantization, scale per output channel (last dim)."""
    s = jnp.max(jnp.abs(w), axis=-2, keepdims=True) / 127.0
    s = jnp.maximum(s, 1e-8)
    q = jnp.clip(jnp.round(w / s), -127.0, 127.0).astype(jnp.int8)
    return q, s


def init_params(key):
    keys = jax.random.split(key, 6)
    D, F = HIDDEN_SIZE, FFN_SIZE

    def w(kk, shape, scale=0.02):
        return scale * jax.random.normal(kk, shape, jnp.float32)

    # fc0: (input_size, D) zero-padded to IN_PAD rows (matches padded input features).
    fc0_w = jnp.zeros((IN_PAD, D), jnp.float32)
    fc0_w = fc0_w.at[:INPUT_SIZE].set(w(keys[0], (INPUT_SIZE, D)))

    # FFN weights: int8 + per-output-channel f32 scales (dominant weight bytes).
    lin1 = w(keys[3], (NLAYERS, D, F))
    lin1_q, lin1_s = _quantize_per_out_channel(lin1)
    lin2 = w(keys[4], (NLAYERS, F, D))
    lin2_q, lin2_s = _quantize_per_out_channel(lin2)

    # fc1: (D, output_size) padded to a 128-lane slab, bf16; padded cols masked in-kernel.
    fc1_w = w(keys[5], (D, OUTPUT_SIZE))
    fc1_w = jnp.pad(fc1_w, ((0, 0), (0, OUT_PAD - OUTPUT_SIZE))).astype(jnp.bfloat16)

    return {
        "fc0_w": fc0_w,
        "fc0_b": jnp.zeros((1, D), jnp.float32),
        "fc1_w": fc1_w,
        "fc1_b": jnp.zeros((1, OUT_PAD), jnp.float32),
        "in_proj_w": w(keys[1], (NLAYERS, D, 3 * D)).astype(jnp.bfloat16),
        "in_proj_b": jnp.zeros((NLAYERS, 1, 3 * D), jnp.float32),
        "out_proj_w": w(keys[2], (NLAYERS, D, D)).astype(jnp.bfloat16),
        "out_proj_b": jnp.zeros((NLAYERS, 1, D), jnp.float32),
        "lin1_w": lin1_q, "lin1_s": lin1_s,
        "lin1_b": jnp.zeros((NLAYERS, 1, F), jnp.float32),
        "lin2_w": lin2_q, "lin2_s": lin2_s,
        "lin2_b": jnp.zeros((NLAYERS, 1, D), jnp.float32),
        "ln1_g": jnp.ones((NLAYERS, 1, D), jnp.float32),
        "ln1_b": jnp.zeros((NLAYERS, 1, D), jnp.float32),
        "ln2_g": jnp.ones((NLAYERS, 1, D), jnp.float32),
        "ln2_b": jnp.zeros((NLAYERS, 1, D), jnp.float32),
    }


# ----------------------------- main -------------------------------------------

if __name__ == "__main__":
    key = jax.random.PRNGKey(0)
    pkey, xkey = jax.random.split(key)

    params = init_params(pkey)

    B, S = 2, 8
    x = jax.random.normal(xkey, (B, S, INPUT_SIZE), jnp.float32)

    forward = jax.jit(lstm_policy_forward)
    out = jax.block_until_ready(forward(params, x))

    assert out.shape == (B, S, OUTPUT_SIZE), out.shape
    row_sums = jnp.sum(out, axis=-1)
    assert bool(jnp.all(jnp.abs(row_sums - 1.0) < 1e-4)), "softmax rows must sum to 1"
    assert bool(jnp.all(jnp.isfinite(out))), "non-finite output"

    print("KERNEL_OK")
</pallas_src>

<mosaic_0001>
module attributes {stable_mosaic.version = 11 : i64} {
  func.func @_fused_forward_kernel(%arg0: i32, %arg1: memref<16x8xf32, #tpu.memory_space<vmem>>, %arg2: memref<8x256xf32, #tpu.memory_space<vmem>>, %arg3: memref<1x256xf32, #tpu.memory_space<vmem>>, %arg4: memref<256x128xbf16, #tpu.memory_space<vmem>>, %arg5: memref<1x128xf32, #tpu.memory_space<vmem>>, %arg6: memref<2x256x768xbf16, #tpu.memory_space<vmem>>, %arg7: memref<2x1x768xf32, #tpu.memory_space<vmem>>, %arg8: memref<2x256x256xbf16, #tpu.memory_space<vmem>>, %arg9: memref<2x1x256xf32, #tpu.memory_space<vmem>>, %arg10: memref<2x256x2048xi8, #tpu.memory_space<vmem>>, %arg11: memref<2x1x2048xf32, #tpu.memory_space<vmem>>, %arg12: memref<2x1x2048xf32, #tpu.memory_space<vmem>>, %arg13: memref<2x2048x256xi8, #tpu.memory_space<vmem>>, %arg14: memref<2x1x256xf32, #tpu.memory_space<vmem>>, %arg15: memref<2x1x256xf32, #tpu.memory_space<vmem>>, %arg16: memref<2x1x256xf32, #tpu.memory_space<vmem>>, %arg17: memref<2x1x256xf32, #tpu.memory_space<vmem>>, %arg18: memref<2x1x256xf32, #tpu.memory_space<vmem>>, %arg19: memref<2x1x256xf32, #tpu.memory_space<vmem>>, %arg20: memref<16x128xf32, #tpu.memory_space<vmem>>) attributes {dimension_semantics = [#tpu.dimension_semantics<parallel>], iteration_bounds = array<i64: 1>, scalar_prefetch = 0 : i64, scratch_operands = 0 : i64, tpu.core_type = #tpu.core_type<tc>, window_params = [{transform_indices = @transform_0, window_bounds = array<i64: 16, 8>}, {pipeline_mode = #tpu.pipeline_mode<synchronous>, transform_indices = @transform_1, window_bounds = array<i64: 8, 256>}, {pipeline_mode = #tpu.pipeline_mode<synchronous>, transform_indices = @transform_2, window_bounds = array<i64: 1, 256>}, {pipeline_mode = #tpu.pipeline_mode<synchronous>, transform_indices = @transform_3, window_bounds = array<i64: 256, 128>}, {pipeline_mode = #tpu.pipeline_mode<synchronous>, transform_indices = @transform_4, window_bounds = array<i64: 1, 128>}, {pipeline_mode = #tpu.pipeline_mode<synchronous>, transform_indices = @transform_5, window_bounds = array<i64: 2, 256, 768>}, {pipeline_mode = #tpu.pipeline_mode<synchronous>, transform_indices = @transform_6, window_bounds = array<i64: 2, 1, 768>}, {pipeline_mode = #tpu.pipeline_mode<synchronous>, transform_indices = @transform_7, window_bounds = array<i64: 2, 256, 256>}, {pipeline_mode = #tpu.pipeline_mode<synchronous>, transform_indices = @transform_8, window_bounds = array<i64: 2, 1, 256>}, {pipeline_mode = #tpu.pipeline_mode<synchronous>, transform_indices = @transform_9, window_bounds = array<i64: 2, 256, 2048>}, {pipeline_mode = #tpu.pipeline_mode<synchronous>, transform_indices = @transform_10, window_bounds = array<i64: 2, 1, 2048>}, {pipeline_mode = #tpu.pipeline_mode<synchronous>, transform_indices = @transform_11, window_bounds = array<i64: 2, 1, 2048>}, {pipeline_mode = #tpu.pipeline_mode<synchronous>, transform_indices = @transform_12, window_bounds = array<i64: 2, 2048, 256>}, {pipeline_mode = #tpu.pipeline_mode<synchronous>, transform_indices = @transform_13, window_bounds = array<i64: 2, 1, 256>}, {pipeline_mode = #tpu.pipeline_mode<synchronous>, transform_indices = @transform_14, window_bounds = array<i64: 2, 1, 256>}, {pipeline_mode = #tpu.pipeline_mode<synchronous>, transform_indices = @transform_15, window_bounds = array<i64: 2, 1, 256>}, {pipeline_mode = #tpu.pipeline_mode<synchronous>, transform_indices = @transform_16, window_bounds = array<i64: 2, 1, 256>}, {pipeline_mode = #tpu.pipeline_mode<synchronous>, transform_indices = @transform_17, window_bounds = array<i64: 2, 1, 256>}, {pipeline_mode = #tpu.pipeline_mode<synchronous>, transform_indices = @transform_18, window_bounds = array<i64: 2, 1, 256>}, {transform_indices = @transform_19, window_bounds = array<i64: 16, 128>}]} {
    %c0 = arith.constant 0 : index
    %c0_0 = arith.constant 0 : index
    %0 = vector.load %arg1[%c0, %c0_0] : memref<16x8xf32, #tpu.memory_space<vmem>>, vector<16x8xf32>
    %c0_1 = arith.constant 0 : index
    %c0_2 = arith.constant 0 : index
    %1 = vector.load %arg2[%c0_1, %c0_2] : memref<8x256xf32, #tpu.memory_space<vmem>>, vector<8x256xf32>
    %cst = arith.constant dense<0.000000e+00> : vector<16x256xf32>
    %2 = tpu.matmul %0, %1, %cst {dimension_numbers = #tpu.dot_dimension_numbers<[1], [0], [0], [1], [0, 0, 1, 1], [], []>} : vector<16x8xf32>, vector<8x256xf32>, vector<16x256xf32> -> vector<16x256xf32>
    %c0_3 = arith.constant 0 : index
    %c0_4 = arith.constant 0 : index
    %3 = vector.load %arg3[%c0_3, %c0_4] : memref<1x256xf32, #tpu.memory_space<vmem>>, vector<1x256xf32>
    %4 = vector.broadcast %3 : vector<1x256xf32> to vector<16x256xf32>
    %5 = arith.addf %2, %4 : vector<16x256xf32>
    %6 = arith.truncf %5 : vector<16x256xf32> to vector<16x256xbf16>
    %c0_5 = arith.constant 0 : index
    %c0_6 = arith.constant 0 : index
    %c0_7 = arith.constant 0 : index
    %7 = vector.load %arg6[%c0_5, %c0_6, %c0_7] : memref<2x256x768xbf16, #tpu.memory_space<vmem>>, vector<1x256x768xbf16>
    %8 = vector.shape_cast %7 : vector<1x256x768xbf16> to vector<256x768xbf16>
    %cst_8 = arith.constant dense<0.000000e+00> : vector<16x768xf32>
    %9 = tpu.matmul %6, %8, %cst_8 {dimension_numbers = #tpu.dot_dimension_numbers<[1], [0], [0], [1], [0, 0, 1, 1], [], []>} : vector<16x256xbf16>, vector<256x768xbf16>, vector<16x768xf32> -> vector<16x768xf32>
    %c0_9 = arith.constant 0 : index
    %c0_10 = arith.constant 0 : index
    %c0_11 = arith.constant 0 : index
    %10 = vector.load %arg7[%c0_9, %c0_10, %c0_11] : memref<2x1x768xf32, #tpu.memory_space<vmem>>, vector<1x1x768xf32>
    %11 = vector.shape_cast %10 : vector<1x1x768xf32> to vector<1x768xf32>
    %12 = vector.broadcast %11 : vector<1x768xf32> to vector<16x768xf32>
    %13 = arith.addf %9, %12 : vector<16x768xf32>
    %14 = vector.extract_strided_slice %13 {offsets = [0, 0], sizes = [16, 256], strides = [1, 1]} : vector<16x768xf32> to vector<16x256xf32>
    %15 = vector.extract_strided_slice %13 {offsets = [0, 256], sizes = [16, 256], strides = [1, 1]} : vector<16x768xf32> to vector<16x256xf32>
    %16 = vector.extract_strided_slice %13 {offsets = [0, 512], sizes = [16, 256], strides = [1, 1]} : vector<16x768xf32> to vector<16x256xf32>
    %c0_12 = arith.constant 0 : index
    %c0_13 = arith.constant 0 : index
    %c0_14 = arith.constant 0 : index
    %17 = vector.load %arg8[%c0_12, %c0_13, %c0_14] : memref<2x256x256xbf16, #tpu.memory_space<vmem>>, vector<1x256x256xbf16>
    %18 = vector.shape_cast %17 : vector<1x256x256xbf16> to vector<256x256xbf16>
    %cst_15 = arith.constant 0.000000e+00 : f32
    %19 = vector.broadcast %cst_15 : f32 to vector<16x256xf32>
    %20 = vector.extract_strided_slice %14 {offsets = [0, 0], sizes = [16, 64], strides = [1, 1]} : vector<16x256xf32> to vector<16x64xf32>
    %cst_16 = arith.constant 1.250000e-01 : f32
    %21 = vector.broadcast %cst_16 : f32 to vector<16x64xf32>
    %22 = arith.mulf %20, %21 : vector<16x64xf32>
    %23 = arith.truncf %22 : vector<16x64xf32> to vector<16x64xbf16>
    %24 = vector.shape_cast %23 : vector<16x64xbf16> to vector<2x8x64xbf16>
    %25 = vector.extract_strided_slice %15 {offsets = [0, 0], sizes = [16, 64], strides = [1, 1]} : vector<16x256xf32> to vector<16x64xf32>
    %26 = arith.truncf %25 : vector<16x64xf32> to vector<16x64xbf16>
    %27 = vector.shape_cast %26 : vector<16x64xbf16> to vector<2x8x64xbf16>
    %28 = vector.extract_strided_slice %16 {offsets = [0, 0], sizes = [16, 64], strides = [1, 1]} : vector<16x256xf32> to vector<16x64xf32>
    %29 = arith.truncf %28 : vector<16x64xf32> to vector<16x64xbf16>
    %30 = vector.shape_cast %29 : vector<16x64xbf16> to vector<2x8x64xbf16>
    "tpu.trace_start"() <{level = 10 : i32, message = "bqd,bkd->bqk"}> : () -> ()
    %cst_17 = arith.constant dense<0.000000e+00> : vector<2x8x8xf32>
    %31 = tpu.matmul %24, %27, %cst_17 {dimension_numbers = #tpu.dot_dimension_numbers<[2], [2], [1], [1], [0, 0, 0, 1, 1, 1], [0], [0]>} : vector<2x8x64xbf16>, vector<2x8x64xbf16>, vector<2x8x8xf32> -> vector<2x8x8xf32>
    "tpu.trace_stop"() : () -> ()
    %cst_18 = arith.constant dense<0xFF800000> : vector<2x8xf32>
    %32 = vector.multi_reduction <maximumf>, %31, %cst_18 [2] : vector<2x8x8xf32> to vector<2x8xf32>
    %33 = vector.shape_cast %32 : vector<2x8xf32> to vector<2x8x1xf32>
    %34 = vector.broadcast %33 : vector<2x8x1xf32> to vector<2x8x8xf32>
    %35 = arith.subf %31, %34 : vector<2x8x8xf32>
    %36 = math.exp %35 : vector<2x8x8xf32>
    %cst_19 = arith.constant dense<0.000000e+00> : vector<2x8xf32>
    %37 = vector.multi_reduction <add>, %36, %cst_19 [2] : vector<2x8x8xf32> to vector<2x8xf32>
    %38 = vector.shape_cast %37 : vector<2x8xf32> to vector<2x8x1xf32>
    %39 = tpu.reciprocal %38 {approx = true} : vector<2x8x1xf32> -> vector<2x8x1xf32>
    %40 = vector.broadcast %39 : vector<2x8x1xf32> to vector<2x8x8xf32>
    %41 = arith.mulf %36, %40 : vector<2x8x8xf32>
    %42 = arith.truncf %41 : vector<2x8x8xf32> to vector<2x8x8xbf16>
    "tpu.trace_start"() <{level = 10 : i32, message = "bqk,bkd->bqd"}> : () -> ()
    %cst_20 = arith.constant dense<0.000000e+00> : vector<2x8x64xf32>
    %43 = tpu.matmul %42, %30, %cst_20 {dimension_numbers = #tpu.dot_dimension_numbers<[2], [1], [1], [2], [0, 0, 0, 1, 1, 2], [0], [0]>} : vector<2x8x8xbf16>, vector<2x8x64xbf16>, vector<2x8x64xf32> -> vector<2x8x64xf32>
    "tpu.trace_stop"() : () -> ()
    %44 = vector.shape_cast %43 : vector<2x8x64xf32> to vector<16x64xf32>
    %45 = arith.truncf %44 : vector<16x64xf32> to vector<16x64xbf16>
    %46 = vector.extract_strided_slice %18 {offsets = [0, 0], sizes = [64, 256], strides = [1, 1]} : vector<256x256xbf16> to vector<64x256xbf16>
    %cst_21 = arith.constant dense<0.000000e+00> : vector<16x256xf32>
    %47 = tpu.matmul %45, %46, %cst_21 {dimension_numbers = #tpu.dot_dimension_numbers<[1], [0], [0], [1], [0, 0, 1, 1], [], []>} : vector<16x64xbf16>, vector<64x256xbf16>, vector<16x256xf32> -> vector<16x256xf32>
    %48 = arith.addf %19, %47 : vector<16x256xf32>
    %49 = vector.extract_strided_slice %14 {offsets = [0, 64], sizes = [16, 64], strides = [1, 1]} : vector<16x256xf32> to vector<16x64xf32>
    %cst_22 = arith.constant 1.250000e-01 : f32
    %50 = vector.broadcast %cst_22 : f32 to vector<16x64xf32>
    %51 = arith.mulf %49, %50 : vector<16x64xf32>
    %52 = arith.truncf %51 : vector<16x64xf32> to vector<16x64xbf16>
    %53 = vector.shape_cast %52 : vector<16x64xbf16> to vector<2x8x64xbf16>
    %54 = vector.extract_strided_slice %15 {offsets = [0, 64], sizes = [16, 64], strides = [1, 1]} : vector<16x256xf32> to vector<16x64xf32>
    %55 = arith.truncf %54 : vector<16x64xf32> to vector<16x64xbf16>
    %56 = vector.shape_cast %55 : vector<16x64xbf16> to vector<2x8x64xbf16>
    %57 = vector.extract_strided_slice %16 {offsets = [0, 64], sizes = [16, 64], strides = [1, 1]} : vector<16x256xf32> to vector<16x64xf32>
    %58 = arith.truncf %57 : vector<16x64xf32> to vector<16x64xbf16>
    %59 = vector.shape_cast %58 : vector<16x64xbf16> to vector<2x8x64xbf16>
    "tpu.trace_start"() <{level = 10 : i32, message = "bqd,bkd->bqk"}> : () -> ()
    %cst_23 = arith.constant dense<0.000000e+00> : vector<2x8x8xf32>
    %60 = tpu.matmul %53, %56, %cst_23 {dimension_numbers = #tpu.dot_dimension_numbers<[2], [2], [1], [1], [0, 0, 0, 1, 1, 1], [0], [0]>} : vector<2x8x64xbf16>, vector<2x8x64xbf16>, vector<2x8x8xf32> -> vector<2x8x8xf32>
    "tpu.trace_stop"() : () -> ()
    %cst_24 = arith.constant dense<0xFF800000> : vector<2x8xf32>
    %61 = vector.multi_reduction <maximumf>, %60, %cst_24 [2] : vector<2x8x8xf32> to vector<2x8xf32>
    %62 = vector.shape_cast %61 : vector<2x8xf32> to vector<2x8x1xf32>
    %63 = vector.broadcast %62 : vector<2x8x1xf32> to vector<2x8x8xf32>
    %64 = arith.subf %60, %63 : vector<2x8x8xf32>
    %65 = math.exp %64 : vector<2x8x8xf32>
    %cst_25 = arith.constant dense<0.000000e+00> : vector<2x8xf32>
    %66 = vector.multi_reduction <add>, %65, %cst_25 [2] : vector<2x8x8xf32> to vector<2x8xf32>
    %67 = vector.shape_cast %66 : vector<2x8xf32> to vector<2x8x1xf32>
    %68 = tpu.reciprocal %67 {approx = true} : vector<2x8x1xf32> -> vector<2x8x1xf32>
    %69 = vector.broadcast %68 : vector<2x8x1xf32> to vector<2x8x8xf32>
    %70 = arith.mulf %65, %69 : vector<2x8x8xf32>
    %71 = arith.truncf %70 : vector<2x8x8xf32> to vector<2x8x8xbf16>
    "tpu.trace_start"() <{level = 10 : i32, message = "bqk,bkd->bqd"}> : () -> ()
    %cst_26 = arith.constant dense<0.000000e+00> : vector<2x8x64xf32>
    %72 = tpu.matmul %71, %59, %cst_26 {dimension_numbers = #tpu.dot_dimension_numbers<[2], [1], [1], [2], [0, 0, 0, 1, 1, 2], [0], [0]>} : vector<2x8x8xbf16>, vector<2x8x64xbf16>, vector<2x8x64xf32> -> vector<2x8x64xf32>
    "tpu.trace_stop"() : () -> ()
    %73 = vector.shape_cast %72 : vector<2x8x64xf32> to vector<16x64xf32>
    %74 = arith.truncf %73 : vector<16x64xf32> to vector<16x64xbf16>
    %75 = vector.extract_strided_slice %18 {offsets = [64, 0], sizes = [64, 256], strides = [1, 1]} : vector<256x256xbf16> to vector<64x256xbf16>
    %cst_27 = arith.constant dense<0.000000e+00> : vector<16x256xf32>
    %76 = tpu.matmul %74, %75, %cst_27 {dimension_numbers = #tpu.dot_dimension_numbers<[1], [0], [0], [1], [0, 0, 1, 1], [], []>} : vector<16x64xbf16>, vector<64x256xbf16>, vector<16x256xf32> -> vector<16x256xf32>
    %77 = arith.addf %48, %76 : vector<16x256xf32>
    %78 = vector.extract_strided_slice %14 {offsets = [0, 128], sizes = [16, 64], strides = [1, 1]} : vector<16x256xf32> to vector<16x64xf32>
    %cst_28 = arith.constant 1.250000e-01 : f32
    %79 = vector.broadcast %cst_28 : f32 to vector<16x64xf32>
    %80 = arith.mulf %78, %79 : vector<16x64xf32>
    %81 = arith.truncf %80 : vector<16x64xf32> to vector<16x64xbf16>
    %82 = vector.shape_cast %81 : vector<16x64xbf16> to vector<2x8x64xbf16>
    %83 = vector.extract_strided_slice %15 {offsets = [0, 128], sizes = [16, 64], strides = [1, 1]} : vector<16x256xf32> to vector<16x64xf32>
    %84 = arith.truncf %83 : vector<16x64xf32> to vector<16x64xbf16>
    %85 = vector.shape_cast %84 : vector<16x64xbf16> to vector<2x8x64xbf16>
    %86 = vector.extract_strided_slice %16 {offsets = [0, 128], sizes = [16, 64], strides = [1, 1]} : vector<16x256xf32> to vector<16x64xf32>
    %87 = arith.truncf %86 : vector<16x64xf32> to vector<16x64xbf16>
    %88 = vector.shape_cast %87 : vector<16x64xbf16> to vector<2x8x64xbf16>
    "tpu.trace_start"() <{level = 10 : i32, message = "bqd,bkd->bqk"}> : () -> ()
    %cst_29 = arith.constant dense<0.000000e+00> : vector<2x8x8xf32>
    %89 = tpu.matmul %82, %85, %cst_29 {dimension_numbers = #tpu.dot_dimension_numbers<[2], [2], [1], [1], [0, 0, 0, 1, 1, 1], [0], [0]>} : vector<2x8x64xbf16>, vector<2x8x64xbf16>, vector<2x8x8xf32> -> vector<2x8x8xf32>
    "tpu.trace_stop"() : () -> ()
    %cst_30 = arith.constant dense<0xFF800000> : vector<2x8xf32>
    %90 = vector.multi_reduction <maximumf>, %89, %cst_30 [2] : vector<2x8x8xf32> to vector<2x8xf32>
    %91 = vector.shape_cast %90 : vector<2x8xf32> to vector<2x8x1xf32>
    %92 = vector.broadcast %91 : vector<2x8x1xf32> to vector<2x8x8xf32>
    %93 = arith.subf %89, %92 : vector<2x8x8xf32>
    %94 = math.exp %93 : vector<2x8x8xf32>
    %cst_31 = arith.constant dense<0.000000e+00> : vector<2x8xf32>
    %95 = vector.multi_reduction <add>, %94, %cst_31 [2] : vector<2x8x8xf32> to vector<2x8xf32>
    %96 = vector.shape_cast %95 : vector<2x8xf32> to vector<2x8x1xf32>
    %97 = tpu.reciprocal %96 {approx = true} : vector<2x8x1xf32> -> vector<2x8x1xf32>
    %98 = vector.broadcast %97 : vector<2x8x1xf32> to vector<2x8x8xf32>
    %99 = arith.mulf %94, %98 : vector<2x8x8xf32>
    %100 = arith.truncf %99 : vector<2x8x8xf32> to vector<2x8x8xbf16>
    "tpu.trace_start"() <{level = 10 : i32, message = "bqk,bkd->bqd"}> : () -> ()
    %cst_32 = arith.constant dense<0.000000e+00> : vector<2x8x64xf32>
    %101 = tpu.matmul %100, %88, %cst_32 {dimension_numbers = #tpu.dot_dimension_numbers<[2], [1], [1], [2], [0, 0, 0, 1, 1, 2], [0], [0]>} : vector<2x8x8xbf16>, vector<2x8x64xbf16>, vector<2x8x64xf32> -> vector<2x8x64xf32>
    "tpu.trace_stop"() : () -> ()
    %102 = vector.shape_cast %101 : vector<2x8x64xf32> to vector<16x64xf32>
    %103 = arith.truncf %102 : vector<16x64xf32> to vector<16x64xbf16>
    %104 = vector.extract_strided_slice %18 {offsets = [128, 0], sizes = [64, 256], strides = [1, 1]} : vector<256x256xbf16> to vector<64x256xbf16>
    %cst_33 = arith.constant dense<0.000000e+00> : vector<16x256xf32>
    %105 = tpu.matmul %103, %104, %cst_33 {dimension_numbers = #tpu.dot_dimension_numbers<[1], [0], [0], [1], [0, 0, 1, 1], [], []>} : vector<16x64xbf16>, vector<64x256xbf16>, vector<16x256xf32> -> vector<16x256xf32>
    %106 = arith.addf %77, %105 : vector<16x256xf32>
    %107 = vector.extract_strided_slice %14 {offsets = [0, 192], sizes = [16, 64], strides = [1, 1]} : vector<16x256xf32> to vector<16x64xf32>
    %cst_34 = arith.constant 1.250000e-01 : f32
    %108 = vector.broadcast %cst_34 : f32 to vector<16x64xf32>
    %109 = arith.mulf %107, %108 : vector<16x64xf32>
    %110 = arith.truncf %109 : vector<16x64xf32> to vector<16x64xbf16>
    %111 = vector.shape_cast %110 : vector<16x64xbf16> to vector<2x8x64xbf16>
    %112 = vector.extract_strided_slice %15 {offsets = [0, 192], sizes = [16, 64], strides = [1, 1]} : vector<16x256xf32> to vector<16x64xf32>
    %113 = arith.truncf %112 : vector<16x64xf32> to vector<16x64xbf16>
    %114 = vector.shape_cast %113 : vector<16x64xbf16> to vector<2x8x64xbf16>
    %115 = vector.extract_strided_slice %16 {offsets = [0, 192], sizes = [16, 64], strides = [1, 1]} : vector<16x256xf32> to vector<16x64xf32>
    %116 = arith.truncf %115 : vector<16x64xf32> to vector<16x64xbf16>
    %117 = vector.shape_cast %116 : vector<16x64xbf16> to vector<2x8x64xbf16>
    "tpu.trace_start"() <{level = 10 : i32, message = "bqd,bkd->bqk"}> : () -> ()
    %cst_35 = arith.constant dense<0.000000e+00> : vector<2x8x8xf32>
    %118 = tpu.matmul %111, %114, %cst_35 {dimension_numbers = #tpu.dot_dimension_numbers<[2], [2], [1], [1], [0, 0, 0, 1, 1, 1], [0], [0]>} : vector<2x8x64xbf16>, vector<2x8x64xbf16>, vector<2x8x8xf32> -> vector<2x8x8xf32>
    "tpu.trace_stop"() : () -> ()
    %cst_36 = arith.constant dense<0xFF800000> : vector<2x8xf32>
    %119 = vector.multi_reduction <maximumf>, %118, %cst_36 [2] : vector<2x8x8xf32> to vector<2x8xf32>
    %120 = vector.shape_cast %119 : vector<2x8xf32> to vector<2x8x1xf32>
    %121 = vector.broadcast %120 : vector<2x8x1xf32> to vector<2x8x8xf32>
    %122 = arith.subf %118, %121 : vector<2x8x8xf32>
    %123 = math.exp %122 : vector<2x8x8xf32>
    %cst_37 = arith.constant dense<0.000000e+00> : vector<2x8xf32>
    %124 = vector.multi_reduction <add>, %123, %cst_37 [2] : vector<2x8x8xf32> to vector<2x8xf32>
    %125 = vector.shape_cast %124 : vector<2x8xf32> to vector<2x8x1xf32>
    %126 = tpu.reciprocal %125 {approx = true} : vector<2x8x1xf32> -> vector<2x8x1xf32>
    %127 = vector.broadcast %126 : vector<2x8x1xf32> to vector<2x8x8xf32>
    %128 = arith.mulf %123, %127 : vector<2x8x8xf32>
    %129 = arith.truncf %128 : vector<2x8x8xf32> to vector<2x8x8xbf16>
    "tpu.trace_start"() <{level = 10 : i32, message = "bqk,bkd->bqd"}> : () -> ()
    %cst_38 = arith.constant dense<0.000000e+00> : vector<2x8x64xf32>
    %130 = tpu.matmul %129, %117, %cst_38 {dimension_numbers = #tpu.dot_dimension_numbers<[2], [1], [1], [2], [0, 0, 0, 1, 1, 2], [0], [0]>} : vector<2x8x8xbf16>, vector<2x8x64xbf16>, vector<2x8x64xf32> -> vector<2x8x64xf32>
    "tpu.trace_stop"() : () -> ()
    %131 = vector.shape_cast %130 : vector<2x8x64xf32> to vector<16x64xf32>
    %132 = arith.truncf %131 : vector<16x64xf32> to vector<16x64xbf16>
    %133 = vector.extract_strided_slice %18 {offsets = [192, 0], sizes = [64, 256], strides = [1, 1]} : vector<256x256xbf16> to vector<64x256xbf16>
    %cst_39 = arith.constant dense<0.000000e+00> : vector<16x256xf32>
    %134 = tpu.matmul %132, %133, %cst_39 {dimension_numbers = #tpu.dot_dimension_numbers<[1], [0], [0], [1], [0, 0, 1, 1], [], []>} : vector<16x64xbf16>, vector<64x256xbf16>, vector<16x256xf32> -> vector<16x256xf32>
    %135 = arith.addf %106, %134 : vector<16x256xf32>
    %c0_40 = arith.constant 0 : index
    %c0_41 = arith.constant 0 : index
    %c0_42 = arith.constant 0 : index
    %136 = vector.load %arg9[%c0_40, %c0_41, %c0_42] : memref<2x1x256xf32, #tpu.memory_space<vmem>>, vector<1x1x256xf32>
    %137 = vector.shape_cast %136 : vector<1x1x256xf32> to vector<1x256xf32>
    %138 = vector.broadcast %137 : vector<1x256xf32> to vector<16x256xf32>
    %139 = arith.addf %135, %138 : vector<16x256xf32>
    %140 = arith.addf %5, %139 : vector<16x256xf32>
    %c0_43 = arith.constant 0 : index
    %c0_44 = arith.constant 0 : index
    %c0_45 = arith.constant 0 : index
    %141 = vector.load %arg16[%c0_43, %c0_44, %c0_45] : memref<2x1x256xf32, #tpu.memory_space<vmem>>, vector<1x1x256xf32>
    %142 = vector.shape_cast %141 : vector<1x1x256xf32> to vector<1x256xf32>
    %c0_46 = arith.constant 0 : index
    %c0_47 = arith.constant 0 : index
    %c0_48 = arith.constant 0 : index
    %143 = vector.load %arg17[%c0_46, %c0_47, %c0_48] : memref<2x1x256xf32, #tpu.memory_space<vmem>>, vector<1x1x256xf32>
    %144 = vector.shape_cast %143 : vector<1x1x256xf32> to vector<1x256xf32>
    %cst_49 = arith.constant dense<0.000000e+00> : vector<16xf32>
    %145 = vector.multi_reduction <add>, %140, %cst_49 [1] : vector<16x256xf32> to vector<16xf32>
    %146 = vector.shape_cast %145 : vector<16xf32> to vector<16x1xf32>
    %cst_50 = arith.constant 2.560000e+02 : f32
    %147 = vector.broadcast %cst_50 : f32 to vector<16x1xf32>
    %148 = arith.divf %146, %147 : vector<16x1xf32>
    %149 = vector.broadcast %148 : vector<16x1xf32> to vector<16x256xf32>
    %150 = arith.subf %140, %149 : vector<16x256xf32>
    %151 = arith.mulf %150, %150 : vector<16x256xf32>
    %cst_51 = arith.constant dense<0.000000e+00> : vector<16xf32>
    %152 = vector.multi_reduction <add>, %151, %cst_51 [1] : vector<16x256xf32> to vector<16xf32>
    %153 = vector.shape_cast %152 : vector<16xf32> to vector<16x1xf32>
    %cst_52 = arith.constant 2.560000e+02 : f32
    %154 = vector.broadcast %cst_52 : f32 to vector<16x1xf32>
    %155 = arith.divf %153, %154 : vector<16x1xf32>
    %156 = vector.broadcast %148 : vector<16x1xf32> to vector<16x256xf32>
    %157 = arith.subf %140, %156 : vector<16x256xf32>
    %cst_53 = arith.constant 9.99999974E-6 : f32
    %158 = vector.broadcast %cst_53 : f32 to vector<16x1xf32>
    %159 = arith.addf %155, %158 : vector<16x1xf32>
    %160 = math.rsqrt %159 : vector<16x1xf32>
    %161 = vector.broadcast %160 : vector<16x1xf32> to vector<16x256xf32>
    %162 = arith.mulf %157, %161 : vector<16x256xf32>
    %163 = vector.broadcast %142 : vector<1x256xf32> to vector<16x256xf32>
    %164 = arith.mulf %162, %163 : vector<16x256xf32>
    %165 = vector.broadcast %144 : vector<1x256xf32> to vector<16x256xf32>
    %166 = arith.addf %164, %165 : vector<16x256xf32>
    %c0_54 = arith.constant 0 : index
    %c0_55 = arith.constant 0 : index
    %c0_56 = arith.constant 0 : index
    %167 = vector.load %arg10[%c0_54, %c0_55, %c0_56] : memref<2x256x2048xi8, #tpu.memory_space<vmem>>, vector<1x256x2048xi8>
    %168 = vector.shape_cast %167 : vector<1x256x2048xi8> to vector<256x2048xi8>
    %169 = arith.sitofp %168 : vector<256x2048xi8> to vector<256x2048xbf16>
    %170 = arith.truncf %166 : vector<16x256xf32> to vector<16x256xbf16>
    %cst_57 = arith.constant dense<0.000000e+00> : vector<16x2048xf32>
    %171 = tpu.matmul %170, %169, %cst_57 {dimension_numbers = #tpu.dot_dimension_numbers<[1], [0], [0], [1], [0, 0, 1, 1], [], []>} : vector<16x256xbf16>, vector<256x2048xbf16>, vector<16x2048xf32> -> vector<16x2048xf32>
    %c0_58 = arith.constant 0 : index
    %c0_59 = arith.constant 0 : index
    %c0_60 = arith.constant 0 : index
    %172 = vector.load %arg11[%c0_58, %c0_59, %c0_60] : memref<2x1x2048xf32, #tpu.memory_space<vmem>>, vector<1x1x2048xf32>
    %173 = vector.shape_cast %172 : vector<1x1x2048xf32> to vector<1x2048xf32>
    %174 = vector.broadcast %173 : vector<1x2048xf32> to vector<16x2048xf32>
    %175 = arith.mulf %171, %174 : vector<16x2048xf32>
    %c0_61 = arith.constant 0 : index
    %c0_62 = arith.constant 0 : index
    %c0_63 = arith.constant 0 : index
    %176 = vector.load %arg12[%c0_61, %c0_62, %c0_63] : memref<2x1x2048xf32, #tpu.memory_space<vmem>>, vector<1x1x2048xf32>
    %177 = vector.shape_cast %176 : vector<1x1x2048xf32> to vector<1x2048xf32>
    %178 = vector.broadcast %177 : vector<1x2048xf32> to vector<16x2048xf32>
    %179 = arith.addf %175, %178 : vector<16x2048xf32>
    %cst_64 = arith.constant 0.000000e+00 : f32
    %180 = vector.broadcast %cst_64 : f32 to vector<16x2048xf32>
    %181 = arith.maximumf %179, %180 : vector<16x2048xf32>
    %c0_65 = arith.constant 0 : index
    %c0_66 = arith.constant 0 : index
    %c0_67 = arith.constant 0 : index
    %182 = vector.load %arg13[%c0_65, %c0_66, %c0_67] : memref<2x2048x256xi8, #tpu.memory_space<vmem>>, vector<1x2048x256xi8>
    %183 = vector.shape_cast %182 : vector<1x2048x256xi8> to vector<2048x256xi8>
    %184 = arith.sitofp %183 : vector<2048x256xi8> to vector<2048x256xbf16>
    %185 = arith.truncf %181 : vector<16x2048xf32> to vector<16x2048xbf16>
    %cst_68 = arith.constant dense<0.000000e+00> : vector<16x256xf32>
    %186 = tpu.matmul %185, %184, %cst_68 {dimension_numbers = #tpu.dot_dimension_numbers<[1], [0], [0], [1], [0, 0, 1, 1], [], []>} : vector<16x2048xbf16>, vector<2048x256xbf16>, vector<16x256xf32> -> vector<16x256xf32>
    %c0_69 = arith.constant 0 : index
    %c0_70 = arith.constant 0 : index
    %c0_71 = arith.constant 0 : index
    %187 = vector.load %arg14[%c0_69, %c0_70, %c0_71] : memref<2x1x256xf32, #tpu.memory_space<vmem>>, vector<1x1x256xf32>
    %188 = vector.shape_cast %187 : vector<1x1x256xf32> to vector<1x256xf32>
    %189 = vector.broadcast %188 : vector<1x256xf32> to vector<16x256xf32>
    %190 = arith.mulf %186, %189 : vector<16x256xf32>
    %c0_72 = arith.constant 0 : index
    %c0_73 = arith.constant 0 : index
    %c0_74 = arith.constant 0 : index
    %191 = vector.load %arg15[%c0_72, %c0_73, %c0_74] : memref<2x1x256xf32, #tpu.memory_space<vmem>>, vector<1x1x256xf32>
    %192 = vector.shape_cast %191 : vector<1x1x256xf32> to vector<1x256xf32>
    %193 = vector.broadcast %192 : vector<1x256xf32> to vector<16x256xf32>
    %194 = arith.addf %190, %193 : vector<16x256xf32>
    %195 = arith.addf %166, %194 : vector<16x256xf32>
    %c0_75 = arith.constant 0 : index
    %c0_76 = arith.constant 0 : index
    %c0_77 = arith.constant 0 : index
    %196 = vector.load %arg18[%c0_75, %c0_76, %c0_77] : memref<2x1x256xf32, #tpu.memory_space<vmem>>, vector<1x1x256xf32>
    %197 = vector.shape_cast %196 : vector<1x1x256xf32> to vector<1x256xf32>
    %c0_78 = arith.constant 0 : index
    %c0_79 = arith.constant 0 : index
    %c0_80 = arith.constant 0 : index
    %198 = vector.load %arg19[%c0_78, %c0_79, %c0_80] : memref<2x1x256xf32, #tpu.memory_space<vmem>>, vector<1x1x256xf32>
    %199 = vector.shape_cast %198 : vector<1x1x256xf32> to vector<1x256xf32>
    %cst_81 = arith.constant dense<0.000000e+00> : vector<16xf32>
    %200 = vector.multi_reduction <add>, %195, %cst_81 [1] : vector<16x256xf32> to vector<16xf32>
    %201 = vector.shape_cast %200 : vector<16xf32> to vector<16x1xf32>
    %cst_82 = arith.constant 2.560000e+02 : f32
    %202 = vector.broadcast %cst_82 : f32 to vector<16x1xf32>
    %203 = arith.divf %201, %202 : vector<16x1xf32>
    %204 = vector.broadcast %203 : vector<16x1xf32> to vector<16x256xf32>
    %205 = arith.subf %195, %204 : vector<16x256xf32>
    %206 = arith.mulf %205, %205 : vector<16x256xf32>
    %cst_83 = arith.constant dense<0.000000e+00> : vector<16xf32>
    %207 = vector.multi_reduction <add>, %206, %cst_83 [1] : vector<16x256xf32> to vector<16xf32>
    %208 = vector.shape_cast %207 : vector<16xf32> to vector<16x1xf32>
    %cst_84 = arith.constant 2.560000e+02 : f32
    %209 = vector.broadcast %cst_84 : f32 to vector<16x1xf32>
    %210 = arith.divf %208, %209 : vector<16x1xf32>
    %211 = vector.broadcast %203 : vector<16x1xf32> to vector<16x256xf32>
    %212 = arith.subf %195, %211 : vector<16x256xf32>
    %cst_85 = arith.constant 9.99999974E-6 : f32
    %213 = vector.broadcast %cst_85 : f32 to vector<16x1xf32>
    %214 = arith.addf %210, %213 : vector<16x1xf32>
    %215 = math.rsqrt %214 : vector<16x1xf32>
    %216 = vector.broadcast %215 : vector<16x1xf32> to vector<16x256xf32>
    %217 = arith.mulf %212, %216 : vector<16x256xf32>
    %218 = vector.broadcast %197 : vector<1x256xf32> to vector<16x256xf32>
    %219 = arith.mulf %217, %218 : vector<16x256xf32>
    %220 = vector.broadcast %199 : vector<1x256xf32> to vector<16x256xf32>
    %221 = arith.addf %219, %220 : vector<16x256xf32>
    %222 = arith.truncf %221 : vector<16x256xf32> to vector<16x256xbf16>
    %c1 = arith.constant 1 : index
    %c0_86 = arith.constant 0 : index
    %c0_87 = arith.constant 0 : index
    %223 = vector.load %arg6[%c1, %c0_86, %c0_87] : memref<2x256x768xbf16, #tpu.memory_space<vmem>>, vector<1x256x768xbf16>
    %224 = vector.shape_cast %223 : vector<1x256x768xbf16> to vector<256x768xbf16>
    %cst_88 = arith.constant dense<0.000000e+00> : vector<16x768xf32>
    %225 = tpu.matmul %222, %224, %cst_88 {dimension_numbers = #tpu.dot_dimension_numbers<[1], [0], [0], [1], [0, 0, 1, 1], [], []>} : vector<16x256xbf16>, vector<256x768xbf16>, vector<16x768xf32> -> vector<16x768xf32>
    %c1_89 = arith.constant 1 : index
    %c0_90 = arith.constant 0 : index
    %c0_91 = arith.constant 0 : index
    %226 = vector.load %arg7[%c1_89, %c0_90, %c0_91] : memref<2x1x768xf32, #tpu.memory_space<vmem>>, vector<1x1x768xf32>
    %227 = vector.shape_cast %226 : vector<1x1x768xf32> to vector<1x768xf32>
    %228 = vector.broadcast %227 : vector<1x768xf32> to vector<16x768xf32>
    %229 = arith.addf %225, %228 : vector<16x768xf32>
    %230 = vector.extract_strided_slice %229 {offsets = [0, 0], sizes = [16, 256], strides = [1, 1]} : vector<16x768xf32> to vector<16x256xf32>
    %231 = vector.extract_strided_slice %229 {offsets = [0, 256], sizes = [16, 256], strides = [1, 1]} : vector<16x768xf32> to vector<16x256xf32>
    %232 = vector.extract_strided_slice %229 {offsets = [0, 512], sizes = [16, 256], strides = [1, 1]} : vector<16x768xf32> to vector<16x256xf32>
    %c1_92 = arith.constant 1 : index
    %c0_93 = arith.constant 0 : index
    %c0_94 = arith.constant 0 : index
    %233 = vector.load %arg8[%c1_92, %c0_93, %c0_94] : memref<2x256x256xbf16, #tpu.memory_space<vmem>>, vector<1x256x256xbf16>
    %234 = vector.shape_cast %233 : vector<1x256x256xbf16> to vector<256x256xbf16>
    %cst_95 = arith.constant 0.000000e+00 : f32
    %235 = vector.broadcast %cst_95 : f32 to vector<16x256xf32>
    %236 = vector.extract_strided_slice %230 {offsets = [0, 0], sizes = [16, 64], strides = [1, 1]} : vector<16x256xf32> to vector<16x64xf32>
    %cst_96 = arith.constant 1.250000e-01 : f32
    %237 = vector.broadcast %cst_96 : f32 to vector<16x64xf32>
    %238 = arith.mulf %236, %237 : vector<16x64xf32>
    %239 = arith.truncf %238 : vector<16x64xf32> to vector<16x64xbf16>
    %240 = vector.shape_cast %239 : vector<16x64xbf16> to vector<2x8x64xbf16>
    %241 = vector.extract_strided_slice %231 {offsets = [0, 0], sizes = [16, 64], strides = [1, 1]} : vector<16x256xf32> to vector<16x64xf32>
    %242 = arith.truncf %241 : vector<16x64xf32> to vector<16x64xbf16>
    %243 = vector.shape_cast %242 : vector<16x64xbf16> to vector<2x8x64xbf16>
    %244 = vector.extract_strided_slice %232 {offsets = [0, 0], sizes = [16, 64], strides = [1, 1]} : vector<16x256xf32> to vector<16x64xf32>
    %245 = arith.truncf %244 : vector<16x64xf32> to vector<16x64xbf16>
    %246 = vector.shape_cast %245 : vector<16x64xbf16> to vector<2x8x64xbf16>
    "tpu.trace_start"() <{level = 10 : i32, message = "bqd,bkd->bqk"}> : () -> ()
    %cst_97 = arith.constant dense<0.000000e+00> : vector<2x8x8xf32>
    %247 = tpu.matmul %240, %243, %cst_97 {dimension_numbers = #tpu.dot_dimension_numbers<[2], [2], [1], [1], [0, 0, 0, 1, 1, 1], [0], [0]>} : vector<2x8x64xbf16>, vector<2x8x64xbf16>, vector<2x8x8xf32> -> vector<2x8x8xf32>
    "tpu.trace_stop"() : () -> ()
    %cst_98 = arith.constant dense<0xFF800000> : vector<2x8xf32>
    %248 = vector.multi_reduction <maximumf>, %247, %cst_98 [2] : vector<2x8x8xf32> to vector<2x8xf32>
    %249 = vector.shape_cast %248 : vector<2x8xf32> to vector<2x8x1xf32>
    %250 = vector.broadcast %249 : vector<2x8x1xf32> to vector<2x8x8xf32>
    %251 = arith.subf %247, %250 : vector<2x8x8xf32>
    %252 = math.exp %251 : vector<2x8x8xf32>
    %cst_99 = arith.constant dense<0.000000e+00> : vector<2x8xf32>
    %253 = vector.multi_reduction <add>, %252, %cst_99 [2] : vector<2x8x8xf32> to vector<2x8xf32>
    %254 = vector.shape_cast %253 : vector<2x8xf32> to vector<2x8x1xf32>
    %255 = tpu.reciprocal %254 {approx = true} : vector<2x8x1xf32> -> vector<2x8x1xf32>
    %256 = vector.broadcast %255 : vector<2x8x1xf32> to vector<2x8x8xf32>
    %257 = arith.mulf %252, %256 : vector<2x8x8xf32>
    %258 = arith.truncf %257 : vector<2x8x8xf32> to vector<2x8x8xbf16>
    "tpu.trace_start"() <{level = 10 : i32, message = "bqk,bkd->bqd"}> : () -> ()
    %cst_100 = arith.constant dense<0.000000e+00> : vector<2x8x64xf32>
    %259 = tpu.matmul %258, %246, %cst_100 {dimension_numbers = #tpu.dot_dimension_numbers<[2], [1], [1], [2], [0, 0, 0, 1, 1, 2], [0], [0]>} : vector<2x8x8xbf16>, vector<2x8x64xbf16>, vector<2x8x64xf32> -> vector<2x8x64xf32>
    "tpu.trace_stop"() : () -> ()
    %260 = vector.shape_cast %259 : vector<2x8x64xf32> to vector<16x64xf32>
    %261 = arith.truncf %260 : vector<16x64xf32> to vector<16x64xbf16>
    %262 = vector.extract_strided_slice %234 {offsets = [0, 0], sizes = [64, 256], strides = [1, 1]} : vector<256x256xbf16> to vector<64x256xbf16>
    %cst_101 = arith.constant dense<0.000000e+00> : vector<16x256xf32>
    %263 = tpu.matmul %261, %262, %cst_101 {dimension_numbers = #tpu.dot_dimension_numbers<[1], [0], [0], [1], [0, 0, 1, 1], [], []>} : vector<16x64xbf16>, vector<64x256xbf16>, vector<16x256xf32> -> vector<16x256xf32>
    %264 = arith.addf %235, %263 : vector<16x256xf32>
    %265 = vector.extract_strided_slice %230 {offsets = [0, 64], sizes = [16, 64], strides = [1, 1]} : vector<16x256xf32> to vector<16x64xf32>
    %cst_102 = arith.constant 1.250000e-01 : f32
    %266 = vector.broadcast %cst_102 : f32 to vector<16x64xf32>
    %267 = arith.mulf %265, %266 : vector<16x64xf32>
    %268 = arith.truncf %267 : vector<16x64xf32> to vector<16x64xbf16>
    %269 = vector.shape_cast %268 : vector<16x64xbf16> to vector<2x8x64xbf16>
    %270 = vector.extract_strided_slice %231 {offsets = [0, 64], sizes = [16, 64], strides = [1, 1]} : vector<16x256xf32> to vector<16x64xf32>
    %271 = arith.truncf %270 : vector<16x64xf32> to vector<16x64xbf16>
    %272 = vector.shape_cast %271 : vector<16x64xbf16> to vector<2x8x64xbf16>
    %273 = vector.extract_strided_slice %232 {offsets = [0, 64], sizes = [16, 64], strides = [1, 1]} : vector<16x256xf32> to vector<16x64xf32>
    %274 = arith.truncf %273 : vector<16x64xf32> to vector<16x64xbf16>
    %275 = vector.shape_cast %274 : vector<16x64xbf16> to vector<2x8x64xbf16>
    "tpu.trace_start"() <{level = 10 : i32, message = "bqd,bkd->bqk"}> : () -> ()
    %cst_103 = arith.constant dense<0.000000e+00> : vector<2x8x8xf32>
    %276 = tpu.matmul %269, %272, %cst_103 {dimension_numbers = #tpu.dot_dimension_numbers<[2], [2], [1], [1], [0, 0, 0, 1, 1, 1], [0], [0]>} : vector<2x8x64xbf16>, vector<2x8x64xbf16>, vector<2x8x8xf32> -> vector<2x8x8xf32>
    "tpu.trace_stop"() : () -> ()
    %cst_104 = arith.constant dense<0xFF800000> : vector<2x8xf32>
    %277 = vector.multi_reduction <maximumf>, %276, %cst_104 [2] : vector<2x8x8xf32> to vector<2x8xf32>
    %278 = vector.shape_cast %277 : vector<2x8xf32> to vector<2x8x1xf32>
    %279 = vector.broadcast %278 : vector<2x8x1xf32> to vector<2x8x8xf32>
    %280 = arith.subf %276, %279 : vector<2x8x8xf32>
    %281 = math.exp %280 : vector<2x8x8xf32>
    %cst_105 = arith.constant dense<0.000000e+00> : vector<2x8xf32>
    %282 = vector.multi_reduction <add>, %281, %cst_105 [2] : vector<2x8x8xf32> to vector<2x8xf32>
    %283 = vector.shape_cast %282 : vector<2x8xf32> to vector<2x8x1xf32>
    %284 = tpu.reciprocal %283 {approx = true} : vector<2x8x1xf32> -> vector<2x8x1xf32>
    %285 = vector.broadcast %284 : vector<2x8x1xf32> to vector<2x8x8xf32>
    %286 = arith.mulf %281, %285 : vector<2x8x8xf32>
    %287 = arith.truncf %286 : vector<2x8x8xf32> to vector<2x8x8xbf16>
    "tpu.trace_start"() <{level = 10 : i32, message = "bqk,bkd->bqd"}> : () -> ()
    %cst_106 = arith.constant dense<0.000000e+00> : vector<2x8x64xf32>
    %288 = tpu.matmul %287, %275, %cst_106 {dimension_numbers = #tpu.dot_dimension_numbers<[2], [1], [1], [2], [0, 0, 0, 1, 1, 2], [0], [0]>} : vector<2x8x8xbf16>, vector<2x8x64xbf16>, vector<2x8x64xf32> -> vector<2x8x64xf32>
    "tpu.trace_stop"() : () -> ()
    %289 = vector.shape_cast %288 : vector<2x8x64xf32> to vector<16x64xf32>
    %290 = arith.truncf %289 : vector<16x64xf32> to vector<16x64xbf16>
    %291 = vector.extract_strided_slice %234 {offsets = [64, 0], sizes = [64, 256], strides = [1, 1]} : vector<256x256xbf16> to vector<64x256xbf16>
    %cst_107 = arith.constant dense<0.000000e+00> : vector<16x256xf32>
    %292 = tpu.matmul %290, %291, %cst_107 {dimension_numbers = #tpu.dot_dimension_numbers<[1], [0], [0], [1], [0, 0, 1, 1], [], []>} : vector<16x64xbf16>, vector<64x256xbf16>, vector<16x256xf32> -> vector<16x256xf32>
    %293 = arith.addf %264, %292 : vector<16x256xf32>
    %294 = vector.extract_strided_slice %230 {offsets = [0, 128], sizes = [16, 64], strides = [1, 1]} : vector<16x256xf32> to vector<16x64xf32>
    %cst_108 = arith.constant 1.250000e-01 : f32
    %295 = vector.broadcast %cst_108 : f32 to vector<16x64xf32>
    %296 = arith.mulf %294, %295 : vector<16x64xf32>
    %297 = arith.truncf %296 : vector<16x64xf32> to vector<16x64xbf16>
    %298 = vector.shape_cast %297 : vector<16x64xbf16> to vector<2x8x64xbf16>
    %299 = vector.extract_strided_slice %231 {offsets = [0, 128], sizes = [16, 64], strides = [1, 1]} : vector<16x256xf32> to vector<16x64xf32>
    %300 = arith.truncf %299 : vector<16x64xf32> to vector<16x64xbf16>
    %301 = vector.shape_cast %300 : vector<16x64xbf16> to vector<2x8x64xbf16>
    %302 = vector.extract_strided_slice %232 {offsets = [0, 128], sizes = [16, 64], strides = [1, 1]} : vector<16x256xf32> to vector<16x64xf32>
    %303 = arith.truncf %302 : vector<16x64xf32> to vector<16x64xbf16>
    %304 = vector.shape_cast %303 : vector<16x64xbf16> to vector<2x8x64xbf16>
    "tpu.trace_start"() <{level = 10 : i32, message = "bqd,bkd->bqk"}> : () -> ()
    %cst_109 = arith.constant dense<0.000000e+00> : vector<2x8x8xf32>
    %305 = tpu.matmul %298, %301, %cst_109 {dimension_numbers = #tpu.dot_dimension_numbers<[2], [2], [1], [1], [0, 0, 0, 1, 1, 1], [0], [0]>} : vector<2x8x64xbf16>, vector<2x8x64xbf16>, vector<2x8x8xf32> -> vector<2x8x8xf32>
    "tpu.trace_stop"() : () -> ()
    %cst_110 = arith.constant dense<0xFF800000> : vector<2x8xf32>
    %306 = vector.multi_reduction <maximumf>, %305, %cst_110 [2] : vector<2x8x8xf32> to vector<2x8xf32>
    %307 = vector.shape_cast %306 : vector<2x8xf32> to vector<2x8x1xf32>
    %308 = vector.broadcast %307 : vector<2x8x1xf32> to vector<2x8x8xf32>
    %309 = arith.subf %305, %308 : vector<2x8x8xf32>
    %310 = math.exp %309 : vector<2x8x8xf32>
    %cst_111 = arith.constant dense<0.000000e+00> : vector<2x8xf32>
    %311 = vector.multi_reduction <add>, %310, %cst_111 [2] : vector<2x8x8xf32> to vector<2x8xf32>
    %312 = vector.shape_cast %311 : vector<2x8xf32> to vector<2x8x1xf32>
    %313 = tpu.reciprocal %312 {approx = true} : vector<2x8x1xf32> -> vector<2x8x1xf32>
    %314 = vector.broadcast %313 : vector<2x8x1xf32> to vector<2x8x8xf32>
    %315 = arith.mulf %310, %314 : vector<2x8x8xf32>
    %316 = arith.truncf %315 : vector<2x8x8xf32> to vector<2x8x8xbf16>
    "tpu.trace_start"() <{level = 10 : i32, message = "bqk,bkd->bqd"}> : () -> ()
    %cst_112 = arith.constant dense<0.000000e+00> : vector<2x8x64xf32>
    %317 = tpu.matmul %316, %304, %cst_112 {dimension_numbers = #tpu.dot_dimension_numbers<[2], [1], [1], [2], [0, 0, 0, 1, 1, 2], [0], [0]>} : vector<2x8x8xbf16>, vector<2x8x64xbf16>, vector<2x8x64xf32> -> vector<2x8x64xf32>
    "tpu.trace_stop"() : () -> ()
    %318 = vector.shape_cast %317 : vector<2x8x64xf32> to vector<16x64xf32>
    %319 = arith.truncf %318 : vector<16x64xf32> to vector<16x64xbf16>
    %320 = vector.extract_strided_slice %234 {offsets = [128, 0], sizes = [64, 256], strides = [1, 1]} : vector<256x256xbf16> to vector<64x256xbf16>
    %cst_113 = arith.constant dense<0.000000e+00> : vector<16x256xf32>
    %321 = tpu.matmul %319, %320, %cst_113 {dimension_numbers = #tpu.dot_dimension_numbers<[1], [0], [0], [1], [0, 0, 1, 1], [], []>} : vector<16x64xbf16>, vector<64x256xbf16>, vector<16x256xf32> -> vector<16x256xf32>
    %322 = arith.addf %293, %321 : vector<16x256xf32>
    %323 = vector.extract_strided_slice %230 {offsets = [0, 192], sizes = [16, 64], strides = [1, 1]} : vector<16x256xf32> to vector<16x64xf32>
    %cst_114 = arith.constant 1.250000e-01 : f32
    %324 = vector.broadcast %cst_114 : f32 to vector<16x64xf32>
    %325 = arith.mulf %323, %324 : vector<16x64xf32>
    %326 = arith.truncf %325 : vector<16x64xf32> to vector<16x64xbf16>
    %327 = vector.shape_cast %326 : vector<16x64xbf16> to vector<2x8x64xbf16>
    %328 = vector.extract_strided_slice %231 {offsets = [0, 192], sizes = [16, 64], strides = [1, 1]} : vector<16x256xf32> to vector<16x64xf32>
    %329 = arith.truncf %328 : vector<16x64xf32> to vector<16x64xbf16>
    %330 = vector.shape_cast %329 : vector<16x64xbf16> to vector<2x8x64xbf16>
    %331 = vector.extract_strided_slice %232 {offsets = [0, 192], sizes = [16, 64], strides = [1, 1]} : vector<16x256xf32> to vector<16x64xf32>
    %332 = arith.truncf %331 : vector<16x64xf32> to vector<16x64xbf16>
    %333 = vector.shape_cast %332 : vector<16x64xbf16> to vector<2x8x64xbf16>
    "tpu.trace_start"() <{level = 10 : i32, message = "bqd,bkd->bqk"}> : () -> ()
    %cst_115 = arith.constant dense<0.000000e+00> : vector<2x8x8xf32>
    %334 = tpu.matmul %327, %330, %cst_115 {dimension_numbers = #tpu.dot_dimension_numbers<[2], [2], [1], [1], [0, 0, 0, 1, 1, 1], [0], [0]>} : vector<2x8x64xbf16>, vector<2x8x64xbf16>, vector<2x8x8xf32> -> vector<2x8x8xf32>
    "tpu.trace_stop"() : () -> ()
    %cst_116 = arith.constant dense<0xFF800000> : vector<2x8xf32>
    %335 = vector.multi_reduction <maximumf>, %334, %cst_116 [2] : vector<2x8x8xf32> to vector<2x8xf32>
    %336 = vector.shape_cast %335 : vector<2x8xf32> to vector<2x8x1xf32>
    %337 = vector.broadcast %336 : vector<2x8x1xf32> to vector<2x8x8xf32>
    %338 = arith.subf %334, %337 : vector<2x8x8xf32>
    %339 = math.exp %338 : vector<2x8x8xf32>
    %cst_117 = arith.constant dense<0.000000e+00> : vector<2x8xf32>
    %340 = vector.multi_reduction <add>, %339, %cst_117 [2] : vector<2x8x8xf32> to vector<2x8xf32>
    %341 = vector.shape_cast %340 : vector<2x8xf32> to vector<2x8x1xf32>
    %342 = tpu.reciprocal %341 {approx = true} : vector<2x8x1xf32> -> vector<2x8x1xf32>
    %343 = vector.broadcast %342 : vector<2x8x1xf32> to vector<2x8x8xf32>
    %344 = arith.mulf %339, %343 : vector<2x8x8xf32>
    %345 = arith.truncf %344 : vector<2x8x8xf32> to vector<2x8x8xbf16>
    "tpu.trace_start"() <{level = 10 : i32, message = "bqk,bkd->bqd"}> : () -> ()
    %cst_118 = arith.constant dense<0.000000e+00> : vector<2x8x64xf32>
    %346 = tpu.matmul %345, %333, %cst_118 {dimension_numbers = #tpu.dot_dimension_numbers<[2], [1], [1], [2], [0, 0, 0, 1, 1, 2], [0], [0]>} : vector<2x8x8xbf16>, vector<2x8x64xbf16>, vector<2x8x64xf32> -> vector<2x8x64xf32>
    "tpu.trace_stop"() : () -> ()
    %347 = vector.shape_cast %346 : vector<2x8x64xf32> to vector<16x64xf32>
    %348 = arith.truncf %347 : vector<16x64xf32> to vector<16x64xbf16>
    %349 = vector.extract_strided_slice %234 {offsets = [192, 0], sizes = [64, 256], strides = [1, 1]} : vector<256x256xbf16> to vector<64x256xbf16>
    %cst_119 = arith.constant dense<0.000000e+00> : vector<16x256xf32>
    %350 = tpu.matmul %348, %349, %cst_119 {dimension_numbers = #tpu.dot_dimension_numbers<[1], [0], [0], [1], [0, 0, 1, 1], [], []>} : vector<16x64xbf16>, vector<64x256xbf16>, vector<16x256xf32> -> vector<16x256xf32>
    %351 = arith.addf %322, %350 : vector<16x256xf32>
    %c1_120 = arith.constant 1 : index
    %c0_121 = arith.constant 0 : index
    %c0_122 = arith.constant 0 : index
    %352 = vector.load %arg9[%c1_120, %c0_121, %c0_122] : memref<2x1x256xf32, #tpu.memory_space<vmem>>, vector<1x1x256xf32>
    %353 = vector.shape_cast %352 : vector<1x1x256xf32> to vector<1x256xf32>
    %354 = vector.broadcast %353 : vector<1x256xf32> to vector<16x256xf32>
    %355 = arith.addf %351, %354 : vector<16x256xf32>
    %356 = arith.addf %221, %355 : vector<16x256xf32>
    %c1_123 = arith.constant 1 : index
    %c0_124 = arith.constant 0 : index
    %c0_125 = arith.constant 0 : index
    %357 = vector.load %arg16[%c1_123, %c0_124, %c0_125] : memref<2x1x256xf32, #tpu.memory_space<vmem>>, vector<1x1x256xf32>
    %358 = vector.shape_cast %357 : vector<1x1x256xf32> to vector<1x256xf32>
    %c1_126 = arith.constant 1 : index
    %c0_127 = arith.constant 0 : index
    %c0_128 = arith.constant 0 : index
    %359 = vector.load %arg17[%c1_126, %c0_127, %c0_128] : memref<2x1x256xf32, #tpu.memory_space<vmem>>, vector<1x1x256xf32>
    %360 = vector.shape_cast %359 : vector<1x1x256xf32> to vector<1x256xf32>
    %cst_129 = arith.constant dense<0.000000e+00> : vector<16xf32>
    %361 = vector.multi_reduction <add>, %356, %cst_129 [1] : vector<16x256xf32> to vector<16xf32>
    %362 = vector.shape_cast %361 : vector<16xf32> to vector<16x1xf32>
    %cst_130 = arith.constant 2.560000e+02 : f32
    %363 = vector.broadcast %cst_130 : f32 to vector<16x1xf32>
    %364 = arith.divf %362, %363 : vector<16x1xf32>
    %365 = vector.broadcast %364 : vector<16x1xf32> to vector<16x256xf32>
    %366 = arith.subf %356, %365 : vector<16x256xf32>
    %367 = arith.mulf %366, %366 : vector<16x256xf32>
    %cst_131 = arith.constant dense<0.000000e+00> : vector<16xf32>
    %368 = vector.multi_reduction <add>, %367, %cst_131 [1] : vector<16x256xf32> to vector<16xf32>
    %369 = vector.shape_cast %368 : vector<16xf32> to vector<16x1xf32>
    %cst_132 = arith.constant 2.560000e+02 : f32
    %370 = vector.broadcast %cst_132 : f32 to vector<16x1xf32>
    %371 = arith.divf %369, %370 : vector<16x1xf32>
    %372 = vector.broadcast %364 : vector<16x1xf32> to vector<16x256xf32>
    %373 = arith.subf %356, %372 : vector<16x256xf32>
    %cst_133 = arith.constant 9.99999974E-6 : f32
    %374 = vector.broadcast %cst_133 : f32 to vector<16x1xf32>
    %375 = arith.addf %371, %374 : vector<16x1xf32>
    %376 = math.rsqrt %375 : vector<16x1xf32>
    %377 = vector.broadcast %376 : vector<16x1xf32> to vector<16x256xf32>
    %378 = arith.mulf %373, %377 : vector<16x256xf32>
    %379 = vector.broadcast %358 : vector<1x256xf32> to vector<16x256xf32>
    %380 = arith.mulf %378, %379 : vector<16x256xf32>
    %381 = vector.broadcast %360 : vector<1x256xf32> to vector<16x256xf32>
    %382 = arith.addf %380, %381 : vector<16x256xf32>
    %c1_134 = arith.constant 1 : index
    %c0_135 = arith.constant 0 : index
    %c0_136 = arith.constant 0 : index
    %383 = vector.load %arg10[%c1_134, %c0_135, %c0_136] : memref<2x256x2048xi8, #tpu.memory_space<vmem>>, vector<1x256x2048xi8>
    %384 = vector.shape_cast %383 : vector<1x256x2048xi8> to vector<256x2048xi8>
    %385 = arith.sitofp %384 : vector<256x2048xi8> to vector<256x2048xbf16>
    %386 = arith.truncf %382 : vector<16x256xf32> to vector<16x256xbf16>
    %cst_137 = arith.constant dense<0.000000e+00> : vector<16x2048xf32>
    %387 = tpu.matmul %386, %385, %cst_137 {dimension_numbers = #tpu.dot_dimension_numbers<[1], [0], [0], [1], [0, 0, 1, 1], [], []>} : vector<16x256xbf16>, vector<256x2048xbf16>, vector<16x2048xf32> -> vector<16x2048xf32>
    %c1_138 = arith.constant 1 : index
    %c0_139 = arith.constant 0 : index
    %c0_140 = arith.constant 0 : index
    %388 = vector.load %arg11[%c1_138, %c0_139, %c0_140] : memref<2x1x2048xf32, #tpu.memory_space<vmem>>, vector<1x1x2048xf32>
    %389 = vector.shape_cast %388 : vector<1x1x2048xf32> to vector<1x2048xf32>
    %390 = vector.broadcast %389 : vector<1x2048xf32> to vector<16x2048xf32>
    %391 = arith.mulf %387, %390 : vector<16x2048xf32>
    %c1_141 = arith.constant 1 : index
    %c0_142 = arith.constant 0 : index
    %c0_143 = arith.constant 0 : index
    %392 = vector.load %arg12[%c1_141, %c0_142, %c0_143] : memref<2x1x2048xf32, #tpu.memory_space<vmem>>, vector<1x1x2048xf32>
    %393 = vector.shape_cast %392 : vector<1x1x2048xf32> to vector<1x2048xf32>
    %394 = vector.broadcast %393 : vector<1x2048xf32> to vector<16x2048xf32>
    %395 = arith.addf %391, %394 : vector<16x2048xf32>
    %cst_144 = arith.constant 0.000000e+00 : f32
    %396 = vector.broadcast %cst_144 : f32 to vector<16x2048xf32>
    %397 = arith.maximumf %395, %396 : vector<16x2048xf32>
    %c1_145 = arith.constant 1 : index
    %c0_146 = arith.constant 0 : index
    %c0_147 = arith.constant 0 : index
    %398 = vector.load %arg13[%c1_145, %c0_146, %c0_147] : memref<2x2048x256xi8, #tpu.memory_space<vmem>>, vector<1x2048x256xi8>
    %399 = vector.shape_cast %398 : vector<1x2048x256xi8> to vector<2048x256xi8>
    %400 = arith.sitofp %399 : vector<2048x256xi8> to vector<2048x256xbf16>
    %401 = arith.truncf %397 : vector<16x2048xf32> to vector<16x2048xbf16>
    %cst_148 = arith.constant dense<0.000000e+00> : vector<16x256xf32>
    %402 = tpu.matmul %401, %400, %cst_148 {dimension_numbers = #tpu.dot_dimension_numbers<[1], [0], [0], [1], [0, 0, 1, 1], [], []>} : vector<16x2048xbf16>, vector<2048x256xbf16>, vector<16x256xf32> -> vector<16x256xf32>
    %c1_149 = arith.constant 1 : index
    %c0_150 = arith.constant 0 : index
    %c0_151 = arith.constant 0 : index
    %403 = vector.load %arg14[%c1_149, %c0_150, %c0_151] : memref<2x1x256xf32, #tpu.memory_space<vmem>>, vector<1x1x256xf32>
    %404 = vector.shape_cast %403 : vector<1x1x256xf32> to vector<1x256xf32>
    %405 = vector.broadcast %404 : vector<1x256xf32> to vector<16x256xf32>
    %406 = arith.mulf %402, %405 : vector<16x256xf32>
    %c1_152 = arith.constant 1 : index
    %c0_153 = arith.constant 0 : index
    %c0_154 = arith.constant 0 : index
    %407 = vector.load %arg15[%c1_152, %c0_153, %c0_154] : memref<2x1x256xf32, #tpu.memory_space<vmem>>, vector<1x1x256xf32>
    %408 = vector.shape_cast %407 : vector<1x1x256xf32> to vector<1x256xf32>
    %409 = vector.broadcast %408 : vector<1x256xf32> to vector<16x256xf32>
    %410 = arith.addf %406, %409 : vector<16x256xf32>
    %411 = arith.addf %382, %410 : vector<16x256xf32>
    %c1_155 = arith.constant 1 : index
    %c0_156 = arith.constant 0 : index
    %c0_157 = arith.constant 0 : index
    %412 = vector.load %arg18[%c1_155, %c0_156, %c0_157] : memref<2x1x256xf32, #tpu.memory_space<vmem>>, vector<1x1x256xf32>
    %413 = vector.shape_cast %412 : vector<1x1x256xf32> to vector<1x256xf32>
    %c1_158 = arith.constant 1 : index
    %c0_159 = arith.constant 0 : index
    %c0_160 = arith.constant 0 : index
    %414 = vector.load %arg19[%c1_158, %c0_159, %c0_160] : memref<2x1x256xf32, #tpu.memory_space<vmem>>, vector<1x1x256xf32>
    %415 = vector.shape_cast %414 : vector<1x1x256xf32> to vector<1x256xf32>
    %cst_161 = arith.constant dense<0.000000e+00> : vector<16xf32>
    %416 = vector.multi_reduction <add>, %411, %cst_161 [1] : vector<16x256xf32> to vector<16xf32>
    %417 = vector.shape_cast %416 : vector<16xf32> to vector<16x1xf32>
    %cst_162 = arith.constant 2.560000e+02 : f32
    %418 = vector.broadcast %cst_162 : f32 to vector<16x1xf32>
    %419 = arith.divf %417, %418 : vector<16x1xf32>
    %420 = vector.broadcast %419 : vector<16x1xf32> to vector<16x256xf32>
    %421 = arith.subf %411, %420 : vector<16x256xf32>
    %422 = arith.mulf %421, %421 : vector<16x256xf32>
    %cst_163 = arith.constant dense<0.000000e+00> : vector<16xf32>
    %423 = vector.multi_reduction <add>, %422, %cst_163 [1] : vector<16x256xf32> to vector<16xf32>
    %424 = vector.shape_cast %423 : vector<16xf32> to vector<16x1xf32>
    %cst_164 = arith.constant 2.560000e+02 : f32
    %425 = vector.broadcast %cst_164 : f32 to vector<16x1xf32>
    %426 = arith.divf %424, %425 : vector<16x1xf32>
    %427 = vector.broadcast %419 : vector<16x1xf32> to vector<16x256xf32>
    %428 = arith.subf %411, %427 : vector<16x256xf32>
    %cst_165 = arith.constant 9.99999974E-6 : f32
    %429 = vector.broadcast %cst_165 : f32 to vector<16x1xf32>
    %430 = arith.addf %426, %429 : vector<16x1xf32>
    %431 = math.rsqrt %430 : vector<16x1xf32>
    %432 = vector.broadcast %431 : vector<16x1xf32> to vector<16x256xf32>
    %433 = arith.mulf %428, %432 : vector<16x256xf32>
    %434 = vector.broadcast %413 : vector<1x256xf32> to vector<16x256xf32>
    %435 = arith.mulf %433, %434 : vector<16x256xf32>
    %436 = vector.broadcast %415 : vector<1x256xf32> to vector<16x256xf32>
    %437 = arith.addf %435, %436 : vector<16x256xf32>
    %438 = arith.truncf %437 : vector<16x256xf32> to vector<16x256xbf16>
    %c0_166 = arith.constant 0 : index
    %c0_167 = arith.constant 0 : index
    %439 = vector.load %arg4[%c0_166, %c0_167] : memref<256x128xbf16, #tpu.memory_space<vmem>>, vector<256x128xbf16>
    %cst_168 = arith.constant dense<0.000000e+00> : vector<16x128xf32>
    %440 = tpu.matmul %438, %439, %cst_168 {dimension_numbers = #tpu.dot_dimension_numbers<[1], [0], [0], [1], [0, 0, 1, 1], [], []>} : vector<16x256xbf16>, vector<256x128xbf16>, vector<16x128xf32> -> vector<16x128xf32>
    %c0_169 = arith.constant 0 : index
    %c0_170 = arith.constant 0 : index
    %441 = vector.load %arg5[%c0_169, %c0_170] : memref<1x128xf32, #tpu.memory_space<vmem>>, vector<1x128xf32>
    %442 = vector.broadcast %441 : vector<1x128xf32> to vector<16x128xf32>
    %443 = arith.addf %440, %442 : vector<16x128xf32>
    %444 = tpu.iota {dimensions = array<i32: 1>} : vector<16x128xi32>
    %c2_i32 = arith.constant 2 : i32
    %445 = vector.broadcast %c2_i32 : i32 to vector<16x128xi32>
    %446 = arith.cmpi slt, %444, %445 : vector<16x128xi32>
    %cst_171 = arith.constant -1.000000e+30 : f32
    %447 = vector.broadcast %cst_171 : f32 to vector<16x128xf32>
    %448 = arith.select %446, %443, %447 : vector<16x128xi1>, vector<16x128xf32>
    %cst_172 = arith.constant dense<0xFF800000> : vector<16xf32>
    %449 = vector.multi_reduction <maximumf>, %448, %cst_172 [1] : vector<16x128xf32> to vector<16xf32>
    %450 = vector.shape_cast %449 : vector<16xf32> to vector<16x1xf32>
    %451 = vector.broadcast %450 : vector<16x1xf32> to vector<16x128xf32>
    %452 = arith.subf %448, %451 : vector<16x128xf32>
    %453 = math.exp %452 : vector<16x128xf32>
    %cst_173 = arith.constant dense<0.000000e+00> : vector<16xf32>
    %454 = vector.multi_reduction <add>, %453, %cst_173 [1] : vector<16x128xf32> to vector<16xf32>
    %455 = vector.shape_cast %454 : vector<16xf32> to vector<16x1xf32>
    %456 = vector.broadcast %455 : vector<16x1xf32> to vector<16x128xf32>
    %457 = arith.divf %453, %456 : vector<16x128xf32>
    %c0_174 = arith.constant 0 : index
    %c0_175 = arith.constant 0 : index
    %458 = vector.load %arg20[%c0_174, %c0_175] : memref<16x128xf32, #tpu.memory_space<vmem>>, vector<16x128xf32>
    tpu.vector_store %arg20[%c0_174, %c0_175], %457 {strides = array<i32>} : memref<16x128xf32, #tpu.memory_space<vmem>>, vector<16x128xf32>,
    return
  }
  func.func @transform_0(%arg0: i32) -> (i32, i32) {
    %c0_i32 = arith.constant 0 : i32
    %c0_i32_0 = arith.constant 0 : i32
    return %arg0, %c0_i32 : i32, i32
  }
  func.func @transform_1(%arg0: i32) -> (i32, i32) {
    %c0_i32 = arith.constant 0 : i32
    %c0_i32_0 = arith.constant 0 : i32
    %c0_i32_1 = arith.constant 0 : i32
    return %c0_i32, %c0_i32_0 : i32, i32
  }
  func.func @transform_2(%arg0: i32) -> (i32, i32) {
    %c0_i32 = arith.constant 0 : i32
    %c0_i32_0 = arith.constant 0 : i32
    %c0_i32_1 = arith.constant 0 : i32
    return %c0_i32, %c0_i32_0 : i32, i32
  }
  func.func @transform_3(%arg0: i32) -> (i32, i32) {
    %c0_i32 = arith.constant 0 : i32
    %c0_i32_0 = arith.constant 0 : i32
    %c0_i32_1 = arith.constant 0 : i32
    return %c0_i32, %c0_i32_0 : i32, i32
  }
  func.func @transform_4(%arg0: i32) -> (i32, i32) {
    %c0_i32 = arith.constant 0 : i32
    %c0_i32_0 = arith.constant 0 : i32
    %c0_i32_1 = arith.constant 0 : i32
    return %c0_i32, %c0_i32_0 : i32, i32
  }
  func.func @transform_5(%arg0: i32) -> (i32, i32, i32) {
    %c0_i32 = arith.constant 0 : i32
    %c0_i32_0 = arith.constant 0 : i32
    %c0_i32_1 = arith.constant 0 : i32
    %c0_i32_2 = arith.constant 0 : i32
    return %c0_i32, %c0_i32_0, %c0_i32_1 : i32, i32, i32
  }
  func.func @transform_6(%arg0: i32) -> (i32, i32, i32) {
    %c0_i32 = arith.constant 0 : i32
    %c0_i32_0 = arith.constant 0 : i32
    %c0_i32_1 = arith.constant 0 : i32
    %c0_i32_2 = arith.constant 0 : i32
    return %c0_i32, %c0_i32_0, %c0_i32_1 : i32, i32, i32
  }
  func.func @transform_7(%arg0: i32) -> (i32, i32, i32) {
    %c0_i32 = arith.constant 0 : i32
    %c0_i32_0 = arith.constant 0 : i32
    %c0_i32_1 = arith.constant 0 : i32
    %c0_i32_2 = arith.constant 0 : i32
    return %c0_i32, %c0_i32_0, %c0_i32_1 : i32, i32, i32
  }
  func.func @transform_8(%arg0: i32) -> (i32, i32, i32) {
    %c0_i32 = arith.constant 0 : i32
    %c0_i32_0 = arith.constant 0 : i32
    %c0_i32_1 = arith.constant 0 : i32
    %c0_i32_2 = arith.constant 0 : i32
    return %c0_i32, %c0_i32_0, %c0_i32_1 : i32, i32, i32
  }
  func.func @transform_9(%arg0: i32) -> (i32, i32, i32) {
    %c0_i32 = arith.constant 0 : i32
    %c0_i32_0 = arith.constant 0 : i32
    %c0_i32_1 = arith.constant 0 : i32
    %c0_i32_2 = arith.constant 0 : i32
    return %c0_i32, %c0_i32_0, %c0_i32_1 : i32, i32, i32
  }
  func.func @transform_10(%arg0: i32) -> (i32, i32, i32) {
    %c0_i32 = arith.constant 0 : i32
    %c0_i32_0 = arith.constant 0 : i32
    %c0_i32_1 = arith.constant 0 : i32
    %c0_i32_2 = arith.constant 0 : i32
    return %c0_i32, %c0_i32_0, %c0_i32_1 : i32, i32, i32
  }
  func.func @transform_11(%arg0: i32) -> (i32, i32, i32) {
    %c0_i32 = arith.constant 0 : i32
    %c0_i32_0 = arith.constant 0 : i32
    %c0_i32_1 = arith.constant 0 : i32
    %c0_i32_2 = arith.constant 0 : i32
    return %c0_i32, %c0_i32_0, %c0_i32_1 : i32, i32, i32
  }
  func.func @transform_12(%arg0: i32) -> (i32, i32, i32) {
    %c0_i32 = arith.constant 0 : i32
    %c0_i32_0 = arith.constant 0 : i32
    %c0_i32_1 = arith.constant 0 : i32
    %c0_i32_2 = arith.constant 0 : i32
    return %c0_i32, %c0_i32_0, %c0_i32_1 : i32, i32, i32
  }
  func.func @transform_13(%arg0: i32) -> (i32, i32, i32) {
    %c0_i32 = arith.constant 0 : i32
    %c0_i32_0 = arith.constant 0 : i32
    %c0_i32_1 = arith.constant 0 : i32
    %c0_i32_2 = arith.constant 0 : i32
    return %c0_i32, %c0_i32_0, %c0_i32_1 : i32, i32, i32
  }
  func.func @transform_14(%arg0: i32) -> (i32, i32, i32) {
    %c0_i32 = arith.constant 0 : i32
    %c0_i32_0 = arith.constant 0 : i32
    %c0_i32_1 = arith.constant 0 : i32
    %c0_i32_2 = arith.constant 0 : i32
    return %c0_i32, %c0_i32_0, %c0_i32_1 : i32, i32, i32
  }
  func.func @transform_15(%arg0: i32) -> (i32, i32, i32) {
    %c0_i32 = arith.constant 0 : i32
    %c0_i32_0 = arith.constant 0 : i32
    %c0_i32_1 = arith.constant 0 : i32
    %c0_i32_2 = arith.constant 0 : i32
    return %c0_i32, %c0_i32_0, %c0_i32_1 : i32, i32, i32
  }
  func.func @transform_16(%arg0: i32) -> (i32, i32, i32) {
    %c0_i32 = arith.constant 0 : i32
    %c0_i32_0 = arith.constant 0 : i32
    %c0_i32_1 = arith.constant 0 : i32
    %c0_i32_2 = arith.constant 0 : i32
    return %c0_i32, %c0_i32_0, %c0_i32_1 : i32, i32, i32
  }
  func.func @transform_17(%arg0: i32) -> (i32, i32, i32) {
    %c0_i32 = arith.constant 0 : i32
    %c0_i32_0 = arith.constant 0 : i32
    %c0_i32_1 = arith.constant 0 : i32
    %c0_i32_2 = arith.constant 0 : i32
    return %c0_i32, %c0_i32_0, %c0_i32_1 : i32, i32, i32
  }
  func.func @transform_18(%arg0: i32) -> (i32, i32, i32) {
    %c0_i32 = arith.constant 0 : i32
    %c0_i32_0 = arith.constant 0 : i32
    %c0_i32_1 = arith.constant 0 : i32
    %c0_i32_2 = arith.constant 0 : i32
    return %c0_i32, %c0_i32_0, %c0_i32_1 : i32, i32, i32
  }
  func.func @transform_19(%arg0: i32) -> (i32, i32) {
    %c0_i32 = arith.constant 0 : i32
    %c0_i32_0 = arith.constant 0 : i32
    return %arg0, %c0_i32 : i32, i32
  }
}

</mosaic_0001>

<bundles_post_ra>
// kernel: lstm_policy_forward.1
= control target key start
LH: loop header
LB: loop body
LE: loop exit
PB: predicated region body
PF: predicated region fallthrough
CT: control target
= control target key end

     0   :  { %s11055_s0 = inlined_call_operand.vmem [shape: f32[16,8], index: 0, kind: input, shape index: {}]   ;;  %s11056_s1 = inlined_call_operand.hbm [shape: f32[8,256], index: 1, kind: input, shape index: {}]   ;;  %s11057_s2 = inlined_call_operand.hbm [shape: f32[1,256], index: 2, kind: input, shape index: {}]   ;;  %s11058_s3 = inlined_call_operand.hbm [shape: bf16[256,128], index: 3, kind: input, shape index: {}]   ;;  %s11059_s4 = inlined_call_operand.hbm [shape: f32[1,128], index: 4, kind: input, shape index: {}]   ;;  %s11060_s5 = inlined_call_operand.hbm [shape: bf16[2,256,768], index: 5, kind: input, shape index: {}]   ;;  %s11061_s6 = inlined_call_operand.hbm [shape: f32[2,1,768], index: 6, kind: input, shape index: {}]   ;;  %s11062_s7 = inlined_call_operand.hbm [shape: bf16[2,256,256], index: 7, kind: input, shape index: {}]   ;;  %s11063_s8 = inlined_call_operand.vmem [shape: f32[2,1,256], index: 8, kind: input, shape index: {}]   ;;  %s11064_s9 = inlined_call_operand.hbm [shape: s8[2,256,2048], index: 9, kind: input, shape index: {}]   ;;  %s11065_s10 = inlined_call_operand.vmem [shape: f32[2,1,2048], index: 10, kind: input, shape index: {}]   ;;  %s11066_s11 = inlined_call_operand.vmem [shape: f32[2,1,2048], index: 11, kind: input, shape index: {}]   ;;  %s11067_s12 = inlined_call_operand.hbm [shape: s8[2,2048,256], index: 12, kind: input, shape index: {}]   ;;  %s11068_s13 = inlined_call_operand.hbm [shape: f32[2,1,256], index: 13, kind: input, shape index: {}]   ;;  %s11069_s14 = inlined_call_operand.hbm [shape: f32[2,1,256], index: 14, kind: input, shape index: {}]   ;;  %s11070_s15 = inlined_call_operand.vmem [shape: f32[2,1,256], index: 15, kind: input, shape index: {}]   ;;  %s11071_s16 = inlined_call_operand.hbm [shape: f32[2,1,256], index: 16, kind: input, shape index: {}]   ;;  %s11072_s17 = inlined_call_operand.vmem [shape: f32[2,1,256], index: 17, kind: input, shape index: {}]   ;;  %s11073_s18 = inlined_call_operand.hbm [shape: f32[2,1,256], index: 18, kind: input, shape index: {}]   ;;  %s11074_s19 = inlined_call_operand.vmem [shape: f32[16,128], index: 19, kind: output, shape index: {}]  }
   0x1   :  { %11076 = sst [smem:[#allocation29_spill]] %s11055_s0 }
   0x2   :  { %11077 = sst [smem:[#allocation30_spill]] %s11056_s1 }
   0x3   :  { %11078 = sst [smem:[#allocation31_spill]] %s11057_s2 }
   0x4   :  { %11079 = sst [smem:[#allocation32_spill]] %s11058_s3 }
   0x5   :  { %24 = vsyncpa [#allocation3], 0 }
   0x6   :  { %25 = vsyncpa [#allocation5], 0 }
   0x7   :  { %26 = vsyncpa [#allocation8], 0 }
   0x8   :  { %27 = vsyncpa [#allocation11], 0 }
   0x9   :  { %28 = vsyncpa [#allocation14], 0 }
   0xa   :  { %29 = vsyncpa [#allocation17], 0 }
   0xb   :  { %30 = vsyncpa [#allocation20], 0  ;;  %s9893_s0 = smov [#allocation4]   ;;  %s9894_s20 = smov [#allocation7]  }
   0xc   :  { %s49_s30 = sshll.u32 %s9893_s0, 4  ;;  %s71_s21 = sshll.u32 %s9894_s20, 4  ;;  %s50_s30 = int_to_ptr.vmem [resolvable:$true] %s49_s30  ;;  %s72_s21 = int_to_ptr.vmem [resolvable:$true] %s71_s21 }
   0xd   :  { %s9627_s1 = scalar_lea.vmem %s50_s30, 32  ;;  %p9632_p1 = scmp.lt.s32.totalorder %s50_s30, %s50_s30 }
   0xe   :  { %p9628_p0 = scmp.ne.s32.totalorder %s50_s30, %s9627_s1  ;;  %p9633_p2 = scmp.lt.s32.totalorder %s9627_s1, %s9627_s1 }
  0x10   :  { %p9634_p3 = por %p9633_p2, %p9632_p1 }
  0x12   :  { %p9635_p4 = pnand %p9634_p3, %p9628_p0 }
  0x14   :  { %9638 = shalt.err (!%p9635_p4)
}
  0x15   :  { %s11080_s23 = sld [smem:[#allocation31_spill]]  ;;  %s9647_s24 = scalar_lea.vmem %s72_s21, 16 }
  0x16   :  { %p9648_p5 = scmp.ne.s32.totalorder %s72_s21, %s9647_s24  ;;  %s9651_s25 = scalar_lea.vmem %s72_s21, 32 }
  0x17   :  { %p9652_p6 = scmp.lt.s32.totalorder %s72_s21, %s72_s21  ;;  %p9653_p7 = scmp.lt.s32.totalorder %s9651_s25, %s9647_s24 }
  0x19   :  { %p9654_p8 = por %p9653_p7, %p9652_p6 }
  0x1b   :  { %52 = dma.hbm_to_vmem [thread:$0]  %s11080_s23, 32, %s50_s30, [#allocation5]  }
  0x1c   :  { %p9655_p9 = pnand %p9654_p8, %p9648_p5 }
  0x1e   :  { %9658 = shalt.err (!%p9655_p9)
}
  0x1f   :  { %74 = dma.hbm_to_vmem [thread:$0]  %s11059_s4, 16, %s72_s21, [#allocation8]  }
  0x20   :  { %s9895_s27 = smov [#allocation10]  }
  0x21   :  { %s92_s28 = sshll.u32 %s9895_s27, 4  ;;  %s93_s28 = int_to_ptr.vmem [resolvable:$true] %s92_s28 }
  0x22   :  { %s9667_s29 = scalar_lea.vmem %s93_s28, 192  ;;  %p9672_p11 = scmp.lt.s32.totalorder %s93_s28, %s93_s28 }
  0x23   :  { %p9668_p10 = scmp.ne.s32.totalorder %s93_s28, %s9667_s29  ;;  %p9673_p12 = scmp.lt.s32.totalorder %s9667_s29, %s9667_s29 }
  0x25   :  { %p9674_p13 = por %p9673_p12, %p9672_p11 }
  0x27   :  { %p9675_p0 = pnand %p9674_p13, %p9668_p10 }
  0x29   :  { %9678 = shalt.err (!%p9675_p0)
}
  0x2a   :  { %s9896_s0 = smov 96   ;;  %s9897_s30 = smov 6  }
  0x2b   :  { %98 = dma.hbm_to_vmem [thread:$0]  %s11061_s6, 192, %s93_s28, [#allocation11], %s9896_s0, %s9896_s0, %s9897_s30  }
  0x2c   :  { %s9898_s22 = smov [#allocation13]   ;;  %s9899_s4 = smov [#allocation16]  }
  0x2d   :  { %s118_s2 = sshll.u32 %s9898_s22, 4  ;;  %s146_s21 = sshll.u32 %s9899_s4, 4  ;;  %s119_s2 = int_to_ptr.vmem [resolvable:$true] %s118_s2  ;;  %s147_s21 = int_to_ptr.vmem [resolvable:$true] %s146_s21 }
  0x2e   :  { %s9687_s23 = scalar_lea.vmem %s119_s2, 32768  ;;  %p9692_p2 = scmp.lt.s32.totalorder %s119_s2, %s119_s2 }
  0x2f   :  { %p9688_p1 = scmp.ne.s32.totalorder %s119_s2, %s9687_s23  ;;  %p9693_p3 = scmp.lt.s32.totalorder %s9687_s23, %s9687_s23 }
  0x31   :  { %p9694_p4 = por %p9693_p3, %p9692_p2 }
  0x33   :  { %p9695_p5 = pnand %p9694_p4, %p9688_p1 }
  0x35   :  { %9698 = shalt.err (!%p9695_p5)
}
  0x36   :  { %s9900_s24 = smov 2048   ;;  %s9901_s25 = smov 128  }
  0x37   :  { %124 = dma.hbm_to_vmem [thread:$0]  %s11064_s9, 32768, %s119_s2, [#allocation14], %s9900_s24, %s9900_s24, %s9901_s25  }
  0x38   :  { %s9707_s6 = scalar_lea.vmem %s147_s21, 64  ;;  %p9712_p7 = scmp.lt.s32.totalorder %s147_s21, %s147_s21 }
  0x39   :  { %p9708_p6 = scmp.ne.s32.totalorder %s147_s21, %s9707_s6  ;;  %p9713_p8 = scmp.lt.s32.totalorder %s9707_s6, %s9707_s6 }
  0x3b   :  { %p9714_p9 = por %p9713_p8, %p9712_p7 }
  0x3d   :  { %p9715_p10 = pnand %p9714_p9, %p9708_p6 }
  0x3f   :  { %9718 = shalt.err (!%p9715_p10)
}
  0x40   :  { %s9902_s27 = smov 32   ;;  %s9903_s28 = smov 2  }
  0x41   :  { %152 = dma.hbm_to_vmem [thread:$0]  %s11068_s13, 64, %s147_s21, [#allocation17], %s9902_s27, %s9902_s27, %s9903_s28  }
  0x42   :  { %s9904_s30 = smov [#allocation19]   ;;  %s9905_s9 = smov [#allocation2]  }
  0x43   :  { %s172_s20 = sshll.u32 %s9904_s30, 4  ;;  %s39_s1 = sshll.u32 %s9905_s9, 4  ;;  %s173_s20 = int_to_ptr.vmem [resolvable:$true] %s172_s20  ;;  %s40_s1 = int_to_ptr.vmem [resolvable:$true] %s39_s1 }
  0x44   :  { %s9727_s22 = scalar_lea.vmem %s173_s20, 64  ;;  %p9732_p12 = scmp.lt.s32.totalorder %s173_s20, %s173_s20 }
  0x45   :  { %p9728_p11 = scmp.ne.s32.totalorder %s173_s20, %s9727_s22  ;;  %p9733_p13 = scmp.lt.s32.totalorder %s9727_s22, %s9727_s22 }
  0x47   :  { %p9734_p0 = por %p9733_p13, %p9732_p12 }
  0x49   :  { %p9735_p1 = pnand %p9734_p0, %p9728_p11 }
  0x4b   :  { %9738 = shalt.err (!%p9735_p1)
}
  0x4c   :  { %178 = dma.hbm_to_vmem [thread:$0]  %s11071_s16, 64, %s173_s20, [#allocation20], %s9902_s27, %s9902_s27, %s9903_s28  }
  0x4d   :  { %s9747_s13 = scalar_lea.vmem %s40_s1, 256  ;;  %p9752_p3 = scmp.lt.s32.totalorder %s40_s1, %s40_s1 }
  0x4e   :  { %p9748_p2 = scmp.ne.s32.totalorder %s40_s1, %s9747_s13  ;;  %p9753_p4 = scmp.lt.s32.totalorder %s9747_s13, %s9747_s13 }
  0x50   :  { %p9754_p5 = por %p9753_p4, %p9752_p3 }
  0x52   :  { %p9755_p6 = pnand %p9754_p5, %p9748_p2 }
  0x54   :  { %9758 = shalt.err (!%p9755_p6)
}
  0x55   :  { %s11081_s24 = sld [smem:[#allocation30_spill]]  ;;  %s9906_s3 = smov [#allocation6]  }
  0x56   :  { %s58_s26 = sshll.u32 %s9906_s3, 4  ;;  %s59_s26 = int_to_ptr.vmem [resolvable:$true] %s58_s26 }
  0x57   :  { %s9767_s6 = scalar_lea.vmem %s59_s26, 2048  ;;  %p9772_p8 = scmp.lt.s32.totalorder %s59_s26, %s59_s26 }
  0x58   :  { %p9768_p7 = scmp.ne.s32.totalorder %s59_s26, %s9767_s6  ;;  %p9773_p9 = scmp.lt.s32.totalorder %s9767_s6, %s9767_s6 }
  0x5a   :  { %p9774_p10 = por %p9773_p9, %p9772_p8 }
  0x5b   :  { %42 = dma.hbm_to_vmem [thread:$0]  %s11081_s24, 256, %s40_s1, [#allocation3]  }
  0x5c   :  { %p9775_p11 = pnand %p9774_p10, %p9768_p7 }
  0x5e   :  { %9778 = shalt.err (!%p9775_p11)
}
  0x5f   :  { %s9907_s16 = smov 64   ;;  %s9908_s29 = smov 4  }
  0x60   :  { %s11082_s20 = sld [smem:[#allocation32_spill]]  ;;  %s9909_s9 = smov [#allocation9]  }
  0x61   :  { %s80_s1 = sshll.u32 %s9909_s9, 4  ;;  %s81_s1 = int_to_ptr.vmem [resolvable:$true] %s80_s1 }
  0x62   :  { %s9787_s22 = scalar_lea.vmem %s81_s1, 24576  ;;  %p9792_p13 = scmp.lt.s32.totalorder %s81_s1, %s81_s1 }
  0x63   :  { %p9788_p12 = scmp.ne.s32.totalorder %s81_s1, %s9787_s22  ;;  %p9793_p0 = scmp.lt.s32.totalorder %s9787_s22, %s9787_s22 }
  0x65   :  { %p9794_p1 = por %p9793_p0, %p9792_p13 }
  0x66   :  { %64 = dma.hbm_to_vmem [thread:$0]  %s11082_s20, 2048, %s59_s26, [#allocation5], %s9907_s16, %s9907_s16, %s9908_s29  }
  0x67   :  { %p9795_p2 = pnand %p9794_p1, %p9788_p12 }
  0x69   :  { %9798 = shalt.err (!%p9795_p2)
}
  0x6a   :  { %s9910_s2 = smov 384   ;;  %s9911_s4 = smov 24  }
  0x6b   :  { %86 = dma.hbm_to_vmem [thread:$0]  %s11060_s5, 24576, %s81_s1, [#allocation8], %s9910_s2, %s9910_s2, %s9911_s4  }
  0x6c   :  { %s9912_s23 = smov [#allocation12]  }
  0x6d   :  { %s104_s24 = sshll.u32 %s9912_s23, 4  ;;  %s105_s24 = int_to_ptr.vmem [resolvable:$true] %s104_s24 }
  0x6e   :  { %s9807_s3 = scalar_lea.vmem %s105_s24, 8192  ;;  %p9812_p4 = scmp.lt.s32.totalorder %s105_s24, %s105_s24 }
  0x6f   :  { %p9808_p3 = scmp.ne.s32.totalorder %s105_s24, %s9807_s3  ;;  %p9813_p5 = scmp.lt.s32.totalorder %s9807_s3, %s9807_s3 }
  0x71   :  { %p9814_p6 = por %p9813_p5, %p9812_p4 }
  0x73   :  { %p9815_p7 = pnand %p9814_p6, %p9808_p3 }
  0x75   :  { %9818 = shalt.err (!%p9815_p7)
}
  0x76   :  { %s9913_s26 = smov 8   ;;  %s9914_s0 = smov [#allocation15]  }
  0x77   :  { %110 = dma.hbm_to_vmem [thread:$0]  %s11062_s7, 8192, %s105_s24, [#allocation11], %s9901_s25, %s9901_s25, %s9913_s26  }
  0x78   :  { %s134_s30 = sshll.u32 %s9914_s0, 4  ;;  %s135_s30 = int_to_ptr.vmem [resolvable:$true] %s134_s30 }
  0x79   :  { %s9827_s5 = scalar_lea.vmem %s135_s30, 32768  ;;  %p9832_p9 = scmp.lt.s32.totalorder %s135_s30, %s135_s30 }
  0x7a   :  { %p9828_p8 = scmp.ne.s32.totalorder %s135_s30, %s9827_s5  ;;  %p9833_p10 = scmp.lt.s32.totalorder %s9827_s5, %s9827_s5 }
  0x7c   :  { %p9834_p11 = por %p9833_p10, %p9832_p9 }
  0x7e   :  { %p9835_p12 = pnand %p9834_p11, %p9828_p8 }
  0x80   :  { %9838 = shalt.err (!%p9835_p12)
}
  0x81   :  { %s9915_s20 = smov 256   ;;  %s9916_s9 = smov 16  }
  0x82   :  { %140 = dma.hbm_to_vmem [thread:$0]  %s11067_s12, 32768, %s135_s30, [#allocation14], %s9915_s20, %s9915_s20, %s9916_s9  }
  0x83   :  { %s9917_s2 = smov [#allocation18]   ;;  %s9918_s13 = smov [#allocation21]  }
  0x84   :  { %s158_s4 = sshll.u32 %s9917_s2, 4  ;;  %s186_s7 = sshll.u32 %s9918_s13, 4  ;;  %s159_s4 = int_to_ptr.vmem [resolvable:$true] %s158_s4  ;;  %s187_s7 = int_to_ptr.vmem [resolvable:$true] %s186_s7 }
  0x85   :  { %s9847_s25 = scalar_lea.vmem %s159_s4, 64  ;;  %p9852_p0 = scmp.lt.s32.totalorder %s159_s4, %s159_s4 }
  0x86   :  { %p9848_p13 = scmp.ne.s32.totalorder %s159_s4, %s9847_s25  ;;  %p9853_p1 = scmp.lt.s32.totalorder %s9847_s25, %s9847_s25 }
  0x88   :  { %p9854_p2 = por %p9853_p1, %p9852_p0 }
  0x8a   :  { %p9855_p3 = pnand %p9854_p2, %p9848_p13 }
  0x8c   :  { %9858 = shalt.err (!%p9855_p3)
}
  0x8d   :  { %164 = dma.hbm_to_vmem [thread:$0]  %s11069_s14, 64, %s159_s4, [#allocation17], %s9902_s27, %s9902_s27, %s9903_s28  }
  0x8e   :  { %s9867_s12 = scalar_lea.vmem %s187_s7, 64  ;;  %p9872_p5 = scmp.lt.s32.totalorder %s187_s7, %s187_s7 }
  0x8f   :  { %p9868_p4 = scmp.ne.s32.totalorder %s187_s7, %s9867_s12  ;;  %p9873_p6 = scmp.lt.s32.totalorder %s9867_s12, %s9867_s12 }
  0x91   :  { %p9874_p7 = por %p9873_p6, %p9872_p5 }
  0x93   :  { %p9875_p8 = pnand %p9874_p7, %p9868_p4 }
  0x95   :  { %9878 = shalt.err (!%p9875_p8)
}
  0x96   :  { %192 = dma.hbm_to_vmem [thread:$0]  %s11073_s18, 64, %s187_s7, [#allocation20], %s9902_s27, %s9902_s27, %s9903_s28  }
  0x97   :  { %9879 = dma.done.wait [#allocation3], 256  }
  0x98   :  { %9880 = vsyncadd [#allocation3], 4294967040 }
  0x99   :  { %9881 = dma.done.wait [#allocation5], 2080  }
  0x9a   :  { %9882 = vsyncadd [#allocation5], 4294965216 }
  0x9b   :  { %9883 = dma.done.wait [#allocation8], 24592  }
  0x9c   :  { %9884 = vsyncadd [#allocation8], 4294942704 }
  0x9d   :  { %9885 = dma.done.wait [#allocation11], 8384  }
  0x9e   :  { %9886 = vsyncadd [#allocation11], 4294958912 }
  0x9f   :  { %9887 = dma.done.wait [#allocation14], 65536  }
  0xa0   :  { %9888 = vsyncadd [#allocation14], 4294901760 }
  0xa1   :  { %9889 = dma.done.wait [#allocation17], 128  }
  0xa2   :  { %9890 = vsyncadd [#allocation17], 4294967168 }
  0xa3   :  { %9891 = dma.done.wait [#allocation20], 128  }
  0xa4   :  { %9892 = vsyncadd [#allocation20], 4294967168  ;;  %v9919_v0 = vmov 0.0   ;;  %v236_v1 = vld [vmem:[#allocation2 + $0x8] sm:$0xff]  ;;  %v235_v2 = vld [vmem:[#allocation2] sm:$0xff]  ;;  %s11083_s27 = sld [smem:[#allocation29_spill]] }
  0xa5   :  { %320 = vmatprep.mubr.f32.mxu0 %v9919_v0  ;;  %vm249_vm0 = vcmask 64512   ;;  %286 = vmatprep.subr.mxu0 %v236_v1  ;;  %v9131_v5 = vld [vmem:[#allocation9 + $0x154] ss:$24 sps:$4 sm:$0xff]   ;;  %v9133_v6 = vld [vmem:[#allocation9 + $0x150] ss:$24 sps:$4 sm:$0xff]   ;;  %vm9920_vm1 = vmmov 0  }
  0xa6   :  { %287 = vmatpush1.msra.mxu0 %v235_v2  ;;  %v9134_v7 = vld [vmem:[#allocation9 + $0x158] ss:$24 sps:$4 sm:$0xff]   ;;  %v9136_v8 = vld [vmem:[#allocation9 + $0x15c] ss:$24 sps:$4 sm:$0xff]   ;;  %943 = vmatprep.subr.bf16.mxu1 %v9131_v5  ;;  %v9140_v11 = vld [vmem:[#allocation9 + $0x128] ss:$24 sps:$4 sm:$0xff]  }
  0xa7   :  { %v9137_v9 = vld [vmem:[#allocation9 + $0x124] ss:$24 sps:$4 sm:$0xff]   ;;  %944 = vmatpush1.bf16.msra.mxu1 %v9133_v6  ;;  %986 = vmatprep.subr.bf16.mxu0 %v9136_v8  ;;  %v9139_v10 = vld [vmem:[#allocation9 + $0x120] ss:$24 sps:$4 sm:$0xff]   ;;  %v9143_v13 = vld [vmem:[#allocation9 + $0xf4] ss:$24 sps:$4 sm:$0xff]  }
  0xa8   :  { %945 = vmatprep.subr.bf16.mxu1 %v9137_v9  ;;  %v9142_v12 = vld [vmem:[#allocation9 + $0x12c] ss:$24 sps:$4 sm:$0xff]   ;;  %v9145_v14 = vld [vmem:[#allocation9 + $0xf0] ss:$24 sps:$4 sm:$0xff]   ;;  %v9148_v15 = vld [vmem:[#allocation9 + $0xfc] ss:$24 sps:$4 sm:$0xff]  }
  0xa9   :  { %v9146_v16 = vld [vmem:[#allocation9 + $0xf8] ss:$24 sps:$4 sm:$0xff]   ;;  %v9149_v17 = vld [vmem:[#allocation9 + $0xc4] ss:$24 sps:$4 sm:$0xff]   ;;  %v9152_v20 = vld [vmem:[#allocation9 + $0xc8] ss:$24 sps:$4 sm:$0xff]  }
  0xaa   :  { %v233_v3 = vld [vmem:[%s11083_s27] sm:$0xff]  ;;  %v234_v4 = vld [vmem:[%s11083_s27 + $0x8] sm:$0xff]  ;;  %v9161_v25 = vld [vmem:[#allocation9 + $0x64] ss:$24 sps:$4 sm:$0xff]   ;;  %vm1124_vm2 = vcmask 523264   ;;  %vm1244_vm3 = vcmask 1043456  }
  0xab   :  { %8454 = vmatmul.mubr.msk.f32.vlgmr.msra.gmra.mxu0 %vm249_vm0, %v233_v3  ;;  %946 = vmatpush1.bf16.msra.mxu1 %v9139_v10  ;;  %v9154_v18 = vld [vmem:[#allocation9 + $0xcc] ss:$24 sps:$4 sm:$0xff]   ;;  %v9151_v19 = vld [vmem:[#allocation9 + $0xc0] ss:$24 sps:$4 sm:$0xff]   ;;  %v9160_v22 = vld [vmem:[#allocation9 + $0x9c] ss:$24 sps:$4 sm:$0xff]  }
  0xac   :  { %326 = vmatprep.mubr.f32.mxu0 %v9919_v0  ;;  %987 = vmatpush1.bf16.msra.mxu0 %v9134_v7  ;;  %v9155_v21 = vld [vmem:[#allocation9 + $0x94] ss:$24 sps:$4 sm:$0xff]   ;;  %v9157_v23 = vld [vmem:[#allocation9 + $0x90] ss:$24 sps:$4 sm:$0xff]   ;;  %v9163_v27 = vld [vmem:[#allocation9 + $0x60] ss:$24 sps:$4 sm:$0xff]   ;;  %v239_v7 = vlaneseq }
  0xad   :  { %988 = vmatprep.subr.bf16.mxu0 %v9142_v12  ;;  %947 = vmatprep.subr.bf16.mxu1 %v9143_v13  ;;  %v9158_v24 = vld [vmem:[#allocation9 + $0x98] ss:$24 sps:$4 sm:$0xff]   ;;  %v9166_v26 = vld [vmem:[#allocation9 + $0x6c] ss:$24 sps:$4 sm:$0xff]   ;;  %v9164_v28 = vld [vmem:[#allocation9 + $0x68] ss:$24 sps:$4 sm:$0xff]  }
  0xae   :  { %v9167_v29 = vld [vmem:[#allocation9 + $0x34] ss:$24 sps:$4 sm:$0xff]   ;;  %v9169_v31 = vld [vmem:[#allocation9 + $0x30] ss:$24 sps:$4 sm:$0xff]   ;;  %v9173_v33 = vld [vmem:[#allocation9 + $0x4] ss:$24 sps:$4 sm:$0xff]  }
  0xaf   :  { %8455 = vmatmul.mubr.msk.f32.gmra.mxu0 %vm249_vm0, %v234_v4  ;;  %948 = vmatpush1.bf16.msra.mxu1 %v9145_v14  ;;  %v9172_v30 = vld [vmem:[#allocation9 + $0x3c] ss:$24 sps:$4 sm:$0xff]   ;;  %v9170_v32 = vld [vmem:[#allocation9 + $0x38] ss:$24 sps:$4 sm:$0xff]   ;;  %v9178_v34 = vld [vmem:[#allocation9 + $0xc] ss:$24 sps:$4 sm:$0xff]  }
  0xb0   :  { %989 = vmatpush1.bf16.msra.mxu0 %v9140_v11  ;;  %949 = vmatprep.subr.bf16.mxu1 %v9149_v17  ;;  %v9175_v35 = vld [vmem:[#allocation9] ss:$24 sps:$4 sm:$0xff]   ;;  %v9179_v37 = vld [vmem:[#allocation9 + $0x2d4] ss:$24 sps:$4 sm:$0xff]   ;;  %v9181_v39 = vld [vmem:[#allocation9 + $0x2d0] ss:$24 sps:$4 sm:$0xff]  }
  0xb1   :  { %990 = vmatprep.subr.bf16.mxu0 %v9148_v15  ;;  %v9176_v36 = vld [vmem:[#allocation9 + $0x8] ss:$24 sps:$4 sm:$0xff]   ;;  %v9184_v38 = vld [vmem:[#allocation9 + $0x2dc] ss:$24 sps:$4 sm:$0xff]   ;;  %v9182_v40 = vld [vmem:[#allocation9 + $0x2d8] ss:$24 sps:$4 sm:$0xff]  }
  0xb2   :  { %v9185_v41 = vld [vmem:[#allocation9 + $0x2a4] ss:$24 sps:$4 sm:$0xff]   ;;  %v9187_v42 = vld [vmem:[#allocation9 + $0x2a0] ss:$24 sps:$4 sm:$0xff]   ;;  %v9191_v45 = vld [vmem:[#allocation9 + $0x274] ss:$24 sps:$4 sm:$0xff]  }
  0xb3   :  { %950 = vmatpush1.bf16.msra.mxu1 %v9151_v19  ;;  %v9190_v43 = vld [vmem:[#allocation9 + $0x2ac] ss:$24 sps:$4 sm:$0xff]   ;;  %v9188_v44 = vld [vmem:[#allocation9 + $0x2a8] ss:$24 sps:$4 sm:$0xff]   ;;  %v9196_v46 = vld [vmem:[#allocation9 + $0x27c] ss:$24 sps:$4 sm:$0xff]  }
  0xb4   :  { %991 = vmatpush1.bf16.msra.mxu0 %v9146_v16  ;;  %951 = vmatprep.subr.bf16.mxu1 %v9155_v21  ;;  %v9193_v47 = vld [vmem:[#allocation9 + $0x270] ss:$24 sps:$4 sm:$0xff]   ;;  %v9197_v49 = vld [vmem:[#allocation9 + $0x244] ss:$24 sps:$4 sm:$0xff]   ;;  %v9199_v51 = vld [vmem:[#allocation9 + $0x240] ss:$24 sps:$4 sm:$0xff]  }
  0xb5   :  { %992 = vmatprep.subr.bf16.mxu0 %v9154_v18  ;;  %v9194_v48 = vld [vmem:[#allocation9 + $0x278] ss:$24 sps:$4 sm:$0xff]   ;;  %v9202_v50 = vld [vmem:[#allocation9 + $0x24c] ss:$24 sps:$4 sm:$0xff]   ;;  %v9200_v52 = vld [vmem:[#allocation9 + $0x248] ss:$24 sps:$4 sm:$0xff]  }
  0xb6   :  { %v9203_v53 = vld [vmem:[#allocation9 + $0x214] ss:$24 sps:$4 sm:$0xff]   ;;  %v9205_v55 = vld [vmem:[#allocation9 + $0x210] ss:$24 sps:$4 sm:$0xff]   ;;  %v9209_v57 = vld [vmem:[#allocation9 + $0x1e4] ss:$24 sps:$4 sm:$0xff]  }
  0xb7   :  { %952 = vmatpush1.bf16.msra.mxu1 %v9157_v23  ;;  %v9208_v54 = vld [vmem:[#allocation9 + $0x21c] ss:$24 sps:$4 sm:$0xff]   ;;  %v9206_v56 = vld [vmem:[#allocation9 + $0x218] ss:$24 sps:$4 sm:$0xff]   ;;  %v9214_v59 = vld [vmem:[#allocation9 + $0x1ec] ss:$24 sps:$4 sm:$0xff]  }
  0xb8   :  { %993 = vmatpush1.bf16.msra.mxu0 %v9152_v20  ;;  %953 = vmatprep.subr.bf16.mxu1 %v9161_v25  ;;  %v9211_v58 = vld [vmem:[#allocation9 + $0x1e0] ss:$24 sps:$4 sm:$0xff]   ;;  %v9215_v61 = vld [vmem:[#allocation9 + $0x1b4] ss:$24 sps:$4 sm:$0xff]   ;;  %v9217_v62 = vld [vmem:[#allocation9 + $0x1b0] ss:$24 sps:$4 sm:$0xff]  }
  0xb9   :  { %994 = vmatprep.subr.bf16.mxu0 %v9160_v22  ;;  %v9212_v60 = vld [vmem:[#allocation9 + $0x1e8] ss:$24 sps:$4 sm:$0xff]   ;;  %v9220_v63 = vld [vmem:[#allocation9 + $0x1bc] ss:$24 sps:$4 sm:$0xff]   ;;  %v9218_v1 = vld [vmem:[#allocation9 + $0x1b8] ss:$24 sps:$4 sm:$0xff]  }
  0xba   :  { %v9221_v2 = vld [vmem:[#allocation9 + $0x184] ss:$24 sps:$4 sm:$0xff]   ;;  %v9223_v3 = vld [vmem:[#allocation9 + $0x180] ss:$24 sps:$4 sm:$0xff]   ;;  %v10090_v8 = vshrl.u32 %v239_v7, 7 }
  0xbb   :  { %954 = vmatpush1.bf16.msra.mxu1 %v9163_v27  ;;  %v9226_v4 = vld [vmem:[#allocation9 + $0x18c] ss:$24 sps:$4 sm:$0xff]   ;;  %v9224_v5 = vld [vmem:[#allocation9 + $0x188] ss:$24 sps:$4 sm:$0xff]   ;;  %v237_v12 = vld [vmem:[#allocation4] sm:$0x3] }
  0xbc   :  { %995 = vmatpush1.bf16.msra.mxu0 %v9158_v24  ;;  %955 = vmatprep.subr.bf16.mxu1 %v9167_v29  ;;  %v9229_v6 = vld [vmem:[#allocation9 + $0x164] ss:$24 sps:$4 sm:$0xff]   ;;  %v10093_v9 = vsub.s32 1, %v10090_v8  ;;  %v10096_v10 = vsub.s32 0, %v10090_v8  ;;  %v9227_v23 = vld [vmem:[#allocation9 + $0x160] ss:$24 sps:$4 sm:$0xff]  }
  0xbd   :  { %996 = vmatprep.subr.bf16.mxu0 %v9166_v26  ;;  %v9232_v25 = vld [vmem:[#allocation9 + $0x134] ss:$24 sps:$4 sm:$0xff]   ;;  %v9230_v26 = vld [vmem:[#allocation9 + $0x130] ss:$24 sps:$4 sm:$0xff]   ;;  %v9235_v27 = vld [vmem:[#allocation9 + $0x104] ss:$24 sps:$4 sm:$0xff]  }
  0xbe   :  { %v246_v14 = vrot.slane %v237_v12, %v10093_v9  ;;  %v242_v15 = vrot.slane %v237_v12, %v10096_v10  ;;  %v9238_v29 = vld [vmem:[#allocation9 + $0xd4] ss:$24 sps:$4 sm:$0xff]  }
  0xbf   :  { %956 = vmatpush1.bf16.msra.mxu1 %v9169_v31  ;;  %v9241_v31 = vld [vmem:[#allocation9 + $0xa4] ss:$24 sps:$4 sm:$0xff]  }
  0xc0   :  { %997 = vmatpush1.bf16.msra.mxu0 %v9164_v28  ;;  %957 = vmatprep.subr.bf16.mxu1 %v9173_v33  ;;  %v9233_v28 = vld [vmem:[#allocation9 + $0x100] ss:$24 sps:$4 sm:$0xff]   ;;  %v9244_v33 = vld [vmem:[#allocation9 + $0x74] ss:$24 sps:$4 sm:$0xff]  }
  0xc1   :  { %998 = vmatprep.subr.bf16.mxu0 %v9172_v30  ;;  %v9236_v30 = vld [vmem:[#allocation9 + $0xd0] ss:$24 sps:$4 sm:$0xff]  }
  0xc3   :  { %958 = vmatpush1.bf16.msra.mxu1 %v9175_v35  ;;  %v9247_v35 = vld [vmem:[#allocation9 + $0x44] ss:$24 sps:$4 sm:$0xff]  }
  0xc4   :  { %999 = vmatpush1.bf16.msra.mxu0 %v9170_v32  ;;  %959 = vmatprep.subr.bf16.mxu1 %v9179_v37  ;;  %v9239_v32 = vld [vmem:[#allocation9 + $0xa0] ss:$24 sps:$4 sm:$0xff]   ;;  %v9250_v37 = vld [vmem:[#allocation9 + $0x14] ss:$24 sps:$4 sm:$0xff]  }
  0xc5   :  { %1000 = vmatprep.subr.bf16.mxu0 %v9178_v34  ;;  %v9242_v34 = vld [vmem:[#allocation9 + $0x70] ss:$24 sps:$4 sm:$0xff]  }
  0xc7   :  { %960 = vmatpush2.bf16.msra.mxu1 %v9181_v39  ;;  %v9253_v39 = vld [vmem:[#allocation9 + $0x2e4] ss:$24 sps:$4 sm:$0xff]  }
  0xc8   :  { %1001 = vmatpush1.bf16.msra.mxu0 %v9176_v36  ;;  %961 = vmatprep.subr.bf16.mxu1 %v9185_v41  ;;  %v9245_v36 = vld [vmem:[#allocation9 + $0x40] ss:$24 sps:$4 sm:$0xff]   ;;  %v9256_v41 = vld [vmem:[#allocation9 + $0x2b4] ss:$24 sps:$4 sm:$0xff]  }
  0xc9   :  { %1002 = vmatprep.subr.bf16.mxu0 %v9184_v38  ;;  %v9248_v38 = vld [vmem:[#allocation9 + $0x10] ss:$24 sps:$4 sm:$0xff]  }
  0xcb   :  { %962 = vmatpush2.bf16.msra.mxu1 %v9187_v42  ;;  %v9254_v42 = vld [vmem:[#allocation9 + $0x2b0] ss:$24 sps:$4 sm:$0xff]  }
  0xcc   :  { %1003 = vmatpush2.bf16.msra.mxu0 %v9182_v40  ;;  %963 = vmatprep.subr.bf16.mxu1 %v9191_v45  ;;  %v9251_v40 = vld [vmem:[#allocation9 + $0x2e0] ss:$24 sps:$4 sm:$0xff]   ;;  %v9262_v45 = vld [vmem:[#allocation9 + $0x254] ss:$24 sps:$4 sm:$0xff]  }
  0xcd   :  { %1004 = vmatprep.subr.bf16.mxu0 %v9190_v43  ;;  %v9259_v43 = vld [vmem:[#allocation9 + $0x284] ss:$24 sps:$4 sm:$0xff]  }
  0xcf   :  { %964 = vmatpush2.bf16.msra.mxu1 %v9193_v47  ;;  %v9265_v47 = vld [vmem:[#allocation9 + $0x224] ss:$24 sps:$4 sm:$0xff]  }
  0xd0   :  { %1005 = vmatpush2.bf16.msra.mxu0 %v9188_v44  ;;  %965 = vmatprep.subr.bf16.mxu1 %v9197_v49  ;;  %v9257_v44 = vld [vmem:[#allocation9 + $0x280] ss:$24 sps:$4 sm:$0xff]   ;;  %v9268_v49 = vld [vmem:[#allocation9 + $0x1f4] ss:$24 sps:$4 sm:$0xff]  }
  0xd1   :  { %1006 = vmatprep.subr.bf16.mxu0 %v9196_v46  ;;  %v9260_v46 = vld [vmem:[#allocation9 + $0x250] ss:$24 sps:$4 sm:$0xff]  }
  0xd3   :  { %966 = vmatpush2.bf16.msra.mxu1 %v9199_v51  ;;  %v9271_v51 = vld [vmem:[#allocation9 + $0x1c4] ss:$24 sps:$4 sm:$0xff]  }
  0xd4   :  { %1007 = vmatpush2.bf16.msra.mxu0 %v9194_v48  ;;  %967 = vmatprep.subr.bf16.mxu1 %v9203_v53  ;;  %v9263_v48 = vld [vmem:[#allocation9 + $0x220] ss:$24 sps:$4 sm:$0xff]   ;;  %v9274_v53 = vld [vmem:[#allocation9 + $0x194] ss:$24 sps:$4 sm:$0xff]  }
  0xd5   :  { %1008 = vmatprep.subr.bf16.mxu0 %v9202_v50  ;;  %v9266_v50 = vld [vmem:[#allocation9 + $0x1f0] ss:$24 sps:$4 sm:$0xff]  }
  0xd7   :  { %968 = vmatpush2.bf16.msra.mxu1 %v9205_v55  ;;  %v10123_v55 = vsub.s32 2, %v10090_v8 }
  0xd8   :  { %1009 = vmatpush2.bf16.msra.mxu0 %v9200_v52  ;;  %969 = vmatprep.subr.bf16.mxu1 %v9209_v57  ;;  %v9269_v52 = vld [vmem:[#allocation9 + $0x1c0] ss:$24 sps:$4 sm:$0xff]   ;;  %v10126_v57 = vsub.s32 3, %v10090_v8 }
  0xd9   :  { %1010 = vmatprep.subr.bf16.mxu0 %v9208_v54  ;;  %v9272_v54 = vld [vmem:[#allocation9 + $0x190] ss:$24 sps:$4 sm:$0xff]  }
  0xdb   :  { %970 = vmatpush2.bf16.msra.mxu1 %v9211_v58 }
  0xdc   :  { %1011 = vmatpush2.bf16.msra.mxu0 %v9206_v56  ;;  %971 = vmatprep.subr.bf16.mxu1 %v9215_v61  ;;  %v431_v56 = vld [vmem:[#allocation10] sm:$0x3f] }
  0xdd   :  { %1012 = vmatprep.subr.bf16.mxu0 %v9214_v59  ;;  %v444_v58 = vrot.slane %v431_v56, %v10123_v55  ;;  %v436_v59 = vrot.slane %v431_v56, %v10096_v10  ;;  %v10134_v61 = vrot.slane %v431_v56, %v10126_v57 }
  0xdf   :  { %972 = vmatpush2.bf16.msra.mxu1 %v9217_v62 }
  0xe0   :  { %1013 = vmatpush2.bf16.msra.mxu0 %v9212_v60  ;;  %973 = vmatprep.subr.bf16.mxu1 %v9221_v2  ;;  %v10131_v60 = vrot.slane %v431_v56, %v10093_v9 }
  0xe1   :  { %1014 = vmatprep.subr.bf16.mxu0 %v9220_v63 }
  0xe3   :  { %974 = vmatpush2.bf16.msra.mxu1 %v9223_v3 }
  0xe4   :  { %1015 = vmatpush2.bf16.msra.mxu0 %v9218_v1  ;;  %1029 = vmatprep.subr.bf16.mxu1 %v9229_v6 }
  0xe5   :  { %1016 = vmatprep.subr.bf16.mxu0 %v9226_v4 }
  0xe8   :  { %1017 = vmatpush2.bf16.msra.mxu0 %v9224_v5 }
  0xe9   :  { %8916 = vmatprep.subr.bf16.mxu0 %v9919_v0 }
 0x16b   :  { %v322_v11 = vpop.f32.mrf.mxu0 }
 0x16c   :  { %v10106_v21 = vadd.f32 %v322_v11, %v242_v15 }
 0x16d   :  { %v324_v13 = vpop.f32.mrf.mxu0 }
 0x16e   :  { %v10102_v19 = vadd.f32 %v324_v13, %v246_v14 }
 0x16f   :  { %v328_v16 = vpop.f32.mrf.mxu0 }
 0x170   :  { %v10100_v17 = vadd.f32 %v328_v16, %v242_v15 }
 0x171   :  { %v330_v18 = vpop.f32.mrf.mxu0 }
 0x172   :  { %v10104_v20 = vadd.f32 %v330_v18, %v246_v14  ;;  %v10112_v24 = vpack.c.bf16 %v10100_v17, %v10106_v21 }
 0x174   :  { %v334_v22 = vpack.c.bf16 %v10104_v20, %v10102_v19 }
 0x176   :  { %975 = vmatprep.mubr.bf16.mxu1 %v334_v22  ;;  %1018 = vmatprep.mubr.bf16.mxu0 %v334_v22 }
 0x177   :  { %976 = vmatmul.mubr.bf16.vlgmr.msra.gmra.mxu1 %v10112_v24  ;;  %1019 = vmatmul.mubr.bf16.vlgmr.msra.gmra.mxu0 %v10112_v24 }
 0x178   :  { %1030 = vmatpush1.bf16.msra.mxu1 %v9227_v23  ;;  %1061 = vmatprep.mubr.bf16.mxu1 %v334_v22 }
 0x179   :  { %1031 = vmatprep.subr.bf16.mxu1 %v9232_v25  ;;  %8918 = vmatprep.mubr.msk.bf16.mxu0 %vm9920_vm1, %v9919_v0 }
 0x17c   :  { %1032 = vmatpush1.bf16.msra.mxu1 %v9230_v26 }
 0x17d   :  { %1033 = vmatprep.subr.bf16.mxu1 %v9235_v27  ;;  %v10150_v27 = vsub.s32 4, %v10090_v8 }
 0x180   :  { %1034 = vmatpush1.bf16.msra.mxu1 %v9233_v28  ;;  %v10153_v28 = vsub.s32 5, %v10090_v8 }
 0x181   :  { %1035 = vmatprep.subr.bf16.mxu1 %v9238_v29  ;;  %v452_v29 = vrot.slane %v431_v56, %v10150_v27 }
 0x184   :  { %1036 = vmatpush1.bf16.msra.mxu1 %v9236_v30 }
 0x185   :  { %1037 = vmatprep.subr.bf16.mxu1 %v9241_v31  ;;  %v10159_v31 = vrot.slane %v431_v56, %v10153_v28 }
 0x188   :  { %1038 = vmatpush1.bf16.msra.mxu1 %v9239_v32 }
 0x189   :  { %1039 = vmatprep.subr.bf16.mxu1 %v9244_v33 }
 0x18c   :  { %1040 = vmatpush1.bf16.msra.mxu1 %v9242_v34 }
 0x18d   :  { %1041 = vmatprep.subr.bf16.mxu1 %v9247_v35 }
 0x190   :  { %1042 = vmatpush1.bf16.msra.mxu1 %v9245_v36 }
 0x191   :  { %1043 = vmatprep.subr.bf16.mxu1 %v9250_v37 }
 0x194   :  { %1044 = vmatpush1.bf16.msra.mxu1 %v9248_v38 }
 0x195   :  { %1045 = vmatprep.subr.bf16.mxu1 %v9253_v39 }
 0x198   :  { %1046 = vmatpush2.bf16.msra.mxu1 %v9251_v40 }
 0x199   :  { %1047 = vmatprep.subr.bf16.mxu1 %v9256_v41 }
 0x19c   :  { %1048 = vmatpush2.bf16.msra.mxu1 %v9254_v42 }
 0x19d   :  { %1049 = vmatprep.subr.bf16.mxu1 %v9259_v43 }
 0x1a0   :  { %1050 = vmatpush2.bf16.msra.mxu1 %v9257_v44 }
 0x1a1   :  { %1051 = vmatprep.subr.bf16.mxu1 %v9262_v45 }
 0x1a4   :  { %1052 = vmatpush2.bf16.msra.mxu1 %v9260_v46 }
 0x1a5   :  { %1053 = vmatprep.subr.bf16.mxu1 %v9265_v47 }
 0x1a8   :  { %1054 = vmatpush2.bf16.msra.mxu1 %v9263_v48 }
 0x1a9   :  { %1055 = vmatprep.subr.bf16.mxu1 %v9268_v49 }
 0x1ac   :  { %1056 = vmatpush2.bf16.msra.mxu1 %v9266_v50 }
 0x1ad   :  { %1057 = vmatprep.subr.bf16.mxu1 %v9271_v51 }
 0x1b0   :  { %1058 = vmatpush2.bf16.msra.mxu1 %v9269_v52 }
 0x1b1   :  { %1059 = vmatprep.subr.bf16.mxu1 %v9274_v53 }
 0x1b4   :  { %1060 = vmatpush2.bf16.msra.mxu1 %v9272_v54 }
 0x1b5   :  { %8910 = vmatprep.subr.bf16.mxu1 %v9919_v0 }
 0x1b7   :  { %1062 = vmatmul.mubr.bf16.vlgmr.msra.gmra.mxu1 %v10112_v24 }
 0x1b8   :  { %8912 = vmatprep.mubr.msk.bf16.mxu1 %vm9920_vm1, %v9919_v0 }
 0x237   :  { %v977_v62 = vpop.f32.mrf.mxu1  ;;  %v1020_v63 = vpop.f32.mrf.mxu0 }
 0x238   :  { %v1021_v1 = vadd.f32 %v1020_v63, %v444_v58  ;;  %v978_v4 = vadd.f32 %v977_v62, %v436_v59 }
 0x239   :  { %v979_v2 = vpop.f32.mrf.mxu1  ;;  %v1022_v3 = vpop.f32.mrf.mxu0 }
 0x23a   :  { %v8802_v5 = vpack.c.bf16 %v1021_v1, %v1021_v1  ;;  %v10137_v6 = vadd.f32 %v979_v2, %v10131_v60  ;;  %v10140_v11 = vadd.f32 %v1022_v3, %v10134_v61  ;;  %v1104_v16 = vmul.f32 0.125, %v978_v4 }
 0x23b   :  { %v1024_v12 = vpop.f32.mrf.mxu0  ;;  %v981_v14 = vpop.f32.mrf.mxu1 }
 0x23c   :  { %v1129_v13 = vsel %vm1124_vm2, %v8802_v5, 0  ;;  %v1025_v15 = vadd.f32 %v1024_v12, %v444_v58  ;;  %v982_v18 = vadd.f32 %v981_v14, %v436_v59  ;;  %v8800_v24 = vpack.c.bf16 %v1104_v16, %v1104_v16 }
 0x23d   :  { %8911 = vmatpush3.bf16.xpose.msra.mxu1 %v1129_v13  ;;  %v10156_v30 = vpop.f32.mrf.mxu1  ;;  %v10172_v44 = vpop.f32.mrf.mxu0 }
 0x23e   :  { %v8803_v22 = vpack.c.bf16 %v1025_v15, %v1025_v15  ;;  %v1105_v25 = vmul.f32 0.125, %v982_v18 }
 0x240   :  { %v1175_v23 = vsel %vm1124_vm2, %v8803_v22, 0  ;;  %v8801_v26 = vpack.c.bf16 %v1105_v25, %v1105_v25 }
 0x241   :  { %8917 = vmatpush3.bf16.xpose.msra.mxu0 %v1175_v23 }
 0x242   :  { %8922 = vmatprep.subr.bf16.mxu0 %v9919_v0 }
 0x244   :  { %8913 = vmatmul.mubr.msk.bf16.vlgmr.msra.gmra.mxu1 %vm1124_vm2, %v8800_v24 }
 0x248   :  { %8919 = vmatmul.mubr.msk.bf16.vlgmr.msra.gmra.mxu0 %vm1124_vm2, %v8801_v26 }
 0x249   :  { %8924 = vmatprep.mubr.msk.bf16.mxu0 %vm9920_vm1, %v9919_v0 }
 0x277   :  { %v1063_v32 = vpop.f32.mrf.mxu1 }
 0x278   :  { %v1064_v33 = vadd.f32 %v1063_v32, %v452_v29 }
 0x279   :  { %v1065_v34 = vpop.f32.mrf.mxu1 }
 0x27a   :  { %v10161_v35 = vpack.c.bf16 %v1064_v33, %v1064_v33  ;;  %v10164_v36 = vadd.f32 %v1065_v34, %v10159_v31 }
 0x27b   :  { %v1067_v37 = vpop.f32.mrf.mxu1 }
 0x27c   :  { %v1246_v38 = vsel %vm1244_vm3, %v10161_v35, 0  ;;  %v1068_v39 = vadd.f32 %v1067_v37, %v452_v29 }
 0x27d   :  { %8923 = vmatpush3.bf16.msra.mxu0 %v1246_v38  ;;  %v10169_v40 = vpop.f32.mrf.mxu1 }
 0x27e   :  { %8928 = vmatprep.subr.bf16.mxu0 %v9919_v0  ;;  %v8805_v12 = vpack.c.bf16 %v1068_v39, %v1068_v39 }
 0x280   :  { %v1292_v16 = vsel %vm1244_vm3, %v8805_v12, 0 }
 0x304   :  { %v1165_v41 = vpop.f32.mrf.mxu1 }
 0x305   :  { %v1217_v42 = vsel %vm249_vm0, %v1165_v41, -inf }
 0x306   :  { %1218 = vmax.xlane.f32.xlu0 %v1217_v42  ;;  %v8914_v43 = vpop.f32.mrf.mxu1 }
 0x308   :  { %v1168_v45 = vpop.f32.mrf.mxu1  ;;  %v1211_v46 = vpop.f32.mrf.mxu0 }
 0x309   :  { %v1220_v47 = vsel %vm249_vm0, %v1211_v46, -inf }
 0x30a   :  { %v8915_v48 = vpop.f32.mrf.mxu1  ;;  %v8920_v49 = vpop.f32.mrf.mxu0  ;;  %1221 = vmax.xlane.f32.xlu0 %v1220_v47 }
 0x30c   :  { %v1214_v50 = vpop.f32.mrf.mxu0 }
 0x30e   :  { %v8921_v51 = vpop.f32.mrf.mxu0 }
 0x320   :  { %1337 = vrot.lane.b32.xlu0 %v8802_v5, %s9907_s16 }
 0x38f   :  { %v1219_v52 = vpop.xlane.xlu0 %1218 }
 0x390   :  { %v1223_v53 = vsub.f32 %v1165_v41, %v1219_v52 }
 0x392   :  { %v1225_v54 = vmul.f32 1.442695, %v1223_v53 }
 0x393   :  { %v1222_v56 = vpop.xlane.xlu0 %1221 }
 0x394   :  { %9531 = vpow2.f32 %v1225_v54  ;;  %v1224_v58 = vsub.f32 %v1211_v46, %v1222_v56 }
 0x396   :  { %v1227_v59 = vmul.f32 1.442695, %v1224_v58 }
 0x398   :  { %9533 = vpow2.f32 %v1227_v59 }
 0x3a1   :  { %v9532_v62 = vpop.eup %9531 }
 0x3a2   :  { %v1229_v63 = vsel %vm249_vm0, %v9532_v62, 0.0 }
 0x3a3   :  { %1230 = vadd.xlane.f32.xlu1 %v1229_v63 }
 0x3a5   :  { %v9534_v1 = vpop.eup %9533 }
 0x3a6   :  { %v1232_v2 = vsel %vm249_vm0, %v9534_v1, 0.0 }
 0x3a7   :  { %1233 = vadd.xlane.f32.xlu1 %v1232_v2 }
 0x3b8   :  { %1335 = vrot.lane.b32.xlu1 %v8800_v24, %s9907_s16 }
 0x3bc   :  { %1387 = vrot.lane.b32.xlu1 %v8803_v22, %s9907_s16  ;;  %v1338_v22 = vpop.permute.xlu0 %1337 }
 0x3bd   :  { %v1343_v25 = vsel %vm1124_vm2, %v1338_v22, 0 }
 0x3c0   :  { %1385 = vrot.lane.b32.xlu1 %v8801_v26, %s9907_s16 }
 0x42c   :  { %v1231_v3 = vpop.xlane.xlu1 %1230 }
 0x42d   :  { %9535 = vrcp.f32 %v1231_v3 }
 0x430   :  { %v1234_v4 = vpop.xlane.xlu1 %1233 }
 0x431   :  { %9537 = vrcp.f32 %v1234_v4 }
 0x434   :  { %v1336_v24 = vpop.permute.xlu1 %1335 }
 0x438   :  { %v1388_v26 = vpop.permute.xlu1 %1387 }
 0x439   :  { %v1393_v29 = vsel %vm1124_vm2, %v1388_v26, 0 }
 0x43a   :  { %v9536_v5 = vpop.eup %9535 }
 0x43b   :  { %v1237_v13 = vmul.f32 %v9536_v5, %v9532_v62 }
 0x43c   :  { %v1386_v32 = vpop.permute.xlu1 %1385 }
 0x43d   :  { %v1239_v14 = vpack.c.bf16 %v1237_v13, %v1237_v13 }
 0x43e   :  { %v9538_v15 = vpop.eup %9537 }
 0x43f   :  { %8925 = vmatmul.mubr.msk.bf16.vlgmr.msra.gmra.mxu0 %vm249_vm0, %v1239_v14  ;;  %v1238_v18 = vmul.f32 %v9538_v15, %v9534_v1  ;;  %v9287_v14 = vld [vmem:[#allocation12 + $0x70] ss:$8 sps:$4 sm:$0xff]   ;;  %v9289_v15 = vld [vmem:[#allocation12 + $0x74] ss:$8 sps:$4 sm:$0xff]  }
 0x440   :  { %8929 = vmatpush3.bf16.msra.mxu0 %v1292_v16  ;;  %8930 = vmatprep.mubr.msk.bf16.mxu0 %vm9920_vm1, %v9919_v0  ;;  %v9292_v16 = vld [vmem:[#allocation12 + $0x64] ss:$8 sps:$4 sm:$0xff]  }
 0x441   :  { %8934 = vmatprep.subr.bf16.mxu0 %v9919_v0  ;;  %v1240_v23 = vpack.c.bf16 %v1238_v18, %v1238_v18  ;;  %1607 = vmatprep.subr.bf16.mxu1 %v9289_v15  ;;  %v9290_v18 = vld [vmem:[#allocation12 + $0x60] ss:$8 sps:$4 sm:$0xff]  }
 0x442   :  { %1608 = vmatpush1.bf16.msra.mxu1 %v9287_v14  ;;  %v1728_v14 = vmul.f32 0.125, %v10137_v6 }
 0x443   :  { %1609 = vmatprep.subr.bf16.mxu1 %v9292_v16 }
 0x444   :  { %v8806_v16 = vpack.c.bf16 %v1728_v14, %v1728_v14 }
 0x446   :  { %1610 = vmatpush1.bf16.msra.mxu1 %v9290_v18 }
 0x447   :  { %8931 = vmatmul.mubr.msk.bf16.vlgmr.msra.gmra.mxu0 %vm249_vm0, %v1240_v23 }
 0x448   :  { %8935 = vmatpush3.bf16.xpose.msra.mxu0 %v1343_v25  ;;  %8936 = vmatprep.mubr.msk.bf16.mxu0 %vm9920_vm1, %v9919_v0 }
 0x449   :  { %8940 = vmatprep.subr.bf16.mxu0 %v9919_v0 }
 0x44f   :  { %8937 = vmatmul.mubr.msk.bf16.vlgmr.msra.gmra.mxu0 %vm1124_vm2, %v1336_v24 }
 0x450   :  { %8941 = vmatpush3.bf16.xpose.msra.mxu0 %v1393_v29  ;;  %8942 = vmatprep.mubr.msk.bf16.mxu0 %vm9920_vm1, %v9919_v0 }
 0x451   :  { %8946 = vmatprep.subr.bf16.mxu0 %v9919_v0 }
 0x457   :  { %8943 = vmatmul.mubr.msk.bf16.vlgmr.msra.gmra.mxu0 %vm1124_vm2, %v1386_v32 }
 0x458   :  { %8948 = vmatprep.mubr.msk.bf16.mxu0 %vm9920_vm1, %v9919_v0 }
 0x4ff   :  { %v10199_v33 = vpop.f32.mrf.mxu0 }
 0x501   :  { %v8926_v34 = vpop.f32.mrf.mxu0 }
 0x502   :  { %v9277_v34 = vld [vmem:[#allocation12 + $0x34] ss:$8 sps:$4 sm:$0xff]  }
 0x503   :  { %v1285_v37 = vpop.f32.mrf.mxu0 }
 0x505   :  { %v8927_v38 = vpop.f32.mrf.mxu0 }
 0x507   :  { %v10201_v39 = vpop.f32.mrf.mxu0 }
 0x508   :  { %v1334_v41 = vpack.c.bf16 %v10201_v39, %v10199_v33  ;;  %v9293_v33 = vld [vmem:[#allocation12 + $0x50] ss:$8 sps:$4 sm:$0xff]   ;;  %v9298_v39 = vld [vmem:[#allocation12 + $0x44] ss:$8 sps:$4 sm:$0xff]  }
 0x509   :  { %v8932_v42 = vpop.f32.mrf.mxu0 }
 0x50b   :  { %v1331_v43 = vpop.f32.mrf.mxu0 }
 0x50c   :  { %v9275_v43 = vld [vmem:[#allocation12 + $0x30] ss:$8 sps:$4 sm:$0xff]  }
 0x50d   :  { %v8933_v45 = vpop.f32.mrf.mxu0 }
 0x50f   :  { %v1379_v46 = vpop.f32.mrf.mxu0 }
 0x510   :  { %v1435_v47 = vsel %vm249_vm0, %v1379_v46, -inf }
 0x511   :  { %1436 = vmax.xlane.f32.xlu0 %v1435_v47  ;;  %v8938_v48 = vpop.f32.mrf.mxu0  ;;  %v9278_v47 = vld [vmem:[#allocation12 + $0x20] ss:$8 sps:$4 sm:$0xff]  }
 0x512   :  { %v9283_v48 = vld [vmem:[#allocation12 + $0x14] ss:$8 sps:$4 sm:$0xff]  }
 0x513   :  { %v1382_v49 = vpop.f32.mrf.mxu0 }
 0x514   :  { %v9281_v49 = vld [vmem:[#allocation12 + $0x10] ss:$8 sps:$4 sm:$0xff]  }
 0x515   :  { %v8939_v50 = vpop.f32.mrf.mxu0 }
 0x516   :  { %v9286_v50 = vld [vmem:[#allocation12 + $0x4] ss:$8 sps:$4 sm:$0xff]  }
 0x517   :  { %v1429_v51 = vpop.f32.mrf.mxu0 }
 0x518   :  { %v1438_v52 = vsel %vm249_vm0, %v1429_v51, -inf }
 0x519   :  { %1439 = vmax.xlane.f32.xlu1 %v1438_v52  ;;  %v8944_v53 = vpop.f32.mrf.mxu0  ;;  %v9284_v52 = vld [vmem:[#allocation12] ss:$8 sps:$4 sm:$0xff]  }
 0x51b   :  { %v1432_v54 = vpop.f32.mrf.mxu0 }
 0x51c   :  { %v984_v54 = vadd.f32 %v10156_v30, %v10131_v60 }
 0x51d   :  { %v8945_v56 = vpop.f32.mrf.mxu0 }
 0x51e   :  { %v1070_v56 = vadd.f32 %v10169_v40, %v10159_v31  ;;  %v9295_v40 = vld [vmem:[#allocation12 + $0x54] ss:$8 sps:$4 sm:$0xff]  }
 0x51f   :  { %1611 = vmatprep.subr.bf16.mxu1 %v9295_v40 }
 0x520   :  { %v10236_v60 = vpack.c.bf16 %v1070_v56, %v1070_v56  ;;  %1612 = vmatpush1.bf16.msra.mxu1 %v9293_v33 }
 0x521   :  { %1613 = vmatprep.subr.bf16.mxu1 %v9298_v39 }
 0x522   :  { %v1914_v31 = vsel %vm1244_vm3, %v10236_v60, 0 }
 0x52a   :  { %1507 = vrot.lane.b32.xlu1 %v8805_v12, %s9907_s16  ;;  %v9921_v12 = vmov 0  }
 0x52b   :  { %1631 = vmatprep.mubr.bf16.mxu1 %v9921_v12 }
 0x59a   :  { %v1437_v58 = vpop.xlane.xlu0 %1436 }
 0x59b   :  { %v1441_v59 = vsub.f32 %v1379_v46, %v1437_v58  ;;  %v9280_v46 = vld [vmem:[#allocation12 + $0x24] ss:$8 sps:$4 sm:$0xff]  }
 0x59d   :  { %v1443_v62 = vmul.f32 1.442695, %v1441_v59 }
 0x59f   :  { %9539 = vpow2.f32 %v1443_v62 }
 0x5a2   :  { %v1440_v63 = vpop.xlane.xlu1 %1439 }
 0x5a3   :  { %v1442_v1 = vsub.f32 %v1429_v51, %v1440_v63  ;;  %v1027_v51 = vadd.f32 %v10172_v44, %v10134_v61  ;;  %v1729_v44 = vmul.f32 0.125, %v984_v54 }
 0x5a5   :  { %v1445_v2 = vmul.f32 1.442695, %v1442_v1  ;;  %v8809_v53 = vpack.c.bf16 %v1027_v51, %v1027_v51  ;;  %v8807_v30 = vpack.c.bf16 %v1729_v44, %v1729_v44  ;;  %v8808_v1 = vpack.c.bf16 %v10140_v11, %v10140_v11 }
 0x5a6   :  { %v1508_v29 = vpop.permute.xlu1 %1507  ;;  %v10255_v11 = vpack.c.bf16 %v10164_v36, %v10164_v36 }
 0x5a7   :  { %9541 = vpow2.f32 %v1445_v2  ;;  %v1513_v37 = vsel %vm1244_vm3, %v1508_v29, 0  ;;  %v1798_v61 = vsel %vm1124_vm2, %v8809_v53, 0 }
 0x5a8   :  { %v1868_v18 = vsel %vm1244_vm3, %v10255_v11, 0 }
 0x5ac   :  { %v9540_v3 = vpop.eup %9539 }
 0x5ad   :  { %v1447_v4 = vsel %vm249_vm0, %v9540_v3, 0.0 }
 0x5ae   :  { %1448 = vadd.xlane.f32.xlu0 %v1447_v4 }
 0x5b4   :  { %v9542_v5 = vpop.eup %9541 }
 0x5b5   :  { %v1450_v13 = vsel %vm249_vm0, %v9542_v5, 0.0 }
 0x5b6   :  { %1451 = vadd.xlane.f32.xlu0 %v1450_v13 }
 0x5cc   :  { %1459 = vrot.lane.b32.xlu0 %v10161_v35, %s9907_s16 }
 0x637   :  { %v1449_v22 = vpop.xlane.xlu0 %1448 }
 0x638   :  { %9543 = vrcp.f32 %v1449_v22 }
 0x63f   :  { %v1452_v23 = vpop.xlane.xlu0 %1451 }
 0x640   :  { %9545 = vrcp.f32 %v1452_v23 }
 0x643   :  { %v1460_v24 = vpop.permute.xlu0 %1459 }
 0x644   :  { %v1465_v25 = vsel %vm1244_vm3, %v1460_v24, 0 }
 0x645   :  { %v9544_v26 = vpop.eup %9543  ;;  %8947 = vmatpush3.bf16.msra.mxu0 %v1465_v25 }
 0x646   :  { %8952 = vmatprep.subr.bf16.mxu0 %v9919_v0  ;;  %v1455_v35 = vmul.f32 %v9544_v26, %v9540_v3 }
 0x648   :  { %v1457_v32 = vpack.c.bf16 %v1455_v35, %v1455_v35 }
 0x64a   :  { %8949 = vmatmul.mubr.msk.bf16.vlgmr.msra.gmra.mxu0 %vm249_vm0, %v1457_v32 }
 0x64b   :  { %8953 = vmatpush3.bf16.msra.mxu0 %v1513_v37  ;;  %8954 = vmatprep.mubr.msk.bf16.mxu0 %vm9920_vm1, %v9919_v0 }
 0x64c   :  { %1693 = vmatprep.subr.bf16.mxu0 %v9277_v34 }
 0x64d   :  { %v9546_v38 = vpop.eup %9545 }
 0x64e   :  { %v1456_v42 = vmul.f32 %v9546_v38, %v9542_v5  ;;  %v1752_v5 = vsel %vm1124_vm2, %v8808_v1, 0 }
 0x650   :  { %v1458_v45 = vpack.c.bf16 %v1456_v42, %v1456_v42 }
 0x652   :  { %8955 = vmatmul.mubr.msk.bf16.vlgmr.msra.gmra.mxu0 %vm249_vm0, %v1458_v45 }
 0x653   :  { %1694 = vmatpush1.bf16.msra.mxu0 %v9275_v43  ;;  %1717 = vmatprep.mubr.bf16.mxu0 %v9921_v12 }
 0x654   :  { %1695 = vmatprep.subr.bf16.mxu0 %v9280_v46 }
 0x657   :  { %1696 = vmatpush1.bf16.msra.mxu0 %v9278_v47 }
 0x658   :  { %1697 = vmatprep.subr.bf16.mxu0 %v9283_v48 }
 0x65b   :  { %1698 = vmatpush1.bf16.msra.mxu0 %v9281_v49 }
 0x65c   :  { %1699 = vmatprep.subr.bf16.mxu0 %v9286_v50 }
 0x65f   :  { %1700 = vmatpush1.bf16.msra.mxu0 %v9284_v52 }
 0x660   :  { %8964 = vmatprep.subr.bf16.mxu0 %v9919_v0 }
 0x662   :  { %8583 = vmatmul.mubr.msk.bf16.vlgmr.msra.gmra.mxu0 %vm1124_vm2, %v1334_v41  ;;  %v9296_v41 = vld [vmem:[#allocation12 + $0x40] ss:$8 sps:$4 sm:$0xff]  }
 0x663   :  { %8965 = vmatpush3.bf16.xpose.msra.mxu0 %v1798_v61  ;;  %8966 = vmatprep.mubr.msk.bf16.mxu0 %vm9920_vm1, %v9919_v0 }
 0x664   :  { %8976 = vmatprep.subr.bf16.mxu0 %v9919_v0  ;;  %1614 = vmatpush1.bf16.msra.mxu1 %v9296_v41 }
 0x665   :  { %8958 = vmatprep.subr.bf16.mxu1 %v9919_v0 }
 0x66a   :  { %8967 = vmatmul.mubr.msk.bf16.vlgmr.msra.gmra.mxu0 %vm1124_vm2, %v8807_v30 }
 0x66b   :  { %8977 = vmatpush3.bf16.msra.mxu0 %v1914_v31  ;;  %8978 = vmatprep.mubr.msk.bf16.mxu0 %vm9920_vm1, %v9919_v0 }
 0x66c   :  { %8982 = vmatprep.subr.bf16.mxu0 %v9919_v0 }
 0x70a   :  { %v1501_v58 = vpop.f32.mrf.mxu0 }
 0x70c   :  { %v8950_v59 = vpop.f32.mrf.mxu0 }
 0x70e   :  { %v1504_v62 = vpop.f32.mrf.mxu0 }
 0x710   :  { %v8951_v63 = vpop.f32.mrf.mxu0 }
 0x712   :  { %v1549_v2 = vpop.f32.mrf.mxu0 }
 0x713   :  { %v1555_v3 = vpack.c.bf16 %v1549_v2, %v1501_v58 }
 0x714   :  { %v8956_v4 = vpop.f32.mrf.mxu0 }
 0x715   :  { %8574 = vmatmul.mubr.msk.bf16.vlgmr.msra.gmra.mxu1 %vm1124_vm2, %v1555_v3 }
 0x716   :  { %8959 = vmatpush3.bf16.xpose.msra.mxu1 %v1752_v5  ;;  %v1552_v13 = vpop.f32.mrf.mxu0  ;;  %8960 = vmatprep.mubr.msk.bf16.mxu1 %vm9920_vm1, %v9919_v0 }
 0x717   :  { %8970 = vmatprep.subr.bf16.mxu1 %v9919_v0 }
 0x718   :  { %v8957_v15 = vpop.f32.mrf.mxu0 }
 0x71d   :  { %8961 = vmatmul.mubr.msk.bf16.vlgmr.msra.gmra.mxu1 %vm1124_vm2, %v8806_v16 }
 0x71e   :  { %8971 = vmatpush3.bf16.msra.mxu1 %v1868_v18  ;;  %8972 = vmatprep.mubr.msk.bf16.mxu1 %vm9920_vm1, %v9919_v0 }
 0x722   :  { %v10262_v22 = vpop.f32.mrf.mxu0 }
 0x724   :  { %v10264_v6 = vpop.f32.mrf.mxu0 }
 0x726   :  { %v10266_v23 = vpop.f32.mrf.mxu0 }
 0x728   :  { %v10268_v24 = vpop.f32.mrf.mxu0 }
 0x72a   :  { %v1834_v36 = vpop.f32.mrf.mxu0 }
 0x72b   :  { %v1843_v25 = vsel %vm249_vm0, %v1834_v36, -inf }
 0x72c   :  { %1844 = vmax.xlane.f32.xlu1 %v1843_v25  ;;  %v8968_v26 = vpop.f32.mrf.mxu0 }
 0x72e   :  { %v1837_v35 = vpop.f32.mrf.mxu0 }
 0x730   :  { %v8969_v29 = vpop.f32.mrf.mxu0 }
 0x73d   :  { %2047 = vrot.lane.b32.xlu1 %v8806_v16, %s9907_s16 }
 0x741   :  { %2099 = vrot.lane.b32.xlu1 %v8809_v53, %s9907_s16 }
 0x745   :  { %2097 = vrot.lane.b32.xlu1 %v8807_v30, %s9907_s16 }
 0x7b5   :  { %v1845_v32 = vpop.xlane.xlu1 %1844 }
 0x7b6   :  { %v1847_v34 = vsub.f32 %v1834_v36, %v1845_v32 }
 0x7b8   :  { %v1850_v37 = vmul.f32 1.442695, %v1847_v34 }
 0x7b9   :  { %v2048_v30 = vpop.permute.xlu1 %2047 }
 0x7ba   :  { %9547 = vpow2.f32 %v1850_v37 }
 0x7bd   :  { %v2100_v40 = vpop.permute.xlu1 %2099 }
 0x7be   :  { %v2105_v33 = vsel %vm1124_vm2, %v2100_v40, 0 }
 0x7c1   :  { %v2098_v39 = vpop.permute.xlu1 %2097 }
 0x7c7   :  { %v9548_v38 = vpop.eup %9547 }
 0x7c8   :  { %v1855_v42 = vsel %vm249_vm0, %v9548_v38, 0.0 }
 0x7c9   :  { %1856 = vadd.xlane.f32.xlu0 %v1855_v42  ;;  %v9301_v42 = vld [vmem:[#allocation12 + $0xb4] ss:$8 sps:$4 sm:$0xff]  }
 0x7ca   :  { %2008 = vmatprep.subr.bf16.mxu1 %v9301_v42 }
 0x7d5   :  { %v10275_v43 = vpop.f32.mrf.mxu1 }
 0x7d6   :  { %v1720_v42 = vadd.f32 %v10262_v22, %v10275_v43 }
 0x7d7   :  { %v10277_v45 = vpop.f32.mrf.mxu1 }
 0x7d9   :  { %v10279_v46 = vpop.f32.mrf.mxu1 }
 0x7db   :  { %v10281_v47 = vpop.f32.mrf.mxu1 }
 0x7dd   :  { %v1788_v48 = vpop.f32.mrf.mxu1 }
 0x7de   :  { %v1840_v52 = vsel %vm249_vm0, %v1788_v48, -inf }
 0x7df   :  { %2049 = vrot.lane.b32.xlu0 %v8808_v1, %s9907_s16  ;;  %v8962_v49 = vpop.f32.mrf.mxu1 }
 0x7e0   :  { %v9302_v49 = vld [vmem:[#allocation12 + $0xa0] ss:$8 sps:$4 sm:$0xff]  }
 0x7e1   :  { %v1791_v50 = vpop.f32.mrf.mxu1 }
 0x7e2   :  { %v9307_v50 = vld [vmem:[#allocation12 + $0x94] ss:$8 sps:$4 sm:$0xff]  }
 0x7e3   :  { %v8963_v51 = vpop.f32.mrf.mxu1 }
 0x7e4   :  { %v9305_v51 = vld [vmem:[#allocation12 + $0x90] ss:$8 sps:$4 sm:$0xff]  }
 0x7fe   :  { %1841 = vmax.xlane.f32.xlu0 %v1840_v52  ;;  %v9310_v52 = vld [vmem:[#allocation12 + $0x84] ss:$8 sps:$4 sm:$0xff]  }
 0x852   :  { %v1857_v53 = vpop.xlane.xlu0 %1856 }
 0x853   :  { %9549 = vrcp.f32 %v1857_v53  ;;  %v9308_v53 = vld [vmem:[#allocation12 + $0x80] ss:$8 sps:$4 sm:$0xff]  }
 0x856   :  { %v2050_v61 = vpop.permute.xlu0 %2049 }
 0x857   :  { %v2055_v31 = vsel %vm1124_vm2, %v2050_v61, 0 }
 0x860   :  { %v9550_v54 = vpop.eup %9549 }
 0x861   :  { %v1861_v56 = vmul.f32 %v9550_v54, %v9548_v38  ;;  %v9299_v38 = vld [vmem:[#allocation12 + $0xb0] ss:$8 sps:$4 sm:$0xff]  }
 0x863   :  { %v1863_v44 = vpack.c.bf16 %v1861_v56, %v1861_v56 }
 0x865   :  { %8979 = vmatmul.mubr.msk.bf16.vlgmr.msra.gmra.mxu0 %vm249_vm0, %v1863_v44 }
 0x866   :  { %8983 = vmatpush3.bf16.xpose.msra.mxu0 %v2055_v31  ;;  %8984 = vmatprep.mubr.msk.bf16.mxu0 %vm9920_vm1, %v9919_v0 }
 0x867   :  { %8988 = vmatprep.subr.bf16.mxu0 %v9919_v0 }
 0x86d   :  { %8985 = vmatmul.mubr.msk.bf16.vlgmr.msra.gmra.mxu0 %vm1124_vm2, %v2048_v30 }
 0x86e   :  { %8989 = vmatpush3.bf16.xpose.msra.mxu0 %v2105_v33  ;;  %8990 = vmatprep.mubr.msk.bf16.mxu0 %vm9920_vm1, %v9919_v0 }
 0x86f   :  { %9000 = vmatprep.subr.bf16.mxu0 %v9919_v0 }
 0x875   :  { %8991 = vmatmul.mubr.msk.bf16.vlgmr.msra.gmra.mxu0 %vm1124_vm2, %v2098_v39 }
 0x876   :  { %9002 = vmatprep.mubr.msk.bf16.mxu0 %vm9920_vm1, %v9919_v0 }
 0x887   :  { %v1842_v41 = vpop.xlane.xlu0 %1841 }
 0x888   :  { %v1846_v58 = vsub.f32 %v1788_v48, %v1842_v41  ;;  %v9304_v48 = vld [vmem:[#allocation12 + $0xa4] ss:$8 sps:$4 sm:$0xff]  }
 0x88a   :  { %v1848_v59 = vmul.f32 1.442695, %v1846_v58 }
 0x88c   :  { %9551 = vpow2.f32 %v1848_v59 }
 0x899   :  { %v9552_v62 = vpop.eup %9551 }
 0x89a   :  { %v1852_v63 = vsel %vm249_vm0, %v9552_v62, 0.0 }
 0x89b   :  { %1853 = vadd.xlane.f32.xlu1 %v1852_v63 }
 0x924   :  { %v1854_v1 = vpop.xlane.xlu1 %1853 }
 0x925   :  { %9553 = vrcp.f32 %v1854_v1  ;;  %v1950_v2 = vpop.f32.mrf.mxu0 }
 0x927   :  { %v8980_v3 = vpop.f32.mrf.mxu0 }
 0x929   :  { %v1953_v4 = vpop.f32.mrf.mxu0 }
 0x92a   :  { %v9313_v4 = vld [vmem:[#allocation12 + $0xf4] ss:$8 sps:$4 sm:$0xff]  }
 0x92b   :  { %v8981_v5 = vpop.f32.mrf.mxu0 }
 0x92d   :  { %v2091_v13 = vpop.f32.mrf.mxu0 }
 0x92e   :  { %v2147_v14 = vsel %vm249_vm0, %v2091_v13, -inf }
 0x92f   :  { %v8986_v15 = vpop.f32.mrf.mxu0  ;;  %2148 = vmax.xlane.f32.xlu0 %v2147_v14 }
 0x931   :  { %v2094_v16 = vpop.f32.mrf.mxu0 }
 0x932   :  { %v9554_v18 = vpop.eup %9553  ;;  %v9311_v16 = vld [vmem:[#allocation12 + $0xf0] ss:$8 sps:$4 sm:$0xff]  }
 0x933   :  { %v8987_v36 = vpop.f32.mrf.mxu0  ;;  %v1860_v25 = vmul.f32 %v9554_v18, %v9552_v62 }
 0x934   :  { %v9316_v36 = vld [vmem:[#allocation12 + $0xe4] ss:$8 sps:$4 sm:$0xff]  }
 0x935   :  { %v2141_v26 = vpop.f32.mrf.mxu0  ;;  %v1862_v35 = vpack.c.bf16 %v1860_v25, %v1860_v25  ;;  %v9314_v25 = vld [vmem:[#allocation12 + $0xe0] ss:$8 sps:$4 sm:$0xff]  }
 0x936   :  { %v2150_v29 = vsel %vm249_vm0, %v2141_v26, -inf }
 0x937   :  { %v8992_v32 = vpop.f32.mrf.mxu0  ;;  %2151 = vmax.xlane.f32.xlu0 %v2150_v29  ;;  %8973 = vmatmul.mubr.msk.bf16.vlgmr.msra.gmra.mxu1 %vm249_vm0, %v1862_v35 }
 0x938   :  { %2032 = vmatprep.mubr.bf16.mxu1 %v9921_v12  ;;  %2009 = vmatpush1.bf16.msra.mxu1 %v9299_v38  ;;  %v9317_v32 = vld [vmem:[#allocation12 + $0xd0] ss:$8 sps:$4 sm:$0xff]   ;;  %v9322_v38 = vld [vmem:[#allocation12 + $0xc4] ss:$8 sps:$4 sm:$0xff]  }
 0x939   :  { %v2144_v34 = vpop.f32.mrf.mxu0  ;;  %2010 = vmatprep.subr.bf16.mxu1 %v9304_v48 }
 0x93a   :  { %v9319_v34 = vld [vmem:[#allocation12 + $0xd4] ss:$8 sps:$4 sm:$0xff]  }
 0x93b   :  { %v8993_v37 = vpop.f32.mrf.mxu0 }
 0x93c   :  { %2011 = vmatpush1.bf16.msra.mxu1 %v9302_v49  ;;  %v9320_v37 = vld [vmem:[#allocation12 + $0xc0] ss:$8 sps:$4 sm:$0xff]   ;;  %v1722_v49 = vadd.f32 %v10264_v6, %v10277_v45 }
 0x93d   :  { %2012 = vmatprep.subr.bf16.mxu1 %v9307_v50  ;;  %v2358_v45 = vld [vmem:[%s11063_s8] sm:$0x3] }
 0x940   :  { %2013 = vmatpush1.bf16.msra.mxu1 %v9305_v51 }
 0x941   :  { %2014 = vmatprep.subr.bf16.mxu1 %v9310_v52  ;;  %v1724_v52 = vadd.f32 %v10266_v23, %v10279_v46  ;;  %v2363_v23 = vrot.slane %v2358_v45, %v10096_v10 }
 0x944   :  { %2015 = vmatpush1.bf16.msra.mxu1 %v9308_v53 }
 0x945   :  { %8994 = vmatprep.subr.bf16.mxu1 %v9919_v0 }
 0x9b8   :  { %v2149_v54 = vpop.xlane.xlu0 %2148 }
 0x9b9   :  { %v2153_v56 = vsub.f32 %v2091_v13, %v2149_v54 }
 0x9bb   :  { %v2155_v61 = vmul.f32 1.442695, %v2153_v56 }
 0x9bd   :  { %9555 = vpow2.f32 %v2155_v61 }
 0x9c0   :  { %v2152_v44 = vpop.xlane.xlu0 %2151 }
 0x9c1   :  { %v2154_v30 = vsub.f32 %v2141_v26, %v2152_v44 }
 0x9c3   :  { %v2157_v31 = vmul.f32 1.442695, %v2154_v30 }
 0x9c5   :  { %9557 = vpow2.f32 %v2157_v31 }
 0x9ca   :  { %v9556_v40 = vpop.eup %9555 }
 0x9cb   :  { %v2159_v33 = vsel %vm249_vm0, %v9556_v40, 0.0 }
 0x9cc   :  { %2160 = vadd.xlane.f32.xlu0 %v2159_v33 }
 0x9d2   :  { %v9558_v39 = vpop.eup %9557 }
 0x9d3   :  { %v2162_v41 = vsel %vm249_vm0, %v9558_v39, 0.0 }
 0x9d4   :  { %2163 = vadd.xlane.f32.xlu1 %v2162_v41 }
 0x9e2   :  { %2171 = vrot.lane.b32.xlu0 %v10255_v11, %s9907_s16 }
 0x9e5   :  { %2219 = vrot.lane.b32.xlu1 %v10236_v60, %s9907_s16 }
 0x9f7   :  { %v1904_v58 = vpop.f32.mrf.mxu1 }
 0x9f8   :  { %v1956_v59 = vpack.c.bf16 %v1950_v2, %v1904_v58  ;;  %v2367_v58 = vrot.slane %v2358_v45, %v10093_v9 }
 0x9f9   :  { %v8974_v62 = vpop.f32.mrf.mxu1 }
 0x9fa   :  { %8602 = vmatmul.mubr.msk.bf16.vlgmr.msra.gmra.mxu1 %vm1124_vm2, %v1956_v59  ;;  %v1726_v62 = vadd.f32 %v10268_v24, %v10281_v47 }
 0x9fb   :  { %v1907_v63 = vpop.f32.mrf.mxu1  ;;  %8996 = vmatprep.mubr.msk.bf16.mxu1 %vm9920_vm1, %v9919_v0 }
 0x9fd   :  { %v8975_v1 = vpop.f32.mrf.mxu1 }
 0xa55   :  { %v2161_v3 = vpop.xlane.xlu0 %2160 }
 0xa56   :  { %9559 = vrcp.f32 %v2161_v3 }
 0xa59   :  { %v2172_v5 = vpop.permute.xlu0 %2171 }
 0xa5a   :  { %v2177_v13 = vsel %vm1244_vm3, %v2172_v5, 0 }
 0xa5b   :  { %8995 = vmatpush3.bf16.msra.mxu1 %v2177_v13 }
 0xa5c   :  { %2319 = vmatprep.subr.bf16.mxu1 %v9313_v4 }
 0xa5d   :  { %v2164_v11 = vpop.xlane.xlu1 %2163 }
 0xa5e   :  { %9561 = vrcp.f32 %v2164_v11 }
 0xa61   :  { %v2220_v60 = vpop.permute.xlu1 %2219 }
 0xa62   :  { %v2225_v2 = vsel %vm1244_vm3, %v2220_v60, 0 }
 0xa63   :  { %v9560_v14 = vpop.eup %9559  ;;  %9001 = vmatpush3.bf16.msra.mxu0 %v2225_v2 }
 0xa64   :  { %v2167_v15 = vmul.f32 %v9560_v14, %v9556_v40 }
 0xa66   :  { %v2169_v18 = vpack.c.bf16 %v2167_v15, %v2167_v15 }
 0xa68   :  { %8997 = vmatmul.mubr.msk.bf16.vlgmr.msra.gmra.mxu1 %vm249_vm0, %v2169_v18 }
 0xa69   :  { %2320 = vmatpush1.bf16.msra.mxu1 %v9311_v16  ;;  %2343 = vmatprep.mubr.bf16.mxu1 %v9921_v12 }
 0xa6a   :  { %2321 = vmatprep.subr.bf16.mxu1 %v9316_v36 }
 0xa6b   :  { %v9562_v26 = vpop.eup %9561 }
 0xa6c   :  { %v2168_v35 = vmul.f32 %v9562_v26, %v9558_v39  ;;  %v2491_v26 = vld [vmem:[#allocation13 + $0x180] sm:$0xff] }
 0xa6d   :  { %2322 = vmatpush1.bf16.msra.mxu1 %v9314_v25  ;;  %v2494_v25 = vld [vmem:[#allocation13 + $0x198] sm:$0xff] }
 0xa6e   :  { %v2170_v29 = vpack.c.bf16 %v2168_v35, %v2168_v35  ;;  %2323 = vmatprep.subr.bf16.mxu1 %v9319_v34  ;;  %v2686_v35 = vunpack.c.h.s8.bf16 %v2494_v25 }
 0xa70   :  { %9003 = vmatmul.mubr.msk.bf16.vlgmr.msra.gmra.mxu0 %vm249_vm0, %v2170_v29  ;;  %v2683_v29 = vunpack.c.h.s8.bf16 %v2491_v26 }
 0xa71   :  { %2324 = vmatpush1.bf16.msra.mxu1 %v9317_v32  ;;  %v2493_v32 = vld [vmem:[#allocation13 + $0x190] sm:$0xff] }
 0xa72   :  { %2325 = vmatprep.subr.bf16.mxu1 %v9322_v38  ;;  %v2670_v38 = vunpack.c.l.s8.bf16 %v2494_v25 }
 0xa75   :  { %2326 = vmatpush1.bf16.msra.mxu1 %v9320_v37  ;;  %v2685_v37 = vunpack.c.h.s8.bf16 %v2493_v32 }
 0xa76   :  { %2872 = vmatprep.subr.bf16.mxu1 %v2686_v35 }
 0xaba   :  { %v2034_v48 = vpop.f32.mrf.mxu1 }
 0xabb   :  { %v2043_v50 = vadd.f32 %v2034_v48, %v1720_v42  ;;  %v2476_v42 = vld [vmem:[#allocation13 + $0x108] sm:$0xff]  ;;  %v2669_v48 = vunpack.c.l.s8.bf16 %v2493_v32 }
 0xabc   :  { %v2036_v51 = vpop.f32.mrf.mxu1 }
 0xabd   :  { %v2044_v53 = vadd.f32 %v2036_v51, %v1722_v49  ;;  %v2652_v49 = vunpack.c.h.s8.bf16 %v2476_v42  ;;  %v2475_v51 = vld [vmem:[#allocation13 + $0x100] sm:$0xff] }
 0xabe   :  { %v2038_v54 = vpop.f32.mrf.mxu1 }
 0xabf   :  { %v2045_v56 = vadd.f32 %v2038_v54, %v1724_v52  ;;  %v2477_v52 = vld [vmem:[#allocation13 + $0x110] sm:$0xff] }
 0xac0   :  { %v2040_v61 = vpop.f32.mrf.mxu1  ;;  %v2653_v54 = vunpack.c.h.s8.bf16 %v2477_v52 }
 0xac1   :  { %v2046_v4 = vadd.f32 %v2040_v61, %v1726_v62 }
 0xb28   :  { %v2213_v44 = vpop.f32.mrf.mxu1 }
 0xb2a   :  { %v8998_v30 = vpop.f32.mrf.mxu1 }
 0xb2b   :  { %v2462_v30 = vld [vmem:[#allocation13 + $0x98] sm:$0xff] }
 0xb2c   :  { %v2216_v31 = vpop.f32.mrf.mxu1 }
 0xb2d   :  { %v2635_v31 = vunpack.c.l.s8.bf16 %v2475_v51 }
 0xb2e   :  { %v8999_v40 = vpop.f32.mrf.mxu1 }
 0xb2f   :  { %v2637_v40 = vunpack.c.l.s8.bf16 %v2477_v52 }
 0xb30   :  { %v2261_v33 = vpop.f32.mrf.mxu0 }
 0xb31   :  { %v2267_v39 = vpack.c.bf16 %v2261_v33, %v2213_v44  ;;  %v2460_v44 = vld [vmem:[#allocation13 + $0x88] sm:$0xff] }
 0xb32   :  { %v9004_v22 = vpop.f32.mrf.mxu0  ;;  %v2620_v33 = vunpack.c.h.s8.bf16 %v2460_v44 }
 0xb33   :  { %8615 = vmatmul.mubr.msk.bf16.vlgmr.msra.gmra.mxu1 %vm1124_vm2, %v2267_v39  ;;  %v2622_v39 = vunpack.c.h.s8.bf16 %v2462_v30  ;;  %v2459_v22 = vld [vmem:[#allocation13 + $0x80] sm:$0xff] }
 0xb34   :  { %v2264_v43 = vpop.f32.mrf.mxu0  ;;  %2873 = vmatpush1.bf16.msra.mxu1 %v2685_v37 }
 0xb35   :  { %2874 = vmatprep.subr.bf16.mxu1 %v2670_v38  ;;  %v2461_v43 = vld [vmem:[#allocation13 + $0x90] sm:$0xff] }
 0xb36   :  { %v9005_v6 = vpop.f32.mrf.mxu0  ;;  %v2621_v45 = vunpack.c.h.s8.bf16 %v2461_v43  ;;  %v2605_v62 = vunpack.c.l.s8.bf16 %v2461_v43 }
 0xb37   :  { %v2619_v6 = vunpack.c.h.s8.bf16 %v2459_v22 }
 0xb38   :  { %2875 = vmatpush1.bf16.msra.mxu1 %v2669_v48 }
 0xbf3   :  { %v2345_v46 = vpop.f32.mrf.mxu1 }
 0xbf4   :  { %v2354_v41 = vadd.f32 %v2345_v46, %v2043_v50  ;;  %v2606_v46 = vunpack.c.l.s8.bf16 %v2462_v30 }
 0xbf5   :  { %v2347_v59 = vpop.f32.mrf.mxu1 }
 0xbf6   :  { %v2370_v63 = vadd.f32 %v2363_v23, %v2354_v41  ;;  %v2355_v1 = vadd.f32 %v2347_v59, %v2044_v53  ;;  %v2651_v53 = vunpack.c.h.s8.bf16 %v2475_v51  ;;  %v2444_v41 = vld [vmem:[#allocation13 + $0x8] sm:$0xff]  ;;  %v2603_v59 = vunpack.c.l.s8.bf16 %v2459_v22 }
 0xbf7   :  { %v2349_v3 = vpop.f32.mrf.mxu1 }
 0xbf8   :  { %v2371_v5 = vadd.f32 %v2367_v58, %v2355_v1  ;;  %v2356_v13 = vadd.f32 %v2349_v3, %v2045_v56  ;;  %v10333_v14 = vadd.f32 %v2370_v63, %v10106_v21  ;;  %v2492_v21 = vld [vmem:[#allocation13 + $0x188] sm:$0xff]  ;;  %v2636_v56 = vunpack.c.l.s8.bf16 %v2476_v42  ;;  %v2443_v3 = vld [vmem:[#allocation13] sm:$0xff] }
 0xbf9   :  { %v2351_v11 = vpop.f32.mrf.mxu1  ;;  %v2668_v34 = vunpack.c.l.s8.bf16 %v2492_v21  ;;  %v2588_v63 = vunpack.c.h.s8.bf16 %v2444_v41 }
 0xbfa   :  { %v2372_v60 = vadd.f32 %v2363_v23, %v2356_v13  ;;  %v2357_v2 = vadd.f32 %v2351_v11, %v2046_v4  ;;  %v10336_v15 = vadd.f32 %v2371_v5, %v10102_v19  ;;  %v2684_v19 = vunpack.c.h.s8.bf16 %v2492_v21  ;;  %v2445_v4 = vld [vmem:[#allocation13 + $0x10] sm:$0xff] }
 0xbfb   :  { %v2604_v23 = vunpack.c.l.s8.bf16 %v2460_v44  ;;  %v2587_v5 = vunpack.c.h.s8.bf16 %v2443_v3  ;;  %v2589_v13 = vunpack.c.h.s8.bf16 %v2445_v4  ;;  %v2572_v11 = vunpack.c.l.s8.bf16 %v2444_v41 }
 0xbfc   :  { %v2373_v16 = vadd.f32 %v2367_v58, %v2357_v2  ;;  %v2380_v18 = vadd.f32 %v10336_v15, %v10333_v14  ;;  %v10341_v24 = vadd.f32 %v2372_v60, %v10100_v17  ;;  %v2478_v17 = vld [vmem:[#allocation13 + $0x118] sm:$0xff]  ;;  %2829 = vmatprep.subr.bf16.mxu0 %v2684_v19  ;;  %v2556_v2 = vld [vmem:[#allocation13 + $0x388] sm:$0xff]  ;;  %v2557_v19 = vld [vmem:[#allocation13 + $0x390] sm:$0xff] }
 0xbfd   :  { %2830 = vmatpush1.bf16.msra.mxu0 %v2683_v29  ;;  %v2654_v50 = vunpack.c.h.s8.bf16 %v2478_v17  ;;  %v2638_v61 = vunpack.c.l.s8.bf16 %v2478_v17  ;;  %v2446_v58 = vld [vmem:[#allocation13 + $0x18] sm:$0xff]  ;;  %v2812_v21 = vunpack.c.h.s8.bf16 %v2556_v2  ;;  %v2813_v29 = vunpack.c.h.s8.bf16 %v2557_v19 }
 0xbfe   :  { %2381 = vadd.xlane.f32.xlu1 %v2380_v18  ;;  %v10344_v47 = vadd.f32 %v2373_v16, %v10104_v20  ;;  %v2667_v20 = vunpack.c.l.s8.bf16 %v2491_v26  ;;  %2831 = vmatprep.subr.bf16.mxu0 %v2668_v34  ;;  %v2590_v1 = vunpack.c.h.s8.bf16 %v2446_v58  ;;  %v2574_v60 = vunpack.c.l.s8.bf16 %v2446_v58  ;;  %v2558_v16 = vld [vmem:[#allocation13 + $0x398] sm:$0xff]  ;;  %v2555_v26 = vld [vmem:[#allocation13 + $0x380] sm:$0xff] }
 0xbff   :  { %2876 = vmatprep.subr.bf16.mxu1 %v2654_v50  ;;  %v2571_v18 = vunpack.c.l.s8.bf16 %v2443_v3  ;;  %v2814_v25 = vunpack.c.h.s8.bf16 %v2558_v16  ;;  %v2811_v35 = vunpack.c.h.s8.bf16 %v2555_v26 }
 0xc00   :  { %v2383_v36 = vadd.f32 %v10344_v47, %v10341_v24  ;;  %2877 = vmatpush1.bf16.msra.mxu1 %v2653_v54  ;;  %v2798_v54 = vunpack.c.l.s8.bf16 %v2558_v16 }
 0xc01   :  { %2832 = vmatpush1.bf16.msra.mxu0 %v2667_v20  ;;  %2878 = vmatprep.subr.bf16.mxu1 %v2638_v61  ;;  %v2797_v61 = vunpack.c.l.s8.bf16 %v2557_v19 }
 0xc02   :  { %2384 = vadd.xlane.f32.xlu0 %v2383_v36  ;;  %2833 = vmatprep.subr.bf16.mxu0 %v2652_v49  ;;  %v2573_v36 = vunpack.c.l.s8.bf16 %v2445_v4 }
 0xc04   :  { %2879 = vmatpush1.bf16.msra.mxu1 %v2637_v40  ;;  %v2541_v40 = vld [vmem:[#allocation13 + $0x310] sm:$0xff] }
 0xc05   :  { %2834 = vmatpush1.bf16.msra.mxu0 %v2651_v53  ;;  %2880 = vmatprep.subr.bf16.mxu1 %v2622_v39  ;;  %v2796_v53 = vunpack.c.l.s8.bf16 %v2556_v2  ;;  %v2781_v39 = vunpack.c.h.s8.bf16 %v2541_v40 }
 0xc06   :  { %2835 = vmatprep.subr.bf16.mxu0 %v2636_v56  ;;  %v2795_v56 = vunpack.c.l.s8.bf16 %v2555_v26 }
 0xc08   :  { %2881 = vmatpush1.bf16.msra.mxu1 %v2621_v45  ;;  %v2765_v45 = vunpack.c.l.s8.bf16 %v2541_v40 }
 0xc09   :  { %2836 = vmatpush1.bf16.msra.mxu0 %v2635_v31  ;;  %2882 = vmatprep.subr.bf16.mxu1 %v2606_v46  ;;  %v2539_v31 = vld [vmem:[#allocation13 + $0x300] sm:$0xff]  ;;  %v2526_v46 = vld [vmem:[#allocation13 + $0x298] sm:$0xff] }
 0xc0a   :  { %2837 = vmatprep.subr.bf16.mxu0 %v2620_v33  ;;  %v2779_v33 = vunpack.c.h.s8.bf16 %v2539_v31  ;;  %v2750_v58 = vunpack.c.h.s8.bf16 %v2526_v46  ;;  %v2734_v4 = vunpack.c.l.s8.bf16 %v2526_v46  ;;  %v2497_v46 = vld [vmem:[#allocation13 + $0x1b0] sm:$0xff] }
 0xc0c   :  { %2883 = vmatpush1.bf16.msra.mxu1 %v2605_v62  ;;  %v2525_v62 = vld [vmem:[#allocation13 + $0x290] sm:$0xff] }
 0xc0d   :  { %2838 = vmatpush1.bf16.msra.mxu0 %v2619_v6  ;;  %2884 = vmatprep.subr.bf16.mxu1 %v2590_v1  ;;  %v2763_v6 = vunpack.c.l.s8.bf16 %v2539_v31  ;;  %v2749_v1 = vunpack.c.h.s8.bf16 %v2525_v62 }
 0xc0e   :  { %2839 = vmatprep.subr.bf16.mxu0 %v2604_v23  ;;  %v2524_v23 = vld [vmem:[#allocation13 + $0x288] sm:$0xff] }
 0xc0f   :  { %v2748_v41 = vunpack.c.h.s8.bf16 %v2524_v23  ;;  %v2732_v3 = vunpack.c.l.s8.bf16 %v2524_v23  ;;  %v2495_v23 = vld [vmem:[#allocation13 + $0x1a0] sm:$0xff] }
 0xc10   :  { %2885 = vmatpush1.bf16.msra.mxu1 %v2589_v13  ;;  %v2733_v13 = vunpack.c.l.s8.bf16 %v2525_v62  ;;  %v2689_v62 = vunpack.c.h.s8.bf16 %v2497_v46 }
 0xc11   :  { %2840 = vmatpush1.bf16.msra.mxu0 %v2603_v59  ;;  %2886 = vmatprep.subr.bf16.mxu1 %v2574_v60  ;;  %v2523_v59 = vld [vmem:[#allocation13 + $0x280] sm:$0xff]  ;;  %v2510_v60 = vld [vmem:[#allocation13 + $0x218] sm:$0xff] }
 0xc12   :  { %2841 = vmatprep.subr.bf16.mxu0 %v2588_v63  ;;  %v2747_v63 = vunpack.c.h.s8.bf16 %v2523_v59  ;;  %v2718_v16 = vunpack.c.h.s8.bf16 %v2510_v60  ;;  %v2702_v19 = vunpack.c.l.s8.bf16 %v2510_v60 }
 0xc14   :  { %2887 = vmatpush1.bf16.msra.mxu1 %v2573_v36  ;;  %v2509_v36 = vld [vmem:[#allocation13 + $0x210] sm:$0xff] }
 0xc15   :  { %2842 = vmatpush1.bf16.msra.mxu0 %v2587_v5  ;;  %2888 = vmatprep.subr.bf16.mxu1 %v2814_v25  ;;  %v2731_v5 = vunpack.c.l.s8.bf16 %v2523_v59  ;;  %v2717_v25 = vunpack.c.h.s8.bf16 %v2509_v36 }
 0xc16   :  { %2843 = vmatprep.subr.bf16.mxu0 %v2572_v11  ;;  %v2508_v11 = vld [vmem:[#allocation13 + $0x208] sm:$0xff] }
 0xc17   :  { %v2716_v2 = vunpack.c.h.s8.bf16 %v2508_v11  ;;  %v2700_v26 = vunpack.c.l.s8.bf16 %v2508_v11 }
 0xc18   :  { %2889 = vmatpush2.bf16.msra.mxu1 %v2813_v29  ;;  %v2701_v29 = vunpack.c.l.s8.bf16 %v2509_v36 }
 0xc19   :  { %2844 = vmatpush1.bf16.msra.mxu0 %v2571_v18  ;;  %2890 = vmatprep.subr.bf16.mxu1 %v2798_v54  ;;  %v2507_v18 = vld [vmem:[#allocation13 + $0x200] sm:$0xff] }
 0xc1a   :  { %2845 = vmatprep.subr.bf16.mxu0 %v2812_v21  ;;  %v2715_v21 = vunpack.c.h.s8.bf16 %v2507_v18 }
 0xc1c   :  { %2891 = vmatpush2.bf16.msra.mxu1 %v2797_v61 }
 0xc1d   :  { %2846 = vmatpush2.bf16.msra.mxu0 %v2811_v35  ;;  %v2699_v35 = vunpack.c.l.s8.bf16 %v2507_v18 }
 0xc1e   :  { %2847 = vmatprep.subr.bf16.mxu0 %v2796_v53  ;;  %v2378_v53 = vld [vmem:[%s11070_s15] sm:$0x3] }
 0xc1f   :  { %v2417_v61 = vrot.slane %v2378_v53, %v10096_v10 }
 0xc21   :  { %2848 = vmatpush2.bf16.msra.mxu0 %v2795_v56  ;;  %v2379_v56 = vld [vmem:[#allocation19] sm:$0x3] }
 0xc22   :  { %v2432_v31 = vrot.slane %v2379_v56, %v10096_v10  ;;  %v2436_v40 = vrot.slane %v2379_v56, %v10093_v9 }
 0xc87   :  { %v2382_v32 = vpop.xlane.xlu1 %2381 }
 0xc88   :  { %v2387_v34 = vmul.f32 0.00390625, %v2382_v32  ;;  %v2496_v32 = vld [vmem:[#allocation13 + $0x1a8] sm:$0xff] }
 0xc8a   :  { %v10349_v37 = vsub.f32 %v10333_v14, %v2387_v34  ;;  %v10352_v38 = vsub.f32 %v10336_v15, %v2387_v34  ;;  %v2498_v34 = vld [vmem:[#allocation13 + $0x1b8] sm:$0xff] }
 0xc8b   :  { %v2385_v42 = vpop.xlane.xlu0 %2384 }
 0xc8c   :  { %v2388_v17 = vmul.f32 0.00390625, %v2385_v42  ;;  %v2393_v20 = vmul.f32 %v10349_v37, %v10349_v37  ;;  %v2394_v48 = vmul.f32 %v10352_v38, %v10352_v38  ;;  %v2688_v42 = vunpack.c.h.s8.bf16 %v2496_v32 }
 0xc8e   :  { %v10359_v49 = vsub.f32 %v10341_v24, %v2388_v17  ;;  %v10362_v50 = vsub.f32 %v10344_v47, %v2388_v17  ;;  %v2397_v51 = vadd.f32 %v2394_v48, %v2393_v20  ;;  %v2540_v24 = vld [vmem:[#allocation13 + $0x308] sm:$0xff]  ;;  %v2542_v47 = vld [vmem:[#allocation13 + $0x318] sm:$0xff]  ;;  %v2690_v17 = vunpack.c.h.s8.bf16 %v2498_v34 }
 0xc8f   :  { %v2780_v44 = vunpack.c.h.s8.bf16 %v2540_v24  ;;  %v2782_v30 = vunpack.c.h.s8.bf16 %v2542_v47  ;;  %v2764_v22 = vunpack.c.l.s8.bf16 %v2540_v24  ;;  %v2766_v43 = vunpack.c.l.s8.bf16 %v2542_v47 }
 0xc90   :  { %2398 = vadd.xlane.f32.xlu0 %v2397_v51  ;;  %v2395_v14 = vmul.f32 %v10359_v49, %v10359_v49  ;;  %v2396_v15 = vmul.f32 %v10362_v50, %v10362_v50  ;;  %v2421_v24 = vrot.slane %v2378_v53, %v10093_v9 }
 0xc91   :  { %2849 = vmatprep.subr.bf16.mxu0 %v2780_v44  ;;  %2892 = vmatprep.subr.bf16.mxu1 %v2782_v30 }
 0xc92   :  { %v2400_v52 = vadd.f32 %v2396_v15, %v2395_v14  ;;  %2850 = vmatpush2.bf16.msra.mxu0 %v2779_v33  ;;  %2893 = vmatpush2.bf16.msra.mxu1 %v2781_v39 }
 0xc93   :  { %2851 = vmatprep.subr.bf16.mxu0 %v2764_v22  ;;  %2894 = vmatprep.subr.bf16.mxu1 %v2766_v43 }
 0xc94   :  { %2401 = vadd.xlane.f32.xlu1 %v2400_v52 }
 0xc96   :  { %2852 = vmatpush2.bf16.msra.mxu0 %v2763_v6  ;;  %2895 = vmatpush2.bf16.msra.mxu1 %v2765_v45 }
 0xc97   :  { %2853 = vmatprep.subr.bf16.mxu0 %v2748_v41  ;;  %2896 = vmatprep.subr.bf16.mxu1 %v2750_v58 }
 0xc9a   :  { %2854 = vmatpush2.bf16.msra.mxu0 %v2747_v63  ;;  %2897 = vmatpush2.bf16.msra.mxu1 %v2749_v1  ;;  %v2672_v63 = vunpack.c.l.s8.bf16 %v2496_v32  ;;  %v2674_v1 = vunpack.c.l.s8.bf16 %v2498_v34 }
 0xc9b   :  { %2855 = vmatprep.subr.bf16.mxu0 %v2732_v3  ;;  %2898 = vmatprep.subr.bf16.mxu1 %v2734_v4  ;;  %v2480_v3 = vld [vmem:[#allocation13 + $0x128] sm:$0xff]  ;;  %v2482_v4 = vld [vmem:[#allocation13 + $0x138] sm:$0xff] }
 0xc9c   :  { %v2656_v11 = vunpack.c.h.s8.bf16 %v2480_v3  ;;  %v2658_v60 = vunpack.c.h.s8.bf16 %v2482_v4 }
 0xc9e   :  { %2856 = vmatpush2.bf16.msra.mxu0 %v2731_v5  ;;  %2899 = vmatpush2.bf16.msra.mxu1 %v2733_v13  ;;  %v2671_v5 = vunpack.c.l.s8.bf16 %v2495_v23  ;;  %v2673_v13 = vunpack.c.l.s8.bf16 %v2497_v46  ;;  %v2561_v46 = vld [vmem:[#allocation13 + $0x3b0] sm:$0xff] }
 0xc9f   :  { %2857 = vmatprep.subr.bf16.mxu0 %v2716_v2  ;;  %2900 = vmatprep.subr.bf16.mxu1 %v2718_v16  ;;  %v2479_v2 = vld [vmem:[#allocation13 + $0x120] sm:$0xff]  ;;  %v2481_v16 = vld [vmem:[#allocation13 + $0x130] sm:$0xff] }
 0xca0   :  { %v2655_v18 = vunpack.c.h.s8.bf16 %v2479_v2  ;;  %v2657_v36 = vunpack.c.h.s8.bf16 %v2481_v16 }
 0xca2   :  { %2858 = vmatpush2.bf16.msra.mxu0 %v2715_v21  ;;  %2901 = vmatpush2.bf16.msra.mxu1 %v2717_v25  ;;  %v2640_v21 = vunpack.c.l.s8.bf16 %v2480_v3  ;;  %v2642_v25 = vunpack.c.l.s8.bf16 %v2482_v4  ;;  %v2544_v3 = vld [vmem:[#allocation13 + $0x328] sm:$0xff]  ;;  %v2546_v4 = vld [vmem:[#allocation13 + $0x338] sm:$0xff] }
 0xca3   :  { %2859 = vmatprep.subr.bf16.mxu0 %v2700_v26  ;;  %2902 = vmatprep.subr.bf16.mxu1 %v2702_v19  ;;  %v2464_v26 = vld [vmem:[#allocation13 + $0xa8] sm:$0xff]  ;;  %v2466_v19 = vld [vmem:[#allocation13 + $0xb8] sm:$0xff] }
 0xca4   :  { %v2624_v32 = vunpack.c.h.s8.bf16 %v2464_v26  ;;  %v2626_v34 = vunpack.c.h.s8.bf16 %v2466_v19 }
 0xca6   :  { %2860 = vmatpush2.bf16.msra.mxu0 %v2699_v35  ;;  %2903 = vmatpush2.bf16.msra.mxu1 %v2701_v29  ;;  %v2639_v35 = vunpack.c.l.s8.bf16 %v2479_v2  ;;  %v2641_v29 = vunpack.c.l.s8.bf16 %v2481_v16  ;;  %v2543_v2 = vld [vmem:[#allocation13 + $0x320] sm:$0xff]  ;;  %v2545_v16 = vld [vmem:[#allocation13 + $0x330] sm:$0xff] }
 0xca7   :  { %2915 = vmatprep.subr.bf16.mxu0 %v2688_v42  ;;  %2958 = vmatprep.subr.bf16.mxu1 %v2690_v17  ;;  %v2463_v42 = vld [vmem:[#allocation13 + $0xa0] sm:$0xff]  ;;  %v2465_v17 = vld [vmem:[#allocation13 + $0xb0] sm:$0xff] }
 0xca8   :  { %v2607_v53 = vunpack.c.l.s8.bf16 %v2463_v42 }
 0xd19   :  { %v2399_v20 = vpop.xlane.xlu0 %2398 }
 0xd1a   :  { %v2403_v48 = vmul.f32 0.00390625, %v2399_v20  ;;  %v2623_v20 = vunpack.c.h.s8.bf16 %v2463_v42  ;;  %v2527_v42 = vld [vmem:[#allocation13 + $0x2a0] sm:$0xff] }
 0xd1c   :  { %v2405_v51 = vadd.f32 1e-05, %v2403_v48  ;;  %v2625_v48 = vunpack.c.h.s8.bf16 %v2465_v17 }
 0xd1d   :  { %v2402_v14 = vpop.xlane.xlu1 %2401 }
 0xd1e   :  { %9563 = vrsqrt.f32 %v2405_v51  ;;  %v2404_v15 = vmul.f32 0.00390625, %v2402_v14  ;;  %v2608_v51 = vunpack.c.l.s8.bf16 %v2464_v26  ;;  %v2610_v14 = vunpack.c.l.s8.bf16 %v2466_v19  ;;  %v2528_v26 = vld [vmem:[#allocation13 + $0x2a8] sm:$0xff]  ;;  %v2530_v19 = vld [vmem:[#allocation13 + $0x2b8] sm:$0xff] }
 0xd20   :  { %v2406_v52 = vadd.f32 1e-05, %v2404_v15  ;;  %v2448_v15 = vld [vmem:[#allocation13 + $0x28] sm:$0xff] }
 0xd21   :  { %v2592_v56 = vunpack.c.h.s8.bf16 %v2448_v15 }
 0xd22   :  { %9565 = vrsqrt.f32 %v2406_v52  ;;  %v2450_v52 = vld [vmem:[#allocation13 + $0x38] sm:$0xff] }
 0xd2b   :  { %v9564_v54 = vpop.eup %9563 }
 0xd2c   :  { %v2409_v47 = vmul.f32 %v9564_v54, %v10349_v37  ;;  %v2410_v44 = vmul.f32 %v9564_v54, %v10352_v38  ;;  %v2609_v54 = vunpack.c.l.s8.bf16 %v2465_v17  ;;  %v2529_v17 = vld [vmem:[#allocation13 + $0x2b0] sm:$0xff] }
 0xd2e   :  { %v2424_v33 = vmul.f32 %v2417_v61, %v2409_v47  ;;  %v2425_v39 = vmul.f32 %v2421_v24, %v2410_v44  ;;  %v2449_v47 = vld [vmem:[#allocation13 + $0x30] sm:$0xff] }
 0xd2f   :  { %v9566_v30 = vpop.eup %9565 }
 0xd30   :  { %v2411_v22 = vmul.f32 %v9566_v30, %v10359_v49  ;;  %v2412_v43 = vmul.f32 %v9566_v30, %v10362_v50  ;;  %v10379_v41 = vadd.f32 %v2432_v31, %v2424_v33  ;;  %v10381_v37 = vadd.f32 %v2436_v40, %v2425_v39  ;;  %v2560_v33 = vld [vmem:[#allocation13 + $0x3a8] sm:$0xff]  ;;  %v2562_v39 = vld [vmem:[#allocation13 + $0x3b8] sm:$0xff] }
 0xd31   :  { %v2687_v50 = vunpack.c.h.s8.bf16 %v2495_v23  ;;  %v2593_v30 = vunpack.c.h.s8.bf16 %v2449_v47  ;;  %v2559_v23 = vld [vmem:[#allocation13 + $0x3a0] sm:$0xff] }
 0xd32   :  { %v2426_v6 = vmul.f32 %v2417_v61, %v2411_v22  ;;  %v2427_v45 = vmul.f32 %v2421_v24, %v2412_v43  ;;  %v2594_v61 = vunpack.c.h.s8.bf16 %v2450_v52  ;;  %v2447_v24 = vld [vmem:[#allocation13 + $0x20] sm:$0xff]  ;;  %v2577_v43 = vunpack.c.l.s8.bf16 %v2449_v47  ;;  %v2513_v47 = vld [vmem:[#allocation13 + $0x230] sm:$0xff] }
 0xd33   :  { %v2591_v44 = vunpack.c.h.s8.bf16 %v2447_v24  ;;  %v2575_v22 = vunpack.c.l.s8.bf16 %v2447_v24  ;;  %v2511_v24 = vld [vmem:[#allocation13 + $0x220] sm:$0xff] }
 0xd34   :  { %v10383_v38 = vadd.f32 %v2432_v31, %v2426_v6  ;;  %v10385_v58 = vadd.f32 %v2436_v40, %v2427_v45  ;;  %v2576_v31 = vunpack.c.l.s8.bf16 %v2448_v15  ;;  %v2578_v40 = vunpack.c.l.s8.bf16 %v2450_v52  ;;  %v2512_v15 = vld [vmem:[#allocation13 + $0x228] sm:$0xff]  ;;  %v2514_v52 = vld [vmem:[#allocation13 + $0x238] sm:$0xff] }
 0xd35   :  { %v2816_v6 = vunpack.c.h.s8.bf16 %v2560_v33  ;;  %v2818_v45 = vunpack.c.h.s8.bf16 %v2562_v39 }
 0xd36   :  { %v10389_v59 = vpack.c.bf16 %v10383_v38, %v10379_v41  ;;  %v10393_v49 = vpack.c.bf16 %v10385_v58, %v10381_v37 }
 0xd38   :  { %2861 = vmatprep.mubr.bf16.mxu0 %v10393_v49  ;;  %2904 = vmatprep.mubr.bf16.mxu1 %v10393_v49 }
 0xd39   :  { %2862 = vmatmul.mubr.bf16.vlgmr.msra.gmra.mxu0 %v10389_v59  ;;  %2905 = vmatmul.mubr.bf16.vlgmr.msra.gmra.mxu1 %v10389_v59 }
 0xd3a   :  { %2916 = vmatpush1.bf16.msra.mxu0 %v2687_v50  ;;  %2959 = vmatpush1.bf16.msra.mxu1 %v2689_v62  ;;  %v2815_v50 = vunpack.c.h.s8.bf16 %v2559_v23  ;;  %v2817_v62 = vunpack.c.h.s8.bf16 %v2561_v46 }
 0xd3b   :  { %2947 = vmatprep.mubr.bf16.mxu0 %v10393_v49  ;;  %2990 = vmatprep.mubr.bf16.mxu1 %v10393_v49 }
 0xd3c   :  { %2917 = vmatprep.subr.bf16.mxu0 %v2672_v63  ;;  %2960 = vmatprep.subr.bf16.mxu1 %v2674_v1  ;;  %v2800_v63 = vunpack.c.l.s8.bf16 %v2560_v33  ;;  %v2802_v1 = vunpack.c.l.s8.bf16 %v2562_v39  ;;  %v2500_v33 = vld [vmem:[#allocation13 + $0x1c8] sm:$0xff]  ;;  %v2502_v39 = vld [vmem:[#allocation13 + $0x1d8] sm:$0xff] }
 0xd3e   :  { %2918 = vmatpush1.bf16.msra.mxu0 %v2671_v5  ;;  %2961 = vmatpush1.bf16.msra.mxu1 %v2673_v13  ;;  %v2799_v5 = vunpack.c.l.s8.bf16 %v2559_v23  ;;  %v2801_v13 = vunpack.c.l.s8.bf16 %v2561_v46  ;;  %v2499_v23 = vld [vmem:[#allocation13 + $0x1c0] sm:$0xff]  ;;  %v2501_v46 = vld [vmem:[#allocation13 + $0x1d0] sm:$0xff] }
 0xd3f   :  { %2919 = vmatprep.subr.bf16.mxu0 %v2656_v11  ;;  %2962 = vmatprep.subr.bf16.mxu1 %v2658_v60  ;;  %v2784_v11 = vunpack.c.h.s8.bf16 %v2544_v3  ;;  %v2786_v60 = vunpack.c.h.s8.bf16 %v2546_v4 }
 0xd42   :  { %2920 = vmatpush1.bf16.msra.mxu0 %v2655_v18  ;;  %2963 = vmatpush1.bf16.msra.mxu1 %v2657_v36  ;;  %v2783_v18 = vunpack.c.h.s8.bf16 %v2543_v2  ;;  %v2785_v36 = vunpack.c.h.s8.bf16 %v2545_v16 }
 0xd43   :  { %2921 = vmatprep.subr.bf16.mxu0 %v2640_v21  ;;  %2964 = vmatprep.subr.bf16.mxu1 %v2642_v25  ;;  %v2768_v21 = vunpack.c.l.s8.bf16 %v2544_v3  ;;  %v2770_v25 = vunpack.c.l.s8.bf16 %v2546_v4  ;;  %v2484_v3 = vld [vmem:[#allocation13 + $0x148] sm:$0xff]  ;;  %v2486_v4 = vld [vmem:[#allocation13 + $0x158] sm:$0xff] }
 0xd46   :  { %2922 = vmatpush1.bf16.msra.mxu0 %v2639_v35  ;;  %2965 = vmatpush1.bf16.msra.mxu1 %v2641_v29  ;;  %v2767_v35 = vunpack.c.l.s8.bf16 %v2543_v2  ;;  %v2769_v29 = vunpack.c.l.s8.bf16 %v2545_v16  ;;  %v2662_v2 = vunpack.c.h.s8.bf16 %v2486_v4  ;;  %v2485_v16 = vld [vmem:[#allocation13 + $0x150] sm:$0xff] }
 0xd47   :  { %2923 = vmatprep.subr.bf16.mxu0 %v2624_v32  ;;  %2966 = vmatprep.subr.bf16.mxu1 %v2626_v34  ;;  %v2752_v32 = vunpack.c.h.s8.bf16 %v2528_v26  ;;  %v2754_v34 = vunpack.c.h.s8.bf16 %v2530_v19 }
 0xd4a   :  { %2924 = vmatpush1.bf16.msra.mxu0 %v2623_v20  ;;  %2967 = vmatpush1.bf16.msra.mxu1 %v2625_v48  ;;  %v2751_v20 = vunpack.c.h.s8.bf16 %v2527_v42  ;;  %v2753_v48 = vunpack.c.h.s8.bf16 %v2529_v17 }
 0xd4b   :  { %2925 = vmatprep.subr.bf16.mxu0 %v2608_v51  ;;  %2968 = vmatprep.subr.bf16.mxu1 %v2610_v14  ;;  %v2736_v51 = vunpack.c.l.s8.bf16 %v2528_v26  ;;  %v2738_v14 = vunpack.c.l.s8.bf16 %v2530_v19  ;;  %v2468_v26 = vld [vmem:[#allocation13 + $0xc8] sm:$0xff]  ;;  %v2470_v19 = vld [vmem:[#allocation13 + $0xd8] sm:$0xff] }
 0xd4e   :  { %2926 = vmatpush1.bf16.msra.mxu0 %v2607_v53  ;;  %2969 = vmatpush1.bf16.msra.mxu1 %v2609_v54  ;;  %v2735_v53 = vunpack.c.l.s8.bf16 %v2527_v42  ;;  %v2737_v54 = vunpack.c.l.s8.bf16 %v2529_v17  ;;  %v2630_v42 = vunpack.c.h.s8.bf16 %v2470_v19  ;;  %v2469_v17 = vld [vmem:[#allocation13 + $0xd0] sm:$0xff] }
 0xd4f   :  { %2927 = vmatprep.subr.bf16.mxu0 %v2592_v56  ;;  %2970 = vmatprep.subr.bf16.mxu1 %v2594_v61  ;;  %v2720_v56 = vunpack.c.h.s8.bf16 %v2512_v15  ;;  %v2722_v61 = vunpack.c.h.s8.bf16 %v2514_v52 }
 0xd52   :  { %2928 = vmatpush1.bf16.msra.mxu0 %v2591_v44  ;;  %2971 = vmatpush1.bf16.msra.mxu1 %v2593_v30  ;;  %v2719_v44 = vunpack.c.h.s8.bf16 %v2511_v24  ;;  %v2721_v30 = vunpack.c.h.s8.bf16 %v2513_v47 }
 0xd53   :  { %2929 = vmatprep.subr.bf16.mxu0 %v2576_v31  ;;  %2972 = vmatprep.subr.bf16.mxu1 %v2578_v40  ;;  %v2704_v31 = vunpack.c.l.s8.bf16 %v2512_v15  ;;  %v2706_v40 = vunpack.c.l.s8.bf16 %v2514_v52  ;;  %v2452_v15 = vld [vmem:[#allocation13 + $0x48] sm:$0xff]  ;;  %v2454_v52 = vld [vmem:[#allocation13 + $0x58] sm:$0xff] }
 0xd56   :  { %2930 = vmatpush1.bf16.msra.mxu0 %v2575_v22  ;;  %2973 = vmatpush1.bf16.msra.mxu1 %v2577_v43  ;;  %v2703_v22 = vunpack.c.l.s8.bf16 %v2511_v24  ;;  %v2705_v43 = vunpack.c.l.s8.bf16 %v2513_v47  ;;  %v2598_v24 = vunpack.c.h.s8.bf16 %v2454_v52  ;;  %v2453_v47 = vld [vmem:[#allocation13 + $0x50] sm:$0xff] }
 0xd57   :  { %2931 = vmatprep.subr.bf16.mxu0 %v2816_v6  ;;  %2974 = vmatprep.subr.bf16.mxu1 %v2818_v45  ;;  %v2692_v6 = vunpack.c.h.s8.bf16 %v2500_v33  ;;  %v2694_v45 = vunpack.c.h.s8.bf16 %v2502_v39 }
 0xd5a   :  { %2932 = vmatpush2.bf16.msra.mxu0 %v2815_v50  ;;  %2975 = vmatpush2.bf16.msra.mxu1 %v2817_v62  ;;  %v2691_v50 = vunpack.c.h.s8.bf16 %v2499_v23  ;;  %v2693_v62 = vunpack.c.h.s8.bf16 %v2501_v46 }
 0xd5b   :  { %2933 = vmatprep.subr.bf16.mxu0 %v2800_v63  ;;  %2976 = vmatprep.subr.bf16.mxu1 %v2802_v1  ;;  %v2676_v63 = vunpack.c.l.s8.bf16 %v2500_v33  ;;  %v2678_v1 = vunpack.c.l.s8.bf16 %v2502_v39  ;;  %v2564_v33 = vld [vmem:[#allocation13 + $0x3c8] sm:$0xff]  ;;  %v2566_v39 = vld [vmem:[#allocation13 + $0x3d8] sm:$0xff] }
 0xd5e   :  { %2934 = vmatpush2.bf16.msra.mxu0 %v2799_v5  ;;  %2977 = vmatpush2.bf16.msra.mxu1 %v2801_v13  ;;  %v2675_v5 = vunpack.c.l.s8.bf16 %v2499_v23  ;;  %v2677_v13 = vunpack.c.l.s8.bf16 %v2501_v46  ;;  %v2822_v23 = vunpack.c.h.s8.bf16 %v2566_v39  ;;  %v2565_v46 = vld [vmem:[#allocation13 + $0x3d0] sm:$0xff] }
 0xd5f   :  { %2935 = vmatprep.subr.bf16.mxu0 %v2784_v11  ;;  %2978 = vmatprep.subr.bf16.mxu1 %v2786_v60  ;;  %v2660_v11 = vunpack.c.h.s8.bf16 %v2484_v3  ;;  %v2483_v60 = vld [vmem:[#allocation13 + $0x140] sm:$0xff] }
 0xd62   :  { %2936 = vmatpush2.bf16.msra.mxu0 %v2783_v18  ;;  %2979 = vmatpush2.bf16.msra.mxu1 %v2785_v36  ;;  %v2659_v18 = vunpack.c.h.s8.bf16 %v2483_v60  ;;  %v2661_v36 = vunpack.c.h.s8.bf16 %v2485_v16 }
 0xd63   :  { %2937 = vmatprep.subr.bf16.mxu0 %v2768_v21  ;;  %2980 = vmatprep.subr.bf16.mxu1 %v2770_v25  ;;  %v2644_v21 = vunpack.c.l.s8.bf16 %v2484_v3  ;;  %v2646_v25 = vunpack.c.l.s8.bf16 %v2486_v4  ;;  %v2548_v3 = vld [vmem:[#allocation13 + $0x348] sm:$0xff]  ;;  %v2550_v4 = vld [vmem:[#allocation13 + $0x358] sm:$0xff] }
 0xd66   :  { %2938 = vmatpush2.bf16.msra.mxu0 %v2767_v35  ;;  %2981 = vmatpush2.bf16.msra.mxu1 %v2769_v29  ;;  %v2643_v35 = vunpack.c.l.s8.bf16 %v2483_v60  ;;  %v2645_v29 = vunpack.c.l.s8.bf16 %v2485_v16  ;;  %v2547_v60 = vld [vmem:[#allocation13 + $0x340] sm:$0xff]  ;;  %v2549_v16 = vld [vmem:[#allocation13 + $0x350] sm:$0xff] }
 0xd67   :  { %2939 = vmatprep.subr.bf16.mxu0 %v2752_v32  ;;  %2982 = vmatprep.subr.bf16.mxu1 %v2754_v34  ;;  %v2628_v32 = vunpack.c.h.s8.bf16 %v2468_v26  ;;  %v2467_v34 = vld [vmem:[#allocation13 + $0xc0] sm:$0xff] }
 0xd6a   :  { %2940 = vmatpush2.bf16.msra.mxu0 %v2751_v20  ;;  %2983 = vmatpush2.bf16.msra.mxu1 %v2753_v48  ;;  %v2627_v20 = vunpack.c.h.s8.bf16 %v2467_v34  ;;  %v2629_v48 = vunpack.c.h.s8.bf16 %v2469_v17 }
 0xd6b   :  { %2941 = vmatprep.subr.bf16.mxu0 %v2736_v51  ;;  %2984 = vmatprep.subr.bf16.mxu1 %v2738_v14  ;;  %v2612_v51 = vunpack.c.l.s8.bf16 %v2468_v26  ;;  %v2614_v14 = vunpack.c.l.s8.bf16 %v2470_v19  ;;  %v2532_v26 = vld [vmem:[#allocation13 + $0x2c8] sm:$0xff]  ;;  %v2534_v19 = vld [vmem:[#allocation13 + $0x2d8] sm:$0xff] }
 0xd6e   :  { %2942 = vmatpush2.bf16.msra.mxu0 %v2735_v53  ;;  %2985 = vmatpush2.bf16.msra.mxu1 %v2737_v54  ;;  %v2611_v53 = vunpack.c.l.s8.bf16 %v2467_v34  ;;  %v2613_v54 = vunpack.c.l.s8.bf16 %v2469_v17  ;;  %v2531_v34 = vld [vmem:[#allocation13 + $0x2c0] sm:$0xff]  ;;  %v2533_v17 = vld [vmem:[#allocation13 + $0x2d0] sm:$0xff] }
 0xd6f   :  { %2943 = vmatprep.subr.bf16.mxu0 %v2720_v56  ;;  %2986 = vmatprep.subr.bf16.mxu1 %v2722_v61  ;;  %v2596_v56 = vunpack.c.h.s8.bf16 %v2452_v15  ;;  %v2451_v61 = vld [vmem:[#allocation13 + $0x40] sm:$0xff] }
 0xd72   :  { %2944 = vmatpush2.bf16.msra.mxu0 %v2719_v44  ;;  %2987 = vmatpush2.bf16.msra.mxu1 %v2721_v30  ;;  %v2595_v44 = vunpack.c.h.s8.bf16 %v2451_v61  ;;  %v2597_v30 = vunpack.c.h.s8.bf16 %v2453_v47 }
 0xd73   :  { %2945 = vmatprep.subr.bf16.mxu0 %v2704_v31  ;;  %2988 = vmatprep.subr.bf16.mxu1 %v2706_v40  ;;  %v2580_v31 = vunpack.c.l.s8.bf16 %v2452_v15  ;;  %v2582_v40 = vunpack.c.l.s8.bf16 %v2454_v52  ;;  %v2516_v15 = vld [vmem:[#allocation13 + $0x248] sm:$0xff]  ;;  %v2518_v52 = vld [vmem:[#allocation13 + $0x258] sm:$0xff] }
 0xd76   :  { %2946 = vmatpush2.bf16.msra.mxu0 %v2703_v22  ;;  %2989 = vmatpush2.bf16.msra.mxu1 %v2705_v43  ;;  %v2579_v22 = vunpack.c.l.s8.bf16 %v2451_v61  ;;  %v2581_v43 = vunpack.c.l.s8.bf16 %v2453_v47  ;;  %v2515_v61 = vld [vmem:[#allocation13 + $0x240] sm:$0xff]  ;;  %v2517_v47 = vld [vmem:[#allocation13 + $0x250] sm:$0xff] }
 0xd77   :  { %3001 = vmatprep.subr.bf16.mxu0 %v2692_v6  ;;  %3044 = vmatprep.subr.bf16.mxu1 %v2694_v45  ;;  %v2820_v6 = vunpack.c.h.s8.bf16 %v2564_v33  ;;  %v2563_v45 = vld [vmem:[#allocation13 + $0x3c0] sm:$0xff] }
 0xd79   :  { %2948 = vmatmul.mubr.bf16.vlgmr.msra.gmra.mxu0 %v10389_v59  ;;  %2991 = vmatmul.mubr.bf16.vlgmr.msra.gmra.mxu1 %v10389_v59 }
 0xd7a   :  { %3002 = vmatpush1.bf16.msra.mxu0 %v2691_v50  ;;  %3033 = vmatprep.mubr.bf16.mxu0 %v10393_v49  ;;  %v2819_v50 = vunpack.c.h.s8.bf16 %v2563_v45 }
 0xd7b   :  { %3045 = vmatpush1.bf16.msra.mxu1 %v2693_v62  ;;  %3076 = vmatprep.mubr.bf16.mxu1 %v10393_v49  ;;  %v2821_v62 = vunpack.c.h.s8.bf16 %v2565_v46 }
 0xd7c   :  { %3003 = vmatprep.subr.bf16.mxu0 %v2676_v63  ;;  %3046 = vmatprep.subr.bf16.mxu1 %v2678_v1  ;;  %v2804_v63 = vunpack.c.l.s8.bf16 %v2564_v33  ;;  %v2806_v1 = vunpack.c.l.s8.bf16 %v2566_v39  ;;  %v2504_v33 = vld [vmem:[#allocation13 + $0x1e8] sm:$0xff]  ;;  %v2506_v39 = vld [vmem:[#allocation13 + $0x1f8] sm:$0xff] }
 0xd7e   :  { %3004 = vmatpush1.bf16.msra.mxu0 %v2675_v5  ;;  %v2803_v5 = vunpack.c.l.s8.bf16 %v2563_v45  ;;  %v2503_v45 = vld [vmem:[#allocation13 + $0x1e0] sm:$0xff] }
 0xd7f   :  { %3047 = vmatpush1.bf16.msra.mxu1 %v2677_v13  ;;  %3005 = vmatprep.subr.bf16.mxu0 %v2660_v11  ;;  %v2805_v13 = vunpack.c.l.s8.bf16 %v2565_v46  ;;  %v2788_v11 = vunpack.c.h.s8.bf16 %v2548_v3  ;;  %v2505_v46 = vld [vmem:[#allocation13 + $0x1f0] sm:$0xff] }
 0xd80   :  { %3048 = vmatprep.subr.bf16.mxu1 %v2662_v2  ;;  %v2790_v2 = vunpack.c.h.s8.bf16 %v2550_v4 }
 0xd82   :  { %3006 = vmatpush1.bf16.msra.mxu0 %v2659_v18  ;;  %v2787_v18 = vunpack.c.h.s8.bf16 %v2547_v60 }
 0xd83   :  { %3049 = vmatpush1.bf16.msra.mxu1 %v2661_v36  ;;  %3007 = vmatprep.subr.bf16.mxu0 %v2644_v21  ;;  %v2789_v36 = vunpack.c.h.s8.bf16 %v2549_v16  ;;  %v2772_v21 = vunpack.c.l.s8.bf16 %v2548_v3  ;;  %v2682_v3 = vunpack.c.l.s8.bf16 %v2506_v39 }
 0xd84   :  { %3050 = vmatprep.subr.bf16.mxu1 %v2646_v25  ;;  %v2774_v25 = vunpack.c.l.s8.bf16 %v2550_v4  ;;  %v2490_v4 = vld [vmem:[#allocation13 + $0x178] sm:$0xff] }
 0xd86   :  { %3008 = vmatpush1.bf16.msra.mxu0 %v2643_v35  ;;  %v2771_v35 = vunpack.c.l.s8.bf16 %v2547_v60  ;;  %v2487_v60 = vld [vmem:[#allocation13 + $0x160] sm:$0xff] }
 0xd87   :  { %3051 = vmatpush1.bf16.msra.mxu1 %v2645_v29  ;;  %3009 = vmatprep.subr.bf16.mxu0 %v2628_v32  ;;  %v2773_v29 = vunpack.c.l.s8.bf16 %v2549_v16  ;;  %v2756_v32 = vunpack.c.h.s8.bf16 %v2532_v26  ;;  %v2489_v16 = vld [vmem:[#allocation13 + $0x170] sm:$0xff] }
 0xd88   :  { %3052 = vmatprep.subr.bf16.mxu1 %v2630_v42  ;;  %v2758_v42 = vunpack.c.h.s8.bf16 %v2534_v19 }
 0xd8a   :  { %3010 = vmatpush1.bf16.msra.mxu0 %v2627_v20  ;;  %v2755_v20 = vunpack.c.h.s8.bf16 %v2531_v34 }
 0xd8b   :  { %3053 = vmatpush1.bf16.msra.mxu1 %v2629_v48  ;;  %3011 = vmatprep.subr.bf16.mxu0 %v2612_v51  ;;  %v2757_v48 = vunpack.c.h.s8.bf16 %v2533_v17  ;;  %v2740_v51 = vunpack.c.l.s8.bf16 %v2532_v26  ;;  %v2472_v26 = vld [vmem:[#allocation13 + $0xe8] sm:$0xff] }
 0xd8c   :  { %3054 = vmatprep.subr.bf16.mxu1 %v2614_v14  ;;  %v2742_v14 = vunpack.c.l.s8.bf16 %v2534_v19  ;;  %v2474_v19 = vld [vmem:[#allocation13 + $0xf8] sm:$0xff] }
 0xd8e   :  { %3012 = vmatpush1.bf16.msra.mxu0 %v2611_v53  ;;  %v2739_v53 = vunpack.c.l.s8.bf16 %v2531_v34  ;;  %v2634_v34 = vunpack.c.h.s8.bf16 %v2474_v19 }
 0xd8f   :  { %3055 = vmatpush1.bf16.msra.mxu1 %v2613_v54  ;;  %3013 = vmatprep.subr.bf16.mxu0 %v2596_v56  ;;  %v2741_v54 = vunpack.c.l.s8.bf16 %v2533_v17  ;;  %v2724_v56 = vunpack.c.h.s8.bf16 %v2516_v15 }
 0xd90   :  { %3056 = vmatprep.subr.bf16.mxu1 %v2598_v24  ;;  %v2726_v24 = vunpack.c.h.s8.bf16 %v2518_v52 }
 0xd92   :  { %3014 = vmatpush1.bf16.msra.mxu0 %v2595_v44  ;;  %v2723_v44 = vunpack.c.h.s8.bf16 %v2515_v61 }
 0xd93   :  { %3057 = vmatpush1.bf16.msra.mxu1 %v2597_v30  ;;  %3015 = vmatprep.subr.bf16.mxu0 %v2580_v31  ;;  %v2725_v30 = vunpack.c.h.s8.bf16 %v2517_v47  ;;  %v2708_v31 = vunpack.c.l.s8.bf16 %v2516_v15  ;;  %v2458_v15 = vld [vmem:[#allocation13 + $0x78] sm:$0xff] }
 0xd94   :  { %3058 = vmatprep.subr.bf16.mxu1 %v2582_v40  ;;  %v2710_v40 = vunpack.c.l.s8.bf16 %v2518_v52 }
 0xd96   :  { %3016 = vmatpush1.bf16.msra.mxu0 %v2579_v22  ;;  %v2707_v22 = vunpack.c.l.s8.bf16 %v2515_v61  ;;  %v2602_v61 = vunpack.c.h.s8.bf16 %v2458_v15 }
 0xd97   :  { %3059 = vmatpush1.bf16.msra.mxu1 %v2581_v43  ;;  %3017 = vmatprep.subr.bf16.mxu0 %v2820_v6  ;;  %v2709_v43 = vunpack.c.l.s8.bf16 %v2517_v47  ;;  %v2696_v6 = vunpack.c.h.s8.bf16 %v2504_v33 }
 0xd98   :  { %3060 = vmatprep.subr.bf16.mxu1 %v2822_v23  ;;  %v2698_v23 = vunpack.c.h.s8.bf16 %v2506_v39 }
 0xd9a   :  { %3018 = vmatpush2.bf16.msra.mxu0 %v2819_v50  ;;  %v2695_v50 = vunpack.c.h.s8.bf16 %v2503_v45 }
 0xd9b   :  { %3061 = vmatpush2.bf16.msra.mxu1 %v2821_v62  ;;  %3019 = vmatprep.subr.bf16.mxu0 %v2804_v63  ;;  %v2697_v62 = vunpack.c.h.s8.bf16 %v2505_v46  ;;  %v2680_v63 = vunpack.c.l.s8.bf16 %v2504_v33  ;;  %v2570_v33 = vld [vmem:[#allocation13 + $0x3f8] sm:$0xff] }
 0xd9c   :  { %3062 = vmatprep.subr.bf16.mxu1 %v2806_v1  ;;  %v2488_v1 = vld [vmem:[#allocation13 + $0x168] sm:$0xff] }
 0xd9e   :  { %3020 = vmatpush2.bf16.msra.mxu0 %v2803_v5  ;;  %v2679_v5 = vunpack.c.l.s8.bf16 %v2503_v45  ;;  %v2826_v45 = vunpack.c.h.s8.bf16 %v2570_v33 }
 0xd9f   :  { %3063 = vmatpush2.bf16.msra.mxu1 %v2805_v13  ;;  %3021 = vmatprep.subr.bf16.mxu0 %v2788_v11  ;;  %v2681_v13 = vunpack.c.l.s8.bf16 %v2505_v46  ;;  %v2664_v11 = vunpack.c.h.s8.bf16 %v2488_v1 }
 0xda0   :  { %3064 = vmatprep.subr.bf16.mxu1 %v2790_v2  ;;  %v2666_v2 = vunpack.c.h.s8.bf16 %v2490_v4 }
 0xda2   :  { %3022 = vmatpush2.bf16.msra.mxu0 %v2787_v18  ;;  %v2663_v18 = vunpack.c.h.s8.bf16 %v2487_v60 }
 0xda3   :  { %3065 = vmatpush2.bf16.msra.mxu1 %v2789_v36  ;;  %3023 = vmatprep.subr.bf16.mxu0 %v2772_v21  ;;  %v2665_v36 = vunpack.c.h.s8.bf16 %v2489_v16  ;;  %v2648_v21 = vunpack.c.l.s8.bf16 %v2488_v1  ;;  %v2552_v1 = vld [vmem:[#allocation13 + $0x368] sm:$0xff] }
 0xda4   :  { %3066 = vmatprep.subr.bf16.mxu1 %v2774_v25  ;;  %v2650_v25 = vunpack.c.l.s8.bf16 %v2490_v4 }
 0xda6   :  { %3024 = vmatpush2.bf16.msra.mxu0 %v2771_v35  ;;  %v2647_v35 = vunpack.c.l.s8.bf16 %v2487_v60 }
 0xda7   :  { %3067 = vmatpush2.bf16.msra.mxu1 %v2773_v29  ;;  %3025 = vmatprep.subr.bf16.mxu0 %v2756_v32  ;;  %v2649_v29 = vunpack.c.l.s8.bf16 %v2489_v16  ;;  %v2471_v32 = vld [vmem:[#allocation13 + $0xe0] sm:$0xff] }
 0xda8   :  { %3068 = vmatprep.subr.bf16.mxu1 %v2758_v42  ;;  %v2473_v42 = vld [vmem:[#allocation13 + $0xf0] sm:$0xff]  ;;  %v2631_v17 = vunpack.c.h.s8.bf16 %v2471_v32  ;;  %v2615_v52 = vunpack.c.l.s8.bf16 %v2471_v32 }
 0xdaa   :  { %3026 = vmatpush2.bf16.msra.mxu0 %v2755_v20  ;;  %v2633_v20 = vunpack.c.h.s8.bf16 %v2473_v42 }
 0xdab   :  { %3069 = vmatpush2.bf16.msra.mxu1 %v2757_v48  ;;  %3027 = vmatprep.subr.bf16.mxu0 %v2740_v51  ;;  %v2616_v48 = vunpack.c.l.s8.bf16 %v2472_v26  ;;  %v2618_v51 = vunpack.c.l.s8.bf16 %v2474_v19 }
 0xdac   :  { %3070 = vmatprep.subr.bf16.mxu1 %v2742_v14  ;;  %v2456_v14 = vld [vmem:[#allocation13 + $0x68] sm:$0xff] }
 0xdae   :  { %3028 = vmatpush2.bf16.msra.mxu0 %v2739_v53  ;;  %v2617_v53 = vunpack.c.l.s8.bf16 %v2473_v42 }
 0xdaf   :  { %3071 = vmatpush2.bf16.msra.mxu1 %v2741_v54  ;;  %3029 = vmatprep.subr.bf16.mxu0 %v2724_v56  ;;  %v2600_v54 = vunpack.c.h.s8.bf16 %v2456_v14  ;;  %v2455_v56 = vld [vmem:[#allocation13 + $0x60] sm:$0xff] }
 0xdb0   :  { %3072 = vmatprep.subr.bf16.mxu1 %v2726_v24  ;;  %v2457_v24 = vld [vmem:[#allocation13 + $0x70] sm:$0xff]  ;;  %v2599_v47 = vunpack.c.h.s8.bf16 %v2455_v56  ;;  %v2583_v39 = vunpack.c.l.s8.bf16 %v2455_v56 }
 0xdb2   :  { %3030 = vmatpush2.bf16.msra.mxu0 %v2723_v44  ;;  %v2601_v44 = vunpack.c.h.s8.bf16 %v2457_v24 }
 0xdb3   :  { %3073 = vmatpush2.bf16.msra.mxu1 %v2725_v30  ;;  %3031 = vmatprep.subr.bf16.mxu0 %v2708_v31  ;;  %v2584_v30 = vunpack.c.l.s8.bf16 %v2456_v14  ;;  %v2586_v31 = vunpack.c.l.s8.bf16 %v2458_v15  ;;  %v2522_v14 = vld [vmem:[#allocation13 + $0x278] sm:$0xff] }
 0xdb4   :  { %3074 = vmatprep.subr.bf16.mxu1 %v2710_v40  ;;  %v2568_v40 = vld [vmem:[#allocation13 + $0x3e8] sm:$0xff]  ;;  %v2730_v56 = vunpack.c.h.s8.bf16 %v2522_v14 }
 0xdb6   :  { %3032 = vmatpush2.bf16.msra.mxu0 %v2707_v22  ;;  %v2585_v22 = vunpack.c.l.s8.bf16 %v2457_v24 }
 0xdb7   :  { %3075 = vmatpush2.bf16.msra.mxu1 %v2709_v43  ;;  %3087 = vmatprep.subr.bf16.mxu0 %v2696_v6  ;;  %v2824_v43 = vunpack.c.h.s8.bf16 %v2568_v40  ;;  %v2567_v6 = vld [vmem:[#allocation13 + $0x3e0] sm:$0xff] }
 0xdb8   :  { %3130 = vmatprep.subr.bf16.mxu1 %v2698_v23  ;;  %v2569_v23 = vld [vmem:[#allocation13 + $0x3f0] sm:$0xff]  ;;  %v2823_v46 = vunpack.c.h.s8.bf16 %v2567_v6  ;;  %v2807_v4 = vunpack.c.l.s8.bf16 %v2567_v6 }
 0xdb9   :  { %3034 = vmatmul.mubr.bf16.vlgmr.msra.gmra.mxu0 %v10389_v59 }
 0xdba   :  { %3077 = vmatmul.mubr.bf16.vlgmr.msra.gmra.mxu1 %v10389_v59  ;;  %3088 = vmatpush1.bf16.msra.mxu0 %v2695_v50  ;;  %v2825_v50 = vunpack.c.h.s8.bf16 %v2569_v23 }
 0xdbb   :  { %3119 = vmatprep.mubr.bf16.mxu0 %v10393_v49  ;;  %3131 = vmatpush1.bf16.msra.mxu1 %v2697_v62  ;;  %v2808_v62 = vunpack.c.l.s8.bf16 %v2568_v40  ;;  %v3460_v40 = vld [vmem:[#allocation15 + $0xb8] sm:$0xff] }
 0xdbc   :  { %3162 = vmatprep.mubr.bf16.mxu1 %v10393_v49  ;;  %3089 = vmatprep.subr.bf16.mxu0 %v2680_v63  ;;  %v2632_v49 = vunpack.c.h.s8.bf16 %v2472_v26  ;;  %v2810_v63 = vunpack.c.l.s8.bf16 %v2570_v33  ;;  %v2538_v26 = vld [vmem:[#allocation13 + $0x2f8] sm:$0xff]  ;;  %v3612_v6 = vunpack.c.h.s8.bf16 %v3460_v40 }
 0xdbd   :  { %3132 = vmatprep.subr.bf16.mxu1 %v2682_v3  ;;  %v2554_v3 = vld [vmem:[#allocation13 + $0x378] sm:$0xff]  ;;  %v2762_v32 = vunpack.c.h.s8.bf16 %v2538_v26 }
 0xdbe   :  { %3090 = vmatpush1.bf16.msra.mxu0 %v2679_v5  ;;  %v2809_v5 = vunpack.c.l.s8.bf16 %v2569_v23  ;;  %v2794_v60 = vunpack.c.h.s8.bf16 %v2554_v3 }
 0xdbf   :  { %3133 = vmatpush1.bf16.msra.mxu1 %v2681_v13  ;;  %3091 = vmatprep.subr.bf16.mxu0 %v2664_v11  ;;  %v2792_v13 = vunpack.c.h.s8.bf16 %v2552_v1  ;;  %v2551_v11 = vld [vmem:[#allocation13 + $0x360] sm:$0xff] }
 0xdc0   :  { %3134 = vmatprep.subr.bf16.mxu1 %v2666_v2  ;;  %v2553_v2 = vld [vmem:[#allocation13 + $0x370] sm:$0xff]  ;;  %v2791_v16 = vunpack.c.h.s8.bf16 %v2551_v11  ;;  %v2775_v19 = vunpack.c.l.s8.bf16 %v2551_v11  ;;  %v3458_v11 = vld [vmem:[#allocation15 + $0xa8] sm:$0xff] }
 0xdc2   :  { %3092 = vmatpush1.bf16.msra.mxu0 %v2663_v18  ;;  %v2793_v18 = vunpack.c.h.s8.bf16 %v2553_v2 }
 0xdc3   :  { %3135 = vmatpush1.bf16.msra.mxu1 %v2665_v36  ;;  %3093 = vmatprep.subr.bf16.mxu0 %v2648_v21  ;;  %v2776_v36 = vunpack.c.l.s8.bf16 %v2552_v1  ;;  %v2778_v21 = vunpack.c.l.s8.bf16 %v2554_v3  ;;  %v3610_v3 = vunpack.c.l.s8.bf16 %v3460_v40 }
 0xdc4   :  { %3136 = vmatprep.subr.bf16.mxu1 %v2650_v25  ;;  %v2536_v25 = vld [vmem:[#allocation13 + $0x2e8] sm:$0xff] }
 0xdc6   :  { %3094 = vmatpush1.bf16.msra.mxu0 %v2647_v35  ;;  %v2777_v35 = vunpack.c.l.s8.bf16 %v2553_v2 }
 0xdc7   :  { %3137 = vmatpush1.bf16.msra.mxu1 %v2649_v29  ;;  %3095 = vmatprep.subr.bf16.mxu0 %v2632_v49  ;;  %v2760_v29 = vunpack.c.h.s8.bf16 %v2536_v25  ;;  %v2535_v49 = vld [vmem:[#allocation13 + $0x2e0] sm:$0xff] }
 0xdc8   :  { %3138 = vmatprep.subr.bf16.mxu1 %v2634_v34  ;;  %v2537_v34 = vld [vmem:[#allocation13 + $0x2f0] sm:$0xff]  ;;  %v2759_v42 = vunpack.c.h.s8.bf16 %v2535_v49  ;;  %v2743_v15 = vunpack.c.l.s8.bf16 %v2535_v49  ;;  %v3457_v49 = vld [vmem:[#allocation15 + $0xa0] sm:$0xff] }
 0xdca   :  { %3096 = vmatpush1.bf16.msra.mxu0 %v2631_v17  ;;  %v2761_v17 = vunpack.c.h.s8.bf16 %v2537_v34 }
 0xdcb   :  { %3139 = vmatpush1.bf16.msra.mxu1 %v2633_v20  ;;  %3097 = vmatprep.subr.bf16.mxu0 %v2616_v48  ;;  %v2744_v20 = vunpack.c.l.s8.bf16 %v2536_v25  ;;  %v2746_v48 = vunpack.c.l.s8.bf16 %v2538_v26  ;;  %v3441_v26 = vld [vmem:[#allocation15 + $0x20] sm:$0xff] }
 0xdcc   :  { %3140 = vmatprep.subr.bf16.mxu1 %v2618_v51  ;;  %v2520_v51 = vld [vmem:[#allocation13 + $0x268] sm:$0xff] }
 0xdce   :  { %3098 = vmatpush1.bf16.msra.mxu0 %v2615_v52  ;;  %v2745_v52 = vunpack.c.l.s8.bf16 %v2537_v34 }
 0xdcf   :  { %3141 = vmatpush1.bf16.msra.mxu1 %v2617_v53  ;;  %3099 = vmatprep.subr.bf16.mxu0 %v2600_v54  ;;  %v2728_v53 = vunpack.c.h.s8.bf16 %v2520_v51  ;;  %v2519_v54 = vld [vmem:[#allocation13 + $0x260] sm:$0xff] }
 0xdd0   :  { %3142 = vmatprep.subr.bf16.mxu1 %v2602_v61  ;;  %v2521_v61 = vld [vmem:[#allocation13 + $0x270] sm:$0xff]  ;;  %v2727_v24 = vunpack.c.h.s8.bf16 %v2519_v54  ;;  %v2711_v33 = vunpack.c.l.s8.bf16 %v2519_v54 }
 0xdd2   :  { %3100 = vmatpush1.bf16.msra.mxu0 %v2599_v47  ;;  %v2729_v47 = vunpack.c.h.s8.bf16 %v2521_v61 }
 0xdd3   :  { %3143 = vmatpush1.bf16.msra.mxu1 %v2601_v44  ;;  %3101 = vmatprep.subr.bf16.mxu0 %v2584_v30  ;;  %v2712_v44 = vunpack.c.l.s8.bf16 %v2520_v51  ;;  %v2714_v30 = vunpack.c.l.s8.bf16 %v2522_v14  ;;  %v3606_v14 = vunpack.c.l.s8.bf16 %v3458_v11 }
 0xdd4   :  { %3144 = vmatprep.subr.bf16.mxu1 %v2586_v31  ;;  %v3444_v31 = vld [vmem:[#allocation15 + $0x38] sm:$0xff] }
 0xdd6   :  { %3102 = vmatpush1.bf16.msra.mxu0 %v2583_v39  ;;  %v2713_v39 = vunpack.c.l.s8.bf16 %v2521_v61  ;;  %v3456_v61 = vld [vmem:[#allocation15 + $0x98] sm:$0xff] }
 0xdd7   :  { %3145 = vmatpush1.bf16.msra.mxu1 %v2585_v22  ;;  %3103 = vmatprep.subr.bf16.mxu0 %v2824_v43  ;;  %v3580_v22 = vunpack.c.h.s8.bf16 %v3444_v31  ;;  %v3443_v43 = vld [vmem:[#allocation15 + $0x30] sm:$0xff]  ;;  %v3604_v40 = vunpack.c.h.s8.bf16 %v3456_v61 }
 0xdd8   :  { %3146 = vmatprep.subr.bf16.mxu1 %v2826_v45  ;;  %v3459_v45 = vld [vmem:[#allocation15 + $0xb0] sm:$0xff]  ;;  %v3579_v23 = vunpack.c.h.s8.bf16 %v3443_v43  ;;  %v3577_v2 = vunpack.c.l.s8.bf16 %v3443_v43 }
 0xdda   :  { %3104 = vmatpush2.bf16.msra.mxu0 %v2823_v46  ;;  %v10412_v46 = vld [vmem:[%s11065_s10] sm:$0xff] }
 0xddb   :  { %3147 = vmatpush2.bf16.msra.mxu1 %v2825_v50  ;;  %3105 = vmatprep.subr.bf16.mxu0 %v2808_v62  ;;  %v3611_v50 = vunpack.c.h.s8.bf16 %v3459_v45  ;;  %v3578_v62 = vunpack.c.l.s8.bf16 %v3444_v31  ;;  %v3192_v1 = vrot.slane %v10412_v46, %v10126_v57 }
 0xddc   :  { %3148 = vmatprep.subr.bf16.mxu1 %v2810_v63  ;;  %v3184_v63 = vrot.slane %v10412_v46, %v10093_v9 }
 0xdde   :  { %3106 = vmatpush2.bf16.msra.mxu0 %v2807_v4  ;;  %v3442_v4 = vld [vmem:[#allocation15 + $0x28] sm:$0xff] }
 0xddf   :  { %3149 = vmatpush2.bf16.msra.mxu1 %v2809_v5  ;;  %3107 = vmatprep.subr.bf16.mxu0 %v2792_v13  ;;  %v3576_v25 = vunpack.c.h.s8.bf16 %v3442_v4  ;;  %v3574_v51 = vunpack.c.l.s8.bf16 %v3442_v4  ;;  %v3438_v4 = vld [vmem:[#allocation15 + $0x8] sm:$0xff] }
 0xde0   :  { %3150 = vmatprep.subr.bf16.mxu1 %v2794_v60  ;;  %v10427_v60 = vld [vmem:[%s11066_s11] sm:$0xff] }
 0xde2   :  { %3108 = vmatpush2.bf16.msra.mxu0 %v2791_v16 }
 0xde3   :  { %3151 = vmatpush2.bf16.msra.mxu1 %v2793_v18  ;;  %3109 = vmatprep.subr.bf16.mxu0 %v2776_v36  ;;  %v3300_v18 = vrot.slane %v10427_v60, %v10093_v9 }
 0xde4   :  { %3152 = vmatprep.subr.bf16.mxu1 %v2778_v21  ;;  %v3609_v21 = vunpack.c.l.s8.bf16 %v3459_v45  ;;  %v3455_v45 = vld [vmem:[#allocation15 + $0x90] sm:$0xff] }
 0xde6   :  { %3110 = vmatpush2.bf16.msra.mxu0 %v2775_v19 }
 0xde7   :  { %3153 = vmatpush2.bf16.msra.mxu1 %v2777_v35  ;;  %3111 = vmatprep.subr.bf16.mxu0 %v2760_v29  ;;  %v3608_v29 = vunpack.c.h.s8.bf16 %v3458_v11  ;;  %v3454_v11 = vld [vmem:[#allocation15 + $0x88] sm:$0xff] }
 0xde8   :  { %3154 = vmatprep.subr.bf16.mxu1 %v2762_v32 }
 0xdea   :  { %3112 = vmatpush2.bf16.msra.mxu0 %v2759_v42  ;;  %v3575_v42 = vunpack.c.h.s8.bf16 %v3441_v26 }
 0xdeb   :  { %3155 = vmatpush2.bf16.msra.mxu1 %v2761_v17  ;;  %3113 = vmatprep.subr.bf16.mxu0 %v2744_v20 }
 0xdec   :  { %3156 = vmatprep.subr.bf16.mxu1 %v2746_v48  ;;  %v3607_v48 = vunpack.c.h.s8.bf16 %v3457_v49 }
 0xdee   :  { %3114 = vmatpush2.bf16.msra.mxu0 %v2743_v15 }
 0xdef   :  { %3157 = vmatpush2.bf16.msra.mxu1 %v2745_v52  ;;  %3115 = vmatprep.subr.bf16.mxu0 %v2728_v53 }
 0xdf0   :  { %3158 = vmatprep.subr.bf16.mxu1 %v2730_v56  ;;  %v3440_v56 = vld [vmem:[#allocation15 + $0x18] sm:$0xff] }
 0xdf1   :  { %v3572_v31 = vunpack.c.h.s8.bf16 %v3440_v56 }
 0xdf2   :  { %3116 = vmatpush2.bf16.msra.mxu0 %v2727_v24 }
 0xdf3   :  { %3159 = vmatpush2.bf16.msra.mxu1 %v2729_v47  ;;  %3117 = vmatprep.subr.bf16.mxu0 %v2712_v44  ;;  %v3573_v44 = vunpack.c.l.s8.bf16 %v3441_v26 }
 0xdf4   :  { %3160 = vmatprep.subr.bf16.mxu1 %v2714_v30  ;;  %v3605_v30 = vunpack.c.l.s8.bf16 %v3457_v49  ;;  %v3468_v49 = vld [vmem:[#allocation15 + $0xf8] sm:$0xff] }
 0xdf6   :  { %3118 = vmatpush2.bf16.msra.mxu0 %v2711_v33  ;;  %v3439_v33 = vld [vmem:[#allocation15 + $0x10] sm:$0xff] }
 0xdf7   :  { %3161 = vmatpush2.bf16.msra.mxu1 %v2713_v39  ;;  %3837 = vmatprep.subr.bf16.mxu0 %v3580_v22 }
 0xdf8   :  { %3880 = vmatprep.subr.bf16.mxu1 %v3612_v6 }
 0xdf9   :  { %3120 = vmatmul.mubr.bf16.vlgmr.msra.gmra.mxu0 %v10389_v59  ;;  %v10419_v5 = vpop.f32.mrf.mxu0  ;;  %v10421_v13 = vpop.f32.mrf.mxu1 }
 0xdfa   :  { %3163 = vmatmul.mubr.bf16.vlgmr.msra.gmra.mxu1 %v10389_v59  ;;  %3838 = vmatpush1.bf16.msra.mxu0 %v3579_v23  ;;  %v3308_v59 = vrot.slane %v10427_v60, %v10126_v57 }
 0xdfb   :  { %3881 = vmatpush1.bf16.msra.mxu1 %v3611_v50  ;;  %v2865_v16 = vpop.f32.mrf.mxu0  ;;  %v2908_v36 = vpop.f32.mrf.mxu1  ;;  %3839 = vmatprep.subr.bf16.mxu0 %v3578_v62  ;;  %v3571_v62 = vunpack.c.h.s8.bf16 %v3439_v33 }
 0xdfc   :  { %v3258_v19 = vmul.f32 %v3184_v63, %v2865_v16  ;;  %v3260_v35 = vmul.f32 %v3192_v1, %v2908_v36  ;;  %3882 = vmatprep.subr.bf16.mxu1 %v3610_v3  ;;  %v3602_v3 = vunpack.c.l.s8.bf16 %v3456_v61  ;;  %v3601_v16 = vunpack.c.l.s8.bf16 %v3455_v45  ;;  %v3437_v36 = vld [vmem:[#allocation15] sm:$0xff]  ;;  %v3466_v61 = vld [vmem:[#allocation15 + $0xe8] sm:$0xff] }
 0xdfd   :  { %v10433_v32 = vpop.f32.mrf.mxu0  ;;  %v10435_v34 = vpop.f32.mrf.mxu1  ;;  %v3567_v26 = vunpack.c.h.s8.bf16 %v3437_v36 }
 0xdfe   :  { %3840 = vmatpush1.bf16.msra.mxu0 %v3577_v2  ;;  %v3374_v15 = vadd.f32 %v3300_v18, %v3258_v19  ;;  %v3376_v52 = vadd.f32 %v3308_v59, %v3260_v35  ;;  %v3569_v2 = vunpack.c.l.s8.bf16 %v3439_v33  ;;  %v3566_v35 = vunpack.c.l.s8.bf16 %v3438_v4 }
 0xdff   :  { %3883 = vmatpush1.bf16.msra.mxu1 %v3609_v21  ;;  %v2869_v17 = vpop.f32.mrf.mxu0  ;;  %v2912_v20 = vpop.f32.mrf.mxu1  ;;  %3841 = vmatprep.subr.bf16.mxu0 %v3576_v25  ;;  %v3600_v21 = vunpack.c.h.s8.bf16 %v3454_v11  ;;  %v3453_v25 = vld [vmem:[#allocation15 + $0x80] sm:$0xff] }
 0xe00   :  { %v3274_v53 = vmul.f32 %v3184_v63, %v2869_v17  ;;  %v3276_v54 = vmul.f32 %v3192_v1, %v2912_v20  ;;  %3884 = vmatprep.subr.bf16.mxu1 %v3608_v29  ;;  %v3406_v39 = vmax.f32 %v3374_v15, 0.0  ;;  %v3408_v22 = vmax.f32 %v3376_v52, 0.0  ;;  %v3452_v29 = vld [vmem:[#allocation15 + $0x78] sm:$0xff] }
 0xe01   :  { %v3603_v63 = vunpack.c.h.s8.bf16 %v3455_v45  ;;  %v3570_v1 = vunpack.c.l.s8.bf16 %v3440_v56  ;;  %v3599_v19 = vunpack.c.h.s8.bf16 %v3453_v25  ;;  %v3597_v17 = vunpack.c.l.s8.bf16 %v3453_v25  ;;  %v3450_v56 = vld [vmem:[#allocation15 + $0x68] sm:$0xff]  ;;  %v3464_v45 = vld [vmem:[#allocation15 + $0xd8] sm:$0xff] }
 0xe02   :  { %v3390_v24 = vadd.f32 %v3300_v18, %v3274_v53  ;;  %v3392_v47 = vadd.f32 %v3308_v59, %v3276_v54  ;;  %3842 = vmatpush1.bf16.msra.mxu0 %v3575_v42  ;;  %v3568_v18 = vunpack.c.h.s8.bf16 %v3438_v4  ;;  %v3598_v59 = vunpack.c.l.s8.bf16 %v3454_v11 }
 0xe03   :  { %3885 = vmatpush1.bf16.msra.mxu1 %v3607_v48  ;;  %3843 = vmatprep.subr.bf16.mxu0 %v3574_v51  ;;  %v3565_v42 = vunpack.c.l.s8.bf16 %v3437_v36  ;;  %v3596_v20 = vunpack.c.h.s8.bf16 %v3452_v29  ;;  %v3451_v48 = vld [vmem:[#allocation15 + $0x70] sm:$0xff]  ;;  %v3628_v51 = vunpack.c.h.s8.bf16 %v3468_v49  ;;  %v3594_v53 = vunpack.c.l.s8.bf16 %v3452_v29  ;;  %v3445_v29 = vld [vmem:[#allocation15 + $0x40] sm:$0xff] }
 0xe04   :  { %v3422_v43 = vmax.f32 %v3390_v24, 0.0  ;;  %v3424_v6 = vmax.f32 %v3392_v47, 0.0  ;;  %3886 = vmatprep.subr.bf16.mxu1 %v3606_v14  ;;  %v3467_v14 = vld [vmem:[#allocation15 + $0xf0] sm:$0xff]  ;;  %v3595_v15 = vunpack.c.h.s8.bf16 %v3451_v48  ;;  %v3626_v54 = vunpack.c.l.s8.bf16 %v3468_v49 }
 0xe05   :  { %v3627_v52 = vunpack.c.h.s8.bf16 %v3467_v14  ;;  %v3593_v24 = vunpack.c.l.s8.bf16 %v3451_v48  ;;  %v3625_v47 = vunpack.c.l.s8.bf16 %v3467_v14  ;;  %v3180_v36 = vrot.slane %v10412_v46, %v10096_v10 }
 0xe06   :  { %3844 = vmatpush1.bf16.msra.mxu0 %v3573_v44  ;;  %v3822_v23 = vpack.c.bf16 %v3422_v43, %v3406_v39  ;;  %v3824_v50 = vpack.c.bf16 %v3424_v6, %v3408_v22  ;;  %v3592_v44 = vunpack.c.h.s8.bf16 %v3450_v56  ;;  %v3590_v22 = vunpack.c.l.s8.bf16 %v3450_v56  ;;  %v3448_v6 = vld [vmem:[#allocation15 + $0x58] sm:$0xff] }
 0xe07   :  { %3887 = vmatpush1.bf16.msra.mxu1 %v3605_v30  ;;  %3845 = vmatprep.subr.bf16.mxu0 %v3572_v31  ;;  %v3449_v30 = vld [vmem:[#allocation15 + $0x60] sm:$0xff]  ;;  %v3624_v31 = vunpack.c.h.s8.bf16 %v3466_v61  ;;  %v3622_v43 = vunpack.c.l.s8.bf16 %v3466_v61  ;;  %v3188_v25 = vrot.slane %v10412_v46, %v10123_v55  ;;  %v3296_v48 = vrot.slane %v10427_v60, %v10096_v10  ;;  %v3476_v56 = vld [vmem:[#allocation15 + $0x138] sm:$0xff] }
 0xe08   :  { %3869 = vmatprep.mubr.bf16.mxu0 %v3822_v23  ;;  %3888 = vmatprep.subr.bf16.mxu1 %v3604_v40  ;;  %v3465_v40 = vld [vmem:[#allocation15 + $0xe0] sm:$0xff]  ;;  %v3591_v33 = vunpack.c.h.s8.bf16 %v3449_v30  ;;  %v3589_v23 = vunpack.c.l.s8.bf16 %v3449_v30  ;;  %v3583_v14 = vunpack.c.h.s8.bf16 %v3445_v29  ;;  %v3492_v61 = vld [vmem:[#allocation15 + $0x1b8] sm:$0xff]  ;;  %v3644_v30 = vunpack.c.h.s8.bf16 %v3476_v56 }
 0xe09   :  { %3912 = vmatprep.mubr.bf16.mxu1 %v3824_v50  ;;  %v3623_v39 = vunpack.c.h.s8.bf16 %v3465_v40  ;;  %v3621_v50 = vunpack.c.l.s8.bf16 %v3465_v40  ;;  %v3275_v49 = vmul.f32 %v3188_v25, %v10435_v34 }
 0xe0a   :  { %3846 = vmatpush1.bf16.msra.mxu0 %v3571_v62  ;;  %v3588_v62 = vunpack.c.h.s8.bf16 %v3448_v6 }
 0xe0b   :  { %3889 = vmatpush1.bf16.msra.mxu1 %v3603_v63  ;;  %3847 = vmatprep.subr.bf16.mxu0 %v3570_v1  ;;  %v3447_v63 = vld [vmem:[#allocation15 + $0x50] sm:$0xff]  ;;  %v3620_v1 = vunpack.c.h.s8.bf16 %v3464_v45 }
 0xe0c   :  { %3890 = vmatprep.subr.bf16.mxu1 %v3602_v3  ;;  %v3463_v3 = vld [vmem:[#allocation15 + $0xd0] sm:$0xff]  ;;  %v3587_v4 = vunpack.c.h.s8.bf16 %v3447_v63 }
 0xe0d   :  { %v3619_v11 = vunpack.c.h.s8.bf16 %v3463_v3 }
 0xe0e   :  { %3848 = vmatpush1.bf16.msra.mxu0 %v3569_v2  ;;  %v3586_v2 = vunpack.c.l.s8.bf16 %v3448_v6 }
 0xe0f   :  { %3891 = vmatpush1.bf16.msra.mxu1 %v3601_v16  ;;  %3849 = vmatprep.subr.bf16.mxu0 %v3568_v18  ;;  %v3618_v16 = vunpack.c.l.s8.bf16 %v3464_v45  ;;  %v3446_v18 = vld [vmem:[#allocation15 + $0x48] sm:$0xff] }
 0xe10   :  { %3892 = vmatprep.subr.bf16.mxu1 %v3600_v21  ;;  %v3462_v21 = vld [vmem:[#allocation15 + $0xc8] sm:$0xff]  ;;  %v3582_v34 = vunpack.c.l.s8.bf16 %v3446_v18 }
 0xe12   :  { %3850 = vmatpush1.bf16.msra.mxu0 %v3567_v26  ;;  %v3585_v26 = vunpack.c.l.s8.bf16 %v3447_v63 }
 0xe13   :  { %3893 = vmatpush1.bf16.msra.mxu1 %v3599_v19  ;;  %3851 = vmatprep.subr.bf16.mxu0 %v3566_v35  ;;  %v3273_v19 = vmul.f32 %v3180_v36, %v10433_v32  ;;  %v3617_v35 = vunpack.c.l.s8.bf16 %v3463_v3  ;;  %v3304_v32 = vrot.slane %v10427_v60, %v10123_v55 }
 0xe14   :  { %3894 = vmatprep.subr.bf16.mxu1 %v3598_v59  ;;  %v3584_v59 = vunpack.c.h.s8.bf16 %v3446_v18  ;;  %v3490_v18 = vld [vmem:[#allocation15 + $0x1a8] sm:$0xff] }
 0xe16   :  { %3852 = vmatpush1.bf16.msra.mxu0 %v3565_v42  ;;  %v3616_v42 = vunpack.c.h.s8.bf16 %v3462_v21 }
 0xe17   :  { %3895 = vmatpush1.bf16.msra.mxu1 %v3597_v17  ;;  %3853 = vmatprep.subr.bf16.mxu0 %v3596_v20  ;;  %v3461_v17 = vld [vmem:[#allocation15 + $0xc0] sm:$0xff]  ;;  %v3257_v20 = vmul.f32 %v3180_v36, %v10419_v5 }
 0xe18   :  { %3896 = vmatprep.subr.bf16.mxu1 %v3628_v51  ;;  %v3259_v51 = vmul.f32 %v3188_v25, %v10421_v13  ;;  %v3316_v25 = vrot.slane %v10427_v60, %v10153_v28 }
 0xe19   :  { %v3373_v5 = vadd.f32 %v3296_v48, %v3257_v20  ;;  %v3489_v20 = vld [vmem:[#allocation15 + $0x1a0] sm:$0xff] }
 0xe1a   :  { %3854 = vmatpush2.bf16.msra.mxu0 %v3595_v15  ;;  %v3389_v15 = vadd.f32 %v3296_v48, %v3273_v19 }
 0xe1b   :  { %3897 = vmatpush2.bf16.msra.mxu1 %v3627_v52  ;;  %3855 = vmatprep.subr.bf16.mxu0 %v3594_v53  ;;  %v3615_v52 = vunpack.c.h.s8.bf16 %v3461_v17  ;;  %v3391_v53 = vadd.f32 %v3304_v32, %v3275_v49 }
 0xe1c   :  { %3898 = vmatprep.subr.bf16.mxu1 %v3626_v54  ;;  %v3614_v54 = vunpack.c.l.s8.bf16 %v3462_v21  ;;  %v3421_v13 = vmax.f32 %v3389_v15, 0.0 }
 0xe1d   :  { %v3423_v40 = vmax.f32 %v3391_v53, 0.0  ;;  %v3670_v53 = vunpack.c.l.s8.bf16 %v3490_v18 }
 0xe1e   :  { %3856 = vmatpush2.bf16.msra.mxu0 %v3593_v24  ;;  %v3375_v24 = vadd.f32 %v3304_v32, %v3259_v51 }
 0xe1f   :  { %3899 = vmatpush2.bf16.msra.mxu1 %v3625_v47  ;;  %3857 = vmatprep.subr.bf16.mxu0 %v3592_v44  ;;  %v3581_v47 = vunpack.c.l.s8.bf16 %v3445_v29  ;;  %v3613_v44 = vunpack.c.l.s8.bf16 %v3461_v17  ;;  %v3672_v17 = vunpack.c.h.s8.bf16 %v3490_v18  ;;  %v3470_v18 = vld [vmem:[#allocation15 + $0x108] sm:$0xff] }
 0xe20   :  { %3900 = vmatprep.subr.bf16.mxu1 %v3624_v31  ;;  %v3475_v31 = vld [vmem:[#allocation15 + $0x130] sm:$0xff]  ;;  %v3407_v6 = vmax.f32 %v3375_v24, 0.0  ;;  %v3472_v24 = vld [vmem:[#allocation15 + $0x118] sm:$0xff] }
 0xe21   :  { %v3643_v45 = vunpack.c.h.s8.bf16 %v3475_v31  ;;  %v3641_v36 = vunpack.c.l.s8.bf16 %v3475_v31  ;;  %v3669_v31 = vunpack.c.l.s8.bf16 %v3489_v20 }
 0xe22   :  { %3858 = vmatpush2.bf16.msra.mxu0 %v3591_v33  ;;  %v3676_v33 = vunpack.c.h.s8.bf16 %v3492_v61  ;;  %v3823_v63 = vpack.c.bf16 %v3423_v40, %v3407_v6  ;;  %v3636_v40 = vunpack.c.h.s8.bf16 %v3472_v24 }
 0xe23   :  { %3901 = vmatpush2.bf16.msra.mxu1 %v3623_v39  ;;  %3859 = vmatprep.subr.bf16.mxu0 %v3590_v22  ;;  %v3491_v39 = vld [vmem:[#allocation15 + $0x1b0] sm:$0xff]  ;;  %v10450_v22 = vsub.s32 7, %v10090_v8 }
 0xe24   :  { %3902 = vmatprep.subr.bf16.mxu1 %v3622_v43  ;;  %v3405_v43 = vmax.f32 %v3373_v5, 0.0  ;;  %v3673_v19 = vunpack.c.l.s8.bf16 %v3491_v39 }
 0xe25   :  { %v3208_v3 = vrot.slane %v10412_v46, %v10450_v22 }
 0xe26   :  { %3860 = vmatpush2.bf16.msra.mxu0 %v3589_v23  ;;  %v3821_v23 = vpack.c.bf16 %v3421_v13, %v3405_v43 }
 0xe27   :  { %3903 = vmatpush2.bf16.msra.mxu1 %v3621_v50  ;;  %3861 = vmatprep.subr.bf16.mxu0 %v3588_v62  ;;  %v3675_v50 = vunpack.c.h.s8.bf16 %v3491_v39  ;;  %v3642_v62 = vunpack.c.l.s8.bf16 %v3476_v56 }
 0xe28   :  { %3904 = vmatprep.subr.bf16.mxu1 %v3620_v1  ;;  %v3200_v1 = vrot.slane %v10412_v46, %v10153_v28 }
 0xe2a   :  { %3862 = vmatpush2.bf16.msra.mxu0 %v3587_v4  ;;  %v3674_v4 = vunpack.c.l.s8.bf16 %v3492_v61 }
 0xe2b   :  { %3905 = vmatpush2.bf16.msra.mxu1 %v3619_v11  ;;  %3863 = vmatprep.subr.bf16.mxu0 %v3586_v2  ;;  %v3474_v11 = vld [vmem:[#allocation15 + $0x128] sm:$0xff] }
 0xe2c   :  { %3906 = vmatprep.subr.bf16.mxu1 %v3618_v16 }
 0xe2e   :  { %3864 = vmatpush2.bf16.msra.mxu0 %v3585_v26 }
 0xe2f   :  { %3907 = vmatpush2.bf16.msra.mxu1 %v3617_v35  ;;  %3865 = vmatprep.subr.bf16.mxu0 %v3584_v59  ;;  %v3640_v35 = vunpack.c.h.s8.bf16 %v3474_v11  ;;  %v3473_v59 = vld [vmem:[#allocation15 + $0x120] sm:$0xff] }
 0xe30   :  { %3908 = vmatprep.subr.bf16.mxu1 %v3616_v42  ;;  %v3324_v42 = vrot.slane %v10427_v60, %v10450_v22  ;;  %v3639_v32 = vunpack.c.h.s8.bf16 %v3473_v59 }
 0xe32   :  { %3866 = vmatpush2.bf16.msra.mxu0 %v3583_v14 }
 0xe33   :  { %3909 = vmatpush2.bf16.msra.mxu1 %v3615_v52  ;;  %3867 = vmatprep.subr.bf16.mxu0 %v3582_v34  ;;  %v3671_v52 = vunpack.c.h.s8.bf16 %v3489_v20  ;;  %v3638_v34 = vunpack.c.l.s8.bf16 %v3474_v11  ;;  %v3484_v20 = vld [vmem:[#allocation15 + $0x178] sm:$0xff] }
 0xe34   :  { %3910 = vmatprep.subr.bf16.mxu1 %v3614_v54 }
 0xe36   :  { %3868 = vmatpush2.bf16.msra.mxu0 %v3581_v47 }
 0xe37   :  { %3911 = vmatpush2.bf16.msra.mxu1 %v3613_v44  ;;  %3923 = vmatprep.subr.bf16.mxu0 %v3644_v30  ;;  %v3637_v44 = vunpack.c.l.s8.bf16 %v3473_v59  ;;  %v3488_v30 = vld [vmem:[#allocation15 + $0x198] sm:$0xff]  ;;  %v3485_v59 = vld [vmem:[#allocation15 + $0x180] sm:$0xff] }
 0xe38   :  { %3966 = vmatprep.subr.bf16.mxu1 %v3676_v33  ;;  %v3471_v33 = vld [vmem:[#allocation15 + $0x110] sm:$0xff]  ;;  %v3666_v11 = vunpack.c.l.s8.bf16 %v3488_v30 }
 0xe39   :  { %v10456_v2 = vpop.f32.mrf.mxu0  ;;  %v10458_v16 = vpop.f32.mrf.mxu1  ;;  %3870 = vmatmul.mubr.bf16.vlgmr.msra.gmra.mxu0 %v3821_v23  ;;  %v3487_v23 = vld [vmem:[#allocation15 + $0x190] sm:$0xff] }
 0xe3a   :  { %3913 = vmatmul.mubr.bf16.vlgmr.msra.gmra.mxu1 %v3823_v63  ;;  %3924 = vmatpush1.bf16.msra.mxu0 %v3643_v45 }
 0xe3b   :  { %3967 = vmatpush1.bf16.msra.mxu1 %v3675_v50  ;;  %v2951_v21 = vpop.f32.mrf.mxu0  ;;  %v2994_v26 = vpop.f32.mrf.mxu1  ;;  %3925 = vmatprep.subr.bf16.mxu0 %v3642_v62  ;;  %v3668_v50 = vunpack.c.h.s8.bf16 %v3488_v30 }
 0xe3c   :  { %v3262_v29 = vmul.f32 %v3200_v1, %v2951_v21  ;;  %v3264_v49 = vmul.f32 %v3208_v3, %v2994_v26  ;;  %3968 = vmatprep.subr.bf16.mxu1 %v3674_v4  ;;  %v3634_v4 = vunpack.c.l.s8.bf16 %v3472_v24  ;;  %v3633_v21 = vunpack.c.l.s8.bf16 %v3471_v33 }
 0xe3d   :  { %v10464_v48 = vpop.f32.mrf.mxu0  ;;  %v10466_v51 = vpop.f32.mrf.mxu1  ;;  %v3632_v26 = vunpack.c.h.s8.bf16 %v3470_v18 }
 0xe3e   :  { %3926 = vmatpush1.bf16.msra.mxu0 %v3641_v36  ;;  %v3378_v54 = vadd.f32 %v3316_v25, %v3262_v29  ;;  %v3380_v56 = vadd.f32 %v3324_v42, %v3264_v49  ;;  %v3486_v36 = vld [vmem:[#allocation15 + $0x188] sm:$0xff]  ;;  %v3663_v49 = vunpack.c.h.s8.bf16 %v3485_v59 }
 0xe3f   :  { %3969 = vmatpush1.bf16.msra.mxu1 %v3673_v19  ;;  %v2955_v14 = vpop.f32.mrf.mxu0  ;;  %v2998_v15 = vpop.f32.mrf.mxu1  ;;  %3927 = vmatprep.subr.bf16.mxu0 %v3640_v35  ;;  %v3469_v19 = vld [vmem:[#allocation15 + $0x100] sm:$0xff]  ;;  %v3664_v35 = vunpack.c.h.s8.bf16 %v3486_v36 }
 0xe40   :  { %v3278_v5 = vmul.f32 %v3200_v1, %v2955_v14  ;;  %v3280_v61 = vmul.f32 %v3208_v3, %v2998_v15  ;;  %3970 = vmatprep.subr.bf16.mxu1 %v3672_v17  ;;  %v3410_v39 = vmax.f32 %v3378_v54, 0.0  ;;  %v3412_v43 = vmax.f32 %v3380_v56, 0.0  ;;  %v3499_v54 = vld [vmem:[#allocation15 + $0x1f0] sm:$0xff] }
 0xe41   :  { %v3635_v1 = vunpack.c.h.s8.bf16 %v3471_v33  ;;  %v3667_v3 = vunpack.c.h.s8.bf16 %v3487_v23  ;;  %v3631_v29 = vunpack.c.h.s8.bf16 %v3469_v19  ;;  %v3662_v17 = vunpack.c.l.s8.bf16 %v3486_v36 }
 0xe42   :  { %v3394_v47 = vadd.f32 %v3316_v25, %v3278_v5  ;;  %v3396_v13 = vadd.f32 %v3324_v42, %v3280_v61  ;;  %3928 = vmatpush1.bf16.msra.mxu0 %v3639_v32  ;;  %v3665_v25 = vunpack.c.l.s8.bf16 %v3487_v23  ;;  %v3630_v42 = vunpack.c.l.s8.bf16 %v3470_v18  ;;  %v3500_v32 = vld [vmem:[#allocation15 + $0x1f8] sm:$0xff]  ;;  %v3495_v18 = vld [vmem:[#allocation15 + $0x1d0] sm:$0xff] }
 0xe43   :  { %3971 = vmatpush1.bf16.msra.mxu1 %v3671_v52  ;;  %3929 = vmatprep.subr.bf16.mxu0 %v3638_v34  ;;  %v3629_v14 = vunpack.c.l.s8.bf16 %v3469_v19  ;;  %v3661_v15 = vunpack.c.l.s8.bf16 %v3485_v59  ;;  %v3660_v52 = vunpack.c.h.s8.bf16 %v3484_v20  ;;  %v3483_v34 = vld [vmem:[#allocation15 + $0x170] sm:$0xff]  ;;  %v3691_v5 = vunpack.c.h.s8.bf16 %v3499_v54 }
 0xe44   :  { %v3426_v6 = vmax.f32 %v3394_v47, 0.0  ;;  %v3428_v45 = vmax.f32 %v3396_v13, 0.0  ;;  %3972 = vmatprep.subr.bf16.mxu1 %v3670_v53  ;;  %v3692_v53 = vunpack.c.h.s8.bf16 %v3500_v32  ;;  %v3659_v56 = vunpack.c.h.s8.bf16 %v3483_v34  ;;  %v3482_v47 = vld [vmem:[#allocation15 + $0x168] sm:$0xff] }
 0xe45   :  { %v3658_v61 = vunpack.c.l.s8.bf16 %v3484_v20  ;;  %v3690_v24 = vunpack.c.l.s8.bf16 %v3500_v32  ;;  %v3498_v13 = vld [vmem:[#allocation15 + $0x1e8] sm:$0xff]  ;;  %v3689_v30 = vunpack.c.l.s8.bf16 %v3499_v54  ;;  %v10469_v36 = vsub.s32 6, %v10090_v8  ;;  %v3477_v32 = vld [vmem:[#allocation15 + $0x140] sm:$0xff] }
 0xe46   :  { %3930 = vmatpush1.bf16.msra.mxu0 %v3637_v44  ;;  %v3826_v62 = vpack.c.bf16 %v3426_v6, %v3410_v39  ;;  %v3828_v63 = vpack.c.bf16 %v3428_v45, %v3412_v43  ;;  %v3657_v44 = vunpack.c.l.s8.bf16 %v3483_v34  ;;  %v3688_v33 = vunpack.c.h.s8.bf16 %v3498_v13  ;;  %v3497_v39 = vld [vmem:[#allocation15 + $0x1e0] sm:$0xff] }
 0xe47   :  { %3973 = vmatpush1.bf16.msra.mxu1 %v3669_v31  ;;  %3931 = vmatprep.subr.bf16.mxu0 %v3636_v40  ;;  %v3656_v31 = vunpack.c.h.s8.bf16 %v3482_v47  ;;  %v3481_v40 = vld [vmem:[#allocation15 + $0x160] sm:$0xff]  ;;  %v3687_v6 = vunpack.c.h.s8.bf16 %v3497_v39  ;;  %v3654_v45 = vunpack.c.l.s8.bf16 %v3482_v47  ;;  %v3686_v23 = vunpack.c.l.s8.bf16 %v3498_v13  ;;  %v3508_v47 = vld [vmem:[#allocation15 + $0x238] sm:$0xff] }
 0xe48   :  { %3955 = vmatprep.mubr.bf16.mxu0 %v3826_v62  ;;  %3998 = vmatprep.mubr.bf16.mxu1 %v3828_v63  ;;  %v3655_v43 = vunpack.c.h.s8.bf16 %v3481_v40  ;;  %v3496_v62 = vld [vmem:[#allocation15 + $0x1d8] sm:$0xff]  ;;  %v3653_v63 = vunpack.c.l.s8.bf16 %v3481_v40  ;;  %v3196_v59 = vrot.slane %v10412_v46, %v10150_v27  ;;  %v3647_v54 = vunpack.c.h.s8.bf16 %v3477_v32  ;;  %v3507_v40 = vld [vmem:[#allocation15 + $0x230] sm:$0xff] }
 0xe49   :  { %3974 = vmatprep.subr.bf16.mxu1 %v3668_v50  ;;  %v3480_v50 = vld [vmem:[#allocation15 + $0x158] sm:$0xff]  ;;  %v3682_v19 = vunpack.c.l.s8.bf16 %v3496_v62 }
 0xe4a   :  { %3932 = vmatpush1.bf16.msra.mxu0 %v3635_v1  ;;  %v3685_v1 = vunpack.c.l.s8.bf16 %v3497_v39  ;;  %v3277_v8 = vmul.f32 %v3196_v59, %v10464_v48  ;;  %v3261_v34 = vmul.f32 %v3196_v59, %v10456_v2  ;;  %v3320_v48 = vrot.slane %v10427_v60, %v10469_v36  ;;  %v3524_v13 = vld [vmem:[#allocation15 + $0x2b8] sm:$0xff]  ;;  %v10499_v59 = vld [vmem:[%s11066_s11 + $0x8] sm:$0xff] }
 0xe4b   :  { %3975 = vmatpush1.bf16.msra.mxu1 %v3667_v3  ;;  %3933 = vmatprep.subr.bf16.mxu0 %v3634_v4  ;;  %v3652_v3 = vunpack.c.h.s8.bf16 %v3480_v50  ;;  %v3479_v4 = vld [vmem:[#allocation15 + $0x150] sm:$0xff]  ;;  %v3740_v39 = vunpack.c.h.s8.bf16 %v3524_v13 }
 0xe4c   :  { %3976 = vmatprep.subr.bf16.mxu1 %v3666_v11  ;;  %v3684_v11 = vunpack.c.h.s8.bf16 %v3496_v62  ;;  %v10486_v62 = vld [vmem:[%s11065_s10 + $0x8] sm:$0xff] }
 0xe4e   :  { %3934 = vmatpush1.bf16.msra.mxu0 %v3633_v21  ;;  %v3651_v21 = vunpack.c.h.s8.bf16 %v3479_v4 }
 0xe4f   :  { %3977 = vmatpush1.bf16.msra.mxu1 %v3665_v25  ;;  %3935 = vmatprep.subr.bf16.mxu0 %v3632_v26  ;;  %v3683_v25 = vunpack.c.h.s8.bf16 %v3495_v18  ;;  %v3650_v26 = vunpack.c.l.s8.bf16 %v3480_v50 }
 0xe50   :  { %3978 = vmatprep.subr.bf16.mxu1 %v3664_v35  ;;  %v3478_v35 = vld [vmem:[#allocation15 + $0x148] sm:$0xff] }
 0xe51   :  { %v3648_v20 = vunpack.c.h.s8.bf16 %v3478_v35 }
 0xe52   :  { %3936 = vmatpush1.bf16.msra.mxu0 %v3631_v29  ;;  %v3494_v29 = vld [vmem:[#allocation15 + $0x1c8] sm:$0xff] }
 0xe53   :  { %3979 = vmatpush1.bf16.msra.mxu1 %v3663_v49  ;;  %3937 = vmatprep.subr.bf16.mxu0 %v3630_v42  ;;  %v3204_v49 = vrot.slane %v10412_v46, %v10469_v36  ;;  %v3649_v42 = vunpack.c.l.s8.bf16 %v3479_v4  ;;  %v3216_v4 = vrot.slane %v10486_v62, %v10093_v9 }
 0xe54   :  { %3980 = vmatprep.subr.bf16.mxu1 %v3662_v17  ;;  %v3681_v17 = vunpack.c.l.s8.bf16 %v3495_v18  ;;  %v3506_v18 = vld [vmem:[#allocation15 + $0x228] sm:$0xff] }
 0xe55   :  { %v3263_v46 = vmul.f32 %v3204_v49, %v10458_v16 }
 0xe56   :  { %3938 = vmatpush1.bf16.msra.mxu0 %v3629_v14  ;;  %v3279_v14 = vmul.f32 %v3204_v49, %v10466_v51  ;;  %v3646_v51 = vunpack.c.l.s8.bf16 %v3478_v35  ;;  %v3705_v35 = vunpack.c.l.s8.bf16 %v3507_v40 }
 0xe57   :  { %3981 = vmatpush1.bf16.msra.mxu1 %v3661_v15  ;;  %3939 = vmatprep.subr.bf16.mxu0 %v3660_v52  ;;  %v3680_v15 = vunpack.c.h.s8.bf16 %v3494_v29  ;;  %v3493_v52 = vld [vmem:[#allocation15 + $0x1c0] sm:$0xff] }
 0xe58   :  { %3982 = vmatprep.subr.bf16.mxu1 %v3692_v53  ;;  %v3312_v53 = vrot.slane %v10427_v60, %v10150_v27  ;;  %v3677_v60 = vunpack.c.l.s8.bf16 %v3493_v52 }
 0xe5a   :  { %3940 = vmatpush2.bf16.msra.mxu0 %v3659_v56  ;;  %v3393_v56 = vadd.f32 %v3312_v53, %v3277_v8  ;;  %v3377_v2 = vadd.f32 %v3312_v53, %v3261_v34  ;;  %v3505_v8 = vld [vmem:[#allocation15 + $0x220] sm:$0xff]  ;;  %v3340_v34 = vrot.slane %v10499_v59, %v10126_v57 }
 0xe5b   :  { %3983 = vmatpush2.bf16.msra.mxu1 %v3691_v5  ;;  %3941 = vmatprep.subr.bf16.mxu0 %v3658_v61  ;;  %v3679_v5 = vunpack.c.h.s8.bf16 %v3493_v52  ;;  %v3395_v61 = vadd.f32 %v3320_v48, %v3279_v14 }
 0xe5c   :  { %3984 = vmatprep.subr.bf16.mxu1 %v3690_v24  ;;  %v3678_v24 = vunpack.c.l.s8.bf16 %v3494_v29  ;;  %v3425_v16 = vmax.f32 %v3393_v56, 0.0 }
 0xe5e   :  { %3942 = vmatpush2.bf16.msra.mxu0 %v3657_v44  ;;  %v3379_v44 = vadd.f32 %v3320_v48, %v3263_v46  ;;  %v3703_v48 = vunpack.c.h.s8.bf16 %v3505_v8 }
 0xe5f   :  { %3985 = vmatpush2.bf16.msra.mxu1 %v3689_v30  ;;  %3943 = vmatprep.subr.bf16.mxu0 %v3656_v31  ;;  %v3645_v30 = vunpack.c.l.s8.bf16 %v3477_v32  ;;  %v3708_v31 = vunpack.c.h.s8.bf16 %v3508_v47 }
 0xe60   :  { %3986 = vmatprep.subr.bf16.mxu1 %v3688_v33  ;;  %v3427_v33 = vmax.f32 %v3395_v61, 0.0 }
 0xe62   :  { %3944 = vmatpush2.bf16.msra.mxu0 %v3655_v43  ;;  %v3523_v43 = vld [vmem:[#allocation15 + $0x2b0] sm:$0xff] }
 0xe63   :  { %3987 = vmatpush2.bf16.msra.mxu1 %v3687_v6  ;;  %3945 = vmatprep.subr.bf16.mxu0 %v3654_v45  ;;  %v3409_v6 = vmax.f32 %v3377_v2, 0.0  ;;  %v3411_v45 = vmax.f32 %v3379_v44, 0.0  ;;  %v3737_v49 = vunpack.c.l.s8.bf16 %v3523_v43  ;;  %v3504_v2 = vld [vmem:[#allocation15 + $0x218] sm:$0xff] }
 0xe64   :  { %3988 = vmatprep.subr.bf16.mxu1 %v3686_v23  ;;  %v3707_v23 = vunpack.c.h.s8.bf16 %v3507_v40 }
 0xe65   :  { %v3825_v50 = vpack.c.bf16 %v3425_v16, %v3409_v6 }
 0xe66   :  { %3946 = vmatpush2.bf16.msra.mxu0 %v3653_v63  ;;  %v3739_v63 = vunpack.c.h.s8.bf16 %v3523_v43 }
 0xe67   :  { %3989 = vmatpush2.bf16.msra.mxu1 %v3685_v1  ;;  %3947 = vmatprep.subr.bf16.mxu0 %v3652_v3  ;;  %v3706_v1 = vunpack.c.l.s8.bf16 %v3508_v47  ;;  %v3827_v3 = vpack.c.bf16 %v3427_v33, %v3411_v45  ;;  %v3700_v33 = vunpack.c.h.s8.bf16 %v3504_v2 }
 0xe68   :  { %3990 = vmatprep.subr.bf16.mxu1 %v3684_v11  ;;  %v3738_v11 = vunpack.c.l.s8.bf16 %v3524_v13 }
 0xe6a   :  { %3948 = vmatpush2.bf16.msra.mxu0 %v3651_v21 }
 0xe6b   :  { %3991 = vmatpush2.bf16.msra.mxu1 %v3683_v25  ;;  %3949 = vmatprep.subr.bf16.mxu0 %v3650_v26  ;;  %v3224_v25 = vrot.slane %v10486_v62, %v10126_v57  ;;  %v3522_v26 = vld [vmem:[#allocation15 + $0x2a8] sm:$0xff] }
 0xe6c   :  { %3992 = vmatprep.subr.bf16.mxu1 %v3682_v19  ;;  %v3736_v14 = vunpack.c.h.s8.bf16 %v3522_v26  ;;  %v3734_v47 = vunpack.c.l.s8.bf16 %v3522_v26  ;;  %v3502_v26 = vld [vmem:[#allocation15 + $0x208] sm:$0xff] }
 0xe6e   :  { %3950 = vmatpush2.bf16.msra.mxu0 %v3649_v42  ;;  %v3704_v42 = vunpack.c.h.s8.bf16 %v3506_v18 }
 0xe6f   :  { %3993 = vmatpush2.bf16.msra.mxu1 %v3681_v17  ;;  %3951 = vmatprep.subr.bf16.mxu0 %v3648_v20  ;;  %v3332_v20 = vrot.slane %v10499_v59, %v10093_v9 }
 0xe70   :  { %3994 = vmatprep.subr.bf16.mxu1 %v3680_v15  ;;  %v3521_v15 = vld [vmem:[#allocation15 + $0x2a0] sm:$0xff] }
 0xe71   :  { %v3735_v56 = vunpack.c.h.s8.bf16 %v3521_v15  ;;  %v3733_v40 = vunpack.c.l.s8.bf16 %v3521_v15  ;;  %v3694_v15 = vunpack.c.l.s8.bf16 %v3502_v26 }
 0xe72   :  { %3952 = vmatpush2.bf16.msra.mxu0 %v3647_v54 }
 0xe73   :  { %3995 = vmatpush2.bf16.msra.mxu1 %v3679_v5  ;;  %3953 = vmatprep.subr.bf16.mxu0 %v3646_v51  ;;  %v3702_v5 = vunpack.c.l.s8.bf16 %v3506_v18  ;;  %v3698_v18 = vunpack.c.l.s8.bf16 %v3504_v2 }
 0xe74   :  { %3996 = vmatprep.subr.bf16.mxu1 %v3678_v24 }
 0xe76   :  { %3954 = vmatpush2.bf16.msra.mxu0 %v3645_v30  ;;  %v3520_v30 = vld [vmem:[#allocation15 + $0x298] sm:$0xff] }
 0xe77   :  { %3997 = vmatpush2.bf16.msra.mxu1 %v3677_v60  ;;  %4009 = vmatprep.subr.bf16.mxu0 %v3708_v31  ;;  %v3701_v60 = vunpack.c.l.s8.bf16 %v3505_v8  ;;  %v3732_v45 = vunpack.c.h.s8.bf16 %v3520_v30  ;;  %v3501_v8 = vld [vmem:[#allocation15 + $0x200] sm:$0xff] }
 0xe78   :  { %4052 = vmatprep.subr.bf16.mxu1 %v3740_v39  ;;  %v3503_v39 = vld [vmem:[#allocation15 + $0x210] sm:$0xff] }
 0xe79   :  { %v10490_v21 = vpop.f32.mrf.mxu0  ;;  %3956 = vmatmul.mubr.bf16.vlgmr.msra.gmra.mxu0 %v3825_v50 }
 0xe7a   :  { %v10494_v19 = vpop.f32.mrf.mxu1  ;;  %3999 = vmatmul.mubr.bf16.vlgmr.msra.gmra.mxu1 %v3827_v3  ;;  %4010 = vmatpush1.bf16.msra.mxu0 %v3707_v23  ;;  %v3519_v23 = vld [vmem:[#allocation15 + $0x290] sm:$0xff]  ;;  %v3699_v3 = vunpack.c.h.s8.bf16 %v3503_v39 }
 0xe7b   :  { %4053 = vmatpush1.bf16.msra.mxu1 %v3739_v63  ;;  %v3037_v29 = vpop.f32.mrf.mxu0  ;;  %4011 = vmatprep.subr.bf16.mxu0 %v3706_v1 }
 0xe7c   :  { %v3266_v17 = vmul.f32 %v3216_v4, %v3037_v29  ;;  %v3080_v32 = vpop.f32.mrf.mxu1  ;;  %4054 = vmatprep.subr.bf16.mxu1 %v3738_v11  ;;  %v3731_v11 = vunpack.c.h.s8.bf16 %v3519_v23  ;;  %v3697_v29 = vunpack.c.l.s8.bf16 %v3503_v39 }
 0xe7d   :  { %v3268_v52 = vmul.f32 %v3224_v25, %v3080_v32  ;;  %v10505_v53 = vpop.f32.mrf.mxu0  ;;  %v3695_v32 = vunpack.c.h.s8.bf16 %v3501_v8 }
 0xe7e   :  { %v10507_v46 = vpop.f32.mrf.mxu1  ;;  %4012 = vmatpush1.bf16.msra.mxu0 %v3705_v35  ;;  %v3382_v51 = vadd.f32 %v3332_v20, %v3266_v17  ;;  %v3518_v35 = vld [vmem:[#allocation15 + $0x288] sm:$0xff] }
 0xe7f   :  { %4055 = vmatpush1.bf16.msra.mxu1 %v3737_v49  ;;  %v3041_v54 = vpop.f32.mrf.mxu0  ;;  %4013 = vmatprep.subr.bf16.mxu0 %v3704_v42  ;;  %v3384_v13 = vadd.f32 %v3340_v34, %v3268_v52  ;;  %v3729_v49 = vunpack.c.l.s8.bf16 %v3519_v23  ;;  %v3696_v42 = vunpack.c.h.s8.bf16 %v3502_v26  ;;  %v3728_v17 = vunpack.c.h.s8.bf16 %v3518_v35  ;;  %v3527_v26 = vld [vmem:[#allocation15 + $0x2d0] sm:$0xff] }
 0xe80   :  { %v3282_v61 = vmul.f32 %v3216_v4, %v3041_v54  ;;  %v3084_v24 = vpop.f32.mrf.mxu1  ;;  %4056 = vmatprep.subr.bf16.mxu1 %v3736_v14  ;;  %v3414_v43 = vmax.f32 %v3382_v51, 0.0  ;;  %v3726_v52 = vunpack.c.l.s8.bf16 %v3518_v35  ;;  %v3693_v54 = vunpack.c.l.s8.bf16 %v3501_v8  ;;  %v3515_v51 = vld [vmem:[#allocation15 + $0x270] sm:$0xff]  ;;  %v3510_v8 = vld [vmem:[#allocation15 + $0x248] sm:$0xff] }
 0xe81   :  { %v3284_v44 = vmul.f32 %v3224_v25, %v3084_v24  ;;  %v3416_v50 = vmax.f32 %v3384_v13, 0.0  ;;  %v3730_v25 = vunpack.c.l.s8.bf16 %v3520_v30  ;;  %v3531_v24 = vld [vmem:[#allocation15 + $0x2f0] sm:$0xff]  ;;  %v3514_v30 = vld [vmem:[#allocation15 + $0x268] sm:$0xff] }
 0xe82   :  { %v3398_v16 = vadd.f32 %v3332_v20, %v3282_v61  ;;  %4014 = vmatpush1.bf16.msra.mxu0 %v3703_v48  ;;  %v3517_v20 = vld [vmem:[#allocation15 + $0x280] sm:$0xff]  ;;  %v3532_v48 = vld [vmem:[#allocation15 + $0x2f8] sm:$0xff]  ;;  %v3755_v2 = vunpack.c.h.s8.bf16 %v3531_v24  ;;  %v3718_v23 = vunpack.c.l.s8.bf16 %v3514_v30 }
 0xe83   :  { %v3400_v31 = vadd.f32 %v3340_v34, %v3284_v44  ;;  %4057 = vmatpush1.bf16.msra.mxu1 %v3735_v56  ;;  %4015 = vmatprep.subr.bf16.mxu0 %v3702_v5  ;;  %v3727_v14 = vunpack.c.h.s8.bf16 %v3517_v20  ;;  %v3516_v34 = vld [vmem:[#allocation15 + $0x278] sm:$0xff]  ;;  %v3725_v56 = vunpack.c.l.s8.bf16 %v3517_v20  ;;  %v3756_v61 = vunpack.c.h.s8.bf16 %v3532_v48  ;;  %v3526_v20 = vld [vmem:[#allocation15 + $0x2c8] sm:$0xff] }
 0xe84   :  { %v3430_v6 = vmax.f32 %v3398_v16, 0.0  ;;  %4058 = vmatprep.subr.bf16.mxu1 %v3734_v47  ;;  %v3724_v5 = vunpack.c.h.s8.bf16 %v3516_v34  ;;  %v3723_v47 = vunpack.c.h.s8.bf16 %v3515_v51  ;;  %v3722_v13 = vunpack.c.l.s8.bf16 %v3516_v34  ;;  %v3530_v16 = vld [vmem:[#allocation15 + $0x2e8] sm:$0xff] }
 0xe85   :  { %v3432_v63 = vmax.f32 %v3400_v31, 0.0  ;;  %v3754_v44 = vunpack.c.l.s8.bf16 %v3532_v48  ;;  %v3753_v31 = vunpack.c.l.s8.bf16 %v3531_v24  ;;  %v3752_v39 = vunpack.c.h.s8.bf16 %v3530_v16  ;;  %v3509_v48 = vld [vmem:[#allocation15 + $0x240] sm:$0xff] }
 0xe86   :  { %4016 = vmatpush1.bf16.msra.mxu0 %v3701_v60  ;;  %v3830_v1 = vpack.c.bf16 %v3430_v6, %v3414_v43  ;;  %v3721_v60 = vunpack.c.l.s8.bf16 %v3515_v51  ;;  %v3529_v43 = vld [vmem:[#allocation15 + $0x2e0] sm:$0xff]  ;;  %v3712_v34 = vunpack.c.h.s8.bf16 %v3510_v8 }
 0xe87   :  { %4059 = vmatpush1.bf16.msra.mxu1 %v3733_v40  ;;  %v3832_v4 = vpack.c.bf16 %v3432_v63, %v3416_v50  ;;  %4017 = vmatprep.subr.bf16.mxu0 %v3700_v33  ;;  %v3720_v40 = vunpack.c.h.s8.bf16 %v3514_v30  ;;  %v3513_v33 = vld [vmem:[#allocation15 + $0x260] sm:$0xff]  ;;  %v3750_v50 = vunpack.c.l.s8.bf16 %v3530_v16  ;;  %v3512_v63 = vld [vmem:[#allocation15 + $0x258] sm:$0xff]  ;;  %v3742_v30 = vunpack.c.l.s8.bf16 %v3526_v20 }
 0xe88   :  { %4041 = vmatprep.mubr.bf16.mxu0 %v3830_v1  ;;  %4060 = vmatprep.subr.bf16.mxu1 %v3732_v45  ;;  %v3719_v6 = vunpack.c.h.s8.bf16 %v3513_v33  ;;  %v3751_v45 = vunpack.c.h.s8.bf16 %v3529_v43  ;;  %v3528_v1 = vld [vmem:[#allocation15 + $0x2d8] sm:$0xff] }
 0xe89   :  { %4084 = vmatprep.mubr.bf16.mxu1 %v3832_v4  ;;  %v3749_v4 = vunpack.c.l.s8.bf16 %v3529_v43  ;;  %v3540_v16 = vld [vmem:[#allocation15 + $0x338] sm:$0xff]  ;;  %v3539_v43 = vld [vmem:[#allocation15 + $0x330] sm:$0xff] }
 0xe8a   :  { %4018 = vmatpush1.bf16.msra.mxu0 %v3699_v3  ;;  %v3717_v3 = vunpack.c.l.s8.bf16 %v3513_v33 }
 0xe8b   :  { %4061 = vmatpush1.bf16.msra.mxu1 %v3731_v11  ;;  %4019 = vmatprep.subr.bf16.mxu0 %v3698_v18  ;;  %v3716_v11 = vunpack.c.h.s8.bf16 %v3512_v63  ;;  %v3511_v18 = vld [vmem:[#allocation15 + $0x250] sm:$0xff] }
 0xe8c   :  { %4062 = vmatprep.subr.bf16.mxu1 %v3730_v25  ;;  %v3748_v25 = vunpack.c.h.s8.bf16 %v3528_v1  ;;  %v3715_v35 = vunpack.c.h.s8.bf16 %v3511_v18 }
 0xe8e   :  { %4020 = vmatpush1.bf16.msra.mxu0 %v3697_v29  ;;  %v3747_v29 = vunpack.c.h.s8.bf16 %v3527_v26 }
 0xe8f   :  { %4063 = vmatpush1.bf16.msra.mxu1 %v3729_v49  ;;  %4021 = vmatprep.subr.bf16.mxu0 %v3696_v42  ;;  %v3714_v49 = vunpack.c.l.s8.bf16 %v3512_v63  ;;  %v3746_v42 = vunpack.c.l.s8.bf16 %v3528_v1  ;;  %v3771_v1 = vunpack.c.h.s8.bf16 %v3539_v43 }
 0xe90   :  { %4064 = vmatprep.subr.bf16.mxu1 %v3728_v17  ;;  %v3212_v17 = vrot.slane %v10486_v62, %v10096_v10 }
 0xe92   :  { %4022 = vmatpush1.bf16.msra.mxu0 %v3695_v32  ;;  %v3220_v32 = vrot.slane %v10486_v62, %v10123_v55  ;;  %v3265_v51 = vmul.f32 %v3212_v17, %v10490_v21 }
 0xe93   :  { %4065 = vmatpush1.bf16.msra.mxu1 %v3727_v14  ;;  %4023 = vmatprep.subr.bf16.mxu0 %v3694_v15  ;;  %v3713_v14 = vunpack.c.l.s8.bf16 %v3511_v18  ;;  %v3281_v15 = vmul.f32 %v3212_v17, %v10505_v53  ;;  %v3336_v53 = vrot.slane %v10499_v59, %v10123_v55  ;;  %v3769_v17 = vunpack.c.l.s8.bf16 %v3539_v43 }
 0xe94   :  { %4066 = vmatprep.subr.bf16.mxu1 %v3726_v52  ;;  %v3745_v52 = vunpack.c.l.s8.bf16 %v3527_v26  ;;  %v3267_v24 = vmul.f32 %v3220_v32, %v10494_v19 }
 0xe96   :  { %4024 = vmatpush1.bf16.msra.mxu0 %v3693_v54  ;;  %v3283_v54 = vmul.f32 %v3220_v32, %v10507_v46  ;;  %v3710_v46 = vunpack.c.l.s8.bf16 %v3510_v8 }
 0xe97   :  { %4067 = vmatpush1.bf16.msra.mxu1 %v3725_v56  ;;  %4025 = vmatprep.subr.bf16.mxu0 %v3724_v5  ;;  %v3744_v56 = vunpack.c.h.s8.bf16 %v3526_v20  ;;  %v3525_v5 = vld [vmem:[#allocation15 + $0x2c0] sm:$0xff] }
 0xe98   :  { %4068 = vmatprep.subr.bf16.mxu1 %v3756_v61  ;;  %v3328_v61 = vrot.slane %v10499_v59, %v10096_v10  ;;  %v3741_v33 = vunpack.c.l.s8.bf16 %v3525_v5 }
 0xe9a   :  { %4026 = vmatpush2.bf16.msra.mxu0 %v3723_v47  ;;  %v3711_v47 = vunpack.c.h.s8.bf16 %v3509_v48  ;;  %v3381_v21 = vadd.f32 %v3328_v61, %v3265_v51  ;;  %v3356_v51 = vrot.slane %v10499_v59, %v10450_v22 }
 0xe9b   :  { %4069 = vmatpush2.bf16.msra.mxu1 %v3755_v2  ;;  %4027 = vmatprep.subr.bf16.mxu0 %v3722_v13  ;;  %v3397_v2 = vadd.f32 %v3328_v61, %v3281_v15  ;;  %v3743_v13 = vunpack.c.h.s8.bf16 %v3525_v5  ;;  %v3537_v15 = vld [vmem:[#allocation15 + $0x320] sm:$0xff] }
 0xe9c   :  { %4070 = vmatprep.subr.bf16.mxu1 %v3754_v44  ;;  %v3399_v44 = vadd.f32 %v3336_v53, %v3283_v54 }
 0xe9d   :  { %v3429_v19 = vmax.f32 %v3397_v2, 0.0 }
 0xe9e   :  { %4028 = vmatpush2.bf16.msra.mxu0 %v3721_v60  ;;  %v3556_v60 = vld [vmem:[#allocation15 + $0x3b8] sm:$0xff] }
 0xe9f   :  { %4071 = vmatpush2.bf16.msra.mxu1 %v3753_v31  ;;  %4029 = vmatprep.subr.bf16.mxu0 %v3720_v40  ;;  %v3383_v31 = vadd.f32 %v3336_v53, %v3267_v24  ;;  %v3709_v40 = vunpack.c.l.s8.bf16 %v3509_v48  ;;  %v3802_v26 = vunpack.c.l.s8.bf16 %v3556_v60  ;;  %v3767_v53 = vunpack.c.h.s8.bf16 %v3537_v15 }
 0xea0   :  { %4072 = vmatprep.subr.bf16.mxu1 %v3752_v39  ;;  %v3772_v39 = vunpack.c.h.s8.bf16 %v3540_v16 }
 0xea1   :  { %v3415_v63 = vmax.f32 %v3383_v31, 0.0 }
 0xea2   :  { %4030 = vmatpush2.bf16.msra.mxu0 %v3719_v6  ;;  %v3431_v6 = vmax.f32 %v3399_v44, 0.0 }
 0xea3   :  { %4073 = vmatpush2.bf16.msra.mxu1 %v3751_v45  ;;  %4031 = vmatprep.subr.bf16.mxu0 %v3718_v23  ;;  %v3804_v45 = vunpack.c.h.s8.bf16 %v3556_v60  ;;  %v3555_v23 = vld [vmem:[#allocation15 + $0x3b0] sm:$0xff] }
 0xea4   :  { %4074 = vmatprep.subr.bf16.mxu1 %v3750_v50  ;;  %v3413_v50 = vmax.f32 %v3381_v21, 0.0  ;;  %v3831_v18 = vpack.c.bf16 %v3431_v6, %v3415_v63  ;;  %v3801_v32 = vunpack.c.l.s8.bf16 %v3555_v23  ;;  %v3536_v21 = vld [vmem:[#allocation15 + $0x318] sm:$0xff] }
 0xea5   :  { %v3764_v6 = vunpack.c.h.s8.bf16 %v3536_v21 }
 0xea6   :  { %4032 = vmatpush2.bf16.msra.mxu0 %v3717_v3  ;;  %v3829_v3 = vpack.c.bf16 %v3429_v19, %v3413_v50 }
 0xea7   :  { %4075 = vmatpush2.bf16.msra.mxu1 %v3749_v4  ;;  %4033 = vmatprep.subr.bf16.mxu0 %v3716_v11  ;;  %v3803_v4 = vunpack.c.h.s8.bf16 %v3555_v23  ;;  %v3770_v11 = vunpack.c.l.s8.bf16 %v3540_v16 }
 0xea8   :  { %4076 = vmatprep.subr.bf16.mxu1 %v3748_v25  ;;  %v3232_v25 = vrot.slane %v10486_v62, %v10153_v28 }
 0xeaa   :  { %4034 = vmatpush2.bf16.msra.mxu0 %v3715_v35  ;;  %v3538_v35 = vld [vmem:[#allocation15 + $0x328] sm:$0xff] }
 0xeab   :  { %4077 = vmatpush2.bf16.msra.mxu1 %v3747_v29  ;;  %4035 = vmatprep.subr.bf16.mxu0 %v3714_v49  ;;  %v3240_v49 = vrot.slane %v10486_v62, %v10450_v22 }
 0xeac   :  { %4078 = vmatprep.subr.bf16.mxu1 %v3746_v42  ;;  %v3554_v42 = vld [vmem:[#allocation15 + $0x3a8] sm:$0xff] }
 0xead   :  { %v3800_v54 = vunpack.c.h.s8.bf16 %v3554_v42  ;;  %v3798_v16 = vunpack.c.l.s8.bf16 %v3554_v42  ;;  %v3534_v42 = vld [vmem:[#allocation15 + $0x308] sm:$0xff] }
 0xeae   :  { %4036 = vmatpush2.bf16.msra.mxu0 %v3713_v14  ;;  %v3768_v14 = vunpack.c.h.s8.bf16 %v3538_v35 }
 0xeaf   :  { %4079 = vmatpush2.bf16.msra.mxu1 %v3745_v52  ;;  %4037 = vmatprep.subr.bf16.mxu0 %v3712_v34  ;;  %v3348_v34 = vrot.slane %v10499_v59, %v10153_v28 }
 0xeb0   :  { %4080 = vmatprep.subr.bf16.mxu1 %v3744_v56  ;;  %v3553_v56 = vld [vmem:[#allocation15 + $0x3a0] sm:$0xff] }
 0xeb1   :  { %v3799_v2 = vunpack.c.h.s8.bf16 %v3553_v56  ;;  %v3797_v43 = vunpack.c.l.s8.bf16 %v3553_v56  ;;  %v3758_v56 = vunpack.c.l.s8.bf16 %v3534_v42 }
 0xeb2   :  { %4038 = vmatpush2.bf16.msra.mxu0 %v3711_v47 }
 0xeb3   :  { %4081 = vmatpush2.bf16.msra.mxu1 %v3743_v13  ;;  %4039 = vmatprep.subr.bf16.mxu0 %v3710_v46  ;;  %v3766_v13 = vunpack.c.l.s8.bf16 %v3538_v35  ;;  %v3762_v35 = vunpack.c.l.s8.bf16 %v3536_v21 }
 0xeb4   :  { %4082 = vmatprep.subr.bf16.mxu1 %v3742_v30 }
 0xeb6   :  { %4040 = vmatpush2.bf16.msra.mxu0 %v3709_v40  ;;  %v3552_v40 = vld [vmem:[#allocation15 + $0x398] sm:$0xff] }
 0xeb7   :  { %4083 = vmatpush2.bf16.msra.mxu1 %v3741_v33  ;;  %4095 = vmatprep.subr.bf16.mxu0 %v3772_v39  ;;  %v3765_v33 = vunpack.c.l.s8.bf16 %v3537_v15  ;;  %v3796_v63 = vunpack.c.h.s8.bf16 %v3552_v40  ;;  %v3533_v15 = vld [vmem:[#allocation15 + $0x300] sm:$0xff] }
 0xeb8   :  { %4138 = vmatprep.subr.bf16.mxu1 %v3804_v45  ;;  %v3535_v45 = vld [vmem:[#allocation15 + $0x310] sm:$0xff] }
 0xeb9   :  { %v10523_v29 = vpop.f32.mrf.mxu0  ;;  %4042 = vmatmul.mubr.bf16.vlgmr.msra.gmra.mxu0 %v3829_v3 }
 0xeba   :  { %v10527_v8 = vpop.f32.mrf.mxu1  ;;  %4085 = vmatmul.mubr.bf16.vlgmr.msra.gmra.mxu1 %v3831_v18  ;;  %4096 = vmatpush1.bf16.msra.mxu0 %v3771_v1  ;;  %v3551_v1 = vld [vmem:[#allocation15 + $0x390] sm:$0xff]  ;;  %v3763_v18 = vunpack.c.h.s8.bf16 %v3535_v45 }
 0xebb   :  { %4139 = vmatpush1.bf16.msra.mxu1 %v3803_v4  ;;  %v3123_v20 = vpop.f32.mrf.mxu0  ;;  %4097 = vmatprep.subr.bf16.mxu0 %v3770_v11 }
 0xebc   :  { %v3270_v52 = vmul.f32 %v3232_v25, %v3123_v20  ;;  %v3166_v48 = vpop.f32.mrf.mxu1  ;;  %4140 = vmatprep.subr.bf16.mxu1 %v3802_v26  ;;  %v3795_v26 = vunpack.c.h.s8.bf16 %v3551_v1  ;;  %v3761_v20 = vunpack.c.l.s8.bf16 %v3535_v45 }
 0xebd   :  { %v3272_v5 = vmul.f32 %v3240_v49, %v3166_v48  ;;  %v10533_v61 = vpop.f32.mrf.mxu0  ;;  %v3759_v48 = vunpack.c.h.s8.bf16 %v3533_v15 }
 0xebe   :  { %v10535_v24 = vpop.f32.mrf.mxu1  ;;  %4098 = vmatpush1.bf16.msra.mxu0 %v3769_v17  ;;  %v3386_v46 = vadd.f32 %v3348_v34, %v3270_v52  ;;  %v3550_v17 = vld [vmem:[#allocation15 + $0x388] sm:$0xff] }
 0xebf   :  { %4141 = vmatpush1.bf16.msra.mxu1 %v3801_v32  ;;  %v3127_v47 = vpop.f32.mrf.mxu0  ;;  %4099 = vmatprep.subr.bf16.mxu0 %v3768_v14  ;;  %v3388_v60 = vadd.f32 %v3356_v51, %v3272_v5  ;;  %v3793_v32 = vunpack.c.l.s8.bf16 %v3551_v1  ;;  %v3760_v14 = vunpack.c.h.s8.bf16 %v3534_v42  ;;  %v3792_v52 = vunpack.c.h.s8.bf16 %v3550_v17  ;;  %v3559_v42 = vld [vmem:[#allocation15 + $0x3d0] sm:$0xff] }
 0xec0   :  { %v3286_v44 = vmul.f32 %v3232_v25, %v3127_v47  ;;  %v3170_v30 = vpop.f32.mrf.mxu1  ;;  %4142 = vmatprep.subr.bf16.mxu1 %v3800_v54  ;;  %v3418_v23 = vmax.f32 %v3386_v46, 0.0  ;;  %v3790_v5 = vunpack.c.l.s8.bf16 %v3550_v17  ;;  %v3757_v47 = vunpack.c.l.s8.bf16 %v3533_v15  ;;  %v3547_v46 = vld [vmem:[#allocation15 + $0x370] sm:$0xff]  ;;  %v3542_v15 = vld [vmem:[#allocation15 + $0x348] sm:$0xff] }
 0xec1   :  { %v3288_v31 = vmul.f32 %v3240_v49, %v3170_v30  ;;  %v3420_v3 = vmax.f32 %v3388_v60, 0.0  ;;  %v3794_v49 = vunpack.c.l.s8.bf16 %v3552_v40  ;;  %v3563_v30 = vld [vmem:[#allocation15 + $0x3f0] sm:$0xff]  ;;  %v3546_v40 = vld [vmem:[#allocation15 + $0x368] sm:$0xff] }
 0xec2   :  { %v3402_v19 = vadd.f32 %v3348_v34, %v3286_v44  ;;  %4100 = vmatpush1.bf16.msra.mxu0 %v3767_v53  ;;  %v3549_v34 = vld [vmem:[#allocation15 + $0x380] sm:$0xff]  ;;  %v3564_v53 = vld [vmem:[#allocation15 + $0x3f8] sm:$0xff]  ;;  %v3819_v21 = vunpack.c.h.s8.bf16 %v3563_v30  ;;  %v3782_v1 = vunpack.c.l.s8.bf16 %v3546_v40 }
 0xec3   :  { %v3404_v39 = vadd.f32 %v3356_v51, %v3288_v31  ;;  %4143 = vmatpush1.bf16.msra.mxu1 %v3799_v2  ;;  %4101 = vmatprep.subr.bf16.mxu0 %v3766_v13  ;;  %v3791_v54 = vunpack.c.h.s8.bf16 %v3549_v34  ;;  %v3548_v51 = vld [vmem:[#allocation15 + $0x378] sm:$0xff]  ;;  %v3789_v2 = vunpack.c.l.s8.bf16 %v3549_v34  ;;  %v3820_v44 = vunpack.c.h.s8.bf16 %v3564_v53  ;;  %v3558_v34 = vld [vmem:[#allocation15 + $0x3c8] sm:$0xff] }
 0xec4   :  { %v3434_v50 = vmax.f32 %v3402_v19, 0.0  ;;  %4144 = vmatprep.subr.bf16.mxu1 %v3798_v16  ;;  %v3788_v13 = vunpack.c.h.s8.bf16 %v3548_v51  ;;  %v3787_v16 = vunpack.c.h.s8.bf16 %v3547_v46  ;;  %v3786_v60 = vunpack.c.l.s8.bf16 %v3548_v51  ;;  %v3562_v19 = vld [vmem:[#allocation15 + $0x3e8] sm:$0xff] }
 0xec5   :  { %v3436_v4 = vmax.f32 %v3404_v39, 0.0  ;;  %v3818_v31 = vunpack.c.l.s8.bf16 %v3564_v53  ;;  %v3817_v39 = vunpack.c.l.s8.bf16 %v3563_v30  ;;  %v3816_v45 = vunpack.c.h.s8.bf16 %v3562_v19  ;;  %v3541_v53 = vld [vmem:[#allocation15 + $0x340] sm:$0xff] }
 0xec6   :  { %4102 = vmatpush1.bf16.msra.mxu0 %v3765_v33  ;;  %v3834_v11 = vpack.c.bf16 %v3434_v50, %v3418_v23  ;;  %v3785_v33 = vunpack.c.l.s8.bf16 %v3547_v46  ;;  %v3561_v23 = vld [vmem:[#allocation15 + $0x3e0] sm:$0xff]  ;;  %v3776_v51 = vunpack.c.h.s8.bf16 %v3542_v15  ;;  %v3775_v30 = vunpack.c.h.s8.bf16 %v3541_v53 }
 0xec7   :  { %4145 = vmatpush1.bf16.msra.mxu1 %v3797_v43  ;;  %v3836_v25 = vpack.c.bf16 %v3436_v4, %v3420_v3  ;;  %4103 = vmatprep.subr.bf16.mxu0 %v3764_v6  ;;  %v3784_v43 = vunpack.c.h.s8.bf16 %v3546_v40  ;;  %v3545_v6 = vld [vmem:[#allocation15 + $0x360] sm:$0xff]  ;;  %v3814_v3 = vunpack.c.l.s8.bf16 %v3562_v19  ;;  %v3544_v4 = vld [vmem:[#allocation15 + $0x358] sm:$0xff]  ;;  %v3773_v19 = vunpack.c.l.s8.bf16 %v3541_v53 }
 0xec8   :  { %4127 = vmatprep.mubr.bf16.mxu0 %v3834_v11  ;;  %4146 = vmatprep.subr.bf16.mxu1 %v3796_v63  ;;  %v3783_v50 = vunpack.c.h.s8.bf16 %v3545_v6  ;;  %v3815_v63 = vunpack.c.h.s8.bf16 %v3561_v23  ;;  %v3560_v11 = vld [vmem:[#allocation15 + $0x3d8] sm:$0xff] }
 0xec9   :  { %4170 = vmatprep.mubr.bf16.mxu1 %v3836_v25  ;;  %v3813_v25 = vunpack.c.l.s8.bf16 %v3561_v23 }
 0xeca   :  { %4104 = vmatpush1.bf16.msra.mxu0 %v3763_v18  ;;  %v3781_v18 = vunpack.c.l.s8.bf16 %v3545_v6 }
 0xecb   :  { %4147 = vmatpush1.bf16.msra.mxu1 %v3795_v26  ;;  %4105 = vmatprep.subr.bf16.mxu0 %v3762_v35  ;;  %v3780_v26 = vunpack.c.h.s8.bf16 %v3544_v4  ;;  %v3543_v35 = vld [vmem:[#allocation15 + $0x350] sm:$0xff] }
 0xecc   :  { %4148 = vmatprep.subr.bf16.mxu1 %v3794_v49  ;;  %v3812_v49 = vunpack.c.h.s8.bf16 %v3560_v11  ;;  %v3779_v17 = vunpack.c.h.s8.bf16 %v3543_v35 }
 0xece   :  { %4106 = vmatpush1.bf16.msra.mxu0 %v3761_v20  ;;  %v3811_v20 = vunpack.c.h.s8.bf16 %v3559_v42 }
 0xecf   :  { %4149 = vmatpush1.bf16.msra.mxu1 %v3793_v32  ;;  %4107 = vmatprep.subr.bf16.mxu0 %v3760_v14  ;;  %v3778_v32 = vunpack.c.l.s8.bf16 %v3544_v4  ;;  %v3810_v14 = vunpack.c.l.s8.bf16 %v3560_v11 }
 0xed0   :  { %4150 = vmatprep.subr.bf16.mxu1 %v3792_v52  ;;  %v3228_v52 = vrot.slane %v10486_v62, %v10150_v27 }
 0xed2   :  { %4108 = vmatpush1.bf16.msra.mxu0 %v3759_v48  ;;  %v3236_v48 = vrot.slane %v10486_v62, %v10469_v36  ;;  %v3269_v46 = vmul.f32 %v3228_v52, %v10523_v29 }
 0xed3   :  { %4151 = vmatpush1.bf16.msra.mxu1 %v3791_v54  ;;  %4109 = vmatprep.subr.bf16.mxu0 %v3758_v56  ;;  %v3777_v54 = vunpack.c.l.s8.bf16 %v3543_v35  ;;  %v3285_v56 = vmul.f32 %v3228_v52, %v10533_v61  ;;  %v3352_v61 = vrot.slane %v10499_v59, %v10469_v36 }
 0xed4   :  { %4152 = vmatprep.subr.bf16.mxu1 %v3790_v5  ;;  %v3809_v5 = vunpack.c.l.s8.bf16 %v3559_v42  ;;  %v3271_v62 = vmul.f32 %v3236_v48, %v10527_v8 }
 0xed6   :  { %4110 = vmatpush1.bf16.msra.mxu0 %v3757_v47  ;;  %v3287_v47 = vmul.f32 %v3236_v48, %v10535_v24  ;;  %v3774_v24 = vunpack.c.l.s8.bf16 %v3542_v15  ;;  %v3387_v29 = vadd.f32 %v3352_v61, %v3271_v62 }
 0xed7   :  { %4153 = vmatpush1.bf16.msra.mxu1 %v3789_v2  ;;  %4111 = vmatprep.subr.bf16.mxu0 %v3788_v13  ;;  %v3808_v2 = vunpack.c.h.s8.bf16 %v3558_v34  ;;  %v3557_v13 = vld [vmem:[#allocation15 + $0x3c0] sm:$0xff] }
 0xed8   :  { %4154 = vmatprep.subr.bf16.mxu1 %v3820_v44  ;;  %v3344_v44 = vrot.slane %v10499_v59, %v10150_v27  ;;  %v3805_v8 = vunpack.c.l.s8.bf16 %v3557_v13 }
 0xeda   :  { %4112 = vmatpush2.bf16.msra.mxu0 %v3787_v16  ;;  %v3401_v16 = vadd.f32 %v3344_v44, %v3285_v56  ;;  %v3385_v40 = vadd.f32 %v3344_v44, %v3269_v46 }
 0xedb   :  { %4155 = vmatpush2.bf16.msra.mxu1 %v3819_v21  ;;  %4113 = vmatprep.subr.bf16.mxu0 %v3786_v60  ;;  %v3807_v21 = vunpack.c.h.s8.bf16 %v3557_v13  ;;  %v3403_v60 = vadd.f32 %v3352_v61, %v3287_v47 }
 0xedc   :  { %4156 = vmatprep.subr.bf16.mxu1 %v3818_v31  ;;  %v3806_v31 = vunpack.c.l.s8.bf16 %v3558_v34  ;;  %v3417_v59 = vmax.f32 %v3385_v40, 0.0 }
 0xede   :  { %4114 = vmatpush2.bf16.msra.mxu0 %v3785_v33  ;;  %v3433_v33 = vmax.f32 %v3401_v16, 0.0 }
 0xedf   :  { %4157 = vmatpush2.bf16.msra.mxu1 %v3817_v39  ;;  %4115 = vmatprep.subr.bf16.mxu0 %v3784_v43  ;;  %v3435_v39 = vmax.f32 %v3403_v60, 0.0  ;;  %v3419_v43 = vmax.f32 %v3387_v29, 0.0 }
 0xee0   :  { %4158 = vmatprep.subr.bf16.mxu1 %v3816_v45  ;;  %v3833_v6 = vpack.c.bf16 %v3433_v33, %v3417_v59 }
 0xee1   :  { %v3835_v45 = vpack.c.bf16 %v3435_v39, %v3419_v43 }
 0xee2   :  { %4116 = vmatpush2.bf16.msra.mxu0 %v3783_v50 }
 0xee3   :  { %4159 = vmatpush2.bf16.msra.mxu1 %v3815_v63  ;;  %4117 = vmatprep.subr.bf16.mxu0 %v3782_v1 }
 0xee4   :  { %4160 = vmatprep.subr.bf16.mxu1 %v3814_v3 }
 0xee6   :  { %4118 = vmatpush2.bf16.msra.mxu0 %v3781_v18 }
 0xee7   :  { %4161 = vmatpush2.bf16.msra.mxu1 %v3813_v25  ;;  %4119 = vmatprep.subr.bf16.mxu0 %v3780_v26 }
 0xee8   :  { %4162 = vmatprep.subr.bf16.mxu1 %v3812_v49 }
 0xeea   :  { %4120 = vmatpush2.bf16.msra.mxu0 %v3779_v17 }
 0xeeb   :  { %4163 = vmatpush2.bf16.msra.mxu1 %v3811_v20  ;;  %4121 = vmatprep.subr.bf16.mxu0 %v3778_v32 }
 0xeec   :  { %4164 = vmatprep.subr.bf16.mxu1 %v3810_v14 }
 0xeee   :  { %4122 = vmatpush2.bf16.msra.mxu0 %v3777_v54 }
 0xeef   :  { %4165 = vmatpush2.bf16.msra.mxu1 %v3809_v5  ;;  %4123 = vmatprep.subr.bf16.mxu0 %v3776_v51 }
 0xef0   :  { %4166 = vmatprep.subr.bf16.mxu1 %v3808_v2 }
 0xef2   :  { %4124 = vmatpush2.bf16.msra.mxu0 %v3775_v30 }
 0xef3   :  { %4167 = vmatpush2.bf16.msra.mxu1 %v3807_v21  ;;  %4125 = vmatprep.subr.bf16.mxu0 %v3774_v24  ;;  %v4181_v24 = vld [vmem:[#allocation16] sm:$0x3] }
 0xef4   :  { %4168 = vmatprep.subr.bf16.mxu1 %v3806_v31 }
 0xef6   :  { %4126 = vmatpush2.bf16.msra.mxu0 %v3773_v19  ;;  %v4197_v19 = vld [vmem:[#allocation18] sm:$0x3] }
 0xef7   :  { %4169 = vmatpush2.bf16.msra.mxu1 %v3805_v8 }
 0xef9   :  { %4128 = vmatmul.mubr.bf16.vlgmr.msra.gmra.mxu0 %v3833_v6  ;;  %v3871_v23 = vpop.f32.mrf.mxu0  ;;  %v4186_v6 = vrot.slane %v4181_v24, %v10096_v10 }
 0xefa   :  { %4171 = vmatmul.mubr.bf16.vlgmr.msra.gmra.mxu1 %v3835_v45  ;;  %v3914_v50 = vpop.f32.mrf.mxu1  ;;  %v4202_v45 = vrot.slane %v4197_v19, %v10096_v10 }
 0xefb   :  { %v3873_v63 = vpop.f32.mrf.mxu0  ;;  %v3915_v15 = vadd.f32 %v3914_v50, %v3871_v23 }
 0xefc   :  { %v3916_v1 = vpop.f32.mrf.mxu1 }
 0xefd   :  { %v3875_v3 = vpop.f32.mrf.mxu0  ;;  %v3917_v34 = vadd.f32 %v3916_v1, %v3873_v63 }
 0xefe   :  { %v3918_v4 = vpop.f32.mrf.mxu1 }
 0xeff   :  { %v3877_v11 = vpop.f32.mrf.mxu0  ;;  %v3919_v56 = vadd.f32 %v3918_v4, %v3875_v3  ;;  %v4190_v4 = vrot.slane %v4181_v24, %v10093_v9  ;;  %v9337_v24 = vld [vmem:[#allocation9 + $0x3f4] ss:$24 sps:$4 sm:$0xff]  }
 0xf00   :  { %v3920_v18 = vpop.f32.mrf.mxu1 }
 0xf01   :  { %v3921_v53 = vadd.f32 %v3920_v18, %v3877_v11  ;;  %v4206_v11 = vrot.slane %v4197_v19, %v10093_v9  ;;  %v9341_v19 = vld [vmem:[#allocation9 + $0x3c0] ss:$24 sps:$4 sm:$0xff]  }
 0xf39   :  { %v3957_v25 = vpop.f32.mrf.mxu0 }
 0xf3a   :  { %v4000_v26 = vpop.f32.mrf.mxu1  ;;  %v3958_v48 = vadd.f32 %v3957_v25, %v3915_v15 }
 0xf3b   :  { %v3959_v35 = vpop.f32.mrf.mxu0 }
 0xf3c   :  { %v4002_v49 = vpop.f32.mrf.mxu1  ;;  %v3960_v5 = vadd.f32 %v3959_v35, %v3917_v34  ;;  %v4001_v47 = vadd.f32 %v4000_v26, %v3958_v48 }
 0xf3d   :  { %v3961_v42 = vpop.f32.mrf.mxu0 }
 0xf3e   :  { %v4004_v17 = vpop.f32.mrf.mxu1  ;;  %v3962_v2 = vadd.f32 %v3961_v42, %v3919_v56  ;;  %v4003_v46 = vadd.f32 %v4002_v49, %v3960_v5 }
 0xf3f   :  { %v3963_v20 = vpop.f32.mrf.mxu0 }
 0xf40   :  { %v4006_v32 = vpop.f32.mrf.mxu1  ;;  %v3964_v44 = vadd.f32 %v3963_v20, %v3921_v53  ;;  %v4005_v30 = vadd.f32 %v4004_v17, %v3962_v2 }
 0xf42   :  { %v4007_v60 = vadd.f32 %v4006_v32, %v3964_v44 }
 0xf79   :  { %v4043_v14 = vpop.f32.mrf.mxu0 }
 0xf7a   :  { %v4086_v52 = vpop.f32.mrf.mxu1  ;;  %v4044_v62 = vadd.f32 %v4043_v14, %v4001_v47 }
 0xf7b   :  { %v4045_v54 = vpop.f32.mrf.mxu0 }
 0xf7c   :  { %v4088_v51 = vpop.f32.mrf.mxu1  ;;  %v4046_v16 = vadd.f32 %v4045_v54, %v4003_v46  ;;  %v4087_v31 = vadd.f32 %v4086_v52, %v4044_v62  ;;  %v9325_v62 = vld [vmem:[#allocation9 + $0x454] ss:$24 sps:$4 sm:$0xff]  }
 0xf7d   :  { %v4047_v13 = vpop.f32.mrf.mxu0  ;;  %4893 = vmatprep.subr.bf16.mxu0 %v9325_v62  ;;  %v9382_v62 = vld [vmem:[#allocation9 + $0x5ac] ss:$24 sps:$4 sm:$0xff]  }
 0xf7e   :  { %v4090_v61 = vpop.f32.mrf.mxu1  ;;  %v4048_v40 = vadd.f32 %v4047_v13, %v4005_v30  ;;  %v4089_v8 = vadd.f32 %v4088_v51, %v4046_v16  ;;  %v9331_v30 = vld [vmem:[#allocation9 + $0x424] ss:$24 sps:$4 sm:$0xff]  }
 0xf7f   :  { %v4049_v21 = vpop.f32.mrf.mxu0  ;;  %v9334_v16 = vld [vmem:[#allocation9 + $0x42c] ss:$24 sps:$4 sm:$0xff]  }
 0xf80   :  { %v4092_v29 = vpop.f32.mrf.mxu1  ;;  %v4050_v39 = vadd.f32 %v4049_v21, %v4007_v60  ;;  %v4091_v50 = vadd.f32 %v4090_v61, %v4048_v40  ;;  %v9326_v61 = vld [vmem:[#allocation9 + $0x458] ss:$24 sps:$4 sm:$0xff]   ;;  %v9343_v40 = vld [vmem:[#allocation9 + $0x3c4] ss:$24 sps:$4 sm:$0xff]  }
 0xf81   :  { %v9329_v21 = vld [vmem:[#allocation9 + $0x420] ss:$24 sps:$4 sm:$0xff]   ;;  %v9335_v60 = vld [vmem:[#allocation9 + $0x3f0] ss:$24 sps:$4 sm:$0xff]  }
 0xf82   :  { %v4093_v25 = vadd.f32 %v4092_v29, %v4050_v39  ;;  %v9346_v29 = vld [vmem:[#allocation9 + $0x3cc] ss:$24 sps:$4 sm:$0xff]   ;;  %v9352_v39 = vld [vmem:[#allocation9 + $0x39c] ss:$24 sps:$4 sm:$0xff]  }
 0xfb9   :  { %v4129_v33 = vpop.f32.mrf.mxu0 }
 0xfba   :  { %v4130_v59 = vadd.f32 %v4129_v33, %v4087_v31  ;;  %v4172_v43 = vpop.f32.mrf.mxu1  ;;  %v9338_v31 = vld [vmem:[#allocation9 + $0x3f8] ss:$24 sps:$4 sm:$0xff]   ;;  %v9344_v33 = vld [vmem:[#allocation9 + $0x3c8] ss:$24 sps:$4 sm:$0xff]  }
 0xfbb   :  { %v4131_v23 = vpop.f32.mrf.mxu0 }
 0xfbc   :  { %v4173_v63 = vadd.f32 %v4172_v43, %v4130_v59  ;;  %v4132_v1 = vadd.f32 %v4131_v23, %v4089_v8  ;;  %v4174_v3 = vpop.f32.mrf.mxu1  ;;  %v9349_v8 = vld [vmem:[#allocation9 + $0x394] ss:$24 sps:$4 sm:$0xff]   ;;  %v9347_v59 = vld [vmem:[#allocation9 + $0x390] ss:$24 sps:$4 sm:$0xff]   ;;  %v9353_v23 = vld [vmem:[#allocation9 + $0x360] ss:$24 sps:$4 sm:$0xff]  }
 0xfbd   :  { %v4133_v18 = vpop.f32.mrf.mxu0  ;;  %v9350_v43 = vld [vmem:[#allocation9 + $0x398] ss:$24 sps:$4 sm:$0xff]  }
 0xfbe   :  { %v4193_v26 = vmul.f32 %v4186_v6, %v4173_v63  ;;  %v4175_v35 = vadd.f32 %v4174_v3, %v4132_v1  ;;  %v4134_v49 = vadd.f32 %v4133_v18, %v4091_v50  ;;  %v4176_v42 = vpop.f32.mrf.mxu1  ;;  %v9356_v50 = vld [vmem:[#allocation9 + $0x368] ss:$24 sps:$4 sm:$0xff]   ;;  %v9361_v63 = vld [vmem:[#allocation9 + $0x334] ss:$24 sps:$4 sm:$0xff]  }
 0xfbf   :  { %v4135_v17 = vpop.f32.mrf.mxu0  ;;  %v9364_v1 = vld [vmem:[#allocation9 + $0x33c] ss:$24 sps:$4 sm:$0xff]   ;;  %v9359_v3 = vld [vmem:[#allocation9 + $0x330] ss:$24 sps:$4 sm:$0xff]   ;;  %v9370_v18 = vld [vmem:[#allocation9 + $0x30c] ss:$24 sps:$4 sm:$0xff]  }
 0xfc0   :  { %v4209_v20 = vadd.f32 %v4202_v45, %v4193_v26  ;;  %v4194_v32 = vmul.f32 %v4190_v4, %v4175_v35  ;;  %v4177_v14 = vadd.f32 %v4176_v42, %v4134_v49  ;;  %v4136_v15 = vadd.f32 %v4135_v17, %v4093_v25  ;;  %v4178_v52 = vpop.f32.mrf.mxu1  ;;  %v9365_v25 = vld [vmem:[#allocation9 + $0x300] ss:$24 sps:$4 sm:$0xff]   ;;  %v9373_v35 = vld [vmem:[#allocation9 + $0x5d4] ss:$24 sps:$4 sm:$0xff]   ;;  %v9371_v42 = vld [vmem:[#allocation9 + $0x5d0] ss:$24 sps:$4 sm:$0xff]  }
 0xfc1   :  { %v9368_v26 = vld [vmem:[#allocation9 + $0x308] ss:$24 sps:$4 sm:$0xff]   ;;  %v9376_v49 = vld [vmem:[#allocation9 + $0x5dc] ss:$24 sps:$4 sm:$0xff]   ;;  %v9374_v17 = vld [vmem:[#allocation9 + $0x5d8] ss:$24 sps:$4 sm:$0xff]  }
 0xfc2   :  { %v4210_v34 = vadd.f32 %v4206_v11, %v4194_v32  ;;  %v4195_v48 = vmul.f32 %v4186_v6, %v4177_v14  ;;  %v4179_v54 = vadd.f32 %v4178_v52, %v4136_v15  ;;  %v10554_v51 = vadd.f32 %v4209_v20, %v10379_v41  ;;  %v9323_v41 = vld [vmem:[#allocation9 + $0x450] ss:$24 sps:$4 sm:$0xff]   ;;  %v9355_v6 = vld [vmem:[#allocation9 + $0x364] ss:$24 sps:$4 sm:$0xff]  }
 0xfc3   :  { %4894 = vmatpush1.bf16.msra.mxu0 %v9323_v41  ;;  %v9377_v41 = vld [vmem:[#allocation9 + $0x5a0] ss:$24 sps:$4 sm:$0xff]  }
 0xfc4   :  { %v4211_v56 = vadd.f32 %v4202_v45, %v4195_v48  ;;  %v4196_v5 = vmul.f32 %v4190_v4, %v4179_v54  ;;  %v10557_v53 = vadd.f32 %v4210_v34, %v10381_v37  ;;  %v9328_v37 = vld [vmem:[#allocation9 + $0x45c] ss:$24 sps:$4 sm:$0xff]   ;;  %4895 = vmatprep.subr.bf16.mxu0 %v9331_v30  ;;  %v9358_v45 = vld [vmem:[#allocation9 + $0x36c] ss:$24 sps:$4 sm:$0xff]   ;;  %v9362_v4 = vld [vmem:[#allocation9 + $0x338] ss:$24 sps:$4 sm:$0xff]  }
 0xfc5   :  { %4936 = vmatprep.subr.bf16.mxu1 %v9328_v37  ;;  %v9388_v37 = vld [vmem:[#allocation9 + $0x57c] ss:$24 sps:$4 sm:$0xff]   ;;  %v9386_v30 = vld [vmem:[#allocation9 + $0x578] ss:$24 sps:$4 sm:$0xff]  }
 0xfc6   :  { %v4212_v47 = vadd.f32 %v4206_v11, %v4196_v5  ;;  %v4219_v2 = vadd.f32 %v10557_v53, %v10554_v51  ;;  %v10562_v13 = vadd.f32 %v4211_v56, %v10383_v38  ;;  %4937 = vmatpush1.bf16.msra.mxu1 %v9326_v61  ;;  %v9332_v38 = vld [vmem:[#allocation9 + $0x428] ss:$24 sps:$4 sm:$0xff]   ;;  %v9367_v11 = vld [vmem:[#allocation9 + $0x304] ss:$24 sps:$4 sm:$0xff]  }
 0xfc7   :  { %4938 = vmatprep.subr.bf16.mxu1 %v9334_v16  ;;  %4896 = vmatpush1.bf16.msra.mxu0 %v9329_v21  ;;  %v9380_v61 = vld [vmem:[#allocation9 + $0x5a8] ss:$24 sps:$4 sm:$0xff]   ;;  %v9391_v16 = vld [vmem:[#allocation9 + $0x544] ss:$24 sps:$4 sm:$0xff]  }
 0xfc8   :  { %4220 = vadd.xlane.f32.xlu0 %v4219_v2  ;;  %v10565_v46 = vadd.f32 %v4212_v47, %v10385_v58  ;;  %v9340_v58 = vld [vmem:[#allocation9 + $0x3fc] ss:$24 sps:$4 sm:$0xff]   ;;  %4897 = vmatprep.subr.bf16.mxu0 %v9337_v24  ;;  %v9389_v21 = vld [vmem:[#allocation9 + $0x540] ss:$24 sps:$4 sm:$0xff]  }
 0xfc9   :  { %v9392_v24 = vld [vmem:[#allocation9 + $0x548] ss:$24 sps:$4 sm:$0xff]  }
 0xfca   :  { %v4222_v44 = vadd.f32 %v10565_v46, %v10562_v13  ;;  %4939 = vmatpush1.bf16.msra.mxu1 %v9332_v38  ;;  %v9394_v38 = vld [vmem:[#allocation9 + $0x54c] ss:$24 sps:$4 sm:$0xff]  }
 0xfcb   :  { %4940 = vmatprep.subr.bf16.mxu1 %v9340_v58  ;;  %4898 = vmatpush1.bf16.msra.mxu0 %v9335_v60  ;;  %v9397_v58 = vld [vmem:[#allocation9 + $0x514] ss:$24 sps:$4 sm:$0xff]  }
 0xfcc   :  { %4223 = vadd.xlane.f32.xlu1 %v4222_v44  ;;  %4899 = vmatprep.subr.bf16.mxu0 %v9343_v40  ;;  %v9379_v44 = vld [vmem:[#allocation9 + $0x5a4] ss:$24 sps:$4 sm:$0xff]   ;;  %v9398_v40 = vld [vmem:[#allocation9 + $0x518] ss:$24 sps:$4 sm:$0xff]  }
 0xfcd   :  { %v9400_v60 = vld [vmem:[#allocation9 + $0x51c] ss:$24 sps:$4 sm:$0xff]  }
 0xfce   :  { %4941 = vmatpush1.bf16.msra.mxu1 %v9338_v31  ;;  %v9395_v31 = vld [vmem:[#allocation9 + $0x510] ss:$24 sps:$4 sm:$0xff]  }
 0xfcf   :  { %4942 = vmatprep.subr.bf16.mxu1 %v9346_v29  ;;  %4900 = vmatpush1.bf16.msra.mxu0 %v9341_v19  ;;  %v9403_v29 = vld [vmem:[#allocation9 + $0x4e4] ss:$24 sps:$4 sm:$0xff]  }
 0xfd0   :  { %4901 = vmatprep.subr.bf16.mxu0 %v9349_v8  ;;  %v9406_v19 = vld [vmem:[#allocation9 + $0x4ec] ss:$24 sps:$4 sm:$0xff]   ;;  %v9404_v8 = vld [vmem:[#allocation9 + $0x4e8] ss:$24 sps:$4 sm:$0xff]  }
 0xfd2   :  { %4943 = vmatpush1.bf16.msra.mxu1 %v9344_v33  ;;  %v9401_v33 = vld [vmem:[#allocation9 + $0x4e0] ss:$24 sps:$4 sm:$0xff]  }
 0xfd3   :  { %4944 = vmatprep.subr.bf16.mxu1 %v9352_v39  ;;  %4902 = vmatpush1.bf16.msra.mxu0 %v9347_v59  ;;  %v9409_v39 = vld [vmem:[#allocation9 + $0x4b4] ss:$24 sps:$4 sm:$0xff]  }
 0xfd4   :  { %4903 = vmatprep.subr.bf16.mxu0 %v9355_v6  ;;  %v9412_v59 = vld [vmem:[#allocation9 + $0x4bc] ss:$24 sps:$4 sm:$0xff]   ;;  %v9410_v6 = vld [vmem:[#allocation9 + $0x4b8] ss:$24 sps:$4 sm:$0xff]  }
 0xfd6   :  { %4945 = vmatpush1.bf16.msra.mxu1 %v9350_v43  ;;  %v9407_v43 = vld [vmem:[#allocation9 + $0x4b0] ss:$24 sps:$4 sm:$0xff]  }
 0xfd7   :  { %4946 = vmatprep.subr.bf16.mxu1 %v9358_v45  ;;  %4904 = vmatpush1.bf16.msra.mxu0 %v9353_v23  ;;  %v9415_v45 = vld [vmem:[#allocation9 + $0x484] ss:$24 sps:$4 sm:$0xff]  }
 0xfd8   :  { %4905 = vmatprep.subr.bf16.mxu0 %v9361_v63  ;;  %v9418_v23 = vld [vmem:[#allocation9 + $0x48c] ss:$24 sps:$4 sm:$0xff]   ;;  %v9416_v63 = vld [vmem:[#allocation9 + $0x488] ss:$24 sps:$4 sm:$0xff]  }
 0xfda   :  { %4947 = vmatpush1.bf16.msra.mxu1 %v9356_v50  ;;  %v9413_v50 = vld [vmem:[#allocation9 + $0x480] ss:$24 sps:$4 sm:$0xff]  }
 0xfdb   :  { %4948 = vmatprep.subr.bf16.mxu1 %v9364_v1  ;;  %4906 = vmatpush1.bf16.msra.mxu0 %v9359_v3  ;;  %v9421_v1 = vld [vmem:[#allocation9 + $0x464] ss:$24 sps:$4 sm:$0xff]  }
 0xfdc   :  { %4907 = vmatprep.subr.bf16.mxu0 %v9367_v11 }
 0xfde   :  { %4949 = vmatpush1.bf16.msra.mxu1 %v9362_v4 }
 0xfdf   :  { %4950 = vmatprep.subr.bf16.mxu1 %v9370_v18  ;;  %4908 = vmatpush1.bf16.msra.mxu0 %v9365_v25 }
 0xfe0   :  { %4909 = vmatprep.subr.bf16.mxu0 %v9373_v35  ;;  %v4217_v35 = vld [vmem:[%s11072_s17] sm:$0x3] }
 0xfe2   :  { %4951 = vmatpush1.bf16.msra.mxu1 %v9368_v26 }
 0xfe3   :  { %4952 = vmatprep.subr.bf16.mxu1 %v9376_v49  ;;  %4910 = vmatpush2.bf16.msra.mxu0 %v9371_v42  ;;  %v4218_v42 = vld [vmem:[#allocation21] sm:$0x3] }
 0xfe4   :  { %4911 = vmatprep.subr.bf16.mxu0 %v9379_v44 }
 0xfe6   :  { %4953 = vmatpush2.bf16.msra.mxu1 %v9374_v17 }
 0xfe7   :  { %4912 = vmatpush2.bf16.msra.mxu0 %v9377_v41  ;;  %4954 = vmatprep.subr.bf16.mxu1 %v9382_v62 }
 0xfea   :  { %4955 = vmatpush2.bf16.msra.mxu1 %v9380_v61 }
 0xfeb   :  { %4956 = vmatprep.subr.bf16.mxu1 %v9388_v37  ;;  %v9422_v37 = vld [vmem:[#allocation9 + $0x430] ss:$24 sps:$4 sm:$0xff]  }
 0xfee   :  { %4957 = vmatpush2.bf16.msra.mxu1 %v9386_v30  ;;  %v9427_v30 = vld [vmem:[#allocation9 + $0x404] ss:$24 sps:$4 sm:$0xff]  }
 0xfef   :  { %4958 = vmatprep.subr.bf16.mxu1 %v9394_v38  ;;  %v9428_v38 = vld [vmem:[#allocation9 + $0x3d0] ss:$24 sps:$4 sm:$0xff]  }
 0xff2   :  { %4959 = vmatpush2.bf16.msra.mxu1 %v9392_v24  ;;  %v9433_v24 = vld [vmem:[#allocation9 + $0x3a4] ss:$24 sps:$4 sm:$0xff]  }
 0xff3   :  { %4960 = vmatprep.subr.bf16.mxu1 %v9400_v60  ;;  %v9436_v60 = vld [vmem:[#allocation9 + $0x374] ss:$24 sps:$4 sm:$0xff]  }
 0xff6   :  { %4961 = vmatpush2.bf16.msra.mxu1 %v9398_v40  ;;  %v9439_v40 = vld [vmem:[#allocation9 + $0x344] ss:$24 sps:$4 sm:$0xff]  }
 0xff7   :  { %4962 = vmatprep.subr.bf16.mxu1 %v9406_v19  ;;  %v9442_v19 = vld [vmem:[#allocation9 + $0x314] ss:$24 sps:$4 sm:$0xff]  }
 0xffa   :  { %4963 = vmatpush2.bf16.msra.mxu1 %v9404_v8  ;;  %v9445_v8 = vld [vmem:[#allocation9 + $0x5e4] ss:$24 sps:$4 sm:$0xff]  }
 0xffb   :  { %4964 = vmatprep.subr.bf16.mxu1 %v9412_v59  ;;  %v9448_v59 = vld [vmem:[#allocation9 + $0x5b4] ss:$24 sps:$4 sm:$0xff]  }
 0xffe   :  { %4965 = vmatpush2.bf16.msra.mxu1 %v9410_v6  ;;  %v9451_v6 = vld [vmem:[#allocation9 + $0x584] ss:$24 sps:$4 sm:$0xff]  }
 0xfff   :  { %4966 = vmatprep.subr.bf16.mxu1 %v9418_v23  ;;  %v9454_v23 = vld [vmem:[#allocation9 + $0x554] ss:$24 sps:$4 sm:$0xff]  }
0x1002   :  { %4967 = vmatpush2.bf16.msra.mxu1 %v9416_v63  ;;  %v9457_v63 = vld [vmem:[#allocation9 + $0x524] ss:$24 sps:$4 sm:$0xff]  }
0x1003   :  { %9006 = vmatprep.subr.bf16.mxu1 %v9919_v0 }
0x1051   :  { %v4221_v20 = vpop.xlane.xlu0 %4220 }
0x1052   :  { %v4225_v32 = vmul.f32 0.00390625, %v4221_v20  ;;  %v4255_v20 = vrot.slane %v4217_v35, %v10096_v10 }
0x1054   :  { %v10570_v14 = vsub.f32 %v10554_v51, %v4225_v32  ;;  %v10573_v15 = vsub.f32 %v10557_v53, %v4225_v32  ;;  %v4259_v32 = vrot.slane %v4217_v35, %v10093_v9  ;;  %v4381_v35 = vld [vmem:[#allocation10 + $0x6] sm:$0x3f] }
0x1055   :  { %v4224_v52 = vpop.xlane.xlu1 %4223 }
0x1056   :  { %v4226_v34 = vmul.f32 0.00390625, %v4224_v52  ;;  %v4231_v48 = vmul.f32 %v10570_v14, %v10570_v14  ;;  %v4232_v54 = vmul.f32 %v10573_v15, %v10573_v15 }
0x1058   :  { %v10580_v56 = vsub.f32 %v10562_v13, %v4226_v34  ;;  %v10583_v5 = vsub.f32 %v10565_v46, %v4226_v34  ;;  %v4235_v47 = vadd.f32 %v4232_v54, %v4231_v48  ;;  %v9385_v13 = vld [vmem:[#allocation9 + $0x574] ss:$24 sps:$4 sm:$0xff]   ;;  %v9383_v46 = vld [vmem:[#allocation9 + $0x570] ss:$24 sps:$4 sm:$0xff]   ;;  %v4270_v48 = vrot.slane %v4218_v42, %v10096_v10 }
0x1059   :  { %4913 = vmatprep.subr.bf16.mxu0 %v9385_v13  ;;  %v4274_v54 = vrot.slane %v4218_v42, %v10093_v9  ;;  %v4386_v42 = vrot.slane %v4381_v35, %v10096_v10 }
0x105a   :  { %4236 = vadd.xlane.f32.xlu0 %v4235_v47  ;;  %v4233_v51 = vmul.f32 %v10580_v56, %v10580_v56  ;;  %v4234_v53 = vmul.f32 %v10583_v5, %v10583_v5  ;;  %4914 = vmatpush2.bf16.msra.mxu0 %v9383_v46  ;;  %v9419_v46 = vld [vmem:[#allocation9 + $0x460] ss:$24 sps:$4 sm:$0xff]  }
0x105b   :  { %4915 = vmatprep.subr.bf16.mxu0 %v9391_v16  ;;  %v9425_v16 = vld [vmem:[#allocation9 + $0x400] ss:$24 sps:$4 sm:$0xff]  }
0x105c   :  { %v4238_v2 = vadd.f32 %v4234_v53, %v4233_v51 }
0x105e   :  { %4239 = vadd.xlane.f32.xlu1 %v4238_v2  ;;  %4916 = vmatpush2.bf16.msra.mxu0 %v9389_v21  ;;  %v9430_v21 = vld [vmem:[#allocation9 + $0x3d4] ss:$24 sps:$4 sm:$0xff]  }
0x105f   :  { %4917 = vmatprep.subr.bf16.mxu0 %v9397_v58  ;;  %v9431_v58 = vld [vmem:[#allocation9 + $0x3a0] ss:$24 sps:$4 sm:$0xff]  }
0x1062   :  { %4918 = vmatpush2.bf16.msra.mxu0 %v9395_v31  ;;  %v9434_v31 = vld [vmem:[#allocation9 + $0x370] ss:$24 sps:$4 sm:$0xff]  }
0x1063   :  { %4919 = vmatprep.subr.bf16.mxu0 %v9403_v29  ;;  %v9437_v29 = vld [vmem:[#allocation9 + $0x340] ss:$24 sps:$4 sm:$0xff]  }
0x1066   :  { %4920 = vmatpush2.bf16.msra.mxu0 %v9401_v33  ;;  %v9440_v33 = vld [vmem:[#allocation9 + $0x310] ss:$24 sps:$4 sm:$0xff]  }
0x1067   :  { %4921 = vmatprep.subr.bf16.mxu0 %v9409_v39  ;;  %v9443_v39 = vld [vmem:[#allocation9 + $0x5e0] ss:$24 sps:$4 sm:$0xff]  }
0x106a   :  { %4922 = vmatpush2.bf16.msra.mxu0 %v9407_v43  ;;  %v9446_v43 = vld [vmem:[#allocation9 + $0x5b0] ss:$24 sps:$4 sm:$0xff]  }
0x106b   :  { %4923 = vmatprep.subr.bf16.mxu0 %v9415_v45  ;;  %v9449_v45 = vld [vmem:[#allocation9 + $0x580] ss:$24 sps:$4 sm:$0xff]  }
0x106e   :  { %4924 = vmatpush2.bf16.msra.mxu0 %v9413_v50  ;;  %v9452_v50 = vld [vmem:[#allocation9 + $0x550] ss:$24 sps:$4 sm:$0xff]  }
0x106f   :  { %4979 = vmatprep.subr.bf16.mxu0 %v9421_v1  ;;  %v9455_v1 = vld [vmem:[#allocation9 + $0x520] ss:$24 sps:$4 sm:$0xff]  }
0x10e3   :  { %v4237_v3 = vpop.xlane.xlu0 %4236 }
0x10e4   :  { %v4241_v4 = vmul.f32 0.00390625, %v4237_v3  ;;  %v9460_v3 = vld [vmem:[#allocation9 + $0x4f4] ss:$24 sps:$4 sm:$0xff]  }
0x10e6   :  { %v4243_v11 = vadd.f32 1e-05, %v4241_v4  ;;  %v9458_v4 = vld [vmem:[#allocation9 + $0x4f0] ss:$24 sps:$4 sm:$0xff]  }
0x10e7   :  { %v4240_v18 = vpop.xlane.xlu1 %4239 }
0x10e8   :  { %9567 = vrsqrt.f32 %v4243_v11  ;;  %v4242_v25 = vmul.f32 0.00390625, %v4240_v18  ;;  %v9463_v11 = vld [vmem:[#allocation9 + $0x4c4] ss:$24 sps:$4 sm:$0xff]   ;;  %v9461_v18 = vld [vmem:[#allocation9 + $0x4c0] ss:$24 sps:$4 sm:$0xff]  }
0x10ea   :  { %v4244_v26 = vadd.f32 1e-05, %v4242_v25  ;;  %v9466_v25 = vld [vmem:[#allocation9 + $0x494] ss:$24 sps:$4 sm:$0xff]  }
0x10ec   :  { %9569 = vrsqrt.f32 %v4244_v26  ;;  %v9464_v26 = vld [vmem:[#allocation9 + $0x490] ss:$24 sps:$4 sm:$0xff]  }
0x10f5   :  { %v9568_v49 = vpop.eup %9567 }
0x10f6   :  { %v4248_v17 = vmul.f32 %v9568_v49, %v10573_v15  ;;  %v4247_v52 = vmul.f32 %v9568_v49, %v10570_v14  ;;  %v4394_v49 = vrot.slane %v4381_v35, %v10123_v55 }
0x10f8   :  { %v4263_v51 = vmul.f32 %v4259_v32, %v4248_v17  ;;  %v4262_v2 = vmul.f32 %v4255_v20, %v4247_v52  ;;  %v10626_v17 = vrot.slane %v4381_v35, %v10093_v9 }
0x10f9   :  { %v9570_v34 = vpop.eup %9569 }
0x10fa   :  { %v4250_v47 = vmul.f32 %v9570_v34, %v10583_v5  ;;  %v4249_v53 = vmul.f32 %v9570_v34, %v10580_v56  ;;  %v10601_v15 = vadd.f32 %v4274_v54, %v4263_v51  ;;  %v10605_v61 = vadd.f32 %v4270_v48, %v4262_v2  ;;  %v9424_v56 = vld [vmem:[#allocation9 + $0x434] ss:$24 sps:$4 sm:$0xff]  }
0x10fc   :  { %v4265_v44 = vmul.f32 %v4259_v32, %v4250_v47  ;;  %v4264_v41 = vmul.f32 %v4255_v20, %v4249_v53  ;;  %v10629_v20 = vrot.slane %v4381_v35, %v10126_v57 }
0x10fe   :  { %v10603_v62 = vadd.f32 %v4274_v54, %v4265_v44  ;;  %v10607_v14 = vadd.f32 %v4270_v48, %v4264_v41 }
0x1100   :  { %v4282_v13 = vpack.c.bf16 %v10603_v62, %v10601_v15  ;;  %v10613_v5 = vpack.c.bf16 %v10607_v14, %v10605_v61 }
0x1102   :  { %4925 = vmatprep.mubr.bf16.mxu0 %v4282_v13  ;;  %4968 = vmatprep.mubr.bf16.mxu1 %v4282_v13 }
0x1103   :  { %4926 = vmatmul.mubr.bf16.vlgmr.msra.gmra.mxu0 %v10613_v5  ;;  %4969 = vmatmul.mubr.bf16.vlgmr.msra.gmra.mxu1 %v10613_v5 }
0x1104   :  { %4980 = vmatpush1.bf16.msra.mxu0 %v9419_v46  ;;  %5011 = vmatprep.mubr.bf16.mxu0 %v4282_v13 }
0x1105   :  { %4981 = vmatprep.subr.bf16.mxu0 %v9424_v56  ;;  %9008 = vmatprep.mubr.msk.bf16.mxu1 %vm9920_vm1, %v9919_v0 }
0x1108   :  { %4982 = vmatpush1.bf16.msra.mxu0 %v9422_v37 }
0x1109   :  { %4983 = vmatprep.subr.bf16.mxu0 %v9427_v30 }
0x110c   :  { %4984 = vmatpush1.bf16.msra.mxu0 %v9425_v16 }
0x110d   :  { %4985 = vmatprep.subr.bf16.mxu0 %v9430_v21 }
0x1110   :  { %4986 = vmatpush1.bf16.msra.mxu0 %v9428_v38 }
0x1111   :  { %4987 = vmatprep.subr.bf16.mxu0 %v9433_v24  ;;  %v4402_v24 = vrot.slane %v4381_v35, %v10150_v27 }
0x1114   :  { %4988 = vmatpush1.bf16.msra.mxu0 %v9431_v58 }
0x1115   :  { %4989 = vmatprep.subr.bf16.mxu0 %v9436_v60  ;;  %v10651_v60 = vrot.slane %v4381_v35, %v10153_v28 }
0x1118   :  { %4990 = vmatpush1.bf16.msra.mxu0 %v9434_v31 }
0x1119   :  { %4991 = vmatprep.subr.bf16.mxu0 %v9439_v40 }
0x111c   :  { %4992 = vmatpush1.bf16.msra.mxu0 %v9437_v29 }
0x111d   :  { %4993 = vmatprep.subr.bf16.mxu0 %v9442_v19 }
0x1120   :  { %4994 = vmatpush1.bf16.msra.mxu0 %v9440_v33 }
0x1121   :  { %4995 = vmatprep.subr.bf16.mxu0 %v9445_v8 }
0x1124   :  { %4996 = vmatpush2.bf16.msra.mxu0 %v9443_v39 }
0x1125   :  { %4997 = vmatprep.subr.bf16.mxu0 %v9448_v59 }
0x1128   :  { %4998 = vmatpush2.bf16.msra.mxu0 %v9446_v43 }
0x1129   :  { %4999 = vmatprep.subr.bf16.mxu0 %v9451_v6 }
0x112c   :  { %5000 = vmatpush2.bf16.msra.mxu0 %v9449_v45 }
0x112d   :  { %5001 = vmatprep.subr.bf16.mxu0 %v9454_v23 }
0x1130   :  { %5002 = vmatpush2.bf16.msra.mxu0 %v9452_v50 }
0x1131   :  { %5003 = vmatprep.subr.bf16.mxu0 %v9457_v63 }
0x1134   :  { %5004 = vmatpush2.bf16.msra.mxu0 %v9455_v1 }
0x1135   :  { %5005 = vmatprep.subr.bf16.mxu0 %v9460_v3 }
0x1138   :  { %5006 = vmatpush2.bf16.msra.mxu0 %v9458_v4 }
0x1139   :  { %5007 = vmatprep.subr.bf16.mxu0 %v9463_v11 }
0x113c   :  { %5008 = vmatpush2.bf16.msra.mxu0 %v9461_v18 }
0x113d   :  { %5009 = vmatprep.subr.bf16.mxu0 %v9466_v25 }
0x1140   :  { %5010 = vmatpush2.bf16.msra.mxu0 %v9464_v26 }
0x1141   :  { %9048 = vmatprep.subr.bf16.mxu0 %v9919_v0 }
0x1143   :  { %5012 = vmatmul.mubr.bf16.vlgmr.msra.gmra.mxu0 %v10613_v5 }
0x1144   :  { %9050 = vmatprep.mubr.msk.bf16.mxu0 %vm9920_vm1, %v9919_v0 }
0x11c3   :  { %v4927_v32 = vpop.f32.mrf.mxu0  ;;  %v4970_v52 = vpop.f32.mrf.mxu1 }
0x11c4   :  { %v4971_v34 = vadd.f32 %v4970_v52, %v4394_v49  ;;  %v4928_v47 = vadd.f32 %v4927_v32, %v4386_v42 }
0x11c5   :  { %v4929_v48 = vpop.f32.mrf.mxu0  ;;  %v4972_v54 = vpop.f32.mrf.mxu1 }
0x11c6   :  { %v8814_v51 = vpack.c.bf16 %v4971_v34, %v4971_v34  ;;  %v10632_v53 = vadd.f32 %v4929_v48, %v10626_v17  ;;  %v10635_v2 = vadd.f32 %v4972_v54, %v10629_v20  ;;  %v5055_v46 = vmul.f32 0.125, %v4928_v47 }
0x11c7   :  { %v4974_v44 = vpop.f32.mrf.mxu1  ;;  %v4931_v5 = vpop.f32.mrf.mxu0 }
0x11c8   :  { %v5079_v41 = vsel %vm1124_vm2, %v8814_v51, 0  ;;  %v4975_v13 = vadd.f32 %v4974_v44, %v4394_v49  ;;  %v8812_v37 = vpack.c.bf16 %v5055_v46, %v5055_v46  ;;  %v4932_v30 = vadd.f32 %v4931_v5, %v4386_v42 }
0x11c9   :  { %9007 = vmatpush3.bf16.xpose.msra.mxu1 %v5079_v41  ;;  %v10648_v58 = vpop.f32.mrf.mxu0  ;;  %v10661_v39 = vpop.f32.mrf.mxu1 }
0x11ca   :  { %9012 = vmatprep.subr.bf16.mxu1 %v9919_v0  ;;  %v8815_v56 = vpack.c.bf16 %v4975_v13, %v4975_v13  ;;  %v5056_v21 = vmul.f32 0.125, %v4932_v30 }
0x11cc   :  { %v5125_v16 = vsel %vm1124_vm2, %v8815_v56, 0  ;;  %v8813_v38 = vpack.c.bf16 %v5056_v21, %v5056_v21 }
0x11d0   :  { %9009 = vmatmul.mubr.msk.bf16.vlgmr.msra.gmra.mxu1 %vm1124_vm2, %v8812_v37 }
0x11d1   :  { %9013 = vmatpush3.bf16.xpose.msra.mxu1 %v5125_v16  ;;  %9014 = vmatprep.mubr.msk.bf16.mxu1 %vm9920_vm1, %v9919_v0 }
0x11d2   :  { %9018 = vmatprep.subr.bf16.mxu1 %v9919_v0 }
0x11d8   :  { %9015 = vmatmul.mubr.msk.bf16.vlgmr.msra.gmra.mxu1 %vm1124_vm2, %v8813_v38 }
0x11d9   :  { %9020 = vmatprep.mubr.msk.bf16.mxu1 %vm9920_vm1, %v9919_v0 }
0x1203   :  { %v5013_v31 = vpop.f32.mrf.mxu0 }
0x1204   :  { %v5014_v40 = vadd.f32 %v5013_v31, %v4402_v24 }
0x1205   :  { %v5015_v29 = vpop.f32.mrf.mxu0 }
0x1206   :  { %v10653_v19 = vpack.c.bf16 %v5014_v40, %v5014_v40  ;;  %v10656_v33 = vadd.f32 %v5015_v29, %v10651_v60 }
0x1207   :  { %v5017_v54 = vpop.f32.mrf.mxu0 }
0x1208   :  { %v5195_v8 = vsel %vm1244_vm3, %v10653_v19, 0  ;;  %v5018_v44 = vadd.f32 %v5017_v54, %v4402_v24 }
0x1209   :  { %9019 = vmatpush3.bf16.msra.mxu1 %v5195_v8 }
0x120a   :  { %9024 = vmatprep.subr.bf16.mxu1 %v9919_v0  ;;  %v10671_v13 = vpack.c.bf16 %v5018_v44, %v5018_v44 }
0x1290   :  { %v5115_v59 = vpop.f32.mrf.mxu1 }
0x1291   :  { %v5167_v43 = vsel %vm249_vm0, %v5115_v59, -inf }
0x1292   :  { %5168 = vmax.xlane.f32.xlu0 %v5167_v43  ;;  %v9010_v6 = vpop.f32.mrf.mxu1 }
0x1294   :  { %v5118_v45 = vpop.f32.mrf.mxu1 }
0x1296   :  { %v9011_v23 = vpop.f32.mrf.mxu1 }
0x1298   :  { %v5161_v50 = vpop.f32.mrf.mxu1 }
0x1299   :  { %v5170_v63 = vsel %vm249_vm0, %v5161_v50, -inf }
0x129a   :  { %5171 = vmax.xlane.f32.xlu1 %v5170_v63  ;;  %v9016_v1 = vpop.f32.mrf.mxu1 }
0x129c   :  { %v5164_v3 = vpop.f32.mrf.mxu1 }
0x129e   :  { %v9017_v4 = vpop.f32.mrf.mxu1 }
0x131b   :  { %v5169_v11 = vpop.xlane.xlu0 %5168 }
0x131c   :  { %v5173_v18 = vsub.f32 %v5115_v59, %v5169_v11 }
0x131e   :  { %v5175_v25 = vmul.f32 1.442695, %v5173_v18 }
0x1320   :  { %9571 = vpow2.f32 %v5175_v25 }
0x1323   :  { %v5172_v26 = vpop.xlane.xlu1 %5171 }
0x1324   :  { %v5174_v35 = vsub.f32 %v5161_v50, %v5172_v26 }
0x1326   :  { %v5177_v49 = vmul.f32 1.442695, %v5174_v35 }
0x1328   :  { %9573 = vpow2.f32 %v5177_v49 }
0x132d   :  { %v9572_v42 = vpop.eup %9571 }
0x132e   :  { %v5179_v32 = vsel %vm249_vm0, %v9572_v42, 0.0 }
0x132f   :  { %5180 = vadd.xlane.f32.xlu0 %v5179_v32 }
0x1335   :  { %v9574_v52 = vpop.eup %9573 }
0x1336   :  { %v5182_v34 = vsel %vm249_vm0, %v9574_v52, 0.0 }
0x1337   :  { %5183 = vadd.xlane.f32.xlu1 %v5182_v34 }
0x1345   :  { %5286 = vrot.lane.b32.xlu0 %v8814_v51, %s9907_s16  ;;  %v5241_v51 = vsel %vm1244_vm3, %v10671_v13, 0 }
0x1348   :  { %5284 = vrot.lane.b32.xlu1 %v8812_v37, %s9907_s16 }
0x134c   :  { %5336 = vrot.lane.b32.xlu1 %v8815_v56, %s9907_s16 }
0x1350   :  { %5334 = vrot.lane.b32.xlu1 %v8813_v38, %s9907_s16 }
0x13b8   :  { %v5181_v48 = vpop.xlane.xlu0 %5180 }
0x13b9   :  { %9575 = vrcp.f32 %v5181_v48 }
0x13bc   :  { %v5287_v30 = vpop.permute.xlu0 %5286 }
0x13bd   :  { %v5292_v38 = vsel %vm1124_vm2, %v5287_v30, 0 }
0x13c0   :  { %v5184_v47 = vpop.xlane.xlu1 %5183 }
0x13c1   :  { %9577 = vrcp.f32 %v5184_v47 }
0x13c4   :  { %v5285_v21 = vpop.permute.xlu1 %5284 }
0x13c6   :  { %v9576_v41 = vpop.eup %9575 }
0x13c7   :  { %v5187_v46 = vmul.f32 %v9576_v41, %v9572_v42 }
0x13c8   :  { %v5337_v24 = vpop.permute.xlu1 %5336 }
0x13c9   :  { %v5189_v5 = vpack.c.bf16 %v5187_v46, %v5187_v46  ;;  %v5342_v31 = vsel %vm1124_vm2, %v5337_v24, 0 }
0x13cb   :  { %9021 = vmatmul.mubr.msk.bf16.vlgmr.msra.gmra.mxu1 %vm249_vm0, %v5189_v5 }
0x13cc   :  { %9025 = vmatpush3.bf16.msra.mxu1 %v5241_v51  ;;  %9026 = vmatprep.mubr.msk.bf16.mxu1 %vm9920_vm1, %v9919_v0  ;;  %v5335_v40 = vpop.permute.xlu1 %5334 }
0x13cd   :  { %9030 = vmatprep.subr.bf16.mxu1 %v9919_v0 }
0x13ce   :  { %v9578_v56 = vpop.eup %9577 }
0x13cf   :  { %v5188_v37 = vmul.f32 %v9578_v56, %v9574_v52 }
0x13d1   :  { %v5190_v16 = vpack.c.bf16 %v5188_v37, %v5188_v37 }
0x13d3   :  { %9027 = vmatmul.mubr.msk.bf16.vlgmr.msra.gmra.mxu1 %vm249_vm0, %v5190_v16  ;;  %v9469_v16 = vld [vmem:[#allocation12 + $0x134] ss:$8 sps:$4 sm:$0xff]  }
0x13d4   :  { %9031 = vmatpush3.bf16.xpose.msra.mxu1 %v5292_v38  ;;  %9032 = vmatprep.mubr.msk.bf16.mxu1 %vm9920_vm1, %v9919_v0 }
0x13d5   :  { %9036 = vmatprep.subr.bf16.mxu1 %v9919_v0 }
0x13db   :  { %9033 = vmatmul.mubr.msk.bf16.vlgmr.msra.gmra.mxu1 %vm1124_vm2, %v5285_v21 }
0x13dc   :  { %9037 = vmatpush3.bf16.xpose.msra.mxu1 %v5342_v31  ;;  %9038 = vmatprep.mubr.msk.bf16.mxu1 %vm9920_vm1, %v9919_v0 }
0x13dd   :  { %9042 = vmatprep.subr.bf16.mxu1 %v9919_v0 }
0x13e3   :  { %9039 = vmatmul.mubr.msk.bf16.vlgmr.msra.gmra.mxu1 %vm1124_vm2, %v5335_v40  ;;  %v9479_v40 = vld [vmem:[#allocation12 + $0x170] ss:$8 sps:$4 sm:$0xff]  }
0x13e4   :  { %9044 = vmatprep.mubr.msk.bf16.mxu1 %vm9920_vm1, %v9919_v0 }
0x148b   :  { %v10692_v29 = vpop.f32.mrf.mxu1 }
0x148d   :  { %v9022_v8 = vpop.f32.mrf.mxu1 }
0x148f   :  { %v5234_v59 = vpop.f32.mrf.mxu1 }
0x1490   :  { %v9484_v59 = vld [vmem:[#allocation12 + $0x164] ss:$8 sps:$4 sm:$0xff]  }
0x1491   :  { %v9023_v43 = vpop.f32.mrf.mxu1 }
0x1493   :  { %v10694_v6 = vpop.f32.mrf.mxu1 }
0x1494   :  { %v5283_v45 = vpack.c.bf16 %v10694_v6, %v10692_v29  ;;  %v9487_v29 = vld [vmem:[#allocation12 + $0x154] ss:$8 sps:$4 sm:$0xff]   ;;  %v9488_v6 = vld [vmem:[#allocation12 + $0x140] ss:$8 sps:$4 sm:$0xff]  }
0x1495   :  { %v9028_v23 = vpop.f32.mrf.mxu1 }
0x1497   :  { %v5280_v50 = vpop.f32.mrf.mxu1 }
0x1498   :  { %v9467_v50 = vld [vmem:[#allocation12 + $0x130] ss:$8 sps:$4 sm:$0xff]  }
0x1499   :  { %v9029_v63 = vpop.f32.mrf.mxu1 }
0x149b   :  { %v5328_v1 = vpop.f32.mrf.mxu1 }
0x149c   :  { %v5384_v3 = vsel %vm249_vm0, %v5328_v1, -inf }
0x149d   :  { %5385 = vmax.xlane.f32.xlu1 %v5384_v3  ;;  %v9034_v4 = vpop.f32.mrf.mxu1  ;;  %v9470_v3 = vld [vmem:[#allocation12 + $0x120] ss:$8 sps:$4 sm:$0xff]  }
0x149e   :  { %v9475_v4 = vld [vmem:[#allocation12 + $0x114] ss:$8 sps:$4 sm:$0xff]  }
0x149f   :  { %v5331_v11 = vpop.f32.mrf.mxu1 }
0x14a0   :  { %v9473_v11 = vld [vmem:[#allocation12 + $0x110] ss:$8 sps:$4 sm:$0xff]  }
0x14a1   :  { %v9035_v18 = vpop.f32.mrf.mxu1 }
0x14a2   :  { %v9478_v18 = vld [vmem:[#allocation12 + $0x104] ss:$8 sps:$4 sm:$0xff]  }
0x14a3   :  { %v5378_v25 = vpop.f32.mrf.mxu1 }
0x14a4   :  { %v5387_v26 = vsel %vm249_vm0, %v5378_v25, -inf }
0x14a5   :  { %5388 = vmax.xlane.f32.xlu0 %v5387_v26  ;;  %v9040_v35 = vpop.f32.mrf.mxu1  ;;  %v9476_v26 = vld [vmem:[#allocation12 + $0x100] ss:$8 sps:$4 sm:$0xff]  }
0x14a7   :  { %v5381_v49 = vpop.f32.mrf.mxu1 }
0x14a8   :  { %v5019_v49 = vpop.f32.mrf.mxu0 }
0x14a9   :  { %v9041_v42 = vpop.f32.mrf.mxu1 }
0x14aa   :  { %v4934_v42 = vadd.f32 %v10648_v58, %v10626_v17 }
0x14ae   :  { %5408 = vrot.lane.b32.xlu1 %v10653_v19, %s9907_s16  ;;  %v9481_v19 = vld [vmem:[#allocation12 + $0x174] ss:$8 sps:$4 sm:$0xff]  }
0x1526   :  { %v5386_v32 = vpop.xlane.xlu1 %5385 }
0x1527   :  { %v5390_v52 = vsub.f32 %v5328_v1, %v5386_v32  ;;  %v9472_v1 = vld [vmem:[#allocation12 + $0x124] ss:$8 sps:$4 sm:$0xff]  }
0x1529   :  { %v5392_v34 = vmul.f32 1.442695, %v5390_v52  ;;  %v5020_v52 = vadd.f32 %v5019_v49, %v10651_v60  ;;  %v9485_v60 = vld [vmem:[#allocation12 + $0x150] ss:$8 sps:$4 sm:$0xff]  }
0x152a   :  { %v5409_v48 = vpop.permute.xlu1 %5408 }
0x152b   :  { %9579 = vpow2.f32 %v5392_v34  ;;  %v5414_v54 = vsel %vm1244_vm3, %v5409_v48, 0 }
0x152c   :  { %9043 = vmatpush3.bf16.msra.mxu1 %v5414_v54 }
0x152d   :  { %5556 = vmatprep.subr.bf16.mxu1 %v9481_v19  ;;  %v5677_v19 = vmul.f32 0.125, %v10632_v53 }
0x152e   :  { %v5389_v47 = vpop.xlane.xlu0 %5388 }
0x152f   :  { %v5391_v44 = vsub.f32 %v5378_v25, %v5389_v47  ;;  %v4977_v25 = vadd.f32 %v10661_v39, %v10629_v20  ;;  %v5678_v20 = vmul.f32 0.125, %v4934_v42  ;;  %v10726_v39 = vpack.c.bf16 %v5020_v52, %v5020_v52 }
0x1531   :  { %v5394_v41 = vmul.f32 1.442695, %v5391_v44  ;;  %v8821_v35 = vpack.c.bf16 %v4977_v25, %v4977_v25  ;;  %v8819_v17 = vpack.c.bf16 %v5678_v20, %v5678_v20  ;;  %v5863_v58 = vsel %vm1244_vm3, %v10726_v39, 0 }
0x1532   :  { %v8820_v44 = vpack.c.bf16 %v10635_v2, %v10635_v2  ;;  %v10745_v2 = vpack.c.bf16 %v10656_v33, %v10656_v33 }
0x1533   :  { %9581 = vpow2.f32 %v5394_v41  ;;  %v5747_v32 = vsel %vm1124_vm2, %v8821_v35, 0 }
0x1538   :  { %v9580_v46 = vpop.eup %9579 }
0x1539   :  { %v5396_v5 = vsel %vm249_vm0, %v9580_v46, 0.0 }
0x153a   :  { %5397 = vadd.xlane.f32.xlu0 %v5396_v5 }
0x1540   :  { %v9582_v51 = vpop.eup %9581 }
0x1541   :  { %v5399_v56 = vsel %vm249_vm0, %v9582_v51, 0.0 }
0x1542   :  { %5400 = vadd.xlane.f32.xlu0 %v5399_v56 }
0x1558   :  { %5456 = vrot.lane.b32.xlu0 %v10671_v13, %s9907_s16  ;;  %v9482_v13 = vld [vmem:[#allocation12 + $0x160] ss:$8 sps:$4 sm:$0xff]  }
0x15c3   :  { %v5398_v37 = vpop.xlane.xlu0 %5397 }
0x15c4   :  { %9583 = vrcp.f32 %v5398_v37 }
0x15cb   :  { %v5401_v30 = vpop.xlane.xlu0 %5400 }
0x15cc   :  { %9585 = vrcp.f32 %v5401_v30  ;;  %v8818_v30 = vpack.c.bf16 %v5677_v19, %v5677_v19 }
0x15cf   :  { %v5457_v21 = vpop.permute.xlu0 %5456 }
0x15d0   :  { %v5462_v38 = vsel %vm1244_vm3, %v5457_v21, 0 }
0x15d1   :  { %v9584_v24 = vpop.eup %9583  ;;  %9049 = vmatpush3.bf16.msra.mxu0 %v5462_v38 }
0x15d2   :  { %v5404_v31 = vmul.f32 %v9584_v24, %v9580_v46  ;;  %5642 = vmatprep.subr.bf16.mxu0 %v9469_v16  ;;  %v5817_v16 = vsel %vm1244_vm3, %v10745_v2, 0 }
0x15d4   :  { %v5406_v8 = vpack.c.bf16 %v5404_v31, %v5404_v31 }
0x15d6   :  { %9045 = vmatmul.mubr.msk.bf16.vlgmr.msra.gmra.mxu1 %vm249_vm0, %v5406_v8 }
0x15d7   :  { %5557 = vmatpush1.bf16.msra.mxu1 %v9479_v40  ;;  %5580 = vmatprep.mubr.bf16.mxu1 %v9921_v12 }
0x15d8   :  { %5558 = vmatprep.subr.bf16.mxu1 %v9484_v59 }
0x15d9   :  { %v9586_v43 = vpop.eup %9585 }
0x15da   :  { %v5405_v23 = vmul.f32 %v9586_v43, %v9582_v51  ;;  %v5701_v51 = vsel %vm1124_vm2, %v8820_v44, 0 }
0x15db   :  { %5559 = vmatpush1.bf16.msra.mxu1 %v9482_v13 }
0x15dc   :  { %v5407_v63 = vpack.c.bf16 %v5405_v23, %v5405_v23  ;;  %5560 = vmatprep.subr.bf16.mxu1 %v9487_v29 }
0x15de   :  { %9051 = vmatmul.mubr.msk.bf16.vlgmr.msra.gmra.mxu0 %vm249_vm0, %v5407_v63 }
0x15df   :  { %5643 = vmatpush1.bf16.msra.mxu0 %v9467_v50  ;;  %5666 = vmatprep.mubr.bf16.mxu0 %v9921_v12 }
0x15e0   :  { %5644 = vmatprep.subr.bf16.mxu0 %v9472_v1  ;;  %5561 = vmatpush1.bf16.msra.mxu1 %v9485_v60 }
0x15e3   :  { %5645 = vmatpush1.bf16.msra.mxu0 %v9470_v3 }
0x15e4   :  { %5646 = vmatprep.subr.bf16.mxu0 %v9475_v4 }
0x15e7   :  { %5647 = vmatpush1.bf16.msra.mxu0 %v9473_v11 }
0x15e8   :  { %5648 = vmatprep.subr.bf16.mxu0 %v9478_v18 }
0x15eb   :  { %5649 = vmatpush1.bf16.msra.mxu0 %v9476_v26 }
0x15ec   :  { %9060 = vmatprep.subr.bf16.mxu0 %v9919_v0 }
0x15ee   :  { %8743 = vmatmul.mubr.msk.bf16.vlgmr.msra.gmra.mxu0 %vm1124_vm2, %v5283_v45  ;;  %v9490_v45 = vld [vmem:[#allocation12 + $0x144] ss:$8 sps:$4 sm:$0xff]  }
0x15ef   :  { %9061 = vmatpush3.bf16.xpose.msra.mxu0 %v5747_v32  ;;  %9062 = vmatprep.mubr.msk.bf16.mxu0 %vm9920_vm1, %v9919_v0 }
0x15f0   :  { %9072 = vmatprep.subr.bf16.mxu0 %v9919_v0  ;;  %5562 = vmatprep.subr.bf16.mxu1 %v9490_v45 }
0x15f1   :  { %5563 = vmatpush1.bf16.msra.mxu1 %v9488_v6 }
0x15f2   :  { %9054 = vmatprep.subr.bf16.mxu1 %v9919_v0 }
0x15f6   :  { %9063 = vmatmul.mubr.msk.bf16.vlgmr.msra.gmra.mxu0 %vm1124_vm2, %v8819_v17 }
0x15f7   :  { %9073 = vmatpush3.bf16.msra.mxu0 %v5863_v58  ;;  %9074 = vmatprep.mubr.msk.bf16.mxu0 %vm9920_vm1, %v9919_v0 }
0x15f8   :  { %9078 = vmatprep.subr.bf16.mxu0 %v9919_v0 }
0x1696   :  { %v5450_v34 = vpop.f32.mrf.mxu1 }
0x1698   :  { %v9046_v48 = vpop.f32.mrf.mxu1 }
0x169a   :  { %v5453_v54 = vpop.f32.mrf.mxu1 }
0x169c   :  { %v9047_v47 = vpop.f32.mrf.mxu1 }
0x169e   :  { %v5498_v41 = vpop.f32.mrf.mxu0 }
0x169f   :  { %v5504_v46 = vpack.c.bf16 %v5498_v41, %v5450_v34 }
0x16a0   :  { %v9052_v5 = vpop.f32.mrf.mxu0 }
0x16a1   :  { %8734 = vmatmul.mubr.msk.bf16.vlgmr.msra.gmra.mxu1 %vm1124_vm2, %v5504_v46 }
0x16a2   :  { %9055 = vmatpush3.bf16.xpose.msra.mxu1 %v5701_v51  ;;  %v5501_v56 = vpop.f32.mrf.mxu0  ;;  %9056 = vmatprep.mubr.msk.bf16.mxu1 %vm9920_vm1, %v9919_v0 }
0x16a3   :  { %9066 = vmatprep.subr.bf16.mxu1 %v9919_v0 }
0x16a4   :  { %v9053_v37 = vpop.f32.mrf.mxu0 }
0x16a9   :  { %9057 = vmatmul.mubr.msk.bf16.vlgmr.msra.gmra.mxu1 %vm1124_vm2, %v8818_v30 }
0x16aa   :  { %9067 = vmatpush3.bf16.msra.mxu1 %v5817_v16  ;;  %9068 = vmatprep.mubr.msk.bf16.mxu1 %vm9920_vm1, %v9919_v0 }
0x16ae   :  { %v10752_v21 = vpop.f32.mrf.mxu0 }
0x16b0   :  { %v10754_v53 = vpop.f32.mrf.mxu0 }
0x16b2   :  { %v10756_v38 = vpop.f32.mrf.mxu0 }
0x16b4   :  { %v10758_v24 = vpop.f32.mrf.mxu0 }
0x16b6   :  { %v5783_v33 = vpop.f32.mrf.mxu0 }
0x16b7   :  { %v5792_v31 = vsel %vm249_vm0, %v5783_v33, -inf }
0x16b8   :  { %5793 = vmax.xlane.f32.xlu1 %v5792_v31  ;;  %v9064_v40 = vpop.f32.mrf.mxu0 }
0x16ba   :  { %v5786_v8 = vpop.f32.mrf.mxu0 }
0x16bc   :  { %v9065_v59 = vpop.f32.mrf.mxu0 }
0x16c9   :  { %5996 = vrot.lane.b32.xlu1 %v8818_v30, %s9907_s16 }
0x16cd   :  { %6048 = vrot.lane.b32.xlu1 %v8821_v35, %s9907_s16 }
0x16d1   :  { %6046 = vrot.lane.b32.xlu1 %v8819_v17, %s9907_s16 }
0x1741   :  { %v5794_v13 = vpop.xlane.xlu1 %5793 }
0x1742   :  { %v5796_v43 = vsub.f32 %v5783_v33, %v5794_v13 }
0x1744   :  { %v5799_v23 = vmul.f32 1.442695, %v5796_v43 }
0x1745   :  { %v5997_v58 = vpop.permute.xlu1 %5996 }
0x1746   :  { %9587 = vpow2.f32 %v5799_v23 }
0x1749   :  { %v6049_v29 = vpop.permute.xlu1 %6048 }
0x174a   :  { %v6054_v6 = vsel %vm1124_vm2, %v6049_v29, 0 }
0x174d   :  { %v6047_v45 = vpop.permute.xlu1 %6046 }
0x1753   :  { %v9588_v50 = vpop.eup %9587 }
0x1754   :  { %v5804_v63 = vsel %vm249_vm0, %v9588_v50, 0.0 }
0x1755   :  { %5805 = vadd.xlane.f32.xlu0 %v5804_v63  ;;  %v9491_v63 = vld [vmem:[#allocation12 + $0x1b0] ss:$8 sps:$4 sm:$0xff]  }
0x1761   :  { %v10765_v1 = vpop.f32.mrf.mxu1 }
0x1763   :  { %v10767_v3 = vpop.f32.mrf.mxu1 }
0x1765   :  { %v10769_v4 = vpop.f32.mrf.mxu1 }
0x1767   :  { %v10771_v11 = vpop.f32.mrf.mxu1 }
0x1769   :  { %v5737_v18 = vpop.f32.mrf.mxu1 }
0x176a   :  { %v5789_v49 = vsel %vm249_vm0, %v5737_v18, -inf }
0x176b   :  { %5998 = vrot.lane.b32.xlu0 %v8820_v44, %s9907_s16  ;;  %v9058_v25 = vpop.f32.mrf.mxu1 }
0x176c   :  { %v9496_v25 = vld [vmem:[#allocation12 + $0x1a4] ss:$8 sps:$4 sm:$0xff]  }
0x176d   :  { %v5740_v26 = vpop.f32.mrf.mxu1 }
0x176e   :  { %v9494_v26 = vld [vmem:[#allocation12 + $0x1a0] ss:$8 sps:$4 sm:$0xff]  }
0x176f   :  { %v9059_v35 = vpop.f32.mrf.mxu1 }
0x1770   :  { %v9499_v35 = vld [vmem:[#allocation12 + $0x194] ss:$8 sps:$4 sm:$0xff]  }
0x178a   :  { %5790 = vmax.xlane.f32.xlu0 %v5789_v49  ;;  %v9497_v49 = vld [vmem:[#allocation12 + $0x190] ss:$8 sps:$4 sm:$0xff]  }
0x17de   :  { %v5806_v42 = vpop.xlane.xlu0 %5805 }
0x17df   :  { %9589 = vrcp.f32 %v5806_v42  ;;  %v9502_v42 = vld [vmem:[#allocation12 + $0x184] ss:$8 sps:$4 sm:$0xff]  }
0x17e2   :  { %v5999_v20 = vpop.permute.xlu0 %5998 }
0x17e3   :  { %v6004_v60 = vsel %vm1124_vm2, %v5999_v20, 0 }
0x17ec   :  { %v9590_v32 = vpop.eup %9589 }
0x17ed   :  { %v5810_v52 = vmul.f32 %v9590_v32, %v9588_v50  ;;  %v9500_v32 = vld [vmem:[#allocation12 + $0x180] ss:$8 sps:$4 sm:$0xff]  }
0x17ef   :  { %v5812_v17 = vpack.c.bf16 %v5810_v52, %v5810_v52 }
0x17f1   :  { %9075 = vmatmul.mubr.msk.bf16.vlgmr.msra.gmra.mxu0 %vm249_vm0, %v5812_v17 }
0x17f2   :  { %9079 = vmatpush3.bf16.xpose.msra.mxu0 %v6004_v60  ;;  %9080 = vmatprep.mubr.msk.bf16.mxu0 %vm9920_vm1, %v9919_v0 }
0x17f3   :  { %9084 = vmatprep.subr.bf16.mxu0 %v9919_v0 }
0x17f9   :  { %9081 = vmatmul.mubr.msk.bf16.vlgmr.msra.gmra.mxu0 %vm1124_vm2, %v5997_v58 }
0x17fa   :  { %9085 = vmatpush3.bf16.xpose.msra.mxu0 %v6054_v6  ;;  %9086 = vmatprep.mubr.msk.bf16.mxu0 %vm9920_vm1, %v9919_v0 }
0x17fb   :  { %9096 = vmatprep.subr.bf16.mxu0 %v9919_v0 }
0x1801   :  { %9087 = vmatmul.mubr.msk.bf16.vlgmr.msra.gmra.mxu0 %vm1124_vm2, %v6047_v45 }
0x1802   :  { %9098 = vmatprep.mubr.msk.bf16.mxu0 %vm9920_vm1, %v9919_v0 }
0x1813   :  { %v5791_v34 = vpop.xlane.xlu0 %5790 }
0x1814   :  { %v5795_v48 = vsub.f32 %v5737_v18, %v5791_v34  ;;  %v9493_v18 = vld [vmem:[#allocation12 + $0x1b4] ss:$8 sps:$4 sm:$0xff]  }
0x1815   :  { %5957 = vmatprep.subr.bf16.mxu1 %v9493_v18  ;;  %v5669_v18 = vadd.f32 %v10752_v21, %v10765_v1 }
0x1816   :  { %v5797_v54 = vmul.f32 1.442695, %v5795_v48 }
0x1818   :  { %9591 = vpow2.f32 %v5797_v54 }
0x1825   :  { %v9592_v47 = vpop.eup %9591 }
0x1826   :  { %v5801_v44 = vsel %vm249_vm0, %v9592_v47, 0.0 }
0x1827   :  { %5802 = vadd.xlane.f32.xlu1 %v5801_v44 }
0x18b0   :  { %v5803_v41 = vpop.xlane.xlu1 %5802 }
0x18b1   :  { %9593 = vrcp.f32 %v5803_v41  ;;  %v5899_v46 = vpop.f32.mrf.mxu0 }
0x18b3   :  { %v9076_v5 = vpop.f32.mrf.mxu0 }
0x18b5   :  { %v5902_v51 = vpop.f32.mrf.mxu0 }
0x18b7   :  { %v9077_v56 = vpop.f32.mrf.mxu0 }
0x18b8   :  { %v9505_v56 = vld [vmem:[#allocation12 + $0x1f4] ss:$8 sps:$4 sm:$0xff]  }
0x18b9   :  { %v6040_v19 = vpop.f32.mrf.mxu0 }
0x18ba   :  { %v6096_v37 = vsel %vm249_vm0, %v6040_v19, -inf }
0x18bb   :  { %v9082_v30 = vpop.f32.mrf.mxu0  ;;  %6097 = vmax.xlane.f32.xlu0 %v6096_v37 }
0x18bd   :  { %v6043_v16 = vpop.f32.mrf.mxu0 }
0x18be   :  { %v9594_v33 = vpop.eup %9593 }
0x18bf   :  { %v9083_v31 = vpop.f32.mrf.mxu0  ;;  %v5809_v40 = vmul.f32 %v9594_v33, %v9592_v47  ;;  %v9503_v33 = vld [vmem:[#allocation12 + $0x1f0] ss:$8 sps:$4 sm:$0xff]  }
0x18c1   :  { %v6090_v8 = vpop.f32.mrf.mxu0  ;;  %v5811_v59 = vpack.c.bf16 %v5809_v40, %v5809_v40  ;;  %v9506_v40 = vld [vmem:[#allocation12 + $0x1e0] ss:$8 sps:$4 sm:$0xff]  }
0x18c2   :  { %v6099_v13 = vsel %vm249_vm0, %v6090_v8, -inf }
0x18c3   :  { %v9088_v43 = vpop.f32.mrf.mxu0  ;;  %6100 = vmax.xlane.f32.xlu0 %v6099_v13  ;;  %9069 = vmatmul.mubr.msk.bf16.vlgmr.msra.gmra.mxu1 %vm249_vm0, %v5811_v59 }
0x18c4   :  { %5981 = vmatprep.mubr.bf16.mxu1 %v9921_v12  ;;  %5958 = vmatpush1.bf16.msra.mxu1 %v9491_v63  ;;  %v9509_v43 = vld [vmem:[#allocation12 + $0x1d0] ss:$8 sps:$4 sm:$0xff]   ;;  %v9514_v63 = vld [vmem:[#allocation12 + $0x1c4] ss:$8 sps:$4 sm:$0xff]  }
0x18c5   :  { %v6093_v23 = vpop.f32.mrf.mxu0  ;;  %5959 = vmatprep.subr.bf16.mxu1 %v9496_v25 }
0x18c6   :  { %v9511_v23 = vld [vmem:[#allocation12 + $0x1d4] ss:$8 sps:$4 sm:$0xff]  }
0x18c7   :  { %v9089_v50 = vpop.f32.mrf.mxu0 }
0x18c8   :  { %5960 = vmatpush1.bf16.msra.mxu1 %v9494_v26  ;;  %v9512_v50 = vld [vmem:[#allocation12 + $0x1c0] ss:$8 sps:$4 sm:$0xff]  }
0x18c9   :  { %5961 = vmatprep.subr.bf16.mxu1 %v9499_v35 }
0x18cc   :  { %5962 = vmatpush1.bf16.msra.mxu1 %v9497_v49  ;;  %v5673_v49 = vadd.f32 %v10756_v38, %v10769_v4 }
0x18cd   :  { %5963 = vmatprep.subr.bf16.mxu1 %v9502_v42 }
0x18d0   :  { %5964 = vmatpush1.bf16.msra.mxu1 %v9500_v32 }
0x18d1   :  { %9090 = vmatprep.subr.bf16.mxu1 %v9919_v0 }
0x1944   :  { %v6098_v52 = vpop.xlane.xlu0 %6097 }
0x1945   :  { %v6102_v20 = vsub.f32 %v6040_v19, %v6098_v52 }
0x1947   :  { %v6104_v17 = vmul.f32 1.442695, %v6102_v20 }
0x1949   :  { %9595 = vpow2.f32 %v6104_v17 }
0x194c   :  { %v6101_v58 = vpop.xlane.xlu0 %6100 }
0x194d   :  { %v6103_v60 = vsub.f32 %v6090_v8, %v6101_v58 }
0x194f   :  { %v6106_v29 = vmul.f32 1.442695, %v6103_v60 }
0x1951   :  { %9597 = vpow2.f32 %v6106_v29 }
0x1956   :  { %v9596_v6 = vpop.eup %9595 }
0x1957   :  { %v6108_v45 = vsel %vm249_vm0, %v9596_v6, 0.0 }
0x1958   :  { %6109 = vadd.xlane.f32.xlu0 %v6108_v45 }
0x195e   :  { %v9598_v34 = vpop.eup %9597 }
0x195f   :  { %v6111_v48 = vsel %vm249_vm0, %v9598_v34, 0.0 }
0x1960   :  { %6112 = vadd.xlane.f32.xlu1 %v6111_v48 }
0x196e   :  { %6120 = vrot.lane.b32.xlu0 %v10745_v2, %s9907_s16 }
0x1971   :  { %6168 = vrot.lane.b32.xlu1 %v10726_v39, %s9907_s16 }
0x1983   :  { %v5853_v54 = vpop.f32.mrf.mxu1 }
0x1984   :  { %v5905_v47 = vpack.c.bf16 %v5899_v46, %v5853_v54 }
0x1985   :  { %v9070_v44 = vpop.f32.mrf.mxu1 }
0x1986   :  { %8762 = vmatmul.mubr.msk.bf16.vlgmr.msra.gmra.mxu1 %vm1124_vm2, %v5905_v47  ;;  %v5675_v47 = vadd.f32 %v10758_v24, %v10771_v11 }
0x1987   :  { %v5856_v41 = vpop.f32.mrf.mxu1  ;;  %9092 = vmatprep.mubr.msk.bf16.mxu1 %vm9920_vm1, %v9919_v0  ;;  %v9508_v0 = vld [vmem:[#allocation12 + $0x1e4] ss:$8 sps:$4 sm:$0xff]  }
0x1989   :  { %v9071_v5 = vpop.f32.mrf.mxu1 }
0x19e1   :  { %v6110_v51 = vpop.xlane.xlu0 %6109 }
0x19e2   :  { %9599 = vrcp.f32 %v6110_v51 }
0x19e5   :  { %v6121_v19 = vpop.permute.xlu0 %6120 }
0x19e6   :  { %v6126_v37 = vsel %vm1244_vm3, %v6121_v19, 0 }
0x19e7   :  { %9091 = vmatpush3.bf16.msra.mxu1 %v6126_v37 }
0x19e8   :  { %6268 = vmatprep.subr.bf16.mxu1 %v9505_v56 }
0x19e9   :  { %v6113_v2 = vpop.xlane.xlu1 %6112 }
0x19ea   :  { %9601 = vrcp.f32 %v6113_v2 }
0x19ed   :  { %v6169_v39 = vpop.permute.xlu1 %6168 }
0x19ee   :  { %v6174_v46 = vsel %vm1244_vm3, %v6169_v39, 0 }
0x19ef   :  { %v9600_v30 = vpop.eup %9599  ;;  %9097 = vmatpush3.bf16.msra.mxu0 %v6174_v46 }
0x19f0   :  { %v6116_v16 = vmul.f32 %v9600_v30, %v9596_v6 }
0x19f2   :  { %v6118_v31 = vpack.c.bf16 %v6116_v16, %v6116_v16 }
0x19f4   :  { %9093 = vmatmul.mubr.msk.bf16.vlgmr.msra.gmra.mxu1 %vm249_vm0, %v6118_v31 }
0x19f5   :  { %6269 = vmatpush1.bf16.msra.mxu1 %v9503_v33  ;;  %6292 = vmatprep.mubr.bf16.mxu1 %v9921_v12  ;;  %v5671_v12 = vadd.f32 %v10754_v53, %v10767_v3  ;;  %v8776_v3 = vld [vmem:[%s11063_s8 + $0x2] sm:$0x3] }
0x19f6   :  { %6270 = vmatprep.subr.bf16.mxu1 %v9508_v0  ;;  %v6313_v38 = vrot.slane %v8776_v3, %v10096_v10  ;;  %v6317_v48 = vrot.slane %v8776_v3, %v10093_v9  ;;  %v6446_v0 = vld [vmem:[#allocation13 + $0x598] sm:$0xff] }
0x19f7   :  { %v9602_v8 = vpop.eup %9601 }
0x19f8   :  { %v6117_v59 = vmul.f32 %v9602_v8, %v9598_v34  ;;  %v6638_v8 = vunpack.c.h.s8.bf16 %v6446_v0 }
0x19f9   :  { %6271 = vmatpush1.bf16.msra.mxu1 %v9506_v40  ;;  %v6443_v40 = vld [vmem:[#allocation13 + $0x580] sm:$0xff] }
0x19fa   :  { %v6119_v13 = vpack.c.bf16 %v6117_v59, %v6117_v59  ;;  %6272 = vmatprep.subr.bf16.mxu1 %v9511_v23  ;;  %v6635_v59 = vunpack.c.h.s8.bf16 %v6443_v40 }
0x19fc   :  { %9099 = vmatmul.mubr.msk.bf16.vlgmr.msra.gmra.mxu0 %vm249_vm0, %v6119_v13  ;;  %v6445_v13 = vld [vmem:[#allocation13 + $0x590] sm:$0xff] }
0x19fd   :  { %6273 = vmatpush1.bf16.msra.mxu1 %v9509_v43  ;;  %v6637_v23 = vunpack.c.h.s8.bf16 %v6445_v13 }
0x19fe   :  { %6274 = vmatprep.subr.bf16.mxu1 %v9514_v63  ;;  %v6428_v63 = vld [vmem:[#allocation13 + $0x508] sm:$0xff] }
0x1a01   :  { %6275 = vmatpush1.bf16.msra.mxu1 %v9512_v50  ;;  %v6622_v50 = vunpack.c.l.s8.bf16 %v6446_v0  ;;  %v6507_v0 = vld [vmem:[#allocation13 + $0x780] sm:$0xff] }
0x1a02   :  { %6824 = vmatprep.subr.bf16.mxu1 %v6638_v8 }
0x1a46   :  { %v5983_v25 = vpop.f32.mrf.mxu1 }
0x1a47   :  { %v5992_v26 = vadd.f32 %v5983_v25, %v5669_v18  ;;  %v6621_v18 = vunpack.c.l.s8.bf16 %v6445_v13  ;;  %v6604_v25 = vunpack.c.h.s8.bf16 %v6428_v63 }
0x1a48   :  { %v5985_v35 = vpop.f32.mrf.mxu1 }
0x1a49   :  { %v5993_v42 = vadd.f32 %v5985_v35, %v5671_v12  ;;  %v6429_v35 = vld [vmem:[#allocation13 + $0x510] sm:$0xff] }
0x1a4a   :  { %v5987_v32 = vpop.f32.mrf.mxu1 }
0x1a4b   :  { %v5994_v52 = vadd.f32 %v5987_v32, %v5673_v49  ;;  %v6588_v32 = vunpack.c.l.s8.bf16 %v6428_v63 }
0x1a4c   :  { %v5989_v20 = vpop.f32.mrf.mxu1 }
0x1a4d   :  { %v5995_v51 = vadd.f32 %v5989_v20, %v5675_v47  ;;  %v6412_v20 = vld [vmem:[#allocation13 + $0x488] sm:$0xff] }
0x1a4e   :  { %v6556_v3 = vunpack.c.l.s8.bf16 %v6412_v20 }
0x1ab4   :  { %v6162_v17 = vpop.f32.mrf.mxu1 }
0x1ab6   :  { %v9094_v58 = vpop.f32.mrf.mxu1 }
0x1ab8   :  { %v6165_v60 = vpop.f32.mrf.mxu1 }
0x1ab9   :  { %v6589_v60 = vunpack.c.l.s8.bf16 %v6429_v35 }
0x1aba   :  { %v9095_v29 = vpop.f32.mrf.mxu1 }
0x1abb   :  { %v6572_v29 = vunpack.c.h.s8.bf16 %v6412_v20 }
0x1abc   :  { %v6210_v6 = vpop.f32.mrf.mxu0 }
0x1abd   :  { %v6216_v45 = vpack.c.bf16 %v6210_v6, %v6162_v17  ;;  %v6414_v17 = vld [vmem:[#allocation13 + $0x498] sm:$0xff] }
0x1abe   :  { %v9100_v21 = vpop.f32.mrf.mxu0  ;;  %v6574_v6 = vunpack.c.h.s8.bf16 %v6414_v17 }
0x1abf   :  { %8775 = vmatmul.mubr.msk.bf16.vlgmr.msra.gmra.mxu1 %vm1124_vm2, %v6216_v45  ;;  %v6411_v45 = vld [vmem:[#allocation13 + $0x480] sm:$0xff]  ;;  %v6413_v21 = vld [vmem:[#allocation13 + $0x490] sm:$0xff] }
0x1ac0   :  { %v6213_v1 = vpop.f32.mrf.mxu0  ;;  %6825 = vmatpush1.bf16.msra.mxu1 %v6637_v23 }
0x1ac1   :  { %6826 = vmatprep.subr.bf16.mxu1 %v6622_v50  ;;  %v6571_v1 = vunpack.c.h.s8.bf16 %v6411_v45 }
0x1ac2   :  { %v9101_v53 = vpop.f32.mrf.mxu0 }
0x1ac3   :  { %v6573_v53 = vunpack.c.h.s8.bf16 %v6413_v21 }
0x1ac4   :  { %6827 = vmatpush1.bf16.msra.mxu1 %v6621_v18 }
0x1b7f   :  { %v6294_v4 = vpop.f32.mrf.mxu1 }
0x1b80   :  { %v6303_v34 = vadd.f32 %v6294_v4, %v5992_v26  ;;  %v6427_v26 = vld [vmem:[#allocation13 + $0x500] sm:$0xff]  ;;  %v6396_v4 = vld [vmem:[#allocation13 + $0x408] sm:$0xff] }
0x1b81   :  { %v6296_v54 = vpop.f32.mrf.mxu1  ;;  %v6603_v49 = vunpack.c.h.s8.bf16 %v6427_v26  ;;  %v6587_v58 = vunpack.c.l.s8.bf16 %v6427_v26  ;;  %v6540_v47 = vunpack.c.h.s8.bf16 %v6396_v4 }
0x1b82   :  { %v6320_v44 = vadd.f32 %v6313_v38, %v6303_v34  ;;  %v6304_v41 = vadd.f32 %v6296_v54, %v5993_v42  ;;  %v6605_v42 = vunpack.c.h.s8.bf16 %v6429_v35  ;;  %v6398_v34 = vld [vmem:[#allocation13 + $0x418] sm:$0xff]  ;;  %v6557_v54 = vunpack.c.l.s8.bf16 %v6413_v21 }
0x1b83   :  { %v6298_v5 = vpop.f32.mrf.mxu1 }
0x1b84   :  { %v6321_v56 = vadd.f32 %v6317_v48, %v6304_v41  ;;  %v6305_v19 = vadd.f32 %v6298_v5, %v5994_v52  ;;  %v10823_v46 = vadd.f32 %v6320_v44, %v10605_v61  ;;  %v6444_v61 = vld [vmem:[#allocation13 + $0x588] sm:$0xff]  ;;  %v6542_v44 = vunpack.c.h.s8.bf16 %v6398_v34  ;;  %v6395_v41 = vld [vmem:[#allocation13 + $0x400] sm:$0xff]  ;;  %v6397_v5 = vld [vmem:[#allocation13 + $0x410] sm:$0xff] }
0x1b85   :  { %v6300_v37 = vpop.f32.mrf.mxu1  ;;  %v6620_v43 = vunpack.c.l.s8.bf16 %v6444_v61 }
0x1b86   :  { %v6322_v2 = vadd.f32 %v6313_v38, %v6305_v19  ;;  %v6306_v39 = vadd.f32 %v6300_v37, %v5995_v51  ;;  %v10826_v30 = vadd.f32 %v6321_v56, %v10601_v15  ;;  %v6636_v15 = vunpack.c.h.s8.bf16 %v6444_v61 }
0x1b87   :  { %v6558_v38 = vunpack.c.l.s8.bf16 %v6414_v17  ;;  %v6539_v51 = vunpack.c.h.s8.bf16 %v6395_v41  ;;  %v6541_v56 = vunpack.c.h.s8.bf16 %v6397_v5  ;;  %v6524_v19 = vunpack.c.l.s8.bf16 %v6396_v4  ;;  %v6491_v17 = vld [vmem:[#allocation13 + $0x700] sm:$0xff] }
0x1b88   :  { %v6323_v16 = vadd.f32 %v6317_v48, %v6306_v39  ;;  %v6332_v33 = vadd.f32 %v10826_v30, %v10823_v46  ;;  %v10831_v24 = vadd.f32 %v6322_v2, %v10607_v14  ;;  %v6430_v14 = vld [vmem:[#allocation13 + $0x518] sm:$0xff]  ;;  %6781 = vmatprep.subr.bf16.mxu0 %v6636_v15  ;;  %v6555_v48 = vunpack.c.l.s8.bf16 %v6411_v45  ;;  %v6508_v2 = vld [vmem:[#allocation13 + $0x788] sm:$0xff] }
0x1b89   :  { %6782 = vmatpush1.bf16.msra.mxu0 %v6635_v59  ;;  %v6606_v12 = vunpack.c.h.s8.bf16 %v6430_v14  ;;  %v6590_v52 = vunpack.c.l.s8.bf16 %v6430_v14  ;;  %v6526_v37 = vunpack.c.l.s8.bf16 %v6398_v34  ;;  %v6510_v39 = vld [vmem:[#allocation13 + $0x798] sm:$0xff]  ;;  %v6763_v15 = vunpack.c.h.s8.bf16 %v6507_v0  ;;  %v6475_v34 = vld [vmem:[#allocation13 + $0x680] sm:$0xff] }
0x1b8a   :  { %6333 = vadd.xlane.f32.xlu1 %v6332_v33  ;;  %v10834_v11 = vadd.f32 %v6323_v16, %v10603_v62  ;;  %v6619_v62 = vunpack.c.l.s8.bf16 %v6443_v40  ;;  %6783 = vmatprep.subr.bf16.mxu0 %v6620_v43  ;;  %v6523_v16 = vunpack.c.l.s8.bf16 %v6395_v41  ;;  %v6525_v33 = vunpack.c.l.s8.bf16 %v6397_v5  ;;  %v6509_v40 = vld [vmem:[#allocation13 + $0x790] sm:$0xff] }
0x1b8b   :  { %6828 = vmatprep.subr.bf16.mxu1 %v6606_v12  ;;  %v6766_v61 = vunpack.c.h.s8.bf16 %v6510_v39  ;;  %v6765_v8 = vunpack.c.h.s8.bf16 %v6509_v40  ;;  %v6748_v35 = vunpack.c.l.s8.bf16 %v6508_v2  ;;  %v6715_v21 = vunpack.c.l.s8.bf16 %v6491_v17 }
0x1b8c   :  { %v6335_v31 = vadd.f32 %v10834_v11, %v10831_v24  ;;  %6829 = vmatpush1.bf16.msra.mxu1 %v6605_v42  ;;  %v6747_v42 = vunpack.c.l.s8.bf16 %v6507_v0  ;;  %v6683_v5 = vunpack.c.l.s8.bf16 %v6475_v34 }
0x1b8d   :  { %6784 = vmatpush1.bf16.msra.mxu0 %v6619_v62  ;;  %6830 = vmatprep.subr.bf16.mxu1 %v6590_v52 }
0x1b8e   :  { %6336 = vadd.xlane.f32.xlu0 %v6335_v31  ;;  %6785 = vmatprep.subr.bf16.mxu0 %v6604_v25  ;;  %v6764_v31 = vunpack.c.h.s8.bf16 %v6508_v2 }
0x1b90   :  { %6831 = vmatpush1.bf16.msra.mxu1 %v6589_v60  ;;  %v6731_v60 = vunpack.c.h.s8.bf16 %v6491_v17 }
0x1b91   :  { %6786 = vmatpush1.bf16.msra.mxu0 %v6603_v49  ;;  %6832 = vmatprep.subr.bf16.mxu1 %v6574_v6  ;;  %v6750_v49 = vunpack.c.l.s8.bf16 %v6510_v39  ;;  %v6459_v39 = vld [vmem:[#allocation13 + $0x600] sm:$0xff] }
0x1b92   :  { %6787 = vmatprep.subr.bf16.mxu0 %v6588_v32  ;;  %v6749_v32 = vunpack.c.l.s8.bf16 %v6509_v40  ;;  %v6651_v40 = vunpack.c.l.s8.bf16 %v6459_v39 }
0x1b94   :  { %6833 = vmatpush1.bf16.msra.mxu1 %v6573_v53  ;;  %v6476_v53 = vld [vmem:[#allocation13 + $0x688] sm:$0xff] }
0x1b95   :  { %6788 = vmatpush1.bf16.msra.mxu0 %v6587_v58  ;;  %6834 = vmatprep.subr.bf16.mxu1 %v6558_v38  ;;  %v6493_v58 = vld [vmem:[#allocation13 + $0x710] sm:$0xff]  ;;  %v6700_v38 = vunpack.c.h.s8.bf16 %v6476_v53 }
0x1b96   :  { %6789 = vmatprep.subr.bf16.mxu0 %v6572_v29  ;;  %v6733_v29 = vunpack.c.h.s8.bf16 %v6493_v58 }
0x1b98   :  { %6835 = vmatpush1.bf16.msra.mxu1 %v6557_v54  ;;  %v6699_v54 = vunpack.c.h.s8.bf16 %v6475_v34 }
0x1b99   :  { %6790 = vmatpush1.bf16.msra.mxu0 %v6571_v1  ;;  %6836 = vmatprep.subr.bf16.mxu1 %v6542_v44  ;;  %v6717_v1 = vunpack.c.l.s8.bf16 %v6493_v58  ;;  %v6684_v44 = vunpack.c.l.s8.bf16 %v6476_v53  ;;  %v6449_v53 = vld [vmem:[#allocation13 + $0x5b0] sm:$0xff] }
0x1b9a   :  { %6791 = vmatprep.subr.bf16.mxu0 %v6556_v3  ;;  %v6478_v3 = vld [vmem:[#allocation13 + $0x698] sm:$0xff]  ;;  %v6641_v34 = vunpack.c.h.s8.bf16 %v6449_v53 }
0x1b9b   :  { %v6702_v4 = vunpack.c.h.s8.bf16 %v6478_v3  ;;  %v6686_v41 = vunpack.c.l.s8.bf16 %v6478_v3 }
0x1b9c   :  { %6837 = vmatpush1.bf16.msra.mxu1 %v6541_v56  ;;  %v6460_v56 = vld [vmem:[#allocation13 + $0x608] sm:$0xff] }
0x1b9d   :  { %6792 = vmatpush1.bf16.msra.mxu0 %v6555_v48  ;;  %6838 = vmatprep.subr.bf16.mxu1 %v6526_v37  ;;  %v6477_v48 = vld [vmem:[#allocation13 + $0x690] sm:$0xff]  ;;  %v6668_v37 = vunpack.c.h.s8.bf16 %v6460_v56 }
0x1b9e   :  { %6793 = vmatprep.subr.bf16.mxu0 %v6540_v47  ;;  %v6701_v47 = vunpack.c.h.s8.bf16 %v6477_v48 }
0x1ba0   :  { %6839 = vmatpush1.bf16.msra.mxu1 %v6525_v33  ;;  %v6667_v33 = vunpack.c.h.s8.bf16 %v6459_v39 }
0x1ba1   :  { %6794 = vmatpush1.bf16.msra.mxu0 %v6539_v51  ;;  %6840 = vmatprep.subr.bf16.mxu1 %v6766_v61  ;;  %v6685_v51 = vunpack.c.l.s8.bf16 %v6477_v48  ;;  %v6652_v61 = vunpack.c.l.s8.bf16 %v6460_v56 }
0x1ba2   :  { %6795 = vmatprep.subr.bf16.mxu0 %v6524_v19  ;;  %v6462_v19 = vld [vmem:[#allocation13 + $0x618] sm:$0xff] }
0x1ba3   :  { %v6670_v2 = vunpack.c.h.s8.bf16 %v6462_v19  ;;  %v6654_v0 = vunpack.c.l.s8.bf16 %v6462_v19  ;;  %v6431_v19 = vld [vmem:[#allocation13 + $0x520] sm:$0xff] }
0x1ba4   :  { %6841 = vmatpush2.bf16.msra.mxu1 %v6765_v8  ;;  %v6448_v8 = vld [vmem:[#allocation13 + $0x5a8] sm:$0xff] }
0x1ba5   :  { %6796 = vmatpush1.bf16.msra.mxu0 %v6523_v16  ;;  %6842 = vmatprep.subr.bf16.mxu1 %v6750_v49  ;;  %v6461_v16 = vld [vmem:[#allocation13 + $0x610] sm:$0xff]  ;;  %v6331_v49 = vld [vmem:[#allocation19 + $0x2] sm:$0x3]  ;;  %v6624_v48 = vunpack.c.l.s8.bf16 %v6448_v8 }
0x1ba6   :  { %6797 = vmatprep.subr.bf16.mxu0 %v6764_v31  ;;  %v6669_v31 = vunpack.c.h.s8.bf16 %v6461_v16  ;;  %v6387_v17 = vrot.slane %v6331_v49, %v10093_v9 }
0x1ba8   :  { %6843 = vmatpush2.bf16.msra.mxu1 %v6749_v32 }
0x1ba9   :  { %6798 = vmatpush2.bf16.msra.mxu0 %v6763_v15  ;;  %v6653_v15 = vunpack.c.l.s8.bf16 %v6461_v16 }
0x1baa   :  { %6799 = vmatprep.subr.bf16.mxu0 %v6748_v35 }
0x1bad   :  { %6800 = vmatpush2.bf16.msra.mxu0 %v6747_v42 }
0x1c13   :  { %v6334_v59 = vpop.xlane.xlu1 %6333 }
0x1c14   :  { %v6338_v13 = vmul.f32 0.00390625, %v6334_v59  ;;  %v6450_v59 = vld [vmem:[#allocation13 + $0x5b8] sm:$0xff] }
0x1c16   :  { %v10839_v43 = vsub.f32 %v10823_v46, %v6338_v13  ;;  %v10842_v23 = vsub.f32 %v10826_v30, %v6338_v13  ;;  %v6640_v13 = vunpack.c.h.s8.bf16 %v6448_v8 }
0x1c17   :  { %v6337_v50 = vpop.xlane.xlu0 %6336 }
0x1c18   :  { %v6339_v63 = vmul.f32 0.00390625, %v6337_v50  ;;  %v6344_v14 = vmul.f32 %v10839_v43, %v10839_v43  ;;  %v6345_v62 = vmul.f32 %v10842_v23, %v10842_v23  ;;  %v6642_v50 = vunpack.c.h.s8.bf16 %v6450_v59 }
0x1c1a   :  { %v10849_v18 = vsub.f32 %v10831_v24, %v6339_v63  ;;  %v10852_v25 = vsub.f32 %v10834_v11, %v6339_v63  ;;  %v6348_v12 = vadd.f32 %v6345_v62, %v6344_v14  ;;  %v6492_v24 = vld [vmem:[#allocation13 + $0x708] sm:$0xff]  ;;  %v6494_v11 = vld [vmem:[#allocation13 + $0x718] sm:$0xff] }
0x1c1b   :  { %v6732_v52 = vunpack.c.h.s8.bf16 %v6492_v24  ;;  %v6734_v20 = vunpack.c.h.s8.bf16 %v6494_v11  ;;  %v6716_v6 = vunpack.c.l.s8.bf16 %v6492_v24  ;;  %v6718_v45 = vunpack.c.l.s8.bf16 %v6494_v11 }
0x1c1c   :  { %6349 = vadd.xlane.f32.xlu0 %v6348_v12  ;;  %v6346_v46 = vmul.f32 %v10849_v18, %v10849_v18  ;;  %v6347_v30 = vmul.f32 %v10852_v25, %v10852_v25 }
0x1c1d   :  { %6801 = vmatprep.subr.bf16.mxu0 %v6732_v52  ;;  %6844 = vmatprep.subr.bf16.mxu1 %v6734_v20  ;;  %v6383_v20 = vrot.slane %v6331_v49, %v10096_v10 }
0x1c1e   :  { %v6351_v26 = vadd.f32 %v6347_v30, %v6346_v46  ;;  %6802 = vmatpush2.bf16.msra.mxu0 %v6731_v60  ;;  %6845 = vmatpush2.bf16.msra.mxu1 %v6733_v29 }
0x1c1f   :  { %6803 = vmatprep.subr.bf16.mxu0 %v6716_v6  ;;  %6846 = vmatprep.subr.bf16.mxu1 %v6718_v45 }
0x1c20   :  { %6352 = vadd.xlane.f32.xlu1 %v6351_v26  ;;  %v8777_v26 = vld [vmem:[%s11070_s15 + $0x2] sm:$0x3] }
0x1c21   :  { %v6368_v42 = vrot.slane %v8777_v26, %v10096_v10  ;;  %v6372_v32 = vrot.slane %v8777_v26, %v10093_v9 }
0x1c22   :  { %6804 = vmatpush2.bf16.msra.mxu0 %v6715_v21  ;;  %6847 = vmatpush2.bf16.msra.mxu1 %v6717_v1  ;;  %v6447_v1 = vld [vmem:[#allocation13 + $0x5a0] sm:$0xff] }
0x1c23   :  { %6805 = vmatprep.subr.bf16.mxu0 %v6700_v38  ;;  %6848 = vmatprep.subr.bf16.mxu1 %v6702_v4 }
0x1c26   :  { %6806 = vmatpush2.bf16.msra.mxu0 %v6699_v54  ;;  %6849 = vmatpush2.bf16.msra.mxu1 %v6701_v47  ;;  %v6626_v54 = vunpack.c.l.s8.bf16 %v6450_v59  ;;  %v6432_v47 = vld [vmem:[#allocation13 + $0x528] sm:$0xff]  ;;  %v6415_v59 = vld [vmem:[#allocation13 + $0x4a0] sm:$0xff] }
0x1c27   :  { %6807 = vmatprep.subr.bf16.mxu0 %v6684_v44  ;;  %6850 = vmatprep.subr.bf16.mxu1 %v6686_v41  ;;  %v6434_v44 = vld [vmem:[#allocation13 + $0x538] sm:$0xff]  ;;  %v6623_v41 = vunpack.c.l.s8.bf16 %v6447_v1  ;;  %v6592_v16 = vunpack.c.l.s8.bf16 %v6432_v47 }
0x1c28   :  { %v6610_v56 = vunpack.c.h.s8.bf16 %v6434_v44 }
0x1c2a   :  { %6808 = vmatpush2.bf16.msra.mxu0 %v6683_v5  ;;  %6851 = vmatpush2.bf16.msra.mxu1 %v6685_v51  ;;  %v6625_v5 = vunpack.c.l.s8.bf16 %v6449_v53  ;;  %v6608_v51 = vunpack.c.h.s8.bf16 %v6432_v47  ;;  %v6498_v47 = vld [vmem:[#allocation13 + $0x738] sm:$0xff] }
0x1c2b   :  { %6809 = vmatprep.subr.bf16.mxu0 %v6668_v37  ;;  %6852 = vmatprep.subr.bf16.mxu1 %v6670_v2  ;;  %v6433_v37 = vld [vmem:[#allocation13 + $0x530] sm:$0xff]  ;;  %v6607_v2 = vunpack.c.h.s8.bf16 %v6431_v19 }
0x1c2c   :  { %v6609_v39 = vunpack.c.h.s8.bf16 %v6433_v37 }
0x1c2e   :  { %6810 = vmatpush2.bf16.msra.mxu0 %v6667_v33  ;;  %6853 = vmatpush2.bf16.msra.mxu1 %v6669_v31  ;;  %v6594_v33 = vunpack.c.l.s8.bf16 %v6434_v44  ;;  %v6416_v31 = vld [vmem:[#allocation13 + $0x4a8] sm:$0xff] }
0x1c2f   :  { %6811 = vmatprep.subr.bf16.mxu0 %v6652_v61  ;;  %6854 = vmatprep.subr.bf16.mxu1 %v6654_v0  ;;  %v6418_v61 = vld [vmem:[#allocation13 + $0x4b8] sm:$0xff]  ;;  %v6591_v0 = vunpack.c.l.s8.bf16 %v6431_v19  ;;  %v6497_v19 = vld [vmem:[#allocation13 + $0x730] sm:$0xff] }
0x1c30   :  { %v6578_v8 = vunpack.c.h.s8.bf16 %v6418_v61 }
0x1c32   :  { %6812 = vmatpush2.bf16.msra.mxu0 %v6651_v40  ;;  %6855 = vmatpush2.bf16.msra.mxu1 %v6653_v15  ;;  %v6593_v40 = vunpack.c.l.s8.bf16 %v6433_v37  ;;  %v6576_v15 = vunpack.c.h.s8.bf16 %v6416_v31 }
0x1c33   :  { %6867 = vmatprep.subr.bf16.mxu0 %v6640_v13  ;;  %6910 = vmatprep.subr.bf16.mxu1 %v6642_v50  ;;  %v6417_v13 = vld [vmem:[#allocation13 + $0x4b0] sm:$0xff]  ;;  %v6575_v50 = vunpack.c.h.s8.bf16 %v6415_v59 }
0x1c34   :  { %v6561_v26 = vunpack.c.l.s8.bf16 %v6417_v13 }
0x1ca5   :  { %v6350_v63 = vpop.xlane.xlu0 %6349 }
0x1ca6   :  { %v6354_v14 = vmul.f32 0.00390625, %v6350_v63  ;;  %v6577_v63 = vunpack.c.h.s8.bf16 %v6417_v13 }
0x1ca8   :  { %v6356_v62 = vadd.f32 1e-05, %v6354_v14  ;;  %v6560_v14 = vunpack.c.l.s8.bf16 %v6416_v31  ;;  %v6482_v31 = vld [vmem:[#allocation13 + $0x6b8] sm:$0xff] }
0x1ca9   :  { %v6353_v12 = vpop.xlane.xlu1 %6352 }
0x1caa   :  { %9603 = vrsqrt.f32 %v6356_v62  ;;  %v6355_v46 = vmul.f32 0.00390625, %v6353_v12  ;;  %v6562_v62 = vunpack.c.l.s8.bf16 %v6418_v61  ;;  %v6400_v12 = vld [vmem:[#allocation13 + $0x428] sm:$0xff] }
0x1cac   :  { %v6357_v30 = vadd.f32 1e-05, %v6355_v46  ;;  %v6402_v46 = vld [vmem:[#allocation13 + $0x438] sm:$0xff] }
0x1cad   :  { %v6546_v49 = vunpack.c.h.s8.bf16 %v6402_v46 }
0x1cae   :  { %9605 = vrsqrt.f32 %v6357_v30  ;;  %v6559_v30 = vunpack.c.l.s8.bf16 %v6415_v59  ;;  %v6481_v59 = vld [vmem:[#allocation13 + $0x6b0] sm:$0xff] }
0x1cb7   :  { %v9604_v35 = vpop.eup %9603 }
0x1cb8   :  { %v6360_v24 = vmul.f32 %v9604_v35, %v10839_v43  ;;  %v6361_v11 = vmul.f32 %v9604_v35, %v10842_v23  ;;  %v6544_v35 = vunpack.c.h.s8.bf16 %v6400_v12 }
0x1cba   :  { %v6375_v58 = vmul.f32 %v6368_v42, %v6360_v24  ;;  %v6376_v60 = vmul.f32 %v6372_v32, %v6361_v11 }
0x1cbb   :  { %v9606_v52 = vpop.eup %9605 }
0x1cbc   :  { %v6362_v29 = vmul.f32 %v9606_v52, %v10849_v18  ;;  %v6363_v6 = vmul.f32 %v9606_v52, %v10852_v25  ;;  %v10869_v3 = vadd.f32 %v6383_v20, %v6375_v58  ;;  %v10871_v43 = vadd.f32 %v6387_v17, %v6376_v60  ;;  %v6514_v58 = vld [vmem:[#allocation13 + $0x7b8] sm:$0xff] }
0x1cbd   :  { %v6639_v25 = vunpack.c.h.s8.bf16 %v6447_v1  ;;  %v6528_v52 = vunpack.c.l.s8.bf16 %v6400_v12  ;;  %v6513_v1 = vld [vmem:[#allocation13 + $0x7b0] sm:$0xff]  ;;  %v6466_v12 = vld [vmem:[#allocation13 + $0x638] sm:$0xff] }
0x1cbe   :  { %v6377_v45 = vmul.f32 %v6368_v42, %v6362_v29  ;;  %v6378_v21 = vmul.f32 %v6372_v32, %v6363_v6  ;;  %v6399_v42 = vld [vmem:[#allocation13 + $0x420] sm:$0xff]  ;;  %v6401_v32 = vld [vmem:[#allocation13 + $0x430] sm:$0xff] }
0x1cbf   :  { %v6543_v24 = vunpack.c.h.s8.bf16 %v6399_v42  ;;  %v6545_v11 = vunpack.c.h.s8.bf16 %v6401_v32  ;;  %v6527_v60 = vunpack.c.l.s8.bf16 %v6399_v42  ;;  %v6529_v29 = vunpack.c.l.s8.bf16 %v6401_v32  ;;  %v6465_v42 = vld [vmem:[#allocation13 + $0x630] sm:$0xff] }
0x1cc0   :  { %v10873_v23 = vadd.f32 %v6383_v20, %v6377_v45  ;;  %v10875_v38 = vadd.f32 %v6387_v17, %v6378_v21  ;;  %v6530_v20 = vunpack.c.l.s8.bf16 %v6402_v46  ;;  %v6512_v17 = vld [vmem:[#allocation13 + $0x7a8] sm:$0xff]  ;;  %v6770_v45 = vunpack.c.h.s8.bf16 %v6514_v58  ;;  %v6511_v21 = vld [vmem:[#allocation13 + $0x7a0] sm:$0xff] }
0x1cc1   :  { %v6768_v6 = vunpack.c.h.s8.bf16 %v6512_v17  ;;  %v6767_v53 = vunpack.c.h.s8.bf16 %v6511_v21  ;;  %v6751_v44 = vunpack.c.l.s8.bf16 %v6511_v21  ;;  %v6453_v21 = vld [vmem:[#allocation13 + $0x5d0] sm:$0xff] }
0x1cc2   :  { %v10879_v4 = vpack.c.bf16 %v10873_v23, %v10869_v3  ;;  %v10883_v18 = vpack.c.bf16 %v10875_v38, %v10871_v43 }
0x1cc4   :  { %6813 = vmatprep.mubr.bf16.mxu0 %v10883_v18  ;;  %6856 = vmatprep.mubr.bf16.mxu1 %v10883_v18 }
0x1cc5   :  { %6814 = vmatmul.mubr.bf16.vlgmr.msra.gmra.mxu0 %v10879_v4  ;;  %6857 = vmatmul.mubr.bf16.vlgmr.msra.gmra.mxu1 %v10879_v4 }
0x1cc6   :  { %6868 = vmatpush1.bf16.msra.mxu0 %v6639_v25  ;;  %6911 = vmatpush1.bf16.msra.mxu1 %v6641_v34  ;;  %v6769_v25 = vunpack.c.h.s8.bf16 %v6513_v1  ;;  %v6752_v34 = vunpack.c.l.s8.bf16 %v6512_v17  ;;  %v6454_v17 = vld [vmem:[#allocation13 + $0x5d8] sm:$0xff] }
0x1cc7   :  { %6899 = vmatprep.mubr.bf16.mxu0 %v10883_v18  ;;  %6942 = vmatprep.mubr.bf16.mxu1 %v10883_v18 }
0x1cc8   :  { %6869 = vmatprep.subr.bf16.mxu0 %v6624_v48  ;;  %6912 = vmatprep.subr.bf16.mxu1 %v6626_v54  ;;  %v6754_v48 = vunpack.c.l.s8.bf16 %v6514_v58  ;;  %v6496_v54 = vld [vmem:[#allocation13 + $0x728] sm:$0xff] }
0x1cca   :  { %6870 = vmatpush1.bf16.msra.mxu0 %v6623_v41  ;;  %6913 = vmatpush1.bf16.msra.mxu1 %v6625_v5  ;;  %v6753_v41 = vunpack.c.l.s8.bf16 %v6513_v1  ;;  %v6736_v5 = vunpack.c.h.s8.bf16 %v6496_v54 }
0x1ccb   :  { %6871 = vmatprep.subr.bf16.mxu0 %v6608_v51  ;;  %6914 = vmatprep.subr.bf16.mxu1 %v6610_v56  ;;  %v6738_v51 = vunpack.c.h.s8.bf16 %v6498_v47  ;;  %v6495_v56 = vld [vmem:[#allocation13 + $0x720] sm:$0xff] }
0x1ccc   :  { %v6735_v37 = vunpack.c.h.s8.bf16 %v6495_v56  ;;  %v6719_v61 = vunpack.c.l.s8.bf16 %v6495_v56  ;;  %v6437_v56 = vld [vmem:[#allocation13 + $0x550] sm:$0xff] }
0x1cce   :  { %6872 = vmatpush1.bf16.msra.mxu0 %v6607_v2  ;;  %6915 = vmatpush1.bf16.msra.mxu1 %v6609_v39  ;;  %v6737_v2 = vunpack.c.h.s8.bf16 %v6497_v19  ;;  %v6720_v39 = vunpack.c.l.s8.bf16 %v6496_v54  ;;  %v6438_v54 = vld [vmem:[#allocation13 + $0x558] sm:$0xff] }
0x1ccf   :  { %6873 = vmatprep.subr.bf16.mxu0 %v6592_v16  ;;  %6916 = vmatprep.subr.bf16.mxu1 %v6594_v33  ;;  %v6722_v16 = vunpack.c.l.s8.bf16 %v6498_v47  ;;  %v6480_v33 = vld [vmem:[#allocation13 + $0x6a8] sm:$0xff] }
0x1cd2   :  { %6874 = vmatpush1.bf16.msra.mxu0 %v6591_v0  ;;  %6917 = vmatpush1.bf16.msra.mxu1 %v6593_v40  ;;  %v6721_v0 = vunpack.c.l.s8.bf16 %v6497_v19  ;;  %v6704_v40 = vunpack.c.h.s8.bf16 %v6480_v33 }
0x1cd3   :  { %6875 = vmatprep.subr.bf16.mxu0 %v6576_v15  ;;  %6918 = vmatprep.subr.bf16.mxu1 %v6578_v8  ;;  %v6706_v15 = vunpack.c.h.s8.bf16 %v6482_v31  ;;  %v6479_v8 = vld [vmem:[#allocation13 + $0x6a0] sm:$0xff] }
0x1cd4   :  { %v6703_v13 = vunpack.c.h.s8.bf16 %v6479_v8  ;;  %v6687_v46 = vunpack.c.l.s8.bf16 %v6479_v8  ;;  %v6421_v8 = vld [vmem:[#allocation13 + $0x4d0] sm:$0xff] }
0x1cd6   :  { %6876 = vmatpush1.bf16.msra.mxu0 %v6575_v50  ;;  %6919 = vmatpush1.bf16.msra.mxu1 %v6577_v63  ;;  %v6705_v50 = vunpack.c.h.s8.bf16 %v6481_v59  ;;  %v6688_v63 = vunpack.c.l.s8.bf16 %v6480_v33  ;;  %v6422_v33 = vld [vmem:[#allocation13 + $0x4d8] sm:$0xff] }
0x1cd7   :  { %6877 = vmatprep.subr.bf16.mxu0 %v6560_v14  ;;  %6920 = vmatprep.subr.bf16.mxu1 %v6562_v62  ;;  %v6690_v14 = vunpack.c.l.s8.bf16 %v6482_v31  ;;  %v6464_v62 = vld [vmem:[#allocation13 + $0x628] sm:$0xff] }
0x1cda   :  { %6878 = vmatpush1.bf16.msra.mxu0 %v6559_v30  ;;  %6921 = vmatpush1.bf16.msra.mxu1 %v6561_v26  ;;  %v6689_v30 = vunpack.c.l.s8.bf16 %v6481_v59  ;;  %v6672_v26 = vunpack.c.h.s8.bf16 %v6464_v62 }
0x1cdb   :  { %6879 = vmatprep.subr.bf16.mxu0 %v6544_v35  ;;  %6922 = vmatprep.subr.bf16.mxu1 %v6546_v49  ;;  %v6674_v35 = vunpack.c.h.s8.bf16 %v6466_v12  ;;  %v6463_v49 = vld [vmem:[#allocation13 + $0x620] sm:$0xff] }
0x1cdc   :  { %v6671_v32 = vunpack.c.h.s8.bf16 %v6463_v49  ;;  %v6655_v58 = vunpack.c.l.s8.bf16 %v6463_v49  ;;  %v6405_v49 = vld [vmem:[#allocation13 + $0x450] sm:$0xff] }
0x1cde   :  { %6880 = vmatpush1.bf16.msra.mxu0 %v6543_v24  ;;  %6923 = vmatpush1.bf16.msra.mxu1 %v6545_v11  ;;  %v6673_v24 = vunpack.c.h.s8.bf16 %v6465_v42  ;;  %v6656_v11 = vunpack.c.l.s8.bf16 %v6464_v62  ;;  %v6406_v62 = vld [vmem:[#allocation13 + $0x458] sm:$0xff] }
0x1cdf   :  { %6881 = vmatprep.subr.bf16.mxu0 %v6528_v52  ;;  %6924 = vmatprep.subr.bf16.mxu1 %v6530_v20  ;;  %v6658_v52 = vunpack.c.l.s8.bf16 %v6466_v12  ;;  %v6452_v20 = vld [vmem:[#allocation13 + $0x5c8] sm:$0xff] }
0x1ce2   :  { %6882 = vmatpush1.bf16.msra.mxu0 %v6527_v60  ;;  %6925 = vmatpush1.bf16.msra.mxu1 %v6529_v29  ;;  %v6657_v60 = vunpack.c.l.s8.bf16 %v6465_v42  ;;  %v6644_v29 = vunpack.c.h.s8.bf16 %v6452_v20 }
0x1ce3   :  { %6883 = vmatprep.subr.bf16.mxu0 %v6768_v6  ;;  %6926 = vmatprep.subr.bf16.mxu1 %v6770_v45  ;;  %v6646_v6 = vunpack.c.h.s8.bf16 %v6454_v17  ;;  %v6451_v45 = vld [vmem:[#allocation13 + $0x5c0] sm:$0xff] }
0x1ce4   :  { %v6643_v1 = vunpack.c.h.s8.bf16 %v6451_v45  ;;  %v6627_v47 = vunpack.c.l.s8.bf16 %v6451_v45  ;;  %v6517_v45 = vld [vmem:[#allocation13 + $0x7d0] sm:$0xff] }
0x1ce6   :  { %6884 = vmatpush2.bf16.msra.mxu0 %v6767_v53  ;;  %6927 = vmatpush2.bf16.msra.mxu1 %v6769_v25  ;;  %v6645_v53 = vunpack.c.h.s8.bf16 %v6453_v21  ;;  %v6628_v25 = vunpack.c.l.s8.bf16 %v6452_v20  ;;  %v6518_v20 = vld [vmem:[#allocation13 + $0x7d8] sm:$0xff] }
0x1ce7   :  { %6885 = vmatprep.subr.bf16.mxu0 %v6752_v34  ;;  %6928 = vmatprep.subr.bf16.mxu1 %v6754_v48  ;;  %v6630_v34 = vunpack.c.l.s8.bf16 %v6454_v17  ;;  %v6436_v48 = vld [vmem:[#allocation13 + $0x548] sm:$0xff] }
0x1cea   :  { %6886 = vmatpush2.bf16.msra.mxu0 %v6751_v44  ;;  %6929 = vmatpush2.bf16.msra.mxu1 %v6753_v41  ;;  %v6629_v44 = vunpack.c.l.s8.bf16 %v6453_v21  ;;  %v6612_v41 = vunpack.c.h.s8.bf16 %v6436_v48 }
0x1ceb   :  { %6887 = vmatprep.subr.bf16.mxu0 %v6736_v5  ;;  %6930 = vmatprep.subr.bf16.mxu1 %v6738_v51  ;;  %v6435_v5 = vld [vmem:[#allocation13 + $0x540] sm:$0xff]  ;;  %v6614_v51 = vunpack.c.h.s8.bf16 %v6438_v54 }
0x1cec   :  { %v6611_v19 = vunpack.c.h.s8.bf16 %v6435_v5  ;;  %v6595_v31 = vunpack.c.l.s8.bf16 %v6435_v5 }
0x1cee   :  { %6888 = vmatpush2.bf16.msra.mxu0 %v6735_v37  ;;  %6931 = vmatpush2.bf16.msra.mxu1 %v6737_v2  ;;  %v6613_v37 = vunpack.c.h.s8.bf16 %v6437_v56  ;;  %v6596_v2 = vunpack.c.l.s8.bf16 %v6436_v48  ;;  %v6502_v48 = vld [vmem:[#allocation13 + $0x758] sm:$0xff] }
0x1cef   :  { %6889 = vmatprep.subr.bf16.mxu0 %v6720_v39  ;;  %6932 = vmatprep.subr.bf16.mxu1 %v6722_v16  ;;  %v6598_v39 = vunpack.c.l.s8.bf16 %v6438_v54  ;;  %v6420_v16 = vld [vmem:[#allocation13 + $0x4c8] sm:$0xff]  ;;  %v6742_v5 = vunpack.c.h.s8.bf16 %v6502_v48 }
0x1cf2   :  { %6890 = vmatpush2.bf16.msra.mxu0 %v6719_v61  ;;  %6933 = vmatpush2.bf16.msra.mxu1 %v6721_v0  ;;  %v6597_v61 = vunpack.c.l.s8.bf16 %v6437_v56  ;;  %v6580_v0 = vunpack.c.h.s8.bf16 %v6420_v16 }
0x1cf3   :  { %6891 = vmatprep.subr.bf16.mxu0 %v6704_v40  ;;  %6934 = vmatprep.subr.bf16.mxu1 %v6706_v15  ;;  %v6419_v40 = vld [vmem:[#allocation13 + $0x4c0] sm:$0xff]  ;;  %v6582_v15 = vunpack.c.h.s8.bf16 %v6422_v33 }
0x1cf4   :  { %v6579_v59 = vunpack.c.h.s8.bf16 %v6419_v40  ;;  %v6563_v12 = vunpack.c.l.s8.bf16 %v6419_v40 }
0x1cf6   :  { %6892 = vmatpush2.bf16.msra.mxu0 %v6703_v13  ;;  %6935 = vmatpush2.bf16.msra.mxu1 %v6705_v50  ;;  %v6581_v13 = vunpack.c.h.s8.bf16 %v6421_v8  ;;  %v6564_v50 = vunpack.c.l.s8.bf16 %v6420_v16  ;;  %v6486_v16 = vld [vmem:[#allocation13 + $0x6d8] sm:$0xff] }
0x1cf7   :  { %6893 = vmatprep.subr.bf16.mxu0 %v6688_v63  ;;  %6936 = vmatprep.subr.bf16.mxu1 %v6690_v14  ;;  %v6566_v63 = vunpack.c.l.s8.bf16 %v6422_v33  ;;  %v6404_v14 = vld [vmem:[#allocation13 + $0x448] sm:$0xff]  ;;  %v6710_v40 = vunpack.c.h.s8.bf16 %v6486_v16 }
0x1cfa   :  { %6894 = vmatpush2.bf16.msra.mxu0 %v6687_v46  ;;  %6937 = vmatpush2.bf16.msra.mxu1 %v6689_v30  ;;  %v6565_v46 = vunpack.c.l.s8.bf16 %v6421_v8  ;;  %v6548_v30 = vunpack.c.h.s8.bf16 %v6404_v14 }
0x1cfb   :  { %6895 = vmatprep.subr.bf16.mxu0 %v6672_v26  ;;  %6938 = vmatprep.subr.bf16.mxu1 %v6674_v35  ;;  %v6403_v26 = vld [vmem:[#allocation13 + $0x440] sm:$0xff]  ;;  %v6550_v35 = vunpack.c.h.s8.bf16 %v6406_v62 }
0x1cfc   :  { %v6547_v42 = vunpack.c.h.s8.bf16 %v6403_v26  ;;  %v6531_v17 = vunpack.c.l.s8.bf16 %v6403_v26 }
0x1cfe   :  { %6896 = vmatpush2.bf16.msra.mxu0 %v6671_v32  ;;  %6939 = vmatpush2.bf16.msra.mxu1 %v6673_v24  ;;  %v6549_v32 = vunpack.c.h.s8.bf16 %v6405_v49  ;;  %v6532_v24 = vunpack.c.l.s8.bf16 %v6404_v14  ;;  %v6470_v14 = vld [vmem:[#allocation13 + $0x658] sm:$0xff] }
0x1cff   :  { %6897 = vmatprep.subr.bf16.mxu0 %v6656_v11  ;;  %6940 = vmatprep.subr.bf16.mxu1 %v6658_v52  ;;  %v6534_v11 = vunpack.c.l.s8.bf16 %v6406_v62  ;;  %v6516_v52 = vld [vmem:[#allocation13 + $0x7c8] sm:$0xff]  ;;  %v6678_v26 = vunpack.c.h.s8.bf16 %v6470_v14 }
0x1d02   :  { %6898 = vmatpush2.bf16.msra.mxu0 %v6655_v58  ;;  %6941 = vmatpush2.bf16.msra.mxu1 %v6657_v60  ;;  %v6533_v58 = vunpack.c.l.s8.bf16 %v6405_v49  ;;  %v6772_v60 = vunpack.c.h.s8.bf16 %v6516_v52 }
0x1d03   :  { %6953 = vmatprep.subr.bf16.mxu0 %v6644_v29  ;;  %6996 = vmatprep.subr.bf16.mxu1 %v6646_v6  ;;  %v6515_v29 = vld [vmem:[#allocation13 + $0x7c0] sm:$0xff]  ;;  %v6774_v6 = vunpack.c.h.s8.bf16 %v6518_v20 }
0x1d04   :  { %v6771_v21 = vunpack.c.h.s8.bf16 %v6515_v29  ;;  %v6755_v54 = vunpack.c.l.s8.bf16 %v6515_v29 }
0x1d05   :  { %6900 = vmatmul.mubr.bf16.vlgmr.msra.gmra.mxu0 %v10879_v4  ;;  %6943 = vmatmul.mubr.bf16.vlgmr.msra.gmra.mxu1 %v10879_v4 }
0x1d06   :  { %6954 = vmatpush1.bf16.msra.mxu0 %v6643_v1  ;;  %6985 = vmatprep.mubr.bf16.mxu0 %v10883_v18  ;;  %v6773_v1 = vunpack.c.h.s8.bf16 %v6517_v45 }
0x1d07   :  { %6997 = vmatpush1.bf16.msra.mxu1 %v6645_v53  ;;  %7028 = vmatprep.mubr.bf16.mxu1 %v10883_v18  ;;  %v6756_v53 = vunpack.c.l.s8.bf16 %v6516_v52  ;;  %v6458_v52 = vld [vmem:[#allocation13 + $0x5f8] sm:$0xff] }
0x1d08   :  { %6955 = vmatprep.subr.bf16.mxu0 %v6628_v25  ;;  %6998 = vmatprep.subr.bf16.mxu1 %v6630_v34  ;;  %v6758_v25 = vunpack.c.l.s8.bf16 %v6518_v20  ;;  %v6500_v34 = vld [vmem:[#allocation13 + $0x748] sm:$0xff]  ;;  %v6650_v29 = vunpack.c.h.s8.bf16 %v6458_v52 }
0x1d0a   :  { %6956 = vmatpush1.bf16.msra.mxu0 %v6627_v47  ;;  %v6757_v47 = vunpack.c.l.s8.bf16 %v6517_v45 }
0x1d0b   :  { %6999 = vmatpush1.bf16.msra.mxu1 %v6629_v44  ;;  %6957 = vmatprep.subr.bf16.mxu0 %v6612_v41  ;;  %v6740_v44 = vunpack.c.h.s8.bf16 %v6500_v34  ;;  %v6499_v41 = vld [vmem:[#allocation13 + $0x740] sm:$0xff] }
0x1d0c   :  { %7000 = vmatprep.subr.bf16.mxu1 %v6614_v51  ;;  %v6501_v51 = vld [vmem:[#allocation13 + $0x750] sm:$0xff]  ;;  %v6739_v56 = vunpack.c.h.s8.bf16 %v6499_v41  ;;  %v6723_v33 = vunpack.c.l.s8.bf16 %v6499_v41 }
0x1d0e   :  { %6958 = vmatpush1.bf16.msra.mxu0 %v6611_v19  ;;  %v6741_v19 = vunpack.c.h.s8.bf16 %v6501_v51 }
0x1d0f   :  { %7001 = vmatpush1.bf16.msra.mxu1 %v6613_v37  ;;  %6959 = vmatprep.subr.bf16.mxu0 %v6596_v2  ;;  %v6724_v37 = vunpack.c.l.s8.bf16 %v6500_v34  ;;  %v6726_v2 = vunpack.c.l.s8.bf16 %v6502_v48  ;;  %v6442_v34 = vld [vmem:[#allocation13 + $0x578] sm:$0xff] }
0x1d10   :  { %7002 = vmatprep.subr.bf16.mxu1 %v6598_v39  ;;  %v6484_v39 = vld [vmem:[#allocation13 + $0x6c8] sm:$0xff]  ;;  %v6618_v41 = vunpack.c.h.s8.bf16 %v6442_v34 }
0x1d12   :  { %6960 = vmatpush1.bf16.msra.mxu0 %v6595_v31  ;;  %v6725_v31 = vunpack.c.l.s8.bf16 %v6501_v51 }
0x1d13   :  { %7003 = vmatpush1.bf16.msra.mxu1 %v6597_v61  ;;  %6961 = vmatprep.subr.bf16.mxu0 %v6580_v0  ;;  %v6708_v61 = vunpack.c.h.s8.bf16 %v6484_v39  ;;  %v6483_v0 = vld [vmem:[#allocation13 + $0x6c0] sm:$0xff] }
0x1d14   :  { %7004 = vmatprep.subr.bf16.mxu1 %v6582_v15  ;;  %v6485_v15 = vld [vmem:[#allocation13 + $0x6d0] sm:$0xff]  ;;  %v6707_v8 = vunpack.c.h.s8.bf16 %v6483_v0  ;;  %v6691_v62 = vunpack.c.l.s8.bf16 %v6483_v0 }
0x1d15   :  { %v6425_v0 = vld [vmem:[#allocation13 + $0x4f0] sm:$0xff] }
0x1d16   :  { %6962 = vmatpush1.bf16.msra.mxu0 %v6579_v59  ;;  %v6709_v59 = vunpack.c.h.s8.bf16 %v6485_v15 }
0x1d17   :  { %7005 = vmatpush1.bf16.msra.mxu1 %v6581_v13  ;;  %6963 = vmatprep.subr.bf16.mxu0 %v6564_v50  ;;  %v6692_v13 = vunpack.c.l.s8.bf16 %v6484_v39  ;;  %v6694_v50 = vunpack.c.l.s8.bf16 %v6486_v16  ;;  %v6426_v39 = vld [vmem:[#allocation13 + $0x4f8] sm:$0xff] }
0x1d18   :  { %7006 = vmatprep.subr.bf16.mxu1 %v6566_v63  ;;  %v6468_v63 = vld [vmem:[#allocation13 + $0x648] sm:$0xff] }
0x1d1a   :  { %6964 = vmatpush1.bf16.msra.mxu0 %v6563_v12  ;;  %v6693_v12 = vunpack.c.l.s8.bf16 %v6485_v15  ;;  %v6585_v15 = vunpack.c.h.s8.bf16 %v6425_v0 }
0x1d1b   :  { %7007 = vmatpush1.bf16.msra.mxu1 %v6565_v46  ;;  %6965 = vmatprep.subr.bf16.mxu0 %v6548_v30  ;;  %v6676_v46 = vunpack.c.h.s8.bf16 %v6468_v63  ;;  %v6467_v30 = vld [vmem:[#allocation13 + $0x640] sm:$0xff] }
0x1d1c   :  { %7008 = vmatprep.subr.bf16.mxu1 %v6550_v35  ;;  %v6469_v35 = vld [vmem:[#allocation13 + $0x650] sm:$0xff]  ;;  %v6675_v49 = vunpack.c.h.s8.bf16 %v6467_v30  ;;  %v6659_v20 = vunpack.c.l.s8.bf16 %v6467_v30 }
0x1d1d   :  { %v6409_v30 = vld [vmem:[#allocation13 + $0x470] sm:$0xff] }
0x1d1e   :  { %6966 = vmatpush1.bf16.msra.mxu0 %v6547_v42  ;;  %v6677_v42 = vunpack.c.h.s8.bf16 %v6469_v35 }
0x1d1f   :  { %7009 = vmatpush1.bf16.msra.mxu1 %v6549_v32  ;;  %6967 = vmatprep.subr.bf16.mxu0 %v6532_v24  ;;  %v6660_v32 = vunpack.c.l.s8.bf16 %v6468_v63  ;;  %v6662_v24 = vunpack.c.l.s8.bf16 %v6470_v14  ;;  %v6569_v14 = vunpack.c.l.s8.bf16 %v6425_v0 }
0x1d20   :  { %7010 = vmatprep.subr.bf16.mxu1 %v6534_v11  ;;  %v6456_v11 = vld [vmem:[#allocation13 + $0x5e8] sm:$0xff] }
0x1d22   :  { %6968 = vmatpush1.bf16.msra.mxu0 %v6531_v17  ;;  %v6661_v17 = vunpack.c.l.s8.bf16 %v6469_v35  ;;  %v6553_v35 = vunpack.c.h.s8.bf16 %v6409_v30 }
0x1d23   :  { %7011 = vmatpush1.bf16.msra.mxu1 %v6533_v58  ;;  %6969 = vmatprep.subr.bf16.mxu0 %v6772_v60  ;;  %v6648_v58 = vunpack.c.h.s8.bf16 %v6456_v11  ;;  %v6455_v60 = vld [vmem:[#allocation13 + $0x5e0] sm:$0xff] }
0x1d24   :  { %7012 = vmatprep.subr.bf16.mxu1 %v6774_v6  ;;  %v6457_v6 = vld [vmem:[#allocation13 + $0x5f0] sm:$0xff]  ;;  %v6647_v45 = vunpack.c.h.s8.bf16 %v6455_v60  ;;  %v6631_v48 = vunpack.c.l.s8.bf16 %v6455_v60 }
0x1d25   :  { %v6521_v60 = vld [vmem:[#allocation13 + $0x7f0] sm:$0xff] }
0x1d26   :  { %6970 = vmatpush2.bf16.msra.mxu0 %v6771_v21  ;;  %v6649_v21 = vunpack.c.h.s8.bf16 %v6457_v6 }
0x1d27   :  { %7013 = vmatpush2.bf16.msra.mxu1 %v6773_v1  ;;  %6971 = vmatprep.subr.bf16.mxu0 %v6756_v53  ;;  %v6632_v1 = vunpack.c.l.s8.bf16 %v6456_v11  ;;  %v6440_v53 = vld [vmem:[#allocation13 + $0x568] sm:$0xff] }
0x1d28   :  { %7014 = vmatprep.subr.bf16.mxu1 %v6758_v25  ;;  %v6634_v25 = vunpack.c.l.s8.bf16 %v6458_v52  ;;  %v6537_v52 = vunpack.c.l.s8.bf16 %v6409_v30 }
0x1d2a   :  { %6972 = vmatpush2.bf16.msra.mxu0 %v6755_v54  ;;  %v6633_v54 = vunpack.c.l.s8.bf16 %v6457_v6  ;;  %v6777_v6 = vunpack.c.h.s8.bf16 %v6521_v60 }
0x1d2b   :  { %7015 = vmatpush2.bf16.msra.mxu1 %v6757_v47  ;;  %6973 = vmatprep.subr.bf16.mxu0 %v6740_v44  ;;  %v6616_v47 = vunpack.c.h.s8.bf16 %v6440_v53  ;;  %v6439_v44 = vld [vmem:[#allocation13 + $0x560] sm:$0xff] }
0x1d2c   :  { %7016 = vmatprep.subr.bf16.mxu1 %v6742_v5  ;;  %v6441_v5 = vld [vmem:[#allocation13 + $0x570] sm:$0xff]  ;;  %v6615_v51 = vunpack.c.h.s8.bf16 %v6439_v44  ;;  %v6599_v16 = vunpack.c.l.s8.bf16 %v6439_v44 }
0x1d2d   :  { %v6505_v44 = vld [vmem:[#allocation13 + $0x770] sm:$0xff] }
0x1d2e   :  { %6974 = vmatpush2.bf16.msra.mxu0 %v6739_v56  ;;  %v6617_v56 = vunpack.c.h.s8.bf16 %v6441_v5 }
0x1d2f   :  { %7017 = vmatpush2.bf16.msra.mxu1 %v6741_v19  ;;  %6975 = vmatprep.subr.bf16.mxu0 %v6724_v37  ;;  %v6600_v19 = vunpack.c.l.s8.bf16 %v6440_v53  ;;  %v6602_v37 = vunpack.c.l.s8.bf16 %v6442_v34  ;;  %v6506_v53 = vld [vmem:[#allocation13 + $0x778] sm:$0xff]  ;;  %v6761_v34 = vunpack.c.l.s8.bf16 %v6521_v60  ;;  %v10902_v60 = vld [vmem:[%s11065_s10 + $0x10] sm:$0xff] }
0x1d30   :  { %7018 = vmatprep.subr.bf16.mxu1 %v6726_v2  ;;  %v6424_v2 = vld [vmem:[#allocation13 + $0x4e8] sm:$0xff] }
0x1d32   :  { %6976 = vmatpush2.bf16.msra.mxu0 %v6723_v33  ;;  %v6601_v33 = vunpack.c.l.s8.bf16 %v6441_v5  ;;  %v6745_v5 = vunpack.c.h.s8.bf16 %v6505_v44 }
0x1d33   :  { %7019 = vmatpush2.bf16.msra.mxu1 %v6725_v31  ;;  %6977 = vmatprep.subr.bf16.mxu0 %v6708_v61  ;;  %v6423_v31 = vld [vmem:[#allocation13 + $0x4e0] sm:$0xff]  ;;  %v6586_v61 = vunpack.c.h.s8.bf16 %v6426_v39 }
0x1d34   :  { %7020 = vmatprep.subr.bf16.mxu1 %v6710_v40  ;;  %v6583_v40 = vunpack.c.h.s8.bf16 %v6423_v31  ;;  %v6567_v63 = vunpack.c.l.s8.bf16 %v6423_v31  ;;  %v6489_v31 = vld [vmem:[#allocation13 + $0x6f0] sm:$0xff] }
0x1d35   :  { %v6713_v0 = vunpack.c.h.s8.bf16 %v6489_v31 }
0x1d36   :  { %6978 = vmatpush2.bf16.msra.mxu0 %v6707_v8  ;;  %v6568_v8 = vunpack.c.l.s8.bf16 %v6424_v2 }
0x1d37   :  { %7021 = vmatpush2.bf16.msra.mxu1 %v6709_v59  ;;  %6979 = vmatprep.subr.bf16.mxu0 %v6692_v13  ;;  %v6570_v59 = vunpack.c.l.s8.bf16 %v6426_v39  ;;  %v6408_v13 = vld [vmem:[#allocation13 + $0x468] sm:$0xff]  ;;  %v6729_v39 = vunpack.c.l.s8.bf16 %v6505_v44 }
0x1d38   :  { %7022 = vmatprep.subr.bf16.mxu1 %v6694_v50  ;;  %v6410_v50 = vld [vmem:[#allocation13 + $0x478] sm:$0xff] }
0x1d3a   :  { %6980 = vmatpush2.bf16.msra.mxu0 %v6691_v62  ;;  %v6552_v62 = vunpack.c.h.s8.bf16 %v6408_v13 }
0x1d3b   :  { %7023 = vmatpush2.bf16.msra.mxu1 %v6693_v12  ;;  %6981 = vmatprep.subr.bf16.mxu0 %v6676_v46  ;;  %v6407_v12 = vld [vmem:[#allocation13 + $0x460] sm:$0xff]  ;;  %v6554_v46 = vunpack.c.h.s8.bf16 %v6410_v50 }
0x1d3c   :  { %7024 = vmatprep.subr.bf16.mxu1 %v6678_v26  ;;  %v6551_v26 = vunpack.c.h.s8.bf16 %v6407_v12  ;;  %v6535_v11 = vunpack.c.l.s8.bf16 %v6407_v12  ;;  %v6473_v12 = vld [vmem:[#allocation13 + $0x670] sm:$0xff] }
0x1d3d   :  { %v6681_v30 = vunpack.c.h.s8.bf16 %v6473_v12 }
0x1d3e   :  { %6982 = vmatpush2.bf16.msra.mxu0 %v6675_v49  ;;  %v6536_v49 = vunpack.c.l.s8.bf16 %v6408_v13 }
0x1d3f   :  { %7025 = vmatpush2.bf16.msra.mxu1 %v6677_v42  ;;  %6983 = vmatprep.subr.bf16.mxu0 %v6660_v32  ;;  %v6538_v42 = vunpack.c.l.s8.bf16 %v6410_v50  ;;  %v6520_v32 = vld [vmem:[#allocation13 + $0x7e8] sm:$0xff]  ;;  %v6697_v50 = vunpack.c.l.s8.bf16 %v6489_v31 }
0x1d40   :  { %7026 = vmatprep.subr.bf16.mxu1 %v6662_v24  ;;  %v6522_v24 = vld [vmem:[#allocation13 + $0x7f8] sm:$0xff] }
0x1d42   :  { %6984 = vmatpush2.bf16.msra.mxu0 %v6659_v20  ;;  %v6776_v20 = vunpack.c.h.s8.bf16 %v6520_v32 }
0x1d43   :  { %7027 = vmatpush2.bf16.msra.mxu1 %v6661_v17  ;;  %7039 = vmatprep.subr.bf16.mxu0 %v6648_v58  ;;  %v6519_v17 = vld [vmem:[#allocation13 + $0x7e0] sm:$0xff]  ;;  %v6778_v58 = vunpack.c.h.s8.bf16 %v6522_v24 }
0x1d44   :  { %7082 = vmatprep.subr.bf16.mxu1 %v6650_v29  ;;  %v6775_v29 = vunpack.c.h.s8.bf16 %v6519_v17 }
0x1d45   :  { %6986 = vmatmul.mubr.bf16.vlgmr.msra.gmra.mxu0 %v10879_v4 }
0x1d46   :  { %7029 = vmatmul.mubr.bf16.vlgmr.msra.gmra.mxu1 %v10879_v4  ;;  %7040 = vmatpush1.bf16.msra.mxu0 %v6647_v45  ;;  %v6760_v45 = vunpack.c.l.s8.bf16 %v6520_v32 }
0x1d47   :  { %7071 = vmatprep.mubr.bf16.mxu0 %v10883_v18  ;;  %7083 = vmatpush1.bf16.msra.mxu1 %v6649_v21  ;;  %v6762_v21 = vunpack.c.l.s8.bf16 %v6522_v24  ;;  %v6665_v24 = vunpack.c.l.s8.bf16 %v6473_v12 }
0x1d48   :  { %7114 = vmatprep.mubr.bf16.mxu1 %v10883_v18  ;;  %7041 = vmatprep.subr.bf16.mxu0 %v6632_v1  ;;  %v6584_v18 = vunpack.c.h.s8.bf16 %v6424_v2  ;;  %v6504_v1 = vld [vmem:[#allocation13 + $0x768] sm:$0xff] }
0x1d49   :  { %7084 = vmatprep.subr.bf16.mxu1 %v6634_v25  ;;  %v6759_v25 = vunpack.c.l.s8.bf16 %v6519_v17  ;;  %v7414_v17 = vld [vmem:[#allocation15 + $0x4b0] sm:$0xff] }
0x1d4a   :  { %7042 = vmatpush1.bf16.msra.mxu0 %v6631_v48  ;;  %v6744_v48 = vunpack.c.h.s8.bf16 %v6504_v1 }
0x1d4b   :  { %7085 = vmatpush1.bf16.msra.mxu1 %v6633_v54  ;;  %7043 = vmatprep.subr.bf16.mxu0 %v6616_v47  ;;  %v6503_v54 = vld [vmem:[#allocation13 + $0x760] sm:$0xff]  ;;  %v6746_v47 = vunpack.c.h.s8.bf16 %v6506_v53 }
0x1d4c   :  { %7086 = vmatprep.subr.bf16.mxu1 %v6618_v41  ;;  %v6743_v41 = vunpack.c.h.s8.bf16 %v6503_v54  ;;  %v6727_v2 = vunpack.c.l.s8.bf16 %v6503_v54  ;;  %v10917_v54 = vld [vmem:[%s11066_s11 + $0x10] sm:$0xff] }
0x1d4e   :  { %7044 = vmatpush1.bf16.msra.mxu0 %v6615_v51  ;;  %v6728_v51 = vunpack.c.l.s8.bf16 %v6504_v1 }
0x1d4f   :  { %7087 = vmatpush1.bf16.msra.mxu1 %v6617_v56  ;;  %7045 = vmatprep.subr.bf16.mxu0 %v6600_v19  ;;  %v6730_v56 = vunpack.c.l.s8.bf16 %v6506_v53  ;;  %v6488_v19 = vld [vmem:[#allocation13 + $0x6e8] sm:$0xff] }
0x1d50   :  { %7088 = vmatprep.subr.bf16.mxu1 %v6602_v37  ;;  %v6490_v37 = vld [vmem:[#allocation13 + $0x6f8] sm:$0xff]  ;;  %v7397_v53 = vld [vmem:[#allocation15 + $0x428] sm:$0xff] }
0x1d52   :  { %7046 = vmatpush1.bf16.msra.mxu0 %v6599_v16  ;;  %v6712_v16 = vunpack.c.h.s8.bf16 %v6488_v19 }
0x1d53   :  { %7089 = vmatpush1.bf16.msra.mxu1 %v6601_v33  ;;  %7047 = vmatprep.subr.bf16.mxu0 %v6584_v18  ;;  %v6487_v33 = vld [vmem:[#allocation13 + $0x6e0] sm:$0xff]  ;;  %v6714_v18 = vunpack.c.h.s8.bf16 %v6490_v37 }
0x1d54   :  { %7090 = vmatprep.subr.bf16.mxu1 %v6586_v61  ;;  %v6711_v61 = vunpack.c.h.s8.bf16 %v6487_v33  ;;  %v6695_v13 = vunpack.c.l.s8.bf16 %v6487_v33 }
0x1d56   :  { %7048 = vmatpush1.bf16.msra.mxu0 %v6583_v40  ;;  %v6696_v40 = vunpack.c.l.s8.bf16 %v6488_v19  ;;  %v7396_v19 = vld [vmem:[#allocation15 + $0x420] sm:$0xff] }
0x1d57   :  { %7091 = vmatpush1.bf16.msra.mxu1 %v6585_v15  ;;  %7049 = vmatprep.subr.bf16.mxu0 %v6568_v8  ;;  %v6698_v15 = vunpack.c.l.s8.bf16 %v6490_v37  ;;  %v6472_v8 = vld [vmem:[#allocation13 + $0x668] sm:$0xff]  ;;  %v7530_v31 = vunpack.c.h.s8.bf16 %v7396_v19 }
0x1d58   :  { %7092 = vmatprep.subr.bf16.mxu1 %v6570_v59  ;;  %v6474_v59 = vld [vmem:[#allocation13 + $0x678] sm:$0xff] }
0x1d5a   :  { %7050 = vmatpush1.bf16.msra.mxu0 %v6567_v63  ;;  %v6680_v63 = vunpack.c.h.s8.bf16 %v6472_v8 }
0x1d5b   :  { %7093 = vmatpush1.bf16.msra.mxu1 %v6569_v14  ;;  %7051 = vmatprep.subr.bf16.mxu0 %v6552_v62  ;;  %v6471_v14 = vld [vmem:[#allocation13 + $0x660] sm:$0xff]  ;;  %v6682_v62 = vunpack.c.h.s8.bf16 %v6474_v59 }
0x1d5c   :  { %7094 = vmatprep.subr.bf16.mxu1 %v6554_v46  ;;  %v6679_v46 = vunpack.c.h.s8.bf16 %v6471_v14  ;;  %v6663_v32 = vunpack.c.l.s8.bf16 %v6471_v14  ;;  %v7395_v14 = vld [vmem:[#allocation15 + $0x418] sm:$0xff] }
0x1d5e   :  { %7052 = vmatpush1.bf16.msra.mxu0 %v6551_v26  ;;  %v6664_v26 = vunpack.c.l.s8.bf16 %v6472_v8 }
0x1d5f   :  { %7095 = vmatpush1.bf16.msra.mxu1 %v6553_v35  ;;  %7053 = vmatprep.subr.bf16.mxu0 %v6536_v49  ;;  %v6666_v35 = vunpack.c.l.s8.bf16 %v6474_v59  ;;  %v7399_v49 = vld [vmem:[#allocation15 + $0x438] sm:$0xff] }
0x1d60   :  { %7096 = vmatprep.subr.bf16.mxu1 %v6538_v42  ;;  %v7415_v42 = vld [vmem:[#allocation15 + $0x4b8] sm:$0xff] }
0x1d61   :  { %v7565_v1 = vunpack.c.l.s8.bf16 %v7415_v42 }
0x1d62   :  { %7054 = vmatpush1.bf16.msra.mxu0 %v6535_v11  ;;  %v7535_v11 = vunpack.c.h.s8.bf16 %v7399_v49 }
0x1d63   :  { %7097 = vmatpush1.bf16.msra.mxu1 %v6537_v52  ;;  %7055 = vmatprep.subr.bf16.mxu0 %v6776_v20  ;;  %v7398_v52 = vld [vmem:[#allocation15 + $0x430] sm:$0xff]  ;;  %v7567_v20 = vunpack.c.h.s8.bf16 %v7415_v42 }
0x1d64   :  { %7098 = vmatprep.subr.bf16.mxu1 %v6778_v58  ;;  %v7534_v58 = vunpack.c.h.s8.bf16 %v7398_v52  ;;  %v7394_v42 = vld [vmem:[#allocation15 + $0x410] sm:$0xff] }
0x1d66   :  { %7056 = vmatpush2.bf16.msra.mxu0 %v6775_v29  ;;  %v7566_v29 = vunpack.c.h.s8.bf16 %v7414_v17 }
0x1d67   :  { %7099 = vmatpush2.bf16.msra.mxu1 %v6777_v6  ;;  %7057 = vmatprep.subr.bf16.mxu0 %v6760_v45  ;;  %v7533_v6 = vunpack.c.l.s8.bf16 %v7399_v49  ;;  %v7137_v45 = vrot.slane %v10902_v60, %v10093_v9 }
0x1d68   :  { %7100 = vmatprep.subr.bf16.mxu1 %v6762_v21  ;;  %v7145_v21 = vrot.slane %v10902_v60, %v10126_v57 }
0x1d6a   :  { %7058 = vmatpush2.bf16.msra.mxu0 %v6759_v25 }
0x1d6b   :  { %7101 = vmatpush2.bf16.msra.mxu1 %v6761_v34  ;;  %7059 = vmatprep.subr.bf16.mxu0 %v6744_v48  ;;  %v7413_v48 = vld [vmem:[#allocation15 + $0x4a8] sm:$0xff] }
0x1d6c   :  { %7102 = vmatprep.subr.bf16.mxu1 %v6746_v47  ;;  %v7532_v47 = vunpack.c.l.s8.bf16 %v7398_v52  ;;  %v7561_v8 = vunpack.c.l.s8.bf16 %v7413_v48 }
0x1d6e   :  { %7060 = vmatpush2.bf16.msra.mxu0 %v6743_v41  ;;  %v7254_v41 = vrot.slane %v10917_v54, %v10093_v9 }
0x1d6f   :  { %7103 = vmatpush2.bf16.msra.mxu1 %v6745_v5  ;;  %7061 = vmatprep.subr.bf16.mxu0 %v6728_v51  ;;  %v7564_v51 = vunpack.c.l.s8.bf16 %v7414_v17 }
0x1d70   :  { %7104 = vmatprep.subr.bf16.mxu1 %v6730_v56  ;;  %v7531_v56 = vunpack.c.h.s8.bf16 %v7397_v53 }
0x1d72   :  { %7062 = vmatpush2.bf16.msra.mxu0 %v6727_v2 }
0x1d73   :  { %7105 = vmatpush2.bf16.msra.mxu1 %v6729_v39  ;;  %7063 = vmatprep.subr.bf16.mxu0 %v6712_v16  ;;  %v7563_v39 = vunpack.c.h.s8.bf16 %v7413_v48  ;;  %v7412_v16 = vld [vmem:[#allocation15 + $0x4a0] sm:$0xff]  ;;  %v7524_v48 = vunpack.c.l.s8.bf16 %v7394_v42 }
0x1d74   :  { %7106 = vmatprep.subr.bf16.mxu1 %v6714_v18 }
0x1d76   :  { %7064 = vmatpush2.bf16.msra.mxu0 %v6711_v61 }
0x1d77   :  { %7107 = vmatpush2.bf16.msra.mxu1 %v6713_v0  ;;  %7065 = vmatprep.subr.bf16.mxu0 %v6696_v40  ;;  %v7562_v40 = vunpack.c.h.s8.bf16 %v7412_v16 }
0x1d78   :  { %7108 = vmatprep.subr.bf16.mxu1 %v6698_v15  ;;  %v7529_v15 = vunpack.c.l.s8.bf16 %v7397_v53  ;;  %v7409_v53 = vld [vmem:[#allocation15 + $0x488] sm:$0xff] }
0x1d7a   :  { %7066 = vmatpush2.bf16.msra.mxu0 %v6695_v13 }
0x1d7b   :  { %7109 = vmatpush2.bf16.msra.mxu1 %v6697_v50  ;;  %7067 = vmatprep.subr.bf16.mxu0 %v6680_v63 }
0x1d7c   :  { %7110 = vmatprep.subr.bf16.mxu1 %v6682_v62  ;;  %v7411_v62 = vld [vmem:[#allocation15 + $0x498] sm:$0xff] }
0x1d7d   :  { %v7559_v49 = vunpack.c.h.s8.bf16 %v7411_v62 }
0x1d7e   :  { %7068 = vmatpush2.bf16.msra.mxu0 %v6679_v46 }
0x1d7f   :  { %7111 = vmatpush2.bf16.msra.mxu1 %v6681_v30  ;;  %7069 = vmatprep.subr.bf16.mxu0 %v6664_v26  ;;  %v7528_v30 = vunpack.c.l.s8.bf16 %v7396_v19  ;;  %v7560_v26 = vunpack.c.l.s8.bf16 %v7412_v16 }
0x1d80   :  { %7112 = vmatprep.subr.bf16.mxu1 %v6666_v35  ;;  %v7527_v35 = vunpack.c.h.s8.bf16 %v7395_v14 }
0x1d82   :  { %7070 = vmatpush2.bf16.msra.mxu0 %v6663_v32 }
0x1d83   :  { %7113 = vmatpush2.bf16.msra.mxu1 %v6665_v24  ;;  %7792 = vmatprep.subr.bf16.mxu0 %v7535_v11 }
0x1d84   :  { %7835 = vmatprep.subr.bf16.mxu1 %v7567_v20  ;;  %v7410_v20 = vld [vmem:[#allocation15 + $0x490] sm:$0xff] }
0x1d85   :  { %7072 = vmatmul.mubr.bf16.vlgmr.msra.gmra.mxu0 %v10879_v4  ;;  %v10909_v25 = vpop.f32.mrf.mxu0  ;;  %v10911_v34 = vpop.f32.mrf.mxu1 }
0x1d86   :  { %7115 = vmatmul.mubr.bf16.vlgmr.msra.gmra.mxu1 %v10879_v4  ;;  %7793 = vmatpush1.bf16.msra.mxu0 %v7534_v58  ;;  %v7262_v4 = vrot.slane %v10917_v54, %v10126_v57 }
0x1d87   :  { %7836 = vmatpush1.bf16.msra.mxu1 %v7566_v29  ;;  %v6817_v44 = vpop.f32.mrf.mxu0  ;;  %v6860_v5 = vpop.f32.mrf.mxu1  ;;  %7794 = vmatprep.subr.bf16.mxu0 %v7533_v6  ;;  %v7526_v29 = vunpack.c.h.s8.bf16 %v7394_v42  ;;  %v7558_v6 = vunpack.c.h.s8.bf16 %v7410_v20 }
0x1d88   :  { %v7211_v37 = vmul.f32 %v7137_v45, %v6817_v44  ;;  %v7213_v2 = vmul.f32 %v7145_v21, %v6860_v5  ;;  %7837 = vmatprep.subr.bf16.mxu1 %v7565_v1  ;;  %v7393_v1 = vld [vmem:[#allocation15 + $0x408] sm:$0xff]  ;;  %v7555_v5 = vunpack.c.h.s8.bf16 %v7409_v53 }
0x1d89   :  { %v10923_v33 = vpop.f32.mrf.mxu0  ;;  %v10925_v18 = vpop.f32.mrf.mxu1  ;;  %v7523_v44 = vunpack.c.h.s8.bf16 %v7393_v1 }
0x1d8a   :  { %7795 = vmatpush1.bf16.msra.mxu0 %v7532_v47  ;;  %v7328_v59 = vadd.f32 %v7254_v41, %v7211_v37  ;;  %v7330_v13 = vadd.f32 %v7262_v4, %v7213_v2  ;;  %v7556_v47 = vunpack.c.l.s8.bf16 %v7410_v20  ;;  %v7521_v37 = vunpack.c.l.s8.bf16 %v7393_v1 }
0x1d8b   :  { %7838 = vmatpush1.bf16.msra.mxu1 %v7564_v51  ;;  %v6821_v61 = vpop.f32.mrf.mxu0  ;;  %v6864_v0 = vpop.f32.mrf.mxu1  ;;  %7796 = vmatprep.subr.bf16.mxu0 %v7531_v56  ;;  %v7408_v51 = vld [vmem:[#allocation15 + $0x480] sm:$0xff]  ;;  %v7553_v2 = vunpack.c.l.s8.bf16 %v7409_v53 }
0x1d8c   :  { %v7227_v50 = vmul.f32 %v7137_v45, %v6821_v61  ;;  %v7229_v63 = vmul.f32 %v7145_v21, %v6864_v0  ;;  %7839 = vmatprep.subr.bf16.mxu1 %v7563_v39  ;;  %v7360_v32 = vmax.f32 %v7328_v59, 0.0  ;;  %v7362_v24 = vmax.f32 %v7330_v13, 0.0  ;;  %v7423_v39 = vld [vmem:[#allocation15 + $0x4f8] sm:$0xff]  ;;  %v7406_v0 = vld [vmem:[#allocation15 + $0x470] sm:$0xff] }
0x1d8d   :  { %v7525_v45 = vunpack.c.l.s8.bf16 %v7395_v14  ;;  %v7557_v21 = vunpack.c.l.s8.bf16 %v7411_v62  ;;  %v7554_v19 = vunpack.c.h.s8.bf16 %v7408_v51  ;;  %v7421_v14 = vld [vmem:[#allocation15 + $0x4e8] sm:$0xff]  ;;  %v7548_v62 = vunpack.c.l.s8.bf16 %v7406_v0 }
0x1d8e   :  { %v7344_v12 = vadd.f32 %v7254_v41, %v7227_v50  ;;  %v7346_v46 = vadd.f32 %v7262_v4, %v7229_v63  ;;  %7797 = vmatpush1.bf16.msra.mxu0 %v7530_v31  ;;  %v7392_v41 = vld [vmem:[#allocation15 + $0x400] sm:$0xff]  ;;  %v7407_v4 = vld [vmem:[#allocation15 + $0x478] sm:$0xff]  ;;  %v7552_v31 = vunpack.c.l.s8.bf16 %v7408_v51  ;;  %v7581_v50 = vunpack.c.l.s8.bf16 %v7423_v39  ;;  %v7405_v63 = vld [vmem:[#allocation15 + $0x468] sm:$0xff] }
0x1d8f   :  { %7840 = vmatpush1.bf16.msra.mxu1 %v7562_v40  ;;  %7798 = vmatprep.subr.bf16.mxu0 %v7529_v15  ;;  %v7522_v56 = vunpack.c.h.s8.bf16 %v7392_v41  ;;  %v7520_v16 = vunpack.c.l.s8.bf16 %v7392_v41  ;;  %v7551_v61 = vunpack.c.h.s8.bf16 %v7407_v4  ;;  %v7583_v40 = vunpack.c.h.s8.bf16 %v7423_v39  ;;  %v7422_v15 = vld [vmem:[#allocation15 + $0x4f0] sm:$0xff]  ;;  %v7417_v41 = vld [vmem:[#allocation15 + $0x4c8] sm:$0xff] }
0x1d90   :  { %v7376_v11 = vmax.f32 %v7344_v12, 0.0  ;;  %v7378_v52 = vmax.f32 %v7346_v46, 0.0  ;;  %7841 = vmatprep.subr.bf16.mxu1 %v7561_v8  ;;  %v7550_v8 = vunpack.c.h.s8.bf16 %v7406_v0  ;;  %v7582_v59 = vunpack.c.h.s8.bf16 %v7422_v15 }
0x1d91   :  { %v7549_v13 = vunpack.c.l.s8.bf16 %v7407_v4  ;;  %v7580_v12 = vunpack.c.l.s8.bf16 %v7422_v15  ;;  %v7547_v46 = vunpack.c.h.s8.bf16 %v7405_v63  ;;  %v7571_v39 = vunpack.c.h.s8.bf16 %v7417_v41 }
0x1d92   :  { %7799 = vmatpush1.bf16.msra.mxu0 %v7528_v30  ;;  %v7777_v17 = vpack.c.bf16 %v7376_v11, %v7360_v32  ;;  %v7779_v58 = vpack.c.bf16 %v7378_v52, %v7362_v24  ;;  %v7404_v30 = vld [vmem:[#allocation15 + $0x460] sm:$0xff]  ;;  %v7545_v32 = vunpack.c.l.s8.bf16 %v7405_v63  ;;  %v7577_v24 = vunpack.c.l.s8.bf16 %v7421_v14  ;;  %v7403_v11 = vld [vmem:[#allocation15 + $0x458] sm:$0xff] }
0x1d93   :  { %7842 = vmatpush1.bf16.msra.mxu1 %v7560_v26  ;;  %7800 = vmatprep.subr.bf16.mxu0 %v7527_v35  ;;  %v7579_v26 = vunpack.c.h.s8.bf16 %v7421_v14  ;;  %v7420_v35 = vld [vmem:[#allocation15 + $0x4e0] sm:$0xff]  ;;  %v7419_v52 = vld [vmem:[#allocation15 + $0x4d8] sm:$0xff]  ;;  %v7544_v20 = vunpack.c.l.s8.bf16 %v7404_v30  ;;  %v7541_v53 = vunpack.c.l.s8.bf16 %v7403_v11 }
0x1d94   :  { %7824 = vmatprep.mubr.bf16.mxu0 %v7777_v17  ;;  %7843 = vmatprep.subr.bf16.mxu1 %v7559_v49  ;;  %v7546_v49 = vunpack.c.h.s8.bf16 %v7404_v30  ;;  %v7578_v42 = vunpack.c.h.s8.bf16 %v7420_v35  ;;  %v7576_v17 = vunpack.c.l.s8.bf16 %v7420_v35  ;;  %v7447_v63 = vld [vmem:[#allocation15 + $0x5b8] sm:$0xff]  ;;  %v7430_v30 = vld [vmem:[#allocation15 + $0x530] sm:$0xff] }
0x1d95   :  { %7867 = vmatprep.mubr.bf16.mxu1 %v7779_v58  ;;  %v7543_v58 = vunpack.c.h.s8.bf16 %v7403_v11  ;;  %v7631_v35 = vunpack.c.h.s8.bf16 %v7447_v63 }
0x1d96   :  { %7801 = vmatpush1.bf16.msra.mxu0 %v7526_v29  ;;  %v7402_v29 = vld [vmem:[#allocation15 + $0x450] sm:$0xff] }
0x1d97   :  { %7844 = vmatpush1.bf16.msra.mxu1 %v7558_v6  ;;  %7802 = vmatprep.subr.bf16.mxu0 %v7525_v45  ;;  %v7575_v6 = vunpack.c.h.s8.bf16 %v7419_v52  ;;  %v7418_v45 = vld [vmem:[#allocation15 + $0x4d0] sm:$0xff]  ;;  %v7540_v51 = vunpack.c.l.s8.bf16 %v7402_v29 }
0x1d98   :  { %7845 = vmatprep.subr.bf16.mxu1 %v7557_v21  ;;  %v7542_v21 = vunpack.c.h.s8.bf16 %v7402_v29  ;;  %v7574_v1 = vunpack.c.h.s8.bf16 %v7418_v45  ;;  %v7161_v29 = vrot.slane %v10902_v60, %v10450_v22 }
0x1d9a   :  { %7803 = vmatpush1.bf16.msra.mxu0 %v7524_v48  ;;  %v7573_v48 = vunpack.c.l.s8.bf16 %v7419_v52 }
0x1d9b   :  { %7846 = vmatpush1.bf16.msra.mxu1 %v7556_v47  ;;  %7804 = vmatprep.subr.bf16.mxu0 %v7523_v44  ;;  %v7401_v47 = vld [vmem:[#allocation15 + $0x448] sm:$0xff]  ;;  %v7133_v44 = vrot.slane %v10902_v60, %v10096_v10 }
0x1d9c   :  { %7847 = vmatprep.subr.bf16.mxu1 %v7555_v5  ;;  %v7141_v5 = vrot.slane %v10902_v60, %v10123_v55 }
0x1d9e   :  { %7805 = vmatpush1.bf16.msra.mxu0 %v7522_v56  ;;  %v7226_v56 = vmul.f32 %v7133_v44, %v10923_v33  ;;  %v7228_v4 = vmul.f32 %v7141_v5, %v10925_v18  ;;  %v7212_v0 = vmul.f32 %v7141_v5, %v10911_v34  ;;  %v7258_v33 = vrot.slane %v10917_v54, %v10123_v55 }
0x1d9f   :  { %7848 = vmatpush1.bf16.msra.mxu1 %v7554_v19  ;;  %7806 = vmatprep.subr.bf16.mxu0 %v7521_v37  ;;  %v7572_v19 = vunpack.c.l.s8.bf16 %v7418_v45  ;;  %v7539_v37 = vunpack.c.h.s8.bf16 %v7401_v47  ;;  %v7537_v18 = vunpack.c.l.s8.bf16 %v7401_v47  ;;  %v7429_v45 = vld [vmem:[#allocation15 + $0x528] sm:$0xff] }
0x1da0   :  { %7849 = vmatprep.subr.bf16.mxu1 %v7553_v2  ;;  %v7400_v2 = vld [vmem:[#allocation15 + $0x440] sm:$0xff]  ;;  %v7329_v14 = vadd.f32 %v7258_v33, %v7212_v0 }
0x1da2   :  { %7807 = vmatpush1.bf16.msra.mxu0 %v7520_v16  ;;  %v7416_v16 = vld [vmem:[#allocation15 + $0x4c0] sm:$0xff] }
0x1da3   :  { %7850 = vmatpush1.bf16.msra.mxu1 %v7552_v31  ;;  %7808 = vmatprep.subr.bf16.mxu0 %v7551_v61  ;;  %v7210_v31 = vmul.f32 %v7133_v44, %v10909_v25  ;;  %v7250_v61 = vrot.slane %v10917_v54, %v10096_v10  ;;  %v7270_v44 = vrot.slane %v10917_v54, %v10153_v28 }
0x1da4   :  { %7851 = vmatprep.subr.bf16.mxu1 %v7583_v40  ;;  %v7538_v40 = vunpack.c.h.s8.bf16 %v7400_v2 }
0x1da5   :  { %v7343_v15 = vadd.f32 %v7250_v61, %v7226_v56  ;;  %v7327_v25 = vadd.f32 %v7250_v61, %v7210_v31  ;;  %v7428_v56 = vld [vmem:[#allocation15 + $0x520] sm:$0xff] }
0x1da6   :  { %7809 = vmatpush2.bf16.msra.mxu0 %v7550_v8  ;;  %v7570_v8 = vunpack.c.h.s8.bf16 %v7416_v16  ;;  %v7594_v61 = vunpack.c.h.s8.bf16 %v7428_v56 }
0x1da7   :  { %7852 = vmatpush2.bf16.msra.mxu1 %v7582_v59  ;;  %7810 = vmatprep.subr.bf16.mxu0 %v7549_v13  ;;  %v7345_v59 = vadd.f32 %v7258_v33, %v7228_v4  ;;  %v7569_v13 = vunpack.c.l.s8.bf16 %v7417_v41  ;;  %v7375_v34 = vmax.f32 %v7343_v15, 0.0  ;;  %v7593_v15 = vunpack.c.l.s8.bf16 %v7429_v45 }
0x1da8   :  { %7853 = vmatprep.subr.bf16.mxu1 %v7581_v50  ;;  %v7431_v50 = vld [vmem:[#allocation15 + $0x538] sm:$0xff] }
0x1daa   :  { %7811 = vmatpush2.bf16.msra.mxu0 %v7548_v62  ;;  %v7536_v62 = vunpack.c.l.s8.bf16 %v7400_v2  ;;  %v7278_v2 = vrot.slane %v10917_v54, %v10450_v22 }
0x1dab   :  { %7854 = vmatpush2.bf16.msra.mxu1 %v7580_v12  ;;  %7812 = vmatprep.subr.bf16.mxu0 %v7547_v46  ;;  %v7568_v12 = vunpack.c.l.s8.bf16 %v7416_v16  ;;  %v7599_v46 = vunpack.c.h.s8.bf16 %v7431_v50 }
0x1dac   :  { %7855 = vmatprep.subr.bf16.mxu1 %v7579_v26  ;;  %v7377_v26 = vmax.f32 %v7345_v59, 0.0 }
0x1dae   :  { %7813 = vmatpush2.bf16.msra.mxu0 %v7546_v49  ;;  %v7446_v49 = vld [vmem:[#allocation15 + $0x5b0] sm:$0xff] }
0x1daf   :  { %7856 = vmatpush2.bf16.msra.mxu1 %v7578_v42  ;;  %7814 = vmatprep.subr.bf16.mxu0 %v7545_v32  ;;  %v7359_v42 = vmax.f32 %v7327_v25, 0.0  ;;  %v7361_v32 = vmax.f32 %v7329_v14, 0.0  ;;  %v7630_v52 = vunpack.c.h.s8.bf16 %v7446_v49  ;;  %v7628_v5 = vunpack.c.l.s8.bf16 %v7446_v49  ;;  %v7427_v25 = vld [vmem:[#allocation15 + $0x518] sm:$0xff] }
0x1db0   :  { %7857 = vmatprep.subr.bf16.mxu1 %v7577_v24  ;;  %v7598_v24 = vunpack.c.h.s8.bf16 %v7430_v30 }
0x1db1   :  { %v7776_v11 = vpack.c.bf16 %v7375_v34, %v7359_v42  ;;  %v7443_v34 = vld [vmem:[#allocation15 + $0x598] sm:$0xff] }
0x1db2   :  { %7815 = vmatpush2.bf16.msra.mxu0 %v7544_v20  ;;  %v7597_v20 = vunpack.c.l.s8.bf16 %v7431_v50 }
0x1db3   :  { %7858 = vmatpush2.bf16.msra.mxu1 %v7576_v17  ;;  %7816 = vmatprep.subr.bf16.mxu0 %v7543_v58  ;;  %v7778_v17 = vpack.c.bf16 %v7377_v26, %v7361_v32  ;;  %v7153_v58 = vrot.slane %v10902_v60, %v10153_v28  ;;  %v7442_v32 = vld [vmem:[#allocation15 + $0x590] sm:$0xff] }
0x1db4   :  { %7859 = vmatprep.subr.bf16.mxu1 %v7575_v6  ;;  %v7629_v6 = vunpack.c.l.s8.bf16 %v7447_v63 }
0x1db6   :  { %7817 = vmatpush2.bf16.msra.mxu0 %v7542_v21 }
0x1db7   :  { %7860 = vmatpush2.bf16.msra.mxu1 %v7574_v1  ;;  %7818 = vmatprep.subr.bf16.mxu0 %v7541_v53  ;;  %v7445_v53 = vld [vmem:[#allocation15 + $0x5a8] sm:$0xff] }
0x1db8   :  { %7861 = vmatprep.subr.bf16.mxu1 %v7573_v48  ;;  %v7596_v48 = vunpack.c.l.s8.bf16 %v7430_v30  ;;  %v7627_v4 = vunpack.c.h.s8.bf16 %v7445_v53  ;;  %v7426_v30 = vld [vmem:[#allocation15 + $0x510] sm:$0xff] }
0x1dba   :  { %7819 = vmatpush2.bf16.msra.mxu0 %v7540_v51  ;;  %v7595_v51 = vunpack.c.h.s8.bf16 %v7429_v45  ;;  %v7441_v45 = vld [vmem:[#allocation15 + $0x588] sm:$0xff] }
0x1dbb   :  { %7862 = vmatpush2.bf16.msra.mxu1 %v7572_v19  ;;  %7820 = vmatprep.subr.bf16.mxu0 %v7539_v37 }
0x1dbc   :  { %7863 = vmatprep.subr.bf16.mxu1 %v7571_v39  ;;  %v7444_v39 = vld [vmem:[#allocation15 + $0x5a0] sm:$0xff] }
0x1dbe   :  { %7821 = vmatpush2.bf16.msra.mxu0 %v7538_v40  ;;  %v7626_v40 = vunpack.c.h.s8.bf16 %v7444_v39 }
0x1dbf   :  { %7864 = vmatpush2.bf16.msra.mxu1 %v7570_v8  ;;  %7822 = vmatprep.subr.bf16.mxu0 %v7537_v18  ;;  %v7625_v8 = vunpack.c.l.s8.bf16 %v7445_v53  ;;  %v7588_v53 = vunpack.c.l.s8.bf16 %v7426_v30 }
0x1dc0   :  { %7865 = vmatprep.subr.bf16.mxu1 %v7569_v13 }
0x1dc2   :  { %7823 = vmatpush2.bf16.msra.mxu0 %v7536_v62  ;;  %v7592_v62 = vunpack.c.l.s8.bf16 %v7428_v56 }
0x1dc3   :  { %7866 = vmatpush2.bf16.msra.mxu1 %v7568_v12  ;;  %7878 = vmatprep.subr.bf16.mxu0 %v7599_v46  ;;  %v7624_v12 = vunpack.c.l.s8.bf16 %v7444_v39  ;;  %v7591_v46 = vunpack.c.h.s8.bf16 %v7427_v25 }
0x1dc4   :  { %7921 = vmatprep.subr.bf16.mxu1 %v7631_v35 }
0x1dc5   :  { %v10943_v21 = vpop.f32.mrf.mxu0  ;;  %v10945_v1 = vpop.f32.mrf.mxu1  ;;  %7825 = vmatmul.mubr.bf16.vlgmr.msra.gmra.mxu0 %v7776_v11 }
0x1dc6   :  { %7868 = vmatmul.mubr.bf16.vlgmr.msra.gmra.mxu1 %v7778_v17  ;;  %7879 = vmatpush1.bf16.msra.mxu0 %v7598_v24  ;;  %v7623_v24 = vunpack.c.h.s8.bf16 %v7443_v34  ;;  %v7622_v17 = vunpack.c.h.s8.bf16 %v7442_v32 }
0x1dc7   :  { %7922 = vmatpush1.bf16.msra.mxu1 %v7630_v52  ;;  %v6903_v47 = vpop.f32.mrf.mxu0  ;;  %v6946_v41 = vpop.f32.mrf.mxu1  ;;  %7880 = vmatprep.subr.bf16.mxu0 %v7597_v20  ;;  %v7590_v20 = vunpack.c.h.s8.bf16 %v7426_v30 }
0x1dc8   :  { %v7215_v19 = vmul.f32 %v7153_v58, %v6903_v47  ;;  %v7217_v37 = vmul.f32 %v7161_v29, %v6946_v41  ;;  %7923 = vmatprep.subr.bf16.mxu1 %v7629_v6  ;;  %v7425_v6 = vld [vmem:[#allocation15 + $0x508] sm:$0xff]  ;;  %v7619_v41 = vunpack.c.h.s8.bf16 %v7441_v45 }
0x1dc9   :  { %v10951_v16 = vpop.f32.mrf.mxu0  ;;  %v10953_v31 = vpop.f32.mrf.mxu1  ;;  %v7587_v47 = vunpack.c.h.s8.bf16 %v7425_v6 }
0x1dca   :  { %7881 = vmatpush1.bf16.msra.mxu0 %v7596_v48  ;;  %v7332_v18 = vadd.f32 %v7270_v44, %v7215_v19  ;;  %v7334_v59 = vadd.f32 %v7278_v2, %v7217_v37  ;;  %v7620_v48 = vunpack.c.l.s8.bf16 %v7442_v32  ;;  %v7585_v19 = vunpack.c.l.s8.bf16 %v7425_v6  ;;  %v7451_v32 = vld [vmem:[#allocation15 + $0x5d8] sm:$0xff] }
0x1dcb   :  { %7924 = vmatpush1.bf16.msra.mxu1 %v7628_v5  ;;  %v6907_v0 = vpop.f32.mrf.mxu0  ;;  %v6950_v33 = vpop.f32.mrf.mxu1  ;;  %7882 = vmatprep.subr.bf16.mxu0 %v7595_v51  ;;  %v7440_v5 = vld [vmem:[#allocation15 + $0x580] sm:$0xff]  ;;  %v7617_v37 = vunpack.c.l.s8.bf16 %v7441_v45 }
0x1dcc   :  { %v7231_v13 = vmul.f32 %v7153_v58, %v6907_v0  ;;  %v7233_v50 = vmul.f32 %v7161_v29, %v6950_v33  ;;  %7925 = vmatprep.subr.bf16.mxu1 %v7627_v4  ;;  %v7364_v26 = vmax.f32 %v7332_v18, 0.0  ;;  %v7366_v35 = vmax.f32 %v7334_v59, 0.0  ;;  %v7455_v4 = vld [vmem:[#allocation15 + $0x5f8] sm:$0xff]  ;;  %v7438_v33 = vld [vmem:[#allocation15 + $0x570] sm:$0xff] }
0x1dcd   :  { %v7589_v58 = vunpack.c.l.s8.bf16 %v7427_v25  ;;  %v7621_v29 = vunpack.c.l.s8.bf16 %v7443_v34  ;;  %v7618_v56 = vunpack.c.h.s8.bf16 %v7440_v5  ;;  %v7453_v25 = vld [vmem:[#allocation15 + $0x5e8] sm:$0xff]  ;;  %v7436_v34 = vld [vmem:[#allocation15 + $0x560] sm:$0xff] }
0x1dce   :  { %v7348_v63 = vadd.f32 %v7270_v44, %v7231_v13  ;;  %v7350_v14 = vadd.f32 %v7278_v2, %v7233_v50  ;;  %7883 = vmatpush1.bf16.msra.mxu0 %v7594_v61  ;;  %v7424_v44 = vld [vmem:[#allocation15 + $0x500] sm:$0xff]  ;;  %v7439_v2 = vld [vmem:[#allocation15 + $0x578] sm:$0xff]  ;;  %v7616_v61 = vunpack.c.l.s8.bf16 %v7440_v5  ;;  %v7645_v13 = vunpack.c.l.s8.bf16 %v7455_v4  ;;  %v7437_v50 = vld [vmem:[#allocation15 + $0x568] sm:$0xff] }
0x1dcf   :  { %7926 = vmatpush1.bf16.msra.mxu1 %v7626_v40  ;;  %7884 = vmatprep.subr.bf16.mxu0 %v7593_v15  ;;  %v7586_v51 = vunpack.c.h.s8.bf16 %v7424_v44  ;;  %v7584_v39 = vunpack.c.l.s8.bf16 %v7424_v44  ;;  %v7615_v0 = vunpack.c.h.s8.bf16 %v7439_v2  ;;  %v7647_v40 = vunpack.c.h.s8.bf16 %v7455_v4  ;;  %v7454_v15 = vld [vmem:[#allocation15 + $0x5f0] sm:$0xff]  ;;  %v7449_v44 = vld [vmem:[#allocation15 + $0x5c8] sm:$0xff] }
0x1dd0   :  { %v7380_v49 = vmax.f32 %v7348_v63, 0.0  ;;  %v7382_v42 = vmax.f32 %v7350_v14, 0.0  ;;  %7927 = vmatprep.subr.bf16.mxu1 %v7625_v8  ;;  %v7614_v8 = vunpack.c.h.s8.bf16 %v7438_v33  ;;  %v7646_v18 = vunpack.c.h.s8.bf16 %v7454_v15 }
0x1dd1   :  { %v7613_v59 = vunpack.c.l.s8.bf16 %v7439_v2  ;;  %v7612_v63 = vunpack.c.l.s8.bf16 %v7438_v33  ;;  %v7644_v14 = vunpack.c.l.s8.bf16 %v7454_v15  ;;  %v7610_v30 = vunpack.c.h.s8.bf16 %v7436_v34 }
0x1dd2   :  { %7885 = vmatpush1.bf16.msra.mxu0 %v7592_v62  ;;  %v7781_v11 = vpack.c.bf16 %v7380_v49, %v7364_v26  ;;  %v7783_v52 = vpack.c.bf16 %v7382_v42, %v7366_v35  ;;  %v7611_v62 = vunpack.c.h.s8.bf16 %v7437_v50  ;;  %v7609_v35 = vunpack.c.l.s8.bf16 %v7437_v50  ;;  %v7435_v42 = vld [vmem:[#allocation15 + $0x558] sm:$0xff] }
0x1dd3   :  { %7928 = vmatpush1.bf16.msra.mxu1 %v7624_v12  ;;  %7886 = vmatprep.subr.bf16.mxu0 %v7591_v46  ;;  %v7643_v12 = vunpack.c.h.s8.bf16 %v7453_v25  ;;  %v7452_v46 = vld [vmem:[#allocation15 + $0x5e0] sm:$0xff]  ;;  %v7641_v49 = vunpack.c.l.s8.bf16 %v7453_v25  ;;  %v7605_v45 = vunpack.c.l.s8.bf16 %v7435_v42  ;;  %v7635_v4 = vunpack.c.h.s8.bf16 %v7449_v44 }
0x1dd4   :  { %7910 = vmatprep.mubr.bf16.mxu0 %v7781_v11  ;;  %7953 = vmatprep.mubr.bf16.mxu1 %v7783_v52  ;;  %v7642_v26 = vunpack.c.h.s8.bf16 %v7452_v46  ;;  %v7640_v11 = vunpack.c.l.s8.bf16 %v7452_v46  ;;  %v7607_v52 = vunpack.c.h.s8.bf16 %v7435_v42 }
0x1dd5   :  { %7929 = vmatprep.subr.bf16.mxu1 %v7623_v24  ;;  %v7608_v24 = vunpack.c.l.s8.bf16 %v7436_v34 }
0x1dd6   :  { %7887 = vmatpush1.bf16.msra.mxu0 %v7590_v20  ;;  %v7434_v20 = vld [vmem:[#allocation15 + $0x550] sm:$0xff] }
0x1dd7   :  { %7930 = vmatpush1.bf16.msra.mxu1 %v7622_v17  ;;  %7888 = vmatprep.subr.bf16.mxu0 %v7589_v58  ;;  %v7639_v17 = vunpack.c.h.s8.bf16 %v7451_v32  ;;  %v7450_v58 = vld [vmem:[#allocation15 + $0x5d0] sm:$0xff]  ;;  %v7604_v5 = vunpack.c.l.s8.bf16 %v7434_v20 }
0x1dd8   :  { %7931 = vmatprep.subr.bf16.mxu1 %v7621_v29  ;;  %v7606_v29 = vunpack.c.h.s8.bf16 %v7434_v20  ;;  %v7638_v6 = vunpack.c.h.s8.bf16 %v7450_v58  ;;  %v7461_v20 = vld [vmem:[#allocation15 + $0x628] sm:$0xff] }
0x1dda   :  { %7889 = vmatpush1.bf16.msra.mxu0 %v7588_v53  ;;  %v7637_v53 = vunpack.c.l.s8.bf16 %v7451_v32 }
0x1ddb   :  { %7932 = vmatpush1.bf16.msra.mxu1 %v7620_v48  ;;  %7890 = vmatprep.subr.bf16.mxu0 %v7587_v47  ;;  %v7433_v48 = vld [vmem:[#allocation15 + $0x548] sm:$0xff]  ;;  %v7149_v47 = vrot.slane %v10902_v60, %v10150_v27 }
0x1ddc   :  { %7933 = vmatprep.subr.bf16.mxu1 %v7619_v41  ;;  %v7157_v41 = vrot.slane %v10902_v60, %v10469_v36 }
0x1dde   :  { %7891 = vmatpush1.bf16.msra.mxu0 %v7586_v51  ;;  %v7230_v51 = vmul.f32 %v7149_v47, %v10951_v16  ;;  %v7232_v2 = vmul.f32 %v7157_v41, %v10953_v31  ;;  %v7216_v60 = vmul.f32 %v7157_v41, %v10945_v1  ;;  %v7274_v16 = vrot.slane %v10917_v54, %v10469_v36  ;;  %v7460_v41 = vld [vmem:[#allocation15 + $0x620] sm:$0xff] }
0x1ddf   :  { %7934 = vmatpush1.bf16.msra.mxu1 %v7618_v56  ;;  %7892 = vmatprep.subr.bf16.mxu0 %v7585_v19  ;;  %v7636_v56 = vunpack.c.l.s8.bf16 %v7450_v58  ;;  %v7603_v19 = vunpack.c.h.s8.bf16 %v7433_v48  ;;  %v7601_v31 = vunpack.c.l.s8.bf16 %v7433_v48 }
0x1de0   :  { %7935 = vmatprep.subr.bf16.mxu1 %v7617_v37  ;;  %v7432_v37 = vld [vmem:[#allocation15 + $0x540] sm:$0xff]  ;;  %v7333_v50 = vadd.f32 %v7274_v16, %v7216_v60 }
0x1de1   :  { %v7602_v33 = vunpack.c.h.s8.bf16 %v7432_v37  ;;  %v7600_v25 = vunpack.c.l.s8.bf16 %v7432_v37  ;;  %v7476_v37 = vld [vmem:[#allocation15 + $0x6a0] sm:$0xff] }
0x1de2   :  { %7893 = vmatpush1.bf16.msra.mxu0 %v7584_v39  ;;  %v7448_v39 = vld [vmem:[#allocation15 + $0x5c0] sm:$0xff] }
0x1de3   :  { %7936 = vmatpush1.bf16.msra.mxu1 %v7616_v61  ;;  %7894 = vmatprep.subr.bf16.mxu0 %v7615_v0  ;;  %v7214_v61 = vmul.f32 %v7149_v47, %v10943_v21  ;;  %v7266_v0 = vrot.slane %v10917_v54, %v10150_v27  ;;  %v7634_v15 = vunpack.c.h.s8.bf16 %v7448_v39  ;;  %v7632_v54 = vunpack.c.l.s8.bf16 %v7448_v39 }
0x1de4   :  { %7937 = vmatprep.subr.bf16.mxu1 %v7647_v40 }
0x1de5   :  { %v7347_v40 = vadd.f32 %v7266_v0, %v7230_v51  ;;  %v7331_v21 = vadd.f32 %v7266_v0, %v7214_v61  ;;  %v7658_v0 = vunpack.c.h.s8.bf16 %v7460_v41 }
0x1de6   :  { %7895 = vmatpush2.bf16.msra.mxu0 %v7614_v8  ;;  %v7349_v8 = vadd.f32 %v7274_v16, %v7232_v2  ;;  %v7690_v16 = vunpack.c.h.s8.bf16 %v7476_v37 }
0x1de7   :  { %7938 = vmatpush2.bf16.msra.mxu1 %v7646_v18  ;;  %7896 = vmatprep.subr.bf16.mxu0 %v7613_v59  ;;  %v7633_v18 = vunpack.c.l.s8.bf16 %v7449_v44  ;;  %v7463_v59 = vld [vmem:[#allocation15 + $0x638] sm:$0xff]  ;;  %v7379_v1 = vmax.f32 %v7347_v40, 0.0  ;;  %v7363_v46 = vmax.f32 %v7331_v21, 0.0  ;;  %v7659_v44 = vunpack.c.h.s8.bf16 %v7461_v20 }
0x1de8   :  { %7939 = vmatprep.subr.bf16.mxu1 %v7645_v13  ;;  %v7479_v13 = vld [vmem:[#allocation15 + $0x6b8] sm:$0xff]  ;;  %v7661_v32 = vunpack.c.l.s8.bf16 %v7463_v59 }
0x1de9   :  { %v7695_v34 = vunpack.c.h.s8.bf16 %v7479_v13 }
0x1dea   :  { %7897 = vmatpush2.bf16.msra.mxu0 %v7612_v63  ;;  %v7663_v63 = vunpack.c.h.s8.bf16 %v7463_v59 }
0x1deb   :  { %7940 = vmatpush2.bf16.msra.mxu1 %v7644_v14  ;;  %7898 = vmatprep.subr.bf16.mxu0 %v7611_v62  ;;  %v7462_v14 = vld [vmem:[#allocation15 + $0x630] sm:$0xff]  ;;  %v7381_v62 = vmax.f32 %v7349_v8, 0.0 }
0x1dec   :  { %7941 = vmatprep.subr.bf16.mxu1 %v7643_v12  ;;  %v7478_v12 = vld [vmem:[#allocation15 + $0x6b0] sm:$0xff] }
0x1ded   :  { %v7694_v42 = vunpack.c.h.s8.bf16 %v7478_v12  ;;  %v7692_v47 = vunpack.c.l.s8.bf16 %v7478_v12  ;;  %v7474_v12 = vld [vmem:[#allocation15 + $0x690] sm:$0xff] }
0x1dee   :  { %7899 = vmatpush2.bf16.msra.mxu0 %v7610_v30  ;;  %v7365_v30 = vmax.f32 %v7333_v50, 0.0  ;;  %v7656_v50 = vunpack.c.l.s8.bf16 %v7460_v41 }
0x1def   :  { %7942 = vmatpush2.bf16.msra.mxu1 %v7642_v26  ;;  %7900 = vmatprep.subr.bf16.mxu0 %v7609_v35  ;;  %v7662_v26 = vunpack.c.h.s8.bf16 %v7462_v14  ;;  %v7780_v35 = vpack.c.bf16 %v7379_v1, %v7363_v46  ;;  %v7688_v1 = vunpack.c.l.s8.bf16 %v7476_v37  ;;  %v7487_v37 = vld [vmem:[#allocation15 + $0x6f8] sm:$0xff] }
0x1df0   :  { %7943 = vmatprep.subr.bf16.mxu1 %v7641_v49  ;;  %v10970_v49 = vld [vmem:[%s11065_s10 + $0x18] sm:$0xff] }
0x1df1   :  { %v7177_v58 = vrot.slane %v10970_v49, %v10126_v57 }
0x1df2   :  { %7901 = vmatpush2.bf16.msra.mxu0 %v7608_v24  ;;  %v7782_v24 = vpack.c.bf16 %v7381_v62, %v7365_v30 }
0x1df3   :  { %7944 = vmatpush2.bf16.msra.mxu1 %v7640_v11  ;;  %7902 = vmatprep.subr.bf16.mxu0 %v7607_v52  ;;  %v7169_v11 = vrot.slane %v10970_v49, %v10093_v9  ;;  %v7693_v52 = vunpack.c.l.s8.bf16 %v7479_v13 }
0x1df4   :  { %7945 = vmatprep.subr.bf16.mxu1 %v7639_v17 }
0x1df6   :  { %7903 = vmatpush2.bf16.msra.mxu0 %v7606_v29  ;;  %v7477_v29 = vld [vmem:[#allocation15 + $0x6a8] sm:$0xff] }
0x1df7   :  { %7946 = vmatpush2.bf16.msra.mxu1 %v7638_v6  ;;  %7904 = vmatprep.subr.bf16.mxu0 %v7605_v45  ;;  %v7660_v45 = vunpack.c.l.s8.bf16 %v7462_v14  ;;  %v7689_v8 = vunpack.c.l.s8.bf16 %v7477_v29 }
0x1df8   :  { %7947 = vmatprep.subr.bf16.mxu1 %v7637_v53  ;;  %v10983_v53 = vld [vmem:[%s11066_s11 + $0x18] sm:$0xff] }
0x1df9   :  { %v7286_v51 = vrot.slane %v10983_v53, %v10093_v9 }
0x1dfa   :  { %7905 = vmatpush2.bf16.msra.mxu0 %v7604_v5 }
0x1dfb   :  { %7948 = vmatpush2.bf16.msra.mxu1 %v7636_v56  ;;  %7906 = vmatprep.subr.bf16.mxu0 %v7603_v19  ;;  %v7691_v19 = vunpack.c.h.s8.bf16 %v7477_v29  ;;  %v7684_v29 = vunpack.c.l.s8.bf16 %v7474_v12 }
0x1dfc   :  { %7949 = vmatprep.subr.bf16.mxu1 %v7635_v4  ;;  %v7294_v4 = vrot.slane %v10983_v53, %v10126_v57  ;;  %v7475_v57 = vld [vmem:[#allocation15 + $0x698] sm:$0xff] }
0x1dfe   :  { %7907 = vmatpush2.bf16.msra.mxu0 %v7602_v33  ;;  %v7657_v33 = vunpack.c.l.s8.bf16 %v7461_v20  ;;  %v7473_v20 = vld [vmem:[#allocation15 + $0x688] sm:$0xff] }
0x1dff   :  { %7950 = vmatpush2.bf16.msra.mxu1 %v7634_v15  ;;  %7908 = vmatprep.subr.bf16.mxu0 %v7601_v31 }
0x1e00   :  { %7951 = vmatprep.subr.bf16.mxu1 %v7633_v18  ;;  %v7459_v18 = vld [vmem:[#allocation15 + $0x618] sm:$0xff] }
0x1e02   :  { %7909 = vmatpush2.bf16.msra.mxu0 %v7600_v25 }
0x1e03   :  { %7952 = vmatpush2.bf16.msra.mxu1 %v7632_v54  ;;  %7964 = vmatprep.subr.bf16.mxu0 %v7663_v63  ;;  %v7655_v54 = vunpack.c.h.s8.bf16 %v7459_v18  ;;  %v7458_v63 = vld [vmem:[#allocation15 + $0x610] sm:$0xff] }
0x1e04   :  { %8007 = vmatprep.subr.bf16.mxu1 %v7695_v34  ;;  %v7687_v34 = vunpack.c.h.s8.bf16 %v7475_v57 }
0x1e05   :  { %v10974_v17 = vpop.f32.mrf.mxu0  ;;  %7911 = vmatmul.mubr.bf16.vlgmr.msra.gmra.mxu0 %v7780_v35  ;;  %v7654_v35 = vunpack.c.h.s8.bf16 %v7458_v63 }
0x1e06   :  { %v10978_v6 = vpop.f32.mrf.mxu1  ;;  %7954 = vmatmul.mubr.bf16.vlgmr.msra.gmra.mxu1 %v7782_v24  ;;  %7965 = vmatpush1.bf16.msra.mxu0 %v7662_v26  ;;  %v7653_v24 = vunpack.c.l.s8.bf16 %v7459_v18  ;;  %v7469_v18 = vld [vmem:[#allocation15 + $0x668] sm:$0xff] }
0x1e07   :  { %8008 = vmatpush1.bf16.msra.mxu1 %v7694_v42  ;;  %v6989_v48 = vpop.f32.mrf.mxu0  ;;  %7966 = vmatprep.subr.bf16.mxu0 %v7661_v32  ;;  %v7686_v32 = vunpack.c.h.s8.bf16 %v7474_v12  ;;  %v7483_v12 = vld [vmem:[#allocation15 + $0x6d8] sm:$0xff] }
0x1e08   :  { %v7219_v5 = vmul.f32 %v7169_v11, %v6989_v48  ;;  %v7032_v56 = vpop.f32.mrf.mxu1  ;;  %8009 = vmatprep.subr.bf16.mxu1 %v7693_v52  ;;  %v7457_v52 = vld [vmem:[#allocation15 + $0x608] sm:$0xff]  ;;  %v7456_v48 = vld [vmem:[#allocation15 + $0x600] sm:$0xff] }
0x1e09   :  { %v7221_v2 = vmul.f32 %v7177_v58, %v7032_v56  ;;  %v10989_v39 = vpop.f32.mrf.mxu0  ;;  %v7650_v41 = vunpack.c.h.s8.bf16 %v7456_v48  ;;  %v7681_v56 = vunpack.c.l.s8.bf16 %v7473_v20 }
0x1e0a   :  { %v10991_v61 = vpop.f32.mrf.mxu1  ;;  %7967 = vmatpush1.bf16.msra.mxu0 %v7660_v45  ;;  %v7336_v40 = vadd.f32 %v7286_v51, %v7219_v5  ;;  %v7651_v45 = vunpack.c.h.s8.bf16 %v7457_v52 }
0x1e0b   :  { %8010 = vmatpush1.bf16.msra.mxu1 %v7692_v47  ;;  %v6993_v60 = vpop.f32.mrf.mxu0  ;;  %7968 = vmatprep.subr.bf16.mxu0 %v7659_v44  ;;  %v7338_v59 = vadd.f32 %v7294_v4, %v7221_v2  ;;  %v7683_v47 = vunpack.c.h.s8.bf16 %v7473_v20  ;;  %v7472_v44 = vld [vmem:[#allocation15 + $0x680] sm:$0xff]  ;;  %v7648_v2 = vunpack.c.l.s8.bf16 %v7456_v48  ;;  %v7701_v20 = vunpack.c.l.s8.bf16 %v7483_v12 }
0x1e0c   :  { %v7235_v15 = vmul.f32 %v7169_v11, %v6993_v60  ;;  %v7036_v31 = vpop.f32.mrf.mxu1  ;;  %8011 = vmatprep.subr.bf16.mxu1 %v7691_v19  ;;  %v7368_v14 = vmax.f32 %v7336_v40, 0.0  ;;  %v7685_v11 = vunpack.c.l.s8.bf16 %v7475_v57  ;;  %v7682_v5 = vunpack.c.h.s8.bf16 %v7472_v44  ;;  %v7471_v19 = vld [vmem:[#allocation15 + $0x678] sm:$0xff]  ;;  %v7470_v60 = vld [vmem:[#allocation15 + $0x670] sm:$0xff] }
0x1e0d   :  { %v7237_v21 = vmul.f32 %v7177_v58, %v7036_v31  ;;  %v7370_v46 = vmax.f32 %v7338_v59, 0.0  ;;  %v7652_v58 = vunpack.c.l.s8.bf16 %v7458_v63  ;;  %v7678_v40 = vunpack.c.h.s8.bf16 %v7470_v60  ;;  %v7485_v59 = vld [vmem:[#allocation15 + $0x6e8] sm:$0xff] }
0x1e0e   :  { %v7352_v13 = vadd.f32 %v7286_v51, %v7235_v15  ;;  %7969 = vmatpush1.bf16.msra.mxu0 %v7658_v0  ;;  %v7649_v51 = vunpack.c.l.s8.bf16 %v7457_v52  ;;  %v7679_v0 = vunpack.c.h.s8.bf16 %v7471_v19  ;;  %v7677_v31 = vunpack.c.l.s8.bf16 %v7471_v19 }
0x1e0f   :  { %v7354_v25 = vadd.f32 %v7294_v4, %v7237_v21  ;;  %8012 = vmatpush1.bf16.msra.mxu1 %v7690_v16  ;;  %7970 = vmatprep.subr.bf16.mxu0 %v7657_v33  ;;  %v7680_v4 = vunpack.c.l.s8.bf16 %v7472_v44  ;;  %v7711_v16 = vunpack.c.h.s8.bf16 %v7487_v37  ;;  %v7486_v33 = vld [vmem:[#allocation15 + $0x6f0] sm:$0xff]  ;;  %v7676_v21 = vunpack.c.l.s8.bf16 %v7470_v60 }
0x1e10   :  { %v7384_v62 = vmax.f32 %v7352_v13, 0.0  ;;  %8013 = vmatprep.subr.bf16.mxu1 %v7689_v8  ;;  %v7710_v15 = vunpack.c.h.s8.bf16 %v7486_v33  ;;  %v7709_v8 = vunpack.c.l.s8.bf16 %v7487_v37  ;;  %v7708_v57 = vunpack.c.l.s8.bf16 %v7486_v33  ;;  %v7480_v37 = vld [vmem:[#allocation15 + $0x6c0] sm:$0xff] }
0x1e11   :  { %v7386_v30 = vmax.f32 %v7354_v25, 0.0  ;;  %v7675_v13 = vunpack.c.h.s8.bf16 %v7469_v18  ;;  %v7707_v25 = vunpack.c.h.s8.bf16 %v7485_v59  ;;  %v7173_v48 = vrot.slane %v10970_v49, %v10123_v55 }
0x1e12   :  { %7971 = vmatpush1.bf16.msra.mxu0 %v7656_v50  ;;  %v7785_v26 = vpack.c.bf16 %v7384_v62, %v7368_v14  ;;  %v7468_v50 = vld [vmem:[#allocation15 + $0x660] sm:$0xff]  ;;  %v7673_v14 = vunpack.c.l.s8.bf16 %v7469_v18  ;;  %v7705_v62 = vunpack.c.l.s8.bf16 %v7485_v59  ;;  %v7698_v33 = vunpack.c.h.s8.bf16 %v7480_v37 }
0x1e13   :  { %8014 = vmatpush1.bf16.msra.mxu1 %v7688_v1  ;;  %v7787_v42 = vpack.c.bf16 %v7386_v30, %v7370_v46  ;;  %7972 = vmatprep.subr.bf16.mxu0 %v7655_v54  ;;  %v7484_v1 = vld [vmem:[#allocation15 + $0x6e0] sm:$0xff]  ;;  %v7674_v54 = vunpack.c.h.s8.bf16 %v7468_v50  ;;  %v7672_v46 = vunpack.c.l.s8.bf16 %v7468_v50 }
0x1e14   :  { %7996 = vmatprep.mubr.bf16.mxu0 %v7785_v26  ;;  %8015 = vmatprep.subr.bf16.mxu1 %v7687_v34  ;;  %v7706_v63 = vunpack.c.h.s8.bf16 %v7484_v1  ;;  %v7467_v34 = vld [vmem:[#allocation15 + $0x658] sm:$0xff]  ;;  %v7704_v30 = vunpack.c.l.s8.bf16 %v7484_v1 }
0x1e15   :  { %8039 = vmatprep.mubr.bf16.mxu1 %v7787_v42  ;;  %v7671_v26 = vunpack.c.h.s8.bf16 %v7467_v34  ;;  %v7703_v42 = vunpack.c.h.s8.bf16 %v7483_v12  ;;  %v7669_v52 = vunpack.c.l.s8.bf16 %v7467_v34 }
0x1e16   :  { %7973 = vmatpush1.bf16.msra.mxu0 %v7654_v35  ;;  %v7466_v35 = vld [vmem:[#allocation15 + $0x650] sm:$0xff] }
0x1e17   :  { %8016 = vmatpush1.bf16.msra.mxu1 %v7686_v32  ;;  %7974 = vmatprep.subr.bf16.mxu0 %v7653_v24  ;;  %v7482_v32 = vld [vmem:[#allocation15 + $0x6d0] sm:$0xff]  ;;  %v7670_v24 = vunpack.c.h.s8.bf16 %v7466_v35 }
0x1e18   :  { %8017 = vmatprep.subr.bf16.mxu1 %v7685_v11  ;;  %v7702_v11 = vunpack.c.h.s8.bf16 %v7482_v32 }
0x1e1a   :  { %7975 = vmatpush1.bf16.msra.mxu0 %v7652_v58  ;;  %v7465_v58 = vld [vmem:[#allocation15 + $0x648] sm:$0xff] }
0x1e1b   :  { %8018 = vmatpush1.bf16.msra.mxu1 %v7684_v29  ;;  %7976 = vmatprep.subr.bf16.mxu0 %v7651_v45  ;;  %v7165_v29 = vrot.slane %v10970_v49, %v10096_v10  ;;  %v7481_v45 = vld [vmem:[#allocation15 + $0x6c8] sm:$0xff] }
0x1e1c   :  { %8019 = vmatprep.subr.bf16.mxu1 %v7683_v47  ;;  %v7668_v47 = vunpack.c.l.s8.bf16 %v7466_v35  ;;  %v7699_v19 = vunpack.c.h.s8.bf16 %v7481_v45 }
0x1e1d   :  { %v7234_v44 = vmul.f32 %v7165_v29, %v10989_v39  ;;  %v7290_v39 = vrot.slane %v10983_v53, %v10123_v55  ;;  %v7696_v55 = vunpack.c.l.s8.bf16 %v7480_v37 }
0x1e1e   :  { %7977 = vmatpush1.bf16.msra.mxu0 %v7650_v41  ;;  %v7700_v41 = vunpack.c.l.s8.bf16 %v7482_v32  ;;  %v7509_v32 = vld [vmem:[#allocation15 + $0x7a8] sm:$0xff] }
0x1e1f   :  { %8020 = vmatpush1.bf16.msra.mxu1 %v7682_v5  ;;  %7978 = vmatprep.subr.bf16.mxu0 %v7649_v51  ;;  %v7667_v5 = vunpack.c.h.s8.bf16 %v7465_v58  ;;  %v7464_v51 = vld [vmem:[#allocation15 + $0x640] sm:$0xff] }
0x1e20   :  { %8021 = vmatprep.subr.bf16.mxu1 %v7681_v56  ;;  %v7236_v56 = vmul.f32 %v7173_v48, %v10991_v61  ;;  %v7666_v60 = vunpack.c.h.s8.bf16 %v7464_v51  ;;  %v7665_v61 = vunpack.c.l.s8.bf16 %v7465_v58  ;;  %v7664_v59 = vunpack.c.l.s8.bf16 %v7464_v51 }
0x1e21   :  { %v7310_v51 = vrot.slane %v10983_v53, %v10450_v22 }
0x1e22   :  { %7979 = vmatpush1.bf16.msra.mxu0 %v7648_v2  ;;  %v7218_v2 = vmul.f32 %v7165_v29, %v10974_v17  ;;  %v7492_v29 = vld [vmem:[#allocation15 + $0x720] sm:$0xff] }
0x1e23   :  { %8022 = vmatpush1.bf16.msra.mxu1 %v7680_v4  ;;  %7980 = vmatprep.subr.bf16.mxu0 %v7679_v0  ;;  %v7282_v4 = vrot.slane %v10983_v53, %v10096_v10  ;;  %v7220_v0 = vmul.f32 %v7173_v48, %v10978_v6  ;;  %v7302_v48 = vrot.slane %v10983_v53, %v10153_v28  ;;  %v7722_v37 = vunpack.c.h.s8.bf16 %v7492_v29 }
0x1e24   :  { %8023 = vmatprep.subr.bf16.mxu1 %v7711_v16 }
0x1e25   :  { %v7351_v16 = vadd.f32 %v7282_v4, %v7234_v44  ;;  %v7335_v17 = vadd.f32 %v7282_v4, %v7218_v2  ;;  %v7337_v18 = vadd.f32 %v7290_v39, %v7220_v0  ;;  %v7755_v44 = vunpack.c.h.s8.bf16 %v7509_v32 }
0x1e26   :  { %7981 = vmatpush2.bf16.msra.mxu0 %v7678_v40  ;;  %v7353_v40 = vadd.f32 %v7290_v39, %v7236_v56 }
0x1e27   :  { %8024 = vmatpush2.bf16.msra.mxu1 %v7710_v15  ;;  %7982 = vmatprep.subr.bf16.mxu0 %v7677_v31  ;;  %v7697_v15 = vunpack.c.l.s8.bf16 %v7481_v45  ;;  %v7495_v31 = vld [vmem:[#allocation15 + $0x738] sm:$0xff]  ;;  %v7383_v6 = vmax.f32 %v7351_v16, 0.0  ;;  %v7367_v1 = vmax.f32 %v7335_v17, 0.0  ;;  %v7753_v16 = vunpack.c.l.s8.bf16 %v7509_v32 }
0x1e28   :  { %8025 = vmatprep.subr.bf16.mxu1 %v7709_v8  ;;  %v7511_v8 = vld [vmem:[#allocation15 + $0x7b8] sm:$0xff]  ;;  %v7725_v34 = vunpack.c.l.s8.bf16 %v7495_v31 }
0x1e29   :  { %v7759_v50 = vunpack.c.h.s8.bf16 %v7511_v8 }
0x1e2a   :  { %7983 = vmatpush2.bf16.msra.mxu0 %v7676_v21  ;;  %v7727_v21 = vunpack.c.h.s8.bf16 %v7495_v31  ;;  %v7720_v31 = vunpack.c.l.s8.bf16 %v7492_v29 }
0x1e2b   :  { %8026 = vmatpush2.bf16.msra.mxu1 %v7708_v57  ;;  %7984 = vmatprep.subr.bf16.mxu0 %v7675_v13  ;;  %v7494_v57 = vld [vmem:[#allocation15 + $0x730] sm:$0xff]  ;;  %v7385_v13 = vmax.f32 %v7353_v40, 0.0 }
0x1e2c   :  { %8027 = vmatprep.subr.bf16.mxu1 %v7707_v25  ;;  %v7510_v25 = vld [vmem:[#allocation15 + $0x7b0] sm:$0xff] }
0x1e2e   :  { %7985 = vmatpush2.bf16.msra.mxu0 %v7674_v54  ;;  %v7369_v54 = vmax.f32 %v7337_v18, 0.0 }
0x1e2f   :  { %8028 = vmatpush2.bf16.msra.mxu1 %v7706_v63  ;;  %7986 = vmatprep.subr.bf16.mxu0 %v7673_v14  ;;  %v7726_v63 = vunpack.c.h.s8.bf16 %v7494_v57  ;;  %v7784_v14 = vpack.c.bf16 %v7383_v6, %v7367_v1 }
0x1e30   :  { %8029 = vmatprep.subr.bf16.mxu1 %v7705_v62  ;;  %v7758_v62 = vunpack.c.h.s8.bf16 %v7510_v25  ;;  %v7786_v12 = vpack.c.bf16 %v7385_v13, %v7369_v54 }
0x1e32   :  { %7987 = vmatpush2.bf16.msra.mxu0 %v7672_v46  ;;  %v7185_v46 = vrot.slane %v10970_v49, %v10153_v28 }
0x1e33   :  { %8030 = vmatpush2.bf16.msra.mxu1 %v7704_v30  ;;  %7988 = vmatprep.subr.bf16.mxu0 %v7671_v26  ;;  %v7757_v30 = vunpack.c.l.s8.bf16 %v7511_v8  ;;  %v7493_v26 = vld [vmem:[#allocation15 + $0x728] sm:$0xff] }
0x1e34   :  { %8031 = vmatprep.subr.bf16.mxu1 %v7703_v42  ;;  %v7193_v42 = vrot.slane %v10970_v49, %v10450_v22  ;;  %v7723_v58 = vunpack.c.h.s8.bf16 %v7493_v26  ;;  %v7721_v0 = vunpack.c.l.s8.bf16 %v7493_v26  ;;  %v7507_v22 = vld [vmem:[#allocation15 + $0x798] sm:$0xff] }
0x1e36   :  { %7989 = vmatpush2.bf16.msra.mxu0 %v7670_v24 }
0x1e37   :  { %8032 = vmatpush2.bf16.msra.mxu1 %v7702_v11  ;;  %7990 = vmatprep.subr.bf16.mxu0 %v7669_v52  ;;  %v7724_v11 = vunpack.c.l.s8.bf16 %v7494_v57  ;;  %v7506_v57 = vld [vmem:[#allocation15 + $0x790] sm:$0xff] }
0x1e38   :  { %8033 = vmatprep.subr.bf16.mxu1 %v7701_v20  ;;  %v7756_v20 = vunpack.c.l.s8.bf16 %v7510_v25 }
0x1e3a   :  { %7991 = vmatpush2.bf16.msra.mxu0 %v7668_v47 }
0x1e3b   :  { %8034 = vmatpush2.bf16.msra.mxu1 %v7700_v41  ;;  %7992 = vmatprep.subr.bf16.mxu0 %v7667_v5  ;;  %v7508_v41 = vld [vmem:[#allocation15 + $0x7a0] sm:$0xff] }
0x1e3c   :  { %8035 = vmatprep.subr.bf16.mxu1 %v7699_v19  ;;  %v7754_v4 = vunpack.c.h.s8.bf16 %v7508_v41  ;;  %v7752_v8 = vunpack.c.l.s8.bf16 %v7508_v41 }
0x1e3e   :  { %7993 = vmatpush2.bf16.msra.mxu0 %v7666_v60 }
0x1e3f   :  { %8036 = vmatpush2.bf16.msra.mxu1 %v7698_v33  ;;  %7994 = vmatprep.subr.bf16.mxu0 %v7665_v61  ;;  %v7491_v33 = vld [vmem:[#allocation15 + $0x718] sm:$0xff] }
0x1e40   :  { %8037 = vmatprep.subr.bf16.mxu1 %v7697_v15  ;;  %v7719_v18 = vunpack.c.h.s8.bf16 %v7491_v33 }
0x1e42   :  { %7995 = vmatpush2.bf16.msra.mxu0 %v7664_v59  ;;  %v7490_v59 = vld [vmem:[#allocation15 + $0x710] sm:$0xff] }
0x1e43   :  { %8038 = vmatpush2.bf16.msra.mxu1 %v7696_v55  ;;  %8050 = vmatprep.subr.bf16.mxu0 %v7727_v21  ;;  %v7751_v21 = vunpack.c.h.s8.bf16 %v7507_v22  ;;  %v7718_v1 = vunpack.c.h.s8.bf16 %v7490_v59 }
0x1e44   :  { %8093 = vmatprep.subr.bf16.mxu1 %v7759_v50 }
0x1e45   :  { %v11007_v35 = vpop.f32.mrf.mxu0  ;;  %7997 = vmatmul.mubr.bf16.vlgmr.msra.gmra.mxu0 %v7784_v14  ;;  %v7717_v14 = vunpack.c.l.s8.bf16 %v7491_v33 }
0x1e46   :  { %v11011_v24 = vpop.f32.mrf.mxu1  ;;  %8040 = vmatmul.mubr.bf16.vlgmr.msra.gmra.mxu1 %v7786_v12  ;;  %8051 = vmatpush1.bf16.msra.mxu0 %v7726_v63  ;;  %v7750_v63 = vunpack.c.h.s8.bf16 %v7506_v57  ;;  %v7505_v12 = vld [vmem:[#allocation15 + $0x788] sm:$0xff] }
0x1e47   :  { %8094 = vmatpush1.bf16.msra.mxu1 %v7758_v62  ;;  %v7075_v52 = vpop.f32.mrf.mxu0  ;;  %8052 = vmatprep.subr.bf16.mxu0 %v7725_v34  ;;  %v7749_v62 = vunpack.c.l.s8.bf16 %v7507_v22  ;;  %v7489_v34 = vld [vmem:[#allocation15 + $0x708] sm:$0xff]  ;;  %v7747_v32 = vunpack.c.h.s8.bf16 %v7505_v12  ;;  %v7745_v29 = vunpack.c.l.s8.bf16 %v7505_v12 }
0x1e48   :  { %v7223_v45 = vmul.f32 %v7185_v46, %v7075_v52  ;;  %v7118_v47 = vpop.f32.mrf.mxu1  ;;  %8095 = vmatprep.subr.bf16.mxu1 %v7757_v30  ;;  %v7748_v30 = vunpack.c.l.s8.bf16 %v7506_v57  ;;  %v7715_v26 = vunpack.c.h.s8.bf16 %v7489_v34  ;;  %v7513_v12 = vld [vmem:[#allocation15 + $0x7c8] sm:$0xff] }
0x1e49   :  { %v7225_v5 = vmul.f32 %v7193_v42, %v7118_v47  ;;  %v11017_v56 = vpop.f32.mrf.mxu0 }
0x1e4a   :  { %v11019_v19 = vpop.f32.mrf.mxu1  ;;  %8053 = vmatpush1.bf16.msra.mxu0 %v7724_v11  ;;  %v7340_v28 = vadd.f32 %v7302_v48, %v7223_v45  ;;  %v7504_v11 = vld [vmem:[#allocation15 + $0x780] sm:$0xff]  ;;  %v7503_v45 = vld [vmem:[#allocation15 + $0x778] sm:$0xff] }
0x1e4b   :  { %8096 = vmatpush1.bf16.msra.mxu1 %v7756_v20  ;;  %v7079_v2 = vpop.f32.mrf.mxu0  ;;  %8054 = vmatprep.subr.bf16.mxu0 %v7723_v58  ;;  %v7342_v61 = vadd.f32 %v7310_v51, %v7225_v5  ;;  %v7746_v20 = vunpack.c.h.s8.bf16 %v7504_v11  ;;  %v7713_v58 = vunpack.c.l.s8.bf16 %v7489_v34  ;;  %v7743_v41 = vunpack.c.h.s8.bf16 %v7503_v45  ;;  %v7502_v5 = vld [vmem:[#allocation15 + $0x770] sm:$0xff] }
0x1e4c   :  { %v7239_v39 = vmul.f32 %v7185_v46, %v7079_v2  ;;  %v7122_v60 = vpop.f32.mrf.mxu1  ;;  %8097 = vmatprep.subr.bf16.mxu1 %v7755_v44  ;;  %v7372_v6 = vmax.f32 %v7340_v28, 0.0  ;;  %v7716_v46 = vunpack.c.l.s8.bf16 %v7490_v59  ;;  %v7744_v44 = vunpack.c.l.s8.bf16 %v7504_v11  ;;  %v7499_v59 = vld [vmem:[#allocation15 + $0x758] sm:$0xff]  ;;  %v7496_v11 = vld [vmem:[#allocation15 + $0x740] sm:$0xff] }
0x1e4d   :  { %v7241_v40 = vmul.f32 %v7193_v42, %v7122_v60  ;;  %v7374_v13 = vmax.f32 %v7342_v61, 0.0  ;;  %v7488_v42 = vld [vmem:[#allocation15 + $0x700] sm:$0xff]  ;;  %v7742_v2 = vunpack.c.h.s8.bf16 %v7502_v5  ;;  %v7517_v60 = vld [vmem:[#allocation15 + $0x7e8] sm:$0xff]  ;;  %v7735_v57 = vunpack.c.h.s8.bf16 %v7499_v59 }
0x1e4e   :  { %v7356_v15 = vadd.f32 %v7302_v48, %v7239_v39  ;;  %8055 = vmatpush1.bf16.msra.mxu0 %v7722_v37  ;;  %v7714_v52 = vunpack.c.h.s8.bf16 %v7488_v42  ;;  %v7519_v48 = vld [vmem:[#allocation15 + $0x7f8] sm:$0xff]  ;;  %v7712_v47 = vunpack.c.l.s8.bf16 %v7488_v42  ;;  %v7518_v37 = vld [vmem:[#allocation15 + $0x7f0] sm:$0xff]  ;;  %v7501_v39 = vld [vmem:[#allocation15 + $0x768] sm:$0xff]  ;;  %v7771_v22 = vunpack.c.h.s8.bf16 %v7517_v60 }
0x1e4f   :  { %v7358_v17 = vadd.f32 %v7310_v51, %v7241_v40  ;;  %8098 = vmatpush1.bf16.msra.mxu1 %v7754_v4  ;;  %8056 = vmatprep.subr.bf16.mxu0 %v7721_v0  ;;  %v7775_v51 = vunpack.c.h.s8.bf16 %v7519_v48  ;;  %v7774_v4 = vunpack.c.h.s8.bf16 %v7518_v37  ;;  %v7741_v0 = vunpack.c.l.s8.bf16 %v7503_v45  ;;  %v7500_v40 = vld [vmem:[#allocation15 + $0x760] sm:$0xff] }
0x1e50   :  { %v7388_v55 = vmax.f32 %v7356_v15, 0.0  ;;  %8099 = vmatprep.subr.bf16.mxu1 %v7753_v16  ;;  %v7773_v28 = vunpack.c.l.s8.bf16 %v7519_v48  ;;  %v7740_v16 = vunpack.c.l.s8.bf16 %v7502_v5  ;;  %v7772_v33 = vunpack.c.l.s8.bf16 %v7518_v37  ;;  %v7516_v15 = vld [vmem:[#allocation15 + $0x7e0] sm:$0xff] }
0x1e51   :  { %v7390_v50 = vmax.f32 %v7358_v17, 0.0  ;;  %v7739_v61 = vunpack.c.h.s8.bf16 %v7501_v39  ;;  %v7770_v17 = vunpack.c.h.s8.bf16 %v7516_v15  ;;  %v7181_v34 = vrot.slane %v10970_v49, %v10150_v27 }
0x1e52   :  { %8057 = vmatpush1.bf16.msra.mxu0 %v7720_v31  ;;  %v7789_v25 = vpack.c.bf16 %v7388_v55, %v7372_v6  ;;  %v7738_v31 = vunpack.c.h.s8.bf16 %v7500_v40  ;;  %v7515_v6 = vld [vmem:[#allocation15 + $0x7d8] sm:$0xff]  ;;  %v7736_v55 = vunpack.c.l.s8.bf16 %v7500_v40  ;;  %v7298_v45 = vrot.slane %v10983_v53, %v10150_v27 }
0x1e53   :  { %8100 = vmatpush1.bf16.msra.mxu1 %v7752_v8  ;;  %v7791_v54 = vpack.c.bf16 %v7390_v50, %v7374_v13  ;;  %8058 = vmatprep.subr.bf16.mxu0 %v7719_v18  ;;  %v7737_v8 = vunpack.c.l.s8.bf16 %v7501_v39  ;;  %v7769_v18 = vunpack.c.l.s8.bf16 %v7517_v60  ;;  %v7498_v13 = vld [vmem:[#allocation15 + $0x750] sm:$0xff]  ;;  %v7767_v50 = vunpack.c.h.s8.bf16 %v7515_v6 }
0x1e54   :  { %8082 = vmatprep.mubr.bf16.mxu0 %v7789_v25  ;;  %8101 = vmatprep.subr.bf16.mxu1 %v7751_v21  ;;  %v7768_v21 = vunpack.c.l.s8.bf16 %v7516_v15  ;;  %v7514_v25 = vld [vmem:[#allocation15 + $0x7d0] sm:$0xff]  ;;  %v7730_v48 = vunpack.c.h.s8.bf16 %v7496_v11  ;;  %v7761_v5 = vunpack.c.l.s8.bf16 %v7513_v12  ;;  %v7728_v37 = vunpack.c.l.s8.bf16 %v7496_v11 }
0x1e55   :  { %8125 = vmatprep.mubr.bf16.mxu1 %v7791_v54  ;;  %v7766_v54 = vunpack.c.h.s8.bf16 %v7514_v25  ;;  %v7764_v42 = vunpack.c.l.s8.bf16 %v7514_v25 }
0x1e56   :  { %8059 = vmatpush1.bf16.msra.mxu0 %v7718_v1  ;;  %v7734_v1 = vunpack.c.h.s8.bf16 %v7498_v13 }
0x1e57   :  { %8102 = vmatpush1.bf16.msra.mxu1 %v7750_v63  ;;  %8060 = vmatprep.subr.bf16.mxu0 %v7717_v14  ;;  %v7733_v63 = vunpack.c.l.s8.bf16 %v7499_v59  ;;  %v7765_v14 = vunpack.c.l.s8.bf16 %v7515_v6 }
0x1e58   :  { %8103 = vmatprep.subr.bf16.mxu1 %v7749_v62  ;;  %v7497_v62 = vld [vmem:[#allocation15 + $0x748] sm:$0xff] }
0x1e5a   :  { %8061 = vmatpush1.bf16.msra.mxu0 %v7716_v46  ;;  %v7189_v46 = vrot.slane %v10970_v49, %v10469_v36 }
0x1e5b   :  { %8104 = vmatpush1.bf16.msra.mxu1 %v7748_v30  ;;  %8062 = vmatprep.subr.bf16.mxu0 %v7715_v26  ;;  %v7732_v30 = vunpack.c.l.s8.bf16 %v7498_v13  ;;  %v7238_v26 = vmul.f32 %v7181_v34, %v11017_v56  ;;  %v7306_v56 = vrot.slane %v10983_v53, %v10469_v36 }
0x1e5c   :  { %8105 = vmatprep.subr.bf16.mxu1 %v7747_v32  ;;  %v7731_v32 = vunpack.c.h.s8.bf16 %v7497_v62  ;;  %v7224_v49 = vmul.f32 %v7189_v46, %v11011_v24 }
0x1e5e   :  { %8063 = vmatpush1.bf16.msra.mxu0 %v7714_v52  ;;  %v7240_v52 = vmul.f32 %v7189_v46, %v11019_v19  ;;  %v7729_v19 = vunpack.c.l.s8.bf16 %v7497_v62 }
0x1e5f   :  { %8106 = vmatpush1.bf16.msra.mxu1 %v7746_v20  ;;  %8064 = vmatprep.subr.bf16.mxu0 %v7713_v58  ;;  %v7763_v20 = vunpack.c.h.s8.bf16 %v7513_v12  ;;  %v7512_v58 = vld [vmem:[#allocation15 + $0x7c0] sm:$0xff] }
0x1e60   :  { %8107 = vmatprep.subr.bf16.mxu1 %v7745_v29  ;;  %v7222_v29 = vmul.f32 %v7181_v34, %v11007_v35  ;;  %v7341_v35 = vadd.f32 %v7306_v56, %v7224_v49  ;;  %v7760_v24 = vunpack.c.l.s8.bf16 %v7512_v58 }
0x1e62   :  { %8065 = vmatpush1.bf16.msra.mxu0 %v7712_v47  ;;  %v7355_v47 = vadd.f32 %v7298_v45, %v7238_v26  ;;  %v7373_v53 = vmax.f32 %v7341_v35, 0.0 }
0x1e63   :  { %8108 = vmatpush1.bf16.msra.mxu1 %v7744_v44  ;;  %8066 = vmatprep.subr.bf16.mxu0 %v7743_v41  ;;  %v7762_v44 = vunpack.c.h.s8.bf16 %v7512_v58  ;;  %v7357_v41 = vadd.f32 %v7306_v56, %v7240_v52  ;;  %v8137_v58 = vld [vmem:[#allocation16 + $0x2] sm:$0x3] }
0x1e64   :  { %8109 = vmatprep.subr.bf16.mxu1 %v7775_v51  ;;  %v7339_v51 = vadd.f32 %v7298_v45, %v7222_v29  ;;  %v7387_v27 = vmax.f32 %v7355_v47, 0.0 }
0x1e66   :  { %8067 = vmatpush2.bf16.msra.mxu0 %v7742_v2  ;;  %v7389_v2 = vmax.f32 %v7357_v41, 0.0  ;;  %v7371_v36 = vmax.f32 %v7339_v51, 0.0  ;;  %v8142_v51 = vrot.slane %v8137_v58, %v10096_v10 }
0x1e67   :  { %8110 = vmatpush2.bf16.msra.mxu1 %v7774_v4  ;;  %8068 = vmatprep.subr.bf16.mxu0 %v7741_v0 }
0x1e68   :  { %8111 = vmatprep.subr.bf16.mxu1 %v7773_v28  ;;  %v7788_v4 = vpack.c.bf16 %v7387_v27, %v7371_v36  ;;  %v7790_v0 = vpack.c.bf16 %v7389_v2, %v7373_v53  ;;  %v8146_v53 = vrot.slane %v8137_v58, %v10093_v9  ;;  %v9518_v58 = vld [vmem:[#allocation6 + $0x30] sm:$0xff]  }
0x1e6a   :  { %8069 = vmatpush2.bf16.msra.mxu0 %v7740_v16 }
0x1e6b   :  { %8112 = vmatpush2.bf16.msra.mxu1 %v7772_v33  ;;  %8070 = vmatprep.subr.bf16.mxu0 %v7739_v61 }
0x1e6c   :  { %8113 = vmatprep.subr.bf16.mxu1 %v7771_v22 }
0x1e6e   :  { %8071 = vmatpush2.bf16.msra.mxu0 %v7738_v31 }
0x1e6f   :  { %8114 = vmatpush2.bf16.msra.mxu1 %v7770_v17  ;;  %8072 = vmatprep.subr.bf16.mxu0 %v7737_v8 }
0x1e70   :  { %8115 = vmatprep.subr.bf16.mxu1 %v7769_v18 }
0x1e72   :  { %8073 = vmatpush2.bf16.msra.mxu0 %v7736_v55 }
0x1e73   :  { %8116 = vmatpush2.bf16.msra.mxu1 %v7768_v21  ;;  %8074 = vmatprep.subr.bf16.mxu0 %v7735_v57 }
0x1e74   :  { %8117 = vmatprep.subr.bf16.mxu1 %v7767_v50 }
0x1e76   :  { %8075 = vmatpush2.bf16.msra.mxu0 %v7734_v1 }
0x1e77   :  { %8118 = vmatpush2.bf16.msra.mxu1 %v7766_v54  ;;  %8076 = vmatprep.subr.bf16.mxu0 %v7733_v63 }
0x1e78   :  { %8119 = vmatprep.subr.bf16.mxu1 %v7765_v14 }
0x1e7a   :  { %8077 = vmatpush2.bf16.msra.mxu0 %v7732_v30 }
0x1e7b   :  { %8120 = vmatpush2.bf16.msra.mxu1 %v7764_v42  ;;  %8078 = vmatprep.subr.bf16.mxu0 %v7731_v32 }
0x1e7c   :  { %8121 = vmatprep.subr.bf16.mxu1 %v7763_v20 }
0x1e7e   :  { %8079 = vmatpush2.bf16.msra.mxu0 %v7730_v48  ;;  %v8154_v48 = vld [vmem:[#allocation18 + $0x2] sm:$0x3] }
0x1e7f   :  { %8122 = vmatpush2.bf16.msra.mxu1 %v7762_v44  ;;  %8080 = vmatprep.subr.bf16.mxu0 %v7729_v19  ;;  %v8159_v35 = vrot.slane %v8154_v48, %v10096_v10 }
0x1e80   :  { %8123 = vmatprep.subr.bf16.mxu1 %v7761_v5 }
0x1e82   :  { %8081 = vmatpush2.bf16.msra.mxu0 %v7728_v37 }
0x1e83   :  { %8124 = vmatpush2.bf16.msra.mxu1 %v7760_v24 }
0x1e85   :  { %8083 = vmatmul.mubr.bf16.vlgmr.msra.gmra.mxu0 %v7788_v4  ;;  %v7826_v28 = vpop.f32.mrf.mxu0  ;;  %v8163_v4 = vrot.slane %v8154_v48, %v10093_v9  ;;  %v9523_v48 = vld [vmem:[#allocation6 + $0x58] sm:$0xff]  }
0x1e86   :  { %8126 = vmatmul.mubr.bf16.vlgmr.msra.gmra.mxu1 %v7790_v0  ;;  %v7869_v39 = vpop.f32.mrf.mxu1 }
0x1e87   :  { %v7828_v60 = vpop.f32.mrf.mxu0  ;;  %v7870_v57 = vadd.f32 %v7869_v39, %v7826_v28 }
0x1e88   :  { %v7871_v16 = vpop.f32.mrf.mxu1 }
0x1e89   :  { %v7830_v33 = vpop.f32.mrf.mxu0  ;;  %v7872_v50 = vadd.f32 %v7871_v16, %v7828_v60 }
0x1e8a   :  { %v7873_v61 = vpop.f32.mrf.mxu1 }
0x1e8b   :  { %v7832_v40 = vpop.f32.mrf.mxu0  ;;  %v7874_v54 = vadd.f32 %v7873_v61, %v7830_v33 }
0x1e8c   :  { %v7875_v22 = vpop.f32.mrf.mxu1 }
0x1e8d   :  { %v7876_v62 = vadd.f32 %v7875_v22, %v7832_v40 }
0x1ec5   :  { %v7912_v15 = vpop.f32.mrf.mxu0 }
0x1ec6   :  { %v7955_v31 = vpop.f32.mrf.mxu1  ;;  %v7913_v25 = vadd.f32 %v7912_v15, %v7870_v57 }
0x1ec7   :  { %v7914_v17 = vpop.f32.mrf.mxu0 }
0x1ec8   :  { %v7957_v8 = vpop.f32.mrf.mxu1  ;;  %v7915_v63 = vadd.f32 %v7914_v17, %v7872_v50  ;;  %v7956_v34 = vadd.f32 %v7955_v31, %v7913_v25 }
0x1ec9   :  { %v7916_v18 = vpop.f32.mrf.mxu0 }
0x1eca   :  { %v7959_v59 = vpop.f32.mrf.mxu1  ;;  %v7917_v12 = vadd.f32 %v7916_v18, %v7874_v54  ;;  %v7958_v30 = vadd.f32 %v7957_v8, %v7915_v63  ;;  %v9515_v63 = vld [vmem:[#allocation6 + $0x78] sm:$0xff]  }
0x1ecb   :  { %v7918_v6 = vpop.f32.mrf.mxu0  ;;  %8888 = vmatprep.subr.bf16.mxu0 %v9515_v63 }
0x1ecc   :  { %v7961_v55 = vpop.f32.mrf.mxu1  ;;  %v7919_v26 = vadd.f32 %v7918_v6, %v7876_v62  ;;  %v7960_v11 = vadd.f32 %v7959_v59, %v7917_v12 }
0x1ece   :  { %v7962_v29 = vadd.f32 %v7961_v55, %v7919_v26 }
0x1f05   :  { %v7998_v21 = vpop.f32.mrf.mxu0 }
0x1f06   :  { %v8041_v13 = vpop.f32.mrf.mxu1  ;;  %v7999_v42 = vadd.f32 %v7998_v21, %v7956_v34 }
0x1f07   :  { %v8000_v1 = vpop.f32.mrf.mxu0 }
0x1f08   :  { %v8043_v14 = vpop.f32.mrf.mxu1  ;;  %v8001_v52 = vadd.f32 %v8000_v1, %v7958_v30  ;;  %v8042_v45 = vadd.f32 %v8041_v13, %v7999_v42 }
0x1f09   :  { %v8002_v46 = vpop.f32.mrf.mxu0 }
0x1f0a   :  { %v8045_v32 = vpop.f32.mrf.mxu1  ;;  %v8003_v49 = vadd.f32 %v8002_v46, %v7960_v11  ;;  %v8044_v44 = vadd.f32 %v8043_v14, %v8001_v52 }
0x1f0b   :  { %v8004_v20 = vpop.f32.mrf.mxu0 }
0x1f0c   :  { %v8047_v56 = vpop.f32.mrf.mxu1  ;;  %v8005_v19 = vadd.f32 %v8004_v20, %v7962_v29  ;;  %v8046_v27 = vadd.f32 %v8045_v32, %v8003_v49  ;;  %v9517_v20 = vld [vmem:[#allocation6 + $0x70] sm:$0xff]   ;;  %v9519_v29 = vld [vmem:[#allocation6 + $0x68] sm:$0xff]   ;;  %v9521_v49 = vld [vmem:[#allocation6 + $0x60] sm:$0xff]  }
0x1f0e   :  { %v8048_v28 = vadd.f32 %v8047_v56, %v8005_v19  ;;  %v9522_v56 = vld [vmem:[#allocation6 + $0x20] sm:$0xff]   ;;  %v9526_v19 = vld [vmem:[#allocation6 + $0x10] sm:$0xff]  }
0x1f45   :  { %v8084_v47 = vpop.f32.mrf.mxu0 }
0x1f46   :  { %v8085_v41 = vadd.f32 %v8084_v47, %v8042_v45  ;;  %v8127_v5 = vpop.f32.mrf.mxu1  ;;  %v9520_v45 = vld [vmem:[#allocation6 + $0x28] sm:$0xff]   ;;  %v9524_v47 = vld [vmem:[#allocation6 + $0x18] sm:$0xff]  }
0x1f47   :  { %v8086_v37 = vpop.f32.mrf.mxu0 }
0x1f48   :  { %v8128_v24 = vadd.f32 %v8127_v5, %v8085_v41  ;;  %v8087_v2 = vadd.f32 %v8086_v37, %v8044_v44  ;;  %v8129_v36 = vpop.f32.mrf.mxu1  ;;  %v9525_v44 = vld [vmem:[#allocation6 + $0x50] sm:$0xff]   ;;  %v9527_v41 = vld [vmem:[#allocation6 + $0x48] sm:$0xff]  }
0x1f49   :  { %v8088_v0 = vpop.f32.mrf.mxu0  ;;  %v9528_v5 = vld [vmem:[#allocation6 + $0x8] sm:$0xff]  }
0x1f4a   :  { %v8149_v39 = vmul.f32 %v8142_v51, %v8128_v24  ;;  %v8130_v60 = vadd.f32 %v8129_v36, %v8087_v2  ;;  %v8089_v16 = vadd.f32 %v8088_v0, %v8046_v27  ;;  %v8131_v33 = vpop.f32.mrf.mxu1 }
0x1f4b   :  { %v8090_v61 = vpop.f32.mrf.mxu0 }
0x1f4c   :  { %v8166_v40 = vadd.f32 %v8159_v35, %v8149_v39  ;;  %v8150_v22 = vmul.f32 %v8146_v53, %v8130_v60  ;;  %v8132_v15 = vadd.f32 %v8131_v33, %v8089_v16  ;;  %v8091_v31 = vadd.f32 %v8090_v61, %v8048_v28  ;;  %v8133_v17 = vpop.f32.mrf.mxu1  ;;  %v8177_v39 = vld [vmem:[#allocation21 + $0x2] sm:$0x3] }
0x1f4e   :  { %v8167_v8 = vadd.f32 %v8163_v4, %v8150_v22  ;;  %v8151_v18 = vmul.f32 %v8142_v51, %v8132_v15  ;;  %v8134_v59 = vadd.f32 %v8133_v17, %v8091_v31  ;;  %v8170_v21 = vadd.f32 %v8166_v40, %v10869_v3  ;;  %v9529_v51 = vld [vmem:[#allocation6 + $0x40] sm:$0xff]  }
0x1f4f   :  { %v8229_v40 = vrot.slane %v8177_v39, %v10096_v10  ;;  %v8233_v22 = vrot.slane %v8177_v39, %v10093_v9 }
0x1f50   :  { %v8168_v6 = vadd.f32 %v8159_v35, %v8151_v18  ;;  %v8152_v55 = vmul.f32 %v8146_v53, %v8134_v59  ;;  %v8171_v57 = vadd.f32 %v8167_v8, %v10871_v43  ;;  %v9530_v35 = vld [vmem:[#allocation6] sm:$0xff]  }
0x1f52   :  { %v8169_v13 = vadd.f32 %v8163_v4, %v8152_v55  ;;  %v8178_v50 = vadd.f32 %v8171_v57, %v8170_v21  ;;  %v8172_v25 = vadd.f32 %v8168_v6, %v10873_v23  ;;  %v8782_v4 = vld [vmem:[%s11072_s17 + $0x2] sm:$0x3] }
0x1f53   :  { %v8214_v16 = vrot.slane %v8782_v4, %v10096_v10  ;;  %v8218_v33 = vrot.slane %v8782_v4, %v10093_v9 }
0x1f54   :  { %8179 = vadd.xlane.f32.xlu0 %v8178_v50  ;;  %v8173_v1 = vadd.f32 %v8169_v13, %v10875_v38  ;;  %v9516_v38 = vld [vmem:[#allocation6 + $0x38] sm:$0xff]  }
0x1f55   :  { %8889 = vmatpush3.bf16.msra.mxu0 %v9516_v38 }
0x1f56   :  { %v8181_v54 = vadd.f32 %v8173_v1, %v8172_v25  ;;  %8890 = vmatprep.subr.bf16.mxu0 %v9517_v20 }
0x1f58   :  { %8182 = vadd.xlane.f32.xlu1 %v8181_v54  ;;  %v8783_v54 = vld [vmem:[#allocation7] ss:$0 sm:$0xff] }
0x1f59   :  { %8891 = vmatpush3.bf16.msra.mxu0 %v9518_v58 }
0x1f5a   :  { %8892 = vmatprep.subr.bf16.mxu0 %v9519_v29 }
0x1f5d   :  { %8893 = vmatpush3.bf16.msra.mxu0 %v9520_v45 }
0x1f5e   :  { %8894 = vmatprep.subr.bf16.mxu0 %v9521_v49 }
0x1f61   :  { %8895 = vmatpush3.bf16.msra.mxu0 %v9522_v56 }
0x1f62   :  { %8896 = vmatprep.subr.bf16.mxu0 %v9523_v48 }
0x1f65   :  { %8897 = vmatpush3.bf16.msra.mxu0 %v9524_v47 }
0x1f66   :  { %8898 = vmatprep.subr.bf16.mxu0 %v9525_v44 }
0x1f69   :  { %8899 = vmatpush3.bf16.msra.mxu0 %v9526_v19 }
0x1f6a   :  { %8900 = vmatprep.subr.bf16.mxu0 %v9527_v41 }
0x1f6d   :  { %8901 = vmatpush3.bf16.msra.mxu0 %v9528_v5 }
0x1f6e   :  { %8902 = vmatprep.subr.bf16.mxu0 %v9529_v51 }
0x1f71   :  { %8903 = vmatpush3.bf16.msra.mxu0 %v9530_v35 }
0x1fdd   :  { %v8180_v14 = vpop.xlane.xlu0 %8179 }
0x1fde   :  { %v8184_v62 = vmul.f32 0.00390625, %v8180_v14 }
0x1fe0   :  { %v8186_v34 = vsub.f32 %v8170_v21, %v8184_v62  ;;  %v8187_v12 = vsub.f32 %v8171_v57, %v8184_v62 }
0x1fe1   :  { %v8183_v46 = vpop.xlane.xlu1 %8182 }
0x1fe2   :  { %v8185_v30 = vmul.f32 0.00390625, %v8183_v46  ;;  %v8190_v3 = vmul.f32 %v8186_v34, %v8186_v34  ;;  %v8191_v26 = vmul.f32 %v8187_v12, %v8187_v12 }
0x1fe4   :  { %v8188_v43 = vsub.f32 %v8172_v25, %v8185_v30  ;;  %v8189_v42 = vsub.f32 %v8173_v1, %v8185_v30  ;;  %v8194_v32 = vadd.f32 %v8191_v26, %v8190_v3  ;;  %v8419_v1 = vand.u32 127, %v239_v7 }
0x1fe6   :  { %8195 = vadd.xlane.f32.xlu0 %v8194_v32  ;;  %v8192_v11 = vmul.f32 %v8188_v43, %v8188_v43  ;;  %v8193_v23 = vmul.f32 %v8189_v42, %v8189_v42  ;;  %vm8420_vm4 = vcmp.lt.s32.totalorder %v8419_v1, 2 }
0x1fe8   :  { %v8197_v52 = vadd.f32 %v8193_v23, %v8192_v11 }
0x1fea   :  { %8198 = vadd.xlane.f32.xlu1 %v8197_v52 }
0x206f   :  { %v8196_v37 = vpop.xlane.xlu0 %8195 }
0x2070   :  { %v8200_v27 = vmul.f32 0.00390625, %v8196_v37 }
0x2072   :  { %v8202_v24 = vadd.f32 1e-05, %v8200_v27 }
0x2073   :  { %v8199_v2 = vpop.xlane.xlu1 %8198 }
0x2074   :  { %9607 = vrsqrt.f32 %v8202_v24  ;;  %v8201_v36 = vmul.f32 0.00390625, %v8199_v2 }
0x2076   :  { %v8203_v53 = vadd.f32 1e-05, %v8201_v36 }
0x2078   :  { %9609 = vrsqrt.f32 %v8203_v53 }
0x2081   :  { %v9608_v0 = vpop.eup %9607 }
0x2082   :  { %v8206_v28 = vmul.f32 %v9608_v0, %v8186_v34  ;;  %v8207_v60 = vmul.f32 %v9608_v0, %v8187_v12 }
0x2084   :  { %v8221_v17 = vmul.f32 %v8214_v16, %v8206_v28  ;;  %v8222_v8 = vmul.f32 %v8218_v33, %v8207_v60 }
0x2085   :  { %v9610_v61 = vpop.eup %9609 }
0x2086   :  { %v8208_v15 = vmul.f32 %v9610_v61, %v8188_v43  ;;  %v8209_v31 = vmul.f32 %v9610_v61, %v8189_v42  ;;  %v8236_v6 = vadd.f32 %v8229_v40, %v8221_v17  ;;  %v8237_v55 = vadd.f32 %v8233_v22, %v8222_v8 }
0x2088   :  { %v8223_v18 = vmul.f32 %v8214_v16, %v8208_v15  ;;  %v8224_v59 = vmul.f32 %v8218_v33, %v8209_v31 }
0x208a   :  { %v8238_v21 = vadd.f32 %v8229_v40, %v8223_v18  ;;  %v8239_v57 = vadd.f32 %v8233_v22, %v8224_v59 }
0x208c   :  { %v8241_v13 = vpack.c.bf16 %v8239_v57, %v8237_v55  ;;  %v8240_v50 = vpack.c.bf16 %v8238_v21, %v8236_v6 }
0x208e   :  { %8409 = vmatprep.mubr.bf16.mxu0 %v8241_v13 }
0x208f   :  { %8410 = vmatmul.mubr.bf16.vlgmr.msra.gmra.mxu0 %v8240_v50 }
0x214f   :  { %v8904_v25 = vpop.f32.mrf.mxu0 }
0x2151   :  { %v8905_v10 = vpop.f32.mrf.mxu0 }
0x2152   :  { %v8906_v9 = vadd.f32 %v8905_v10, %v8904_v25 }
0x2153   :  { %v8907_v63 = vpop.f32.mrf.mxu0 }
0x2154   :  { %v8412_v14 = vadd.f32 %v8906_v9, %v8783_v54 }
0x2155   :  { %v8908_v62 = vpop.f32.mrf.mxu0 }
0x2156   :  { %v8909_v34 = vadd.f32 %v8908_v62, %v8907_v63  ;;  %v8421_v12 = vsel %vm8420_vm4, %v8412_v14, -1e+30 }
0x2157   :  { %8423 = vmax.xlane.f32.xlu0 %v8421_v12 }
0x2158   :  { %v8415_v46 = vadd.f32 %v8909_v34, %v8783_v54 }
0x215a   :  { %v8422_v30 = vsel %vm8420_vm4, %v8415_v46, -1e+30 }
0x215b   :  { %8425 = vmax.xlane.f32.xlu1 %v8422_v30 }
0x21e0   :  { %v8424_v3 = vpop.xlane.xlu0 %8423 }
0x21e1   :  { %v8427_v26 = vsub.f32 %v8421_v12, %v8424_v3 }
0x21e3   :  { %v8429_v43 = vmul.f32 1.442695, %v8427_v26 }
0x21e4   :  { %v8426_v42 = vpop.xlane.xlu1 %8425 }
0x21e5   :  { %9611 = vpow2.f32 %v8429_v43  ;;  %v8428_v32 = vsub.f32 %v8422_v30, %v8426_v42 }
0x21e7   :  { %v8431_v7 = vmul.f32 1.442695, %v8428_v32 }
0x21e9   :  { %9613 = vpow2.f32 %v8431_v7 }
0x21f2   :  { %v9612_v11 = vpop.eup %9611 }
0x21f3   :  { %8433 = vadd.xlane.f32.xlu0 %v9612_v11 }
0x21f6   :  { %v9614_v23 = vpop.eup %9613 }
0x21f7   :  { %8435 = vadd.xlane.f32.xlu1 %v9614_v23 }
0x227c   :  { %v8434_v52 = vpop.xlane.xlu0 %8433 }
0x227d   :  { %9615 = vrcp.f32 %v8434_v52 }
0x2280   :  { %v8436_v38 = vpop.xlane.xlu1 %8435 }
0x2281   :  { %9617 = vrcp.f32 %v8436_v38 }
0x228a   :  { %v9616_v20 = vpop.eup %9615 }
0x228b   :  { %v8438_v58 = vmul.f32 %v9616_v20, %v9612_v11 }
0x228d   :  { %8441 = vst [vmem:[%s11074_s19] sm:$0xff] %v8438_v58 }
0x228e   :  { %v9618_v29 = vpop.eup %9617 }
0x228f   :  { %v8440_v45 = vmul.f32 %v9618_v29, %v9614_v23 }
0x2291   :  { %8442 = vst [vmem:[%s11074_s19 + $0x8] sm:$0xff] %v8440_v45 }
0x2292   :  { %8447 = vsyncpa [#allocation3], 1 }
0x2293   :  { %8448 = vsyncpa [#allocation5], 1 }
0x2294   :  { %8449 = vsyncpa [#allocation8], 1 }
0x2295   :  { %8450 = vsyncpa [#allocation11], 1 }
0x2296   :  { %8451 = vsyncpa [#allocation14], 1 }
0x2297   :  { %8452 = vsyncpa [#allocation17], 1 }
0x2298   :  { %8453 = vsyncpa [#allocation20], 1 }

</bundles_post_ra>
